<compile_context>
chip_gen: v7x
topology: tpu7x:2x2x1
jax: 0.10.0
libtpu: 0.0.40
codegen_flags: <defaults>
</compile_context>

<pallas_src>
import jax
import jax.numpy as jnp
from jax.experimental import pallas as pl
from jax.experimental.pallas import tpu as pltpu

FRAME_SIZE = 64          # must be a multiple of 64 (six MaxPool1d(2) stages)
HIDDEN = 128
NUM_LAYERS = 7
CHANNELS = [1, 32, 64, 128, 256, 512, 1024]
VMEM_LIMIT = 48 * 1024 * 1024   # <= v7x physical (64 MiB), plenty on v5e/v6e


def _round_up(x, m):
    return (x + m - 1) // m * m


def _sigmoid(z):
    # tanh-based sigmoid: numerically robust (no exp overflow) and runs on EUP.
    return 0.5 * (jnp.tanh(0.5 * z) + 1.0)


# ----------------------------------------------------------------------------
# Fused CNN: 6 x (Conv1d(k=3, pad=1) + ReLU + MaxPool1d(2)) in one kernel.
# Activations are length-major channels-last: (L, Nb, C).
# ----------------------------------------------------------------------------
def _conv_relu_pool_block(h, w_ref, b_ref):
    """One conv stage. h: (L, Nb, cin) value; w_ref: (3, cin, cout); b_ref: (1, cout)."""
    L, Nb, cin = h.shape
    cout = w_ref.shape[2]

    # Shift the INPUT along the length axis (cin channels; cheaper than shifting
    # the cout-wide outputs).  Zero rows implement Conv1d padding=1.
    zrow = jnp.zeros((1, Nb, cin), jnp.float32)
    h_prev = jnp.concatenate([zrow, h[:L - 1]], axis=0)   # x[l-1]
    h_next = jnp.concatenate([h[1:], zrow], axis=0)       # x[l+1]

    def tap(hv, k):
        hf = hv.reshape(L * Nb, cin)       # merge leading dims: layout-preserving
        wk = w_ref[k]                      # (cin, cout)
        if cin == 1:
            return hf * wk                 # degenerate K=1 conv -> broadcast mul (VPU)
        return jnp.dot(hf, wk, preferred_element_type=jnp.float32)  # MXU, M = L*Nb

    y = tap(h_prev, 0) + tap(h, 1) + tap(h_next, 2) + b_ref[...]    # conv + bias
    y = jnp.maximum(y, 0.0).reshape(L, Nb, cout)                    # ReLU

    # MaxPool1d(kernel=2, stride=2): pair adjacent length positions.
    y_pairs = y.reshape(L // 2, 2, Nb, cout)                        # split leading dim
    return jnp.maximum(y_pairs[:, 0], y_pairs[:, 1])                # (L//2, Nb, cout)


def _cnn_kernel(x_ref, *refs):
    # refs = (w1, b1, w2, b2, ..., w6, b6, out_ref)
    o_ref = refs[-1]
    h = x_ref[...]                                         # (F, Nb, 1)
    for li in range(len(CHANNELS) - 1):
        h = _conv_relu_pool_block(h, refs[2 * li], refs[2 * li + 1])
    o_ref[...] = h                                         # (F//64, Nb, 1024)


def cnn_forward(x_lm, conv_params):
    """x_lm: (F, N, 1) length-major, channels-last. Returns (F//64, N, 1024)."""
    F, N, _ = x_lm.shape
    Lo = F // 64
    Nb = 128 if N >= 128 else _round_up(N, 8)              # samples per grid step
    N_pad = _round_up(N, Nb)
    if N_pad != N:
        x_lm = jnp.pad(x_lm, ((0, 0), (0, N_pad - N), (0, 0)))

    in_specs = [pl.BlockSpec((F, Nb, 1), lambda n: (0, n, 0))]
    args = [x_lm]
    for (w, b) in conv_params:
        in_specs.append(pl.BlockSpec(w.shape, lambda n: (0, 0, 0)))
        in_specs.append(pl.BlockSpec(b.shape, lambda n: (0, 0)))
        args.extend([w, b])

    out = pl.pallas_call(
        _cnn_kernel,
        out_shape=jax.ShapeDtypeStruct((Lo, N_pad, CHANNELS[-1]), jnp.float32),
        grid=(N_pad // Nb,),
        in_specs=in_specs,
        out_specs=pl.BlockSpec((Lo, Nb, CHANNELS[-1]), lambda n: (0, n, 0)),
        compiler_params=pltpu.CompilerParams(
            dimension_semantics=("parallel",),
            vmem_limit_bytes=VMEM_LIMIT,
        ),
    )(*args)
    return out[:, :N, :]


# ----------------------------------------------------------------------------
# 7-layer LSTM (batch_first) + Linear(128, 2) + Sigmoid, fully in one kernel.
# ----------------------------------------------------------------------------
def _make_lstm_dense_kernel(B_blk, T, Din, H, NL):
    def kernel(x_ref, h0_ref, c0_ref, wih0_ref, wihr_ref, whh_ref, b_ref,
               wd_ref, bd_ref, y_ref, hn_ref, cn_ref, hseq_ref, gx_ref):
        # x_ref:    (1, T*B_blk, Din)  rows ordered (t, b) inside the batch block
        # h0/c0:    (1, NL, B_blk, H)  initial state
        # hseq_ref: (T, B_blk, H)      current layer's output sequence (VMEM scratch)
        # gx_ref:   (T, B_blk, 4H)     hoisted input-side gate pre-activations
        for layer in range(NL):
            w_hh = whh_ref[layer]                              # (H, 4H)
            bias = b_ref[layer]                                # (1, 4H)

            # Hoisted input projection: ONE batched matmul per layer (bias folded in).
            if layer == 0:
                xin = x_ref[0]                                 # (T*B_blk, Din)
                w_ih = wih0_ref[...]                           # (Din, 4H)
            else:
                xin = hseq_ref[...].reshape(T * B_blk, H)
                w_ih = wihr_ref[layer - 1]                     # (H, 4H)
            gx = jnp.dot(xin, w_ih, preferred_element_type=jnp.float32) + bias
            gx_ref[...] = gx.reshape(T, B_blk, 4 * H)

            h_init = h0_ref[0, layer]                          # (B_blk, H)
            c_init = c0_ref[0, layer]

            def step(t, carry):
                h, c = carry
                gates = gx_ref[t] + jnp.dot(
                    h, w_hh, preferred_element_type=jnp.float32)
                i_g = _sigmoid(gates[:, 0 * H:1 * H])          # PyTorch gate order i,f,g,o
                f_g = _sigmoid(gates[:, 1 * H:2 * H])
                g_g = jnp.tanh(gates[:, 2 * H:3 * H])
                o_g = _sigmoid(gates[:, 3 * H:4 * H])
                c = f_g * c + i_g * g_g
                h = o_g * jnp.tanh(c)
                hseq_ref[t] = h
                return (h, c)

            h_last, c_last = jax.lax.fori_loop(0, T, step, (h_init, c_init))
            hn_ref[0, layer] = h_last
            cn_ref[0, layer] = c_last
            # TODO(synk): inter-layer LSTM dropout (p=0.5) is identity in eval mode.

        # Fused Linear(H, 2) + Sigmoid over all timesteps at once.
        hall = hseq_ref[...].reshape(T * B_blk, H)
        y_ref[0] = _sigmoid(
            jnp.dot(hall, wd_ref[...], preferred_element_type=jnp.float32)
            + bd_ref[...])

    return kernel


def lstm_dense_forward(feats, params, state=None):
    """feats: (B, T, Din). Returns y (B, T, 2) and (hn, cn) each (NL, B, H)."""
    B, T, Din = feats.shape
    H, NL = HIDDEN, NUM_LAYERS
    # Split the batch across TensorCores (v7x has 2) when there is enough work.
    n_blocks = 2 if B > 8 else 1
    B_blk = _round_up(pl.cdiv(B, n_blocks), 8)   # multiple of 8 -> layout-safe reshapes
    B_pad = n_blocks * B_blk

    x = jnp.pad(feats.astype(jnp.float32), ((0, B_pad - B), (0, 0), (0, 0)))
    x_blk = (x.reshape(n_blocks, B_blk, T, Din)
              .transpose(0, 2, 1, 3)                       # time-major inside block
              .reshape(n_blocks, T * B_blk, Din))

    if state is None:
        h0 = jnp.zeros((NL, B_pad, H), jnp.float32)
        c0 = jnp.zeros((NL, B_pad, H), jnp.float32)
    else:
        h0_in, c0_in = state                               # each (NL, B, H)
        h0 = jnp.pad(h0_in.astype(jnp.float32), ((0, 0), (0, B_pad - B), (0, 0)))
        c0 = jnp.pad(c0_in.astype(jnp.float32), ((0, 0), (0, B_pad - B), (0, 0)))
    h0_blk = h0.reshape(NL, n_blocks, B_blk, H).transpose(1, 0, 2, 3)
    c0_blk = c0.reshape(NL, n_blocks, B_blk, H).transpose(1, 0, 2, 3)

    kernel = _make_lstm_dense_kernel(B_blk, T, Din, H, NL)
    blk3 = lambda i: (i, 0, 0)
    blk4 = lambda i: (i, 0, 0, 0)
    full2 = lambda i: (0, 0)
    full3 = lambda i: (0, 0, 0)

    y_flat, hn_blk, cn_blk = pl.pallas_call(
        kernel,
        out_shape=(
            jax.ShapeDtypeStruct((n_blocks, T * B_blk, 2), jnp.float32),
            jax.ShapeDtypeStruct((n_blocks, NL, B_blk, H), jnp.float32),
            jax.ShapeDtypeStruct((n_blocks, NL, B_blk, H), jnp.float32),
        ),
        grid=(n_blocks,),
        in_specs=[
            pl.BlockSpec((1, T * B_blk, Din), blk3),
            pl.BlockSpec((1, NL, B_blk, H), blk4),
            pl.BlockSpec((1, NL, B_blk, H), blk4),
            pl.BlockSpec(params["wih0"].shape, full2),
            pl.BlockSpec(params["wihr"].shape, full3),
            pl.BlockSpec(params["whh"].shape, full3),
            pl.BlockSpec(params["b"].shape, full3),
            pl.BlockSpec(params["wd"].shape, full2),
            pl.BlockSpec(params["bd"].shape, full2),
        ],
        out_specs=(
            pl.BlockSpec((1, T * B_blk, 2), blk3),
            pl.BlockSpec((1, NL, B_blk, H), blk4),
            pl.BlockSpec((1, NL, B_blk, H), blk4),
        ),
        scratch_shapes=[
            pltpu.VMEM((T, B_blk, H), jnp.float32),
            pltpu.VMEM((T, B_blk, 4 * H), jnp.float32),
        ],
        compiler_params=pltpu.CompilerParams(
            dimension_semantics=("parallel",),
            vmem_limit_bytes=VMEM_LIMIT,
        ),
    )(x_blk, h0_blk, c0_blk, params["wih0"], params["wihr"], params["whh"],
      params["b"], params["wd"], params["bd"])

    y = (y_flat.reshape(n_blocks, T, B_blk, 2)
               .transpose(0, 2, 1, 3)
               .reshape(B_pad, T, 2))[:B]
    hn = hn_blk.transpose(1, 0, 2, 3).reshape(NL, B_pad, H)[:, :B]
    cn = cn_blk.transpose(1, 0, 2, 3).reshape(NL, B_pad, H)[:, :B]
    return y, (hn, cn)


# ----------------------------------------------------------------------------
# Parameters (deterministic synthetic init) and full forward pass
# ----------------------------------------------------------------------------
def init_params(key, frame_size=FRAME_SIZE):
    keys = jax.random.split(key, 32)
    ki = iter(keys)
    conv = []
    for cin, cout in zip(CHANNELS[:-1], CHANNELS[1:]):
        std = (cin * 3) ** -0.5
        # NOTE: PyTorch Conv1d stores (cout, cin, k); we store (k, cin, cout).
        w = jax.random.normal(next(ki), (3, cin, cout), jnp.float32) * std
        b = jax.random.normal(next(ki), (1, cout), jnp.float32) * std
        conv.append((w, b))
    H = HIDDEN
    interface = frame_size * 16
    s = H ** -0.5
    wih0 = jax.random.normal(next(ki), (interface, 4 * H), jnp.float32) * s
    wihr = jax.random.normal(next(ki), (NUM_LAYERS - 1, H, 4 * H), jnp.float32) * s
    whh = jax.random.normal(next(ki), (NUM_LAYERS, H, 4 * H), jnp.float32) * s
    b_l = jax.random.normal(next(ki), (NUM_LAYERS, 1, 4 * H), jnp.float32) * s
    wd = jax.random.normal(next(ki), (H, 2), jnp.float32) * s
    bd = jax.random.normal(next(ki), (1, 2), jnp.float32) * s
    return dict(conv=conv, wih0=wih0, wihr=wihr, whh=whh, b=b_l, wd=wd, bd=bd)


def v2_extra_large_forward(batch_inputs, params, state=None):
    # batch_inputs: (batch, seq_len, frame_size), float32
    B, T, F = batch_inputs.shape
    assert F % 64 == 0, "frame_size must be divisible by 64 (six MaxPool1d(2) stages)"
    N = B * T
    # Length-major channels-last layout for the fused CNN kernel: (F, N, 1).
    x_lm = batch_inputs.astype(jnp.float32).reshape(N, F).T.reshape(F, N, 1)
    cnn_out = cnn_forward(x_lm, params["conv"])        # (Lo, N, 1024)
    # TODO(synk): nn.Dropout(0.5) after the CNN is identity in eval mode.
    Lo = F // 64
    # PyTorch flattens (C=1024, Lo) channel-major per sample before the LSTM.
    feats = jnp.transpose(cnn_out, (1, 2, 0)).reshape(B, T, CHANNELS[-1] * Lo)
    y, (hn, cn) = lstm_dense_forward(feats, params, state)
    return y, (hn, cn)


if __name__ == "__main__":
    B, T, F = 2, 4, FRAME_SIZE
    key = jax.random.PRNGKey(0)
    x = jax.random.normal(key, (B, T, F), jnp.float32)
    params = init_params(jax.random.PRNGKey(0))

    out, (h_n, c_n) = v2_extra_large_forward(x, params)
    jax.block_until_ready((out, h_n, c_n))

    assert out.shape == (B, T, 2)
    assert h_n.shape == (NUM_LAYERS, B, HIDDEN)
    assert c_n.shape == (NUM_LAYERS, B, HIDDEN)
    assert bool(jnp.all(jnp.isfinite(out)))
    assert bool(jnp.all((out >= 0.0) & (out <= 1.0)))
    print("KERNEL_OK")
</pallas_src>

<mosaic_0001>
module attributes {stable_mosaic.version = 11 : i64} {
  func.func @_cnn_kernel(%arg0: i32, %arg1: memref<64x8x1xf32, #tpu.memory_space<vmem>>, %arg2: memref<3x1x32xf32, #tpu.memory_space<vmem>>, %arg3: memref<1x32xf32, #tpu.memory_space<vmem>>, %arg4: memref<3x32x64xf32, #tpu.memory_space<vmem>>, %arg5: memref<1x64xf32, #tpu.memory_space<vmem>>, %arg6: memref<3x64x128xf32, #tpu.memory_space<vmem>>, %arg7: memref<1x128xf32, #tpu.memory_space<vmem>>, %arg8: memref<3x128x256xf32, #tpu.memory_space<vmem>>, %arg9: memref<1x256xf32, #tpu.memory_space<vmem>>, %arg10: memref<3x256x512xf32, #tpu.memory_space<vmem>>, %arg11: memref<1x512xf32, #tpu.memory_space<vmem>>, %arg12: memref<3x512x1024xf32, #tpu.memory_space<vmem>>, %arg13: memref<1x1024xf32, #tpu.memory_space<vmem>>, %arg14: memref<1x8x1024xf32, #tpu.memory_space<vmem>>) attributes {dimension_semantics = [#tpu.dimension_semantics<parallel>], iteration_bounds = array<i64: 1>, scalar_prefetch = 0 : i64, scratch_operands = 0 : i64, tpu.core_type = #tpu.core_type<tc>, window_params = [{transform_indices = @transform_0, window_bounds = array<i64: 64, 8, 1>}, {pipeline_mode = #tpu.pipeline_mode<synchronous>, transform_indices = @transform_1, window_bounds = array<i64: 3, 1, 32>}, {pipeline_mode = #tpu.pipeline_mode<synchronous>, transform_indices = @transform_2, window_bounds = array<i64: 1, 32>}, {pipeline_mode = #tpu.pipeline_mode<synchronous>, transform_indices = @transform_3, window_bounds = array<i64: 3, 32, 64>}, {pipeline_mode = #tpu.pipeline_mode<synchronous>, transform_indices = @transform_4, window_bounds = array<i64: 1, 64>}, {pipeline_mode = #tpu.pipeline_mode<synchronous>, transform_indices = @transform_5, window_bounds = array<i64: 3, 64, 128>}, {pipeline_mode = #tpu.pipeline_mode<synchronous>, transform_indices = @transform_6, window_bounds = array<i64: 1, 128>}, {pipeline_mode = #tpu.pipeline_mode<synchronous>, transform_indices = @transform_7, window_bounds = array<i64: 3, 128, 256>}, {pipeline_mode = #tpu.pipeline_mode<synchronous>, transform_indices = @transform_8, window_bounds = array<i64: 1, 256>}, {pipeline_mode = #tpu.pipeline_mode<synchronous>, transform_indices = @transform_9, window_bounds = array<i64: 3, 256, 512>}, {pipeline_mode = #tpu.pipeline_mode<synchronous>, transform_indices = @transform_10, window_bounds = array<i64: 1, 512>}, {pipeline_mode = #tpu.pipeline_mode<synchronous>, transform_indices = @transform_11, window_bounds = array<i64: 3, 512, 1024>}, {pipeline_mode = #tpu.pipeline_mode<synchronous>, transform_indices = @transform_12, window_bounds = array<i64: 1, 1024>}, {transform_indices = @transform_13, window_bounds = array<i64: 1, 8, 1024>}]} {
    %c0 = arith.constant 0 : index
    %c0_0 = arith.constant 0 : index
    %c0_1 = arith.constant 0 : index
    %0 = vector.load %arg1[%c0, %c0_0, %c0_1] : memref<64x8x1xf32, #tpu.memory_space<vmem>>, vector<64x8x1xf32>
    %cst = arith.constant 0.000000e+00 : f32
    %1 = vector.broadcast %cst : f32 to vector<1x8x1xf32>
    %2 = vector.extract_strided_slice %0 {offsets = [0, 0, 0], sizes = [63, 8, 1], strides = [1, 1, 1]} : vector<64x8x1xf32> to vector<63x8x1xf32>
    %3 = tpu.concatenate %1, %2 in 0 : vector<1x8x1xf32>, vector<63x8x1xf32> -> vector<64x8x1xf32>
    %4 = vector.extract_strided_slice %0 {offsets = [1, 0, 0], sizes = [63, 8, 1], strides = [1, 1, 1]} : vector<64x8x1xf32> to vector<63x8x1xf32>
    %5 = tpu.concatenate %4, %1 in 0 : vector<63x8x1xf32>, vector<1x8x1xf32> -> vector<64x8x1xf32>
    %6 = vector.shape_cast %3 : vector<64x8x1xf32> to vector<512x1xf32>
    %c0_2 = arith.constant 0 : index
    %c0_3 = arith.constant 0 : index
    %c0_4 = arith.constant 0 : index
    %7 = vector.load %arg2[%c0_2, %c0_3, %c0_4] : memref<3x1x32xf32, #tpu.memory_space<vmem>>, vector<1x1x32xf32>
    %8 = vector.shape_cast %7 : vector<1x1x32xf32> to vector<1x32xf32>
    %9 = vector.broadcast %6 : vector<512x1xf32> to vector<512x32xf32>
    %10 = vector.broadcast %8 : vector<1x32xf32> to vector<512x32xf32>
    %11 = arith.mulf %9, %10 : vector<512x32xf32>
    %12 = vector.shape_cast %0 : vector<64x8x1xf32> to vector<512x1xf32>
    %c1 = arith.constant 1 : index
    %c0_5 = arith.constant 0 : index
    %c0_6 = arith.constant 0 : index
    %13 = vector.load %arg2[%c1, %c0_5, %c0_6] : memref<3x1x32xf32, #tpu.memory_space<vmem>>, vector<1x1x32xf32>
    %14 = vector.shape_cast %13 : vector<1x1x32xf32> to vector<1x32xf32>
    %15 = vector.broadcast %12 : vector<512x1xf32> to vector<512x32xf32>
    %16 = vector.broadcast %14 : vector<1x32xf32> to vector<512x32xf32>
    %17 = arith.mulf %15, %16 : vector<512x32xf32>
    %18 = arith.addf %11, %17 : vector<512x32xf32>
    %19 = vector.shape_cast %5 : vector<64x8x1xf32> to vector<512x1xf32>
    %c2 = arith.constant 2 : index
    %c0_7 = arith.constant 0 : index
    %c0_8 = arith.constant 0 : index
    %20 = vector.load %arg2[%c2, %c0_7, %c0_8] : memref<3x1x32xf32, #tpu.memory_space<vmem>>, vector<1x1x32xf32>
    %21 = vector.shape_cast %20 : vector<1x1x32xf32> to vector<1x32xf32>
    %22 = vector.broadcast %19 : vector<512x1xf32> to vector<512x32xf32>
    %23 = vector.broadcast %21 : vector<1x32xf32> to vector<512x32xf32>
    %24 = arith.mulf %22, %23 : vector<512x32xf32>
    %25 = arith.addf %18, %24 : vector<512x32xf32>
    %c0_9 = arith.constant 0 : index
    %c0_10 = arith.constant 0 : index
    %26 = vector.load %arg3[%c0_9, %c0_10] : memref<1x32xf32, #tpu.memory_space<vmem>>, vector<1x32xf32>
    %27 = vector.broadcast %26 : vector<1x32xf32> to vector<512x32xf32>
    %28 = arith.addf %25, %27 : vector<512x32xf32>
    %cst_11 = arith.constant 0.000000e+00 : f32
    %29 = vector.broadcast %cst_11 : f32 to vector<512x32xf32>
    %30 = arith.maximumf %28, %29 : vector<512x32xf32>
    %31 = vector.shape_cast %30 : vector<512x32xf32> to vector<64x8x32xf32>
    %32 = vector.shape_cast %31 : vector<64x8x32xf32> to vector<32x2x8x32xf32>
    %33 = vector.extract_strided_slice %32 {offsets = [0, 0, 0, 0], sizes = [32, 1, 8, 32], strides = [1, 1, 1, 1]} : vector<32x2x8x32xf32> to vector<32x1x8x32xf32>
    %34 = vector.shape_cast %33 : vector<32x1x8x32xf32> to vector<32x8x32xf32>
    %35 = vector.extract_strided_slice %32 {offsets = [0, 1, 0, 0], sizes = [32, 1, 8, 32], strides = [1, 1, 1, 1]} : vector<32x2x8x32xf32> to vector<32x1x8x32xf32>
    %36 = vector.shape_cast %35 : vector<32x1x8x32xf32> to vector<32x8x32xf32>
    %37 = arith.maximumf %34, %36 : vector<32x8x32xf32>
    %cst_12 = arith.constant 0.000000e+00 : f32
    %38 = vector.broadcast %cst_12 : f32 to vector<1x8x32xf32>
    %39 = vector.extract_strided_slice %37 {offsets = [0, 0, 0], sizes = [31, 8, 32], strides = [1, 1, 1]} : vector<32x8x32xf32> to vector<31x8x32xf32>
    %40 = tpu.concatenate %38, %39 in 0 : vector<1x8x32xf32>, vector<31x8x32xf32> -> vector<32x8x32xf32>
    %41 = vector.extract_strided_slice %37 {offsets = [1, 0, 0], sizes = [31, 8, 32], strides = [1, 1, 1]} : vector<32x8x32xf32> to vector<31x8x32xf32>
    %42 = tpu.concatenate %41, %38 in 0 : vector<31x8x32xf32>, vector<1x8x32xf32> -> vector<32x8x32xf32>
    %43 = vector.shape_cast %40 : vector<32x8x32xf32> to vector<256x32xf32>
    %c0_13 = arith.constant 0 : index
    %c0_14 = arith.constant 0 : index
    %c0_15 = arith.constant 0 : index
    %44 = vector.load %arg4[%c0_13, %c0_14, %c0_15] : memref<3x32x64xf32, #tpu.memory_space<vmem>>, vector<1x32x64xf32>
    %45 = vector.shape_cast %44 : vector<1x32x64xf32> to vector<32x64xf32>
    %cst_16 = arith.constant dense<0.000000e+00> : vector<256x64xf32>
    %46 = tpu.matmul %43, %45, %cst_16 {dimension_numbers = #tpu.dot_dimension_numbers<[1], [0], [0], [1], [0, 0, 1, 1], [], []>} : vector<256x32xf32>, vector<32x64xf32>, vector<256x64xf32> -> vector<256x64xf32>
    %47 = vector.shape_cast %37 : vector<32x8x32xf32> to vector<256x32xf32>
    %c1_17 = arith.constant 1 : index
    %c0_18 = arith.constant 0 : index
    %c0_19 = arith.constant 0 : index
    %48 = vector.load %arg4[%c1_17, %c0_18, %c0_19] : memref<3x32x64xf32, #tpu.memory_space<vmem>>, vector<1x32x64xf32>
    %49 = vector.shape_cast %48 : vector<1x32x64xf32> to vector<32x64xf32>
    %cst_20 = arith.constant dense<0.000000e+00> : vector<256x64xf32>
    %50 = tpu.matmul %47, %49, %cst_20 {dimension_numbers = #tpu.dot_dimension_numbers<[1], [0], [0], [1], [0, 0, 1, 1], [], []>} : vector<256x32xf32>, vector<32x64xf32>, vector<256x64xf32> -> vector<256x64xf32>
    %51 = arith.addf %46, %50 : vector<256x64xf32>
    %52 = vector.shape_cast %42 : vector<32x8x32xf32> to vector<256x32xf32>
    %c2_21 = arith.constant 2 : index
    %c0_22 = arith.constant 0 : index
    %c0_23 = arith.constant 0 : index
    %53 = vector.load %arg4[%c2_21, %c0_22, %c0_23] : memref<3x32x64xf32, #tpu.memory_space<vmem>>, vector<1x32x64xf32>
    %54 = vector.shape_cast %53 : vector<1x32x64xf32> to vector<32x64xf32>
    %cst_24 = arith.constant dense<0.000000e+00> : vector<256x64xf32>
    %55 = tpu.matmul %52, %54, %cst_24 {dimension_numbers = #tpu.dot_dimension_numbers<[1], [0], [0], [1], [0, 0, 1, 1], [], []>} : vector<256x32xf32>, vector<32x64xf32>, vector<256x64xf32> -> vector<256x64xf32>
    %56 = arith.addf %51, %55 : vector<256x64xf32>
    %c0_25 = arith.constant 0 : index
    %c0_26 = arith.constant 0 : index
    %57 = vector.load %arg5[%c0_25, %c0_26] : memref<1x64xf32, #tpu.memory_space<vmem>>, vector<1x64xf32>
    %58 = vector.broadcast %57 : vector<1x64xf32> to vector<256x64xf32>
    %59 = arith.addf %56, %58 : vector<256x64xf32>
    %cst_27 = arith.constant 0.000000e+00 : f32
    %60 = vector.broadcast %cst_27 : f32 to vector<256x64xf32>
    %61 = arith.maximumf %59, %60 : vector<256x64xf32>
    %62 = vector.shape_cast %61 : vector<256x64xf32> to vector<32x8x64xf32>
    %63 = vector.shape_cast %62 : vector<32x8x64xf32> to vector<16x2x8x64xf32>
    %64 = vector.extract_strided_slice %63 {offsets = [0, 0, 0, 0], sizes = [16, 1, 8, 64], strides = [1, 1, 1, 1]} : vector<16x2x8x64xf32> to vector<16x1x8x64xf32>
    %65 = vector.shape_cast %64 : vector<16x1x8x64xf32> to vector<16x8x64xf32>
    %66 = vector.extract_strided_slice %63 {offsets = [0, 1, 0, 0], sizes = [16, 1, 8, 64], strides = [1, 1, 1, 1]} : vector<16x2x8x64xf32> to vector<16x1x8x64xf32>
    %67 = vector.shape_cast %66 : vector<16x1x8x64xf32> to vector<16x8x64xf32>
    %68 = arith.maximumf %65, %67 : vector<16x8x64xf32>
    %cst_28 = arith.constant 0.000000e+00 : f32
    %69 = vector.broadcast %cst_28 : f32 to vector<1x8x64xf32>
    %70 = vector.extract_strided_slice %68 {offsets = [0, 0, 0], sizes = [15, 8, 64], strides = [1, 1, 1]} : vector<16x8x64xf32> to vector<15x8x64xf32>
    %71 = tpu.concatenate %69, %70 in 0 : vector<1x8x64xf32>, vector<15x8x64xf32> -> vector<16x8x64xf32>
    %72 = vector.extract_strided_slice %68 {offsets = [1, 0, 0], sizes = [15, 8, 64], strides = [1, 1, 1]} : vector<16x8x64xf32> to vector<15x8x64xf32>
    %73 = tpu.concatenate %72, %69 in 0 : vector<15x8x64xf32>, vector<1x8x64xf32> -> vector<16x8x64xf32>
    %74 = vector.shape_cast %71 : vector<16x8x64xf32> to vector<128x64xf32>
    %c0_29 = arith.constant 0 : index
    %c0_30 = arith.constant 0 : index
    %c0_31 = arith.constant 0 : index
    %75 = vector.load %arg6[%c0_29, %c0_30, %c0_31] : memref<3x64x128xf32, #tpu.memory_space<vmem>>, vector<1x64x128xf32>
    %76 = vector.shape_cast %75 : vector<1x64x128xf32> to vector<64x128xf32>
    %cst_32 = arith.constant dense<0.000000e+00> : vector<128x128xf32>
    %77 = tpu.matmul %74, %76, %cst_32 {dimension_numbers = #tpu.dot_dimension_numbers<[1], [0], [0], [1], [0, 0, 1, 1], [], []>} : vector<128x64xf32>, vector<64x128xf32>, vector<128x128xf32> -> vector<128x128xf32>
    %78 = vector.shape_cast %68 : vector<16x8x64xf32> to vector<128x64xf32>
    %c1_33 = arith.constant 1 : index
    %c0_34 = arith.constant 0 : index
    %c0_35 = arith.constant 0 : index
    %79 = vector.load %arg6[%c1_33, %c0_34, %c0_35] : memref<3x64x128xf32, #tpu.memory_space<vmem>>, vector<1x64x128xf32>
    %80 = vector.shape_cast %79 : vector<1x64x128xf32> to vector<64x128xf32>
    %cst_36 = arith.constant dense<0.000000e+00> : vector<128x128xf32>
    %81 = tpu.matmul %78, %80, %cst_36 {dimension_numbers = #tpu.dot_dimension_numbers<[1], [0], [0], [1], [0, 0, 1, 1], [], []>} : vector<128x64xf32>, vector<64x128xf32>, vector<128x128xf32> -> vector<128x128xf32>
    %82 = arith.addf %77, %81 : vector<128x128xf32>
    %83 = vector.shape_cast %73 : vector<16x8x64xf32> to vector<128x64xf32>
    %c2_37 = arith.constant 2 : index
    %c0_38 = arith.constant 0 : index
    %c0_39 = arith.constant 0 : index
    %84 = vector.load %arg6[%c2_37, %c0_38, %c0_39] : memref<3x64x128xf32, #tpu.memory_space<vmem>>, vector<1x64x128xf32>
    %85 = vector.shape_cast %84 : vector<1x64x128xf32> to vector<64x128xf32>
    %cst_40 = arith.constant dense<0.000000e+00> : vector<128x128xf32>
    %86 = tpu.matmul %83, %85, %cst_40 {dimension_numbers = #tpu.dot_dimension_numbers<[1], [0], [0], [1], [0, 0, 1, 1], [], []>} : vector<128x64xf32>, vector<64x128xf32>, vector<128x128xf32> -> vector<128x128xf32>
    %87 = arith.addf %82, %86 : vector<128x128xf32>
    %c0_41 = arith.constant 0 : index
    %c0_42 = arith.constant 0 : index
    %88 = vector.load %arg7[%c0_41, %c0_42] : memref<1x128xf32, #tpu.memory_space<vmem>>, vector<1x128xf32>
    %89 = vector.broadcast %88 : vector<1x128xf32> to vector<128x128xf32>
    %90 = arith.addf %87, %89 : vector<128x128xf32>
    %cst_43 = arith.constant 0.000000e+00 : f32
    %91 = vector.broadcast %cst_43 : f32 to vector<128x128xf32>
    %92 = arith.maximumf %90, %91 : vector<128x128xf32>
    %93 = vector.shape_cast %92 : vector<128x128xf32> to vector<16x8x128xf32>
    %94 = vector.shape_cast %93 : vector<16x8x128xf32> to vector<8x2x8x128xf32>
    %95 = vector.extract_strided_slice %94 {offsets = [0, 0, 0, 0], sizes = [8, 1, 8, 128], strides = [1, 1, 1, 1]} : vector<8x2x8x128xf32> to vector<8x1x8x128xf32>
    %96 = vector.shape_cast %95 : vector<8x1x8x128xf32> to vector<8x8x128xf32>
    %97 = vector.extract_strided_slice %94 {offsets = [0, 1, 0, 0], sizes = [8, 1, 8, 128], strides = [1, 1, 1, 1]} : vector<8x2x8x128xf32> to vector<8x1x8x128xf32>
    %98 = vector.shape_cast %97 : vector<8x1x8x128xf32> to vector<8x8x128xf32>
    %99 = arith.maximumf %96, %98 : vector<8x8x128xf32>
    %cst_44 = arith.constant 0.000000e+00 : f32
    %100 = vector.broadcast %cst_44 : f32 to vector<1x8x128xf32>
    %101 = vector.extract_strided_slice %99 {offsets = [0, 0, 0], sizes = [7, 8, 128], strides = [1, 1, 1]} : vector<8x8x128xf32> to vector<7x8x128xf32>
    %102 = tpu.concatenate %100, %101 in 0 : vector<1x8x128xf32>, vector<7x8x128xf32> -> vector<8x8x128xf32>
    %103 = vector.extract_strided_slice %99 {offsets = [1, 0, 0], sizes = [7, 8, 128], strides = [1, 1, 1]} : vector<8x8x128xf32> to vector<7x8x128xf32>
    %104 = tpu.concatenate %103, %100 in 0 : vector<7x8x128xf32>, vector<1x8x128xf32> -> vector<8x8x128xf32>
    %105 = vector.shape_cast %102 : vector<8x8x128xf32> to vector<64x128xf32>
    %c0_45 = arith.constant 0 : index
    %c0_46 = arith.constant 0 : index
    %c0_47 = arith.constant 0 : index
    %106 = vector.load %arg8[%c0_45, %c0_46, %c0_47] : memref<3x128x256xf32, #tpu.memory_space<vmem>>, vector<1x128x256xf32>
    %107 = vector.shape_cast %106 : vector<1x128x256xf32> to vector<128x256xf32>
    %cst_48 = arith.constant dense<0.000000e+00> : vector<64x256xf32>
    %108 = tpu.matmul %105, %107, %cst_48 {dimension_numbers = #tpu.dot_dimension_numbers<[1], [0], [0], [1], [0, 0, 1, 1], [], []>} : vector<64x128xf32>, vector<128x256xf32>, vector<64x256xf32> -> vector<64x256xf32>
    %109 = vector.shape_cast %99 : vector<8x8x128xf32> to vector<64x128xf32>
    %c1_49 = arith.constant 1 : index
    %c0_50 = arith.constant 0 : index
    %c0_51 = arith.constant 0 : index
    %110 = vector.load %arg8[%c1_49, %c0_50, %c0_51] : memref<3x128x256xf32, #tpu.memory_space<vmem>>, vector<1x128x256xf32>
    %111 = vector.shape_cast %110 : vector<1x128x256xf32> to vector<128x256xf32>
    %cst_52 = arith.constant dense<0.000000e+00> : vector<64x256xf32>
    %112 = tpu.matmul %109, %111, %cst_52 {dimension_numbers = #tpu.dot_dimension_numbers<[1], [0], [0], [1], [0, 0, 1, 1], [], []>} : vector<64x128xf32>, vector<128x256xf32>, vector<64x256xf32> -> vector<64x256xf32>
    %113 = arith.addf %108, %112 : vector<64x256xf32>
    %114 = vector.shape_cast %104 : vector<8x8x128xf32> to vector<64x128xf32>
    %c2_53 = arith.constant 2 : index
    %c0_54 = arith.constant 0 : index
    %c0_55 = arith.constant 0 : index
    %115 = vector.load %arg8[%c2_53, %c0_54, %c0_55] : memref<3x128x256xf32, #tpu.memory_space<vmem>>, vector<1x128x256xf32>
    %116 = vector.shape_cast %115 : vector<1x128x256xf32> to vector<128x256xf32>
    %cst_56 = arith.constant dense<0.000000e+00> : vector<64x256xf32>
    %117 = tpu.matmul %114, %116, %cst_56 {dimension_numbers = #tpu.dot_dimension_numbers<[1], [0], [0], [1], [0, 0, 1, 1], [], []>} : vector<64x128xf32>, vector<128x256xf32>, vector<64x256xf32> -> vector<64x256xf32>
    %118 = arith.addf %113, %117 : vector<64x256xf32>
    %c0_57 = arith.constant 0 : index
    %c0_58 = arith.constant 0 : index
    %119 = vector.load %arg9[%c0_57, %c0_58] : memref<1x256xf32, #tpu.memory_space<vmem>>, vector<1x256xf32>
    %120 = vector.broadcast %119 : vector<1x256xf32> to vector<64x256xf32>
    %121 = arith.addf %118, %120 : vector<64x256xf32>
    %cst_59 = arith.constant 0.000000e+00 : f32
    %122 = vector.broadcast %cst_59 : f32 to vector<64x256xf32>
    %123 = arith.maximumf %121, %122 : vector<64x256xf32>
    %124 = vector.shape_cast %123 : vector<64x256xf32> to vector<8x8x256xf32>
    %125 = vector.shape_cast %124 : vector<8x8x256xf32> to vector<4x2x8x256xf32>
    %126 = vector.extract_strided_slice %125 {offsets = [0, 0, 0, 0], sizes = [4, 1, 8, 256], strides = [1, 1, 1, 1]} : vector<4x2x8x256xf32> to vector<4x1x8x256xf32>
    %127 = vector.shape_cast %126 : vector<4x1x8x256xf32> to vector<4x8x256xf32>
    %128 = vector.extract_strided_slice %125 {offsets = [0, 1, 0, 0], sizes = [4, 1, 8, 256], strides = [1, 1, 1, 1]} : vector<4x2x8x256xf32> to vector<4x1x8x256xf32>
    %129 = vector.shape_cast %128 : vector<4x1x8x256xf32> to vector<4x8x256xf32>
    %130 = arith.maximumf %127, %129 : vector<4x8x256xf32>
    %cst_60 = arith.constant 0.000000e+00 : f32
    %131 = vector.broadcast %cst_60 : f32 to vector<1x8x256xf32>
    %132 = vector.extract_strided_slice %130 {offsets = [0, 0, 0], sizes = [3, 8, 256], strides = [1, 1, 1]} : vector<4x8x256xf32> to vector<3x8x256xf32>
    %133 = tpu.concatenate %131, %132 in 0 : vector<1x8x256xf32>, vector<3x8x256xf32> -> vector<4x8x256xf32>
    %134 = vector.extract_strided_slice %130 {offsets = [1, 0, 0], sizes = [3, 8, 256], strides = [1, 1, 1]} : vector<4x8x256xf32> to vector<3x8x256xf32>
    %135 = tpu.concatenate %134, %131 in 0 : vector<3x8x256xf32>, vector<1x8x256xf32> -> vector<4x8x256xf32>
    %136 = vector.shape_cast %133 : vector<4x8x256xf32> to vector<32x256xf32>
    %c0_61 = arith.constant 0 : index
    %c0_62 = arith.constant 0 : index
    %c0_63 = arith.constant 0 : index
    %137 = vector.load %arg10[%c0_61, %c0_62, %c0_63] : memref<3x256x512xf32, #tpu.memory_space<vmem>>, vector<1x256x512xf32>
    %138 = vector.shape_cast %137 : vector<1x256x512xf32> to vector<256x512xf32>
    %cst_64 = arith.constant dense<0.000000e+00> : vector<32x512xf32>
    %139 = tpu.matmul %136, %138, %cst_64 {dimension_numbers = #tpu.dot_dimension_numbers<[1], [0], [0], [1], [0, 0, 1, 1], [], []>} : vector<32x256xf32>, vector<256x512xf32>, vector<32x512xf32> -> vector<32x512xf32>
    %140 = vector.shape_cast %130 : vector<4x8x256xf32> to vector<32x256xf32>
    %c1_65 = arith.constant 1 : index
    %c0_66 = arith.constant 0 : index
    %c0_67 = arith.constant 0 : index
    %141 = vector.load %arg10[%c1_65, %c0_66, %c0_67] : memref<3x256x512xf32, #tpu.memory_space<vmem>>, vector<1x256x512xf32>
    %142 = vector.shape_cast %141 : vector<1x256x512xf32> to vector<256x512xf32>
    %cst_68 = arith.constant dense<0.000000e+00> : vector<32x512xf32>
    %143 = tpu.matmul %140, %142, %cst_68 {dimension_numbers = #tpu.dot_dimension_numbers<[1], [0], [0], [1], [0, 0, 1, 1], [], []>} : vector<32x256xf32>, vector<256x512xf32>, vector<32x512xf32> -> vector<32x512xf32>
    %144 = arith.addf %139, %143 : vector<32x512xf32>
    %145 = vector.shape_cast %135 : vector<4x8x256xf32> to vector<32x256xf32>
    %c2_69 = arith.constant 2 : index
    %c0_70 = arith.constant 0 : index
    %c0_71 = arith.constant 0 : index
    %146 = vector.load %arg10[%c2_69, %c0_70, %c0_71] : memref<3x256x512xf32, #tpu.memory_space<vmem>>, vector<1x256x512xf32>
    %147 = vector.shape_cast %146 : vector<1x256x512xf32> to vector<256x512xf32>
    %cst_72 = arith.constant dense<0.000000e+00> : vector<32x512xf32>
    %148 = tpu.matmul %145, %147, %cst_72 {dimension_numbers = #tpu.dot_dimension_numbers<[1], [0], [0], [1], [0, 0, 1, 1], [], []>} : vector<32x256xf32>, vector<256x512xf32>, vector<32x512xf32> -> vector<32x512xf32>
    %149 = arith.addf %144, %148 : vector<32x512xf32>
    %c0_73 = arith.constant 0 : index
    %c0_74 = arith.constant 0 : index
    %150 = vector.load %arg11[%c0_73, %c0_74] : memref<1x512xf32, #tpu.memory_space<vmem>>, vector<1x512xf32>
    %151 = vector.broadcast %150 : vector<1x512xf32> to vector<32x512xf32>
    %152 = arith.addf %149, %151 : vector<32x512xf32>
    %cst_75 = arith.constant 0.000000e+00 : f32
    %153 = vector.broadcast %cst_75 : f32 to vector<32x512xf32>
    %154 = arith.maximumf %152, %153 : vector<32x512xf32>
    %155 = vector.shape_cast %154 : vector<32x512xf32> to vector<4x8x512xf32>
    %156 = vector.shape_cast %155 : vector<4x8x512xf32> to vector<2x2x8x512xf32>
    %157 = vector.extract_strided_slice %156 {offsets = [0, 0, 0, 0], sizes = [2, 1, 8, 512], strides = [1, 1, 1, 1]} : vector<2x2x8x512xf32> to vector<2x1x8x512xf32>
    %158 = vector.shape_cast %157 : vector<2x1x8x512xf32> to vector<2x8x512xf32>
    %159 = vector.extract_strided_slice %156 {offsets = [0, 1, 0, 0], sizes = [2, 1, 8, 512], strides = [1, 1, 1, 1]} : vector<2x2x8x512xf32> to vector<2x1x8x512xf32>
    %160 = vector.shape_cast %159 : vector<2x1x8x512xf32> to vector<2x8x512xf32>
    %161 = arith.maximumf %158, %160 : vector<2x8x512xf32>
    %cst_76 = arith.constant 0.000000e+00 : f32
    %162 = vector.broadcast %cst_76 : f32 to vector<1x8x512xf32>
    %163 = vector.extract_strided_slice %161 {offsets = [0, 0, 0], sizes = [1, 8, 512], strides = [1, 1, 1]} : vector<2x8x512xf32> to vector<1x8x512xf32>
    %164 = tpu.concatenate %162, %163 in 0 : vector<1x8x512xf32>, vector<1x8x512xf32> -> vector<2x8x512xf32>
    %165 = vector.extract_strided_slice %161 {offsets = [1, 0, 0], sizes = [1, 8, 512], strides = [1, 1, 1]} : vector<2x8x512xf32> to vector<1x8x512xf32>
    %166 = tpu.concatenate %165, %162 in 0 : vector<1x8x512xf32>, vector<1x8x512xf32> -> vector<2x8x512xf32>
    %167 = vector.shape_cast %164 : vector<2x8x512xf32> to vector<16x512xf32>
    %c0_77 = arith.constant 0 : index
    %c0_78 = arith.constant 0 : index
    %c0_79 = arith.constant 0 : index
    %168 = vector.load %arg12[%c0_77, %c0_78, %c0_79] : memref<3x512x1024xf32, #tpu.memory_space<vmem>>, vector<1x512x1024xf32>
    %169 = vector.shape_cast %168 : vector<1x512x1024xf32> to vector<512x1024xf32>
    %cst_80 = arith.constant dense<0.000000e+00> : vector<16x1024xf32>
    %170 = tpu.matmul %167, %169, %cst_80 {dimension_numbers = #tpu.dot_dimension_numbers<[1], [0], [0], [1], [0, 0, 1, 1], [], []>} : vector<16x512xf32>, vector<512x1024xf32>, vector<16x1024xf32> -> vector<16x1024xf32>
    %171 = vector.shape_cast %161 : vector<2x8x512xf32> to vector<16x512xf32>
    %c1_81 = arith.constant 1 : index
    %c0_82 = arith.constant 0 : index
    %c0_83 = arith.constant 0 : index
    %172 = vector.load %arg12[%c1_81, %c0_82, %c0_83] : memref<3x512x1024xf32, #tpu.memory_space<vmem>>, vector<1x512x1024xf32>
    %173 = vector.shape_cast %172 : vector<1x512x1024xf32> to vector<512x1024xf32>
    %cst_84 = arith.constant dense<0.000000e+00> : vector<16x1024xf32>
    %174 = tpu.matmul %171, %173, %cst_84 {dimension_numbers = #tpu.dot_dimension_numbers<[1], [0], [0], [1], [0, 0, 1, 1], [], []>} : vector<16x512xf32>, vector<512x1024xf32>, vector<16x1024xf32> -> vector<16x1024xf32>
    %175 = arith.addf %170, %174 : vector<16x1024xf32>
    %176 = vector.shape_cast %166 : vector<2x8x512xf32> to vector<16x512xf32>
    %c2_85 = arith.constant 2 : index
    %c0_86 = arith.constant 0 : index
    %c0_87 = arith.constant 0 : index
    %177 = vector.load %arg12[%c2_85, %c0_86, %c0_87] : memref<3x512x1024xf32, #tpu.memory_space<vmem>>, vector<1x512x1024xf32>
    %178 = vector.shape_cast %177 : vector<1x512x1024xf32> to vector<512x1024xf32>
    %cst_88 = arith.constant dense<0.000000e+00> : vector<16x1024xf32>
    %179 = tpu.matmul %176, %178, %cst_88 {dimension_numbers = #tpu.dot_dimension_numbers<[1], [0], [0], [1], [0, 0, 1, 1], [], []>} : vector<16x512xf32>, vector<512x1024xf32>, vector<16x1024xf32> -> vector<16x1024xf32>
    %180 = arith.addf %175, %179 : vector<16x1024xf32>
    %c0_89 = arith.constant 0 : index
    %c0_90 = arith.constant 0 : index
    %181 = vector.load %arg13[%c0_89, %c0_90] : memref<1x1024xf32, #tpu.memory_space<vmem>>, vector<1x1024xf32>
    %182 = vector.broadcast %181 : vector<1x1024xf32> to vector<16x1024xf32>
    %183 = arith.addf %180, %182 : vector<16x1024xf32>
    %cst_91 = arith.constant 0.000000e+00 : f32
    %184 = vector.broadcast %cst_91 : f32 to vector<16x1024xf32>
    %185 = arith.maximumf %183, %184 : vector<16x1024xf32>
    %186 = vector.shape_cast %185 : vector<16x1024xf32> to vector<2x8x1024xf32>
    %187 = vector.shape_cast %186 : vector<2x8x1024xf32> to vector<1x2x8x1024xf32>
    %188 = vector.extract_strided_slice %187 {offsets = [0, 0, 0, 0], sizes = [1, 1, 8, 1024], strides = [1, 1, 1, 1]} : vector<1x2x8x1024xf32> to vector<1x1x8x1024xf32>
    %189 = vector.shape_cast %188 : vector<1x1x8x1024xf32> to vector<1x8x1024xf32>
    %190 = vector.extract_strided_slice %187 {offsets = [0, 1, 0, 0], sizes = [1, 1, 8, 1024], strides = [1, 1, 1, 1]} : vector<1x2x8x1024xf32> to vector<1x1x8x1024xf32>
    %191 = vector.shape_cast %190 : vector<1x1x8x1024xf32> to vector<1x8x1024xf32>
    %192 = arith.maximumf %189, %191 : vector<1x8x1024xf32>
    %c0_92 = arith.constant 0 : index
    %c0_93 = arith.constant 0 : index
    %c0_94 = arith.constant 0 : index
    %193 = vector.load %arg14[%c0_92, %c0_93, %c0_94] : memref<1x8x1024xf32, #tpu.memory_space<vmem>>, vector<1x8x1024xf32>
    tpu.vector_store %arg14[%c0_92, %c0_93, %c0_94], %192 {strides = array<i32>} : memref<1x8x1024xf32, #tpu.memory_space<vmem>>, vector<1x8x1024xf32>,
    return
  }
  func.func @transform_0(%arg0: i32) -> (i32, i32, i32) {
    %c0_i32 = arith.constant 0 : i32
    %c0_i32_0 = arith.constant 0 : i32
    %c0_i32_1 = arith.constant 0 : i32
    return %c0_i32, %arg0, %c0_i32_0 : i32, i32, i32
  }
  func.func @transform_1(%arg0: i32) -> (i32, i32, i32) {
    %c0_i32 = arith.constant 0 : i32
    %c0_i32_0 = arith.constant 0 : i32
    %c0_i32_1 = arith.constant 0 : i32
    %c0_i32_2 = arith.constant 0 : i32
    return %c0_i32, %c0_i32_0, %c0_i32_1 : i32, i32, i32
  }
  func.func @transform_2(%arg0: i32) -> (i32, i32) {
    %c0_i32 = arith.constant 0 : i32
    %c0_i32_0 = arith.constant 0 : i32
    %c0_i32_1 = arith.constant 0 : i32
    return %c0_i32, %c0_i32_0 : i32, i32
  }
  func.func @transform_3(%arg0: i32) -> (i32, i32, i32) {
    %c0_i32 = arith.constant 0 : i32
    %c0_i32_0 = arith.constant 0 : i32
    %c0_i32_1 = arith.constant 0 : i32
    %c0_i32_2 = arith.constant 0 : i32
    return %c0_i32, %c0_i32_0, %c0_i32_1 : i32, i32, i32
  }
  func.func @transform_4(%arg0: i32) -> (i32, i32) {
    %c0_i32 = arith.constant 0 : i32
    %c0_i32_0 = arith.constant 0 : i32
    %c0_i32_1 = arith.constant 0 : i32
    return %c0_i32, %c0_i32_0 : i32, i32
  }
  func.func @transform_5(%arg0: i32) -> (i32, i32, i32) {
    %c0_i32 = arith.constant 0 : i32
    %c0_i32_0 = arith.constant 0 : i32
    %c0_i32_1 = arith.constant 0 : i32
    %c0_i32_2 = arith.constant 0 : i32
    return %c0_i32, %c0_i32_0, %c0_i32_1 : i32, i32, i32
  }
  func.func @transform_6(%arg0: i32) -> (i32, i32) {
    %c0_i32 = arith.constant 0 : i32
    %c0_i32_0 = arith.constant 0 : i32
    %c0_i32_1 = arith.constant 0 : i32
    return %c0_i32, %c0_i32_0 : i32, i32
  }
  func.func @transform_7(%arg0: i32) -> (i32, i32, i32) {
    %c0_i32 = arith.constant 0 : i32
    %c0_i32_0 = arith.constant 0 : i32
    %c0_i32_1 = arith.constant 0 : i32
    %c0_i32_2 = arith.constant 0 : i32
    return %c0_i32, %c0_i32_0, %c0_i32_1 : i32, i32, i32
  }
  func.func @transform_8(%arg0: i32) -> (i32, i32) {
    %c0_i32 = arith.constant 0 : i32
    %c0_i32_0 = arith.constant 0 : i32
    %c0_i32_1 = arith.constant 0 : i32
    return %c0_i32, %c0_i32_0 : i32, i32
  }
  func.func @transform_9(%arg0: i32) -> (i32, i32, i32) {
    %c0_i32 = arith.constant 0 : i32
    %c0_i32_0 = arith.constant 0 : i32
    %c0_i32_1 = arith.constant 0 : i32
    %c0_i32_2 = arith.constant 0 : i32
    return %c0_i32, %c0_i32_0, %c0_i32_1 : i32, i32, i32
  }
  func.func @transform_10(%arg0: i32) -> (i32, i32) {
    %c0_i32 = arith.constant 0 : i32
    %c0_i32_0 = arith.constant 0 : i32
    %c0_i32_1 = arith.constant 0 : i32
    return %c0_i32, %c0_i32_0 : i32, i32
  }
  func.func @transform_11(%arg0: i32) -> (i32, i32, i32) {
    %c0_i32 = arith.constant 0 : i32
    %c0_i32_0 = arith.constant 0 : i32
    %c0_i32_1 = arith.constant 0 : i32
    %c0_i32_2 = arith.constant 0 : i32
    return %c0_i32, %c0_i32_0, %c0_i32_1 : i32, i32, i32
  }
  func.func @transform_12(%arg0: i32) -> (i32, i32) {
    %c0_i32 = arith.constant 0 : i32
    %c0_i32_0 = arith.constant 0 : i32
    %c0_i32_1 = arith.constant 0 : i32
    return %c0_i32, %c0_i32_0 : i32, i32
  }
  func.func @transform_13(%arg0: i32) -> (i32, i32, i32) {
    %c0_i32 = arith.constant 0 : i32
    %c0_i32_0 = arith.constant 0 : i32
    %c0_i32_1 = arith.constant 0 : i32
    return %c0_i32, %arg0, %c0_i32_0 : i32, i32, i32
  }
}

</mosaic_0001>

<bundles_post_ra>
// kernel: tpu_custom_call.1
= control target key start
LH: loop header
LB: loop body
LE: loop exit
PB: predicated region body
PF: predicated region fallthrough
CT: control target
= control target key end

     0   :  { %18 = vsyncpa [#allocation3], 0  ;;  %s12324_s0 = inlined_call_operand.vmem [shape: f32[64,8,1], index: 0, kind: input, shape index: {}]   ;;  %s12325_s1 = inlined_call_operand.hbm [shape: f32[3,1,32], index: 1, kind: input, shape index: {}]   ;;  %s12326_s2 = inlined_call_operand.hbm [shape: f32[1,32], index: 2, kind: input, shape index: {}]   ;;  %s12327_s3 = inlined_call_operand.hbm [shape: f32[3,32,64], index: 3, kind: input, shape index: {}]   ;;  %s12328_s4 = inlined_call_operand.hbm [shape: f32[1,64], index: 4, kind: input, shape index: {}]   ;;  %s12329_s5 = inlined_call_operand.hbm [shape: f32[3,64,128], index: 5, kind: input, shape index: {}]   ;;  %s12330_s6 = inlined_call_operand.hbm [shape: f32[1,128], index: 6, kind: input, shape index: {}]   ;;  %s12331_s7 = inlined_call_operand.hbm [shape: f32[3,128,256], index: 7, kind: input, shape index: {}]   ;;  %s12332_s8 = inlined_call_operand.hbm [shape: f32[1,256], index: 8, kind: input, shape index: {}]   ;;  %s12333_s9 = inlined_call_operand.hbm [shape: f32[3,256,512], index: 9, kind: input, shape index: {}]   ;;  %s12334_s10 = inlined_call_operand.hbm [shape: f32[1,512], index: 10, kind: input, shape index: {}]   ;;  %s12335_s11 = inlined_call_operand.hbm [shape: f32[3,512,1024], index: 11, kind: input, shape index: {}]   ;;  %s12336_s12 = inlined_call_operand.hbm [shape: f32[1,1024], index: 12, kind: input, shape index: {}]   ;;  %s12337_s13 = inlined_call_operand.hbm [shape: f32[1,8,1024], index: 13, kind: output, shape index: {}]  }
   0x1   :  { %19 = vsyncpa [#allocation6], 0 }
   0x2   :  { %20 = vsyncpa [#allocation9], 0 }
   0x3   :  { %21 = vsyncpa [#allocation12], 0 }
   0x4   :  { %22 = vsyncpa [#allocation15], 0 }
   0x5   :  { %23 = vsyncpa [#allocation18], 0 }
   0x6   :  { %24 = vsyncpa [#allocation21], 0 }
   0x7   :  { %25 = vsyncpa [#allocation4], 0  ;;  %s10867_s25 = smov [#allocation5]   ;;  %s10868_s27 = smov [#allocation8]  }
   0x8   :  { %s46_s26 = sshll.u32 %s10867_s25, 4  ;;  %s68_s28 = sshll.u32 %s10868_s27, 4  ;;  %s47_s26 = int_to_ptr.vmem [resolvable:$true] %s46_s26  ;;  %s69_s28 = int_to_ptr.vmem [resolvable:$true] %s68_s28 }
   0x9   :  { %s10565_s14 = scalar_lea.hbm %s12326_s2, 16 }
   0xa   :  { %p10566_p0 = scmp.ne.s32.totalorder %s12326_s2, %s10565_s14  ;;  %p10569_p1 = scmp.lt.u32.totalorder %s10565_s14, %s12326_s2 }
   0xc   :  { %p10571_p2 = pnand %p10569_p1, %p10566_p0 }
   0xe   :  { %10574 = shalt.err (!%p10571_p2)
}
   0xf   :  { %s10575_s19 = scalar_lea.vmem %s47_s26, 16  ;;  %s10579_s20 = scalar_lea.vmem %s47_s26, 32 }
  0x10   :  { %p10576_p3 = scmp.ne.s32.totalorder %s47_s26, %s10575_s19  ;;  %p10580_p4 = scmp.lt.s32.totalorder %s47_s26, %s47_s26 }
  0x11   :  { %p10581_p5 = scmp.lt.s32.totalorder %s10579_s20, %s10575_s19 }
  0x13   :  { %p10582_p6 = por %p10581_p5, %p10580_p4 }
  0x15   :  { %p10583_p7 = pnand %p10582_p6, %p10576_p3 }
  0x17   :  { %10586 = shalt.err (!%p10583_p7)
}
  0x18   :  { %49 = dma.hbm_to_vmem [thread:$0]  %s12326_s2, 16, %s47_s26, [#allocation6]  }
  0x19   :  { %s10587_s25 = scalar_lea.hbm %s12328_s4, 16 }
  0x1a   :  { %p10588_p8 = scmp.ne.s32.totalorder %s12328_s4, %s10587_s25  ;;  %p10591_p9 = scmp.lt.u32.totalorder %s10587_s25, %s12328_s4 }
  0x1c   :  { %p10593_p10 = pnand %p10591_p9, %p10588_p8 }
  0x1e   :  { %10596 = shalt.err (!%p10593_p10)
}
  0x1f   :  { %s10597_s15 = scalar_lea.vmem %s69_s28, 16  ;;  %s10601_s16 = scalar_lea.vmem %s69_s28, 32 }
  0x20   :  { %p10598_p11 = scmp.ne.s32.totalorder %s69_s28, %s10597_s15  ;;  %p10602_p12 = scmp.lt.s32.totalorder %s69_s28, %s69_s28 }
  0x21   :  { %p10603_p13 = scmp.lt.s32.totalorder %s10601_s16, %s10597_s15 }
  0x23   :  { %p10604_p0 = por %p10603_p13, %p10602_p12 }
  0x25   :  { %p10605_p1 = pnand %p10604_p0, %p10598_p11 }
  0x27   :  { %10608 = shalt.err (!%p10605_p1)
}
  0x28   :  { %71 = dma.hbm_to_vmem [thread:$0]  %s12328_s4, 16, %s69_s28, [#allocation9]  }
  0x29   :  { %s10869_s17 = smov [#allocation11]   ;;  %s10870_s19 = smov [#allocation14]  }
  0x2a   :  { %s90_s18 = sshll.u32 %s10869_s17, 4  ;;  %s112_s20 = sshll.u32 %s10870_s19, 4  ;;  %s91_s18 = int_to_ptr.vmem [resolvable:$true] %s90_s18  ;;  %s113_s20 = int_to_ptr.vmem [resolvable:$true] %s112_s20 }
  0x2b   :  { %s10609_s23 = scalar_lea.hbm %s12330_s6, 16 }
  0x2c   :  { %p10610_p2 = scmp.ne.s32.totalorder %s12330_s6, %s10609_s23  ;;  %p10613_p3 = scmp.lt.u32.totalorder %s10609_s23, %s12330_s6 }
  0x2e   :  { %p10615_p4 = pnand %p10613_p3, %p10610_p2 }
  0x30   :  { %10618 = shalt.err (!%p10615_p4)
}
  0x31   :  { %s10619_s4 = scalar_lea.vmem %s91_s18, 16  ;;  %s10623_s28 = scalar_lea.vmem %s91_s18, 32 }
  0x32   :  { %p10620_p5 = scmp.ne.s32.totalorder %s91_s18, %s10619_s4  ;;  %p10624_p6 = scmp.lt.s32.totalorder %s91_s18, %s91_s18 }
  0x33   :  { %p10625_p7 = scmp.lt.s32.totalorder %s10623_s28, %s10619_s4 }
  0x35   :  { %p10626_p8 = por %p10625_p7, %p10624_p6 }
  0x37   :  { %p10627_p9 = pnand %p10626_p8, %p10620_p5 }
  0x39   :  { %10630 = shalt.err (!%p10627_p9)
}
  0x3a   :  { %93 = dma.hbm_to_vmem [thread:$0]  %s12330_s6, 16, %s91_s18, [#allocation12]  }
  0x3b   :  { %s10631_s2 = scalar_lea.hbm %s12332_s8, 32 }
  0x3c   :  { %p10632_p10 = scmp.ne.s32.totalorder %s12332_s8, %s10631_s2  ;;  %p10635_p11 = scmp.lt.u32.totalorder %s10631_s2, %s12332_s8 }
  0x3e   :  { %p10637_p12 = pnand %p10635_p11, %p10632_p10 }
  0x40   :  { %10640 = shalt.err (!%p10637_p12)
}
  0x41   :  { %s10641_s22 = scalar_lea.vmem %s113_s20, 32  ;;  %p10646_p0 = scmp.lt.s32.totalorder %s113_s20, %s113_s20 }
  0x42   :  { %p10642_p13 = scmp.ne.s32.totalorder %s113_s20, %s10641_s22  ;;  %p10647_p1 = scmp.lt.s32.totalorder %s10641_s22, %s10641_s22 }
  0x44   :  { %p10648_p2 = por %p10647_p1, %p10646_p0 }
  0x46   :  { %p10649_p3 = pnand %p10648_p2, %p10642_p13 }
  0x48   :  { %10652 = shalt.err (!%p10649_p3)
}
  0x49   :  { %115 = dma.hbm_to_vmem [thread:$0]  %s12332_s8, 32, %s113_s20, [#allocation15]  }
  0x4a   :  { %s10871_s23 = smov [#allocation17]   ;;  %s10872_s25 = smov [#allocation2]  }
  0x4b   :  { %s134_s24 = sshll.u32 %s10871_s23, 4  ;;  %s33_s27 = sshll.u32 %s10872_s25, 4  ;;  %s135_s24 = int_to_ptr.vmem [resolvable:$true] %s134_s24  ;;  %s11009_s27 = int_to_ptr.vmem [resolvable:$true] %s33_s27 }
  0x4c   :  { %s10653_s28 = scalar_lea.hbm %s12334_s10, 64 }
  0x4d   :  { %p10654_p4 = scmp.ne.s32.totalorder %s12334_s10, %s10653_s28  ;;  %p10657_p5 = scmp.lt.u32.totalorder %s10653_s28, %s12334_s10 }
  0x4f   :  { %p10659_p6 = pnand %p10657_p5, %p10654_p4 }
  0x51   :  { %10662 = shalt.err (!%p10659_p6)
}
  0x52   :  { %s10663_s8 = scalar_lea.vmem %s135_s24, 64  ;;  %p10668_p8 = scmp.lt.s32.totalorder %s135_s24, %s135_s24 }
  0x53   :  { %p10664_p7 = scmp.ne.s32.totalorder %s135_s24, %s10663_s8  ;;  %p10669_p9 = scmp.lt.s32.totalorder %s10663_s8, %s10663_s8 }
  0x55   :  { %p10670_p10 = por %p10669_p9, %p10668_p8 }
  0x57   :  { %p10671_p11 = pnand %p10670_p10, %p10664_p7 }
  0x59   :  { %10674 = shalt.err (!%p10671_p11)
}
  0x5a   :  { %137 = dma.hbm_to_vmem [thread:$0]  %s12334_s10, 64, %s135_s24, [#allocation18]  }
  0x5b   :  { %s10675_s19 = scalar_lea.hbm %s12325_s1, 48 }
  0x5c   :  { %p10676_p12 = scmp.ne.s32.totalorder %s12325_s1, %s10675_s19  ;;  %p10679_p13 = scmp.lt.u32.totalorder %s10675_s19, %s12325_s1 }
  0x5e   :  { %p10681_p0 = pnand %p10679_p13, %p10676_p12 }
  0x60   :  { %10684 = shalt.err (!%p10681_p0)
}
  0x61   :  { %s10685_s23 = scalar_lea.vmem %s11009_s27, 48  ;;  %s10689_s10 = scalar_lea.vmem %s11009_s27, 64 }
  0x62   :  { %p10686_p1 = scmp.ne.s32.totalorder %s11009_s27, %s10685_s23  ;;  %p10690_p2 = scmp.lt.s32.totalorder %s11009_s27, %s11009_s27 }
  0x63   :  { %p10691_p3 = scmp.lt.s32.totalorder %s10689_s10, %s10685_s23 }
  0x65   :  { %p10692_p4 = por %p10691_p3, %p10690_p2 }
  0x67   :  { %p10693_p5 = pnand %p10692_p4, %p10686_p1 }
  0x69   :  { %10696 = shalt.err (!%p10693_p5)
}
  0x6a   :  { %s10873_s24 = smov 16   ;;  %s10874_s25 = smov 1  }
  0x6b   :  { %39 = dma.hbm_to_vmem [thread:$0]  %s12325_s1, 48, %s11009_s27, [#allocation3], %s10873_s24, %s10873_s24, %s10874_s25  }
  0x6c   :  { %s10875_s28 = smov [#allocation7]   ;;  %s10697_s16 = scalar_lea.hbm %s12327_s3, 1536 }
  0x6d   :  { %s55_s30 = sshll.u32 %s10875_s28, 4  ;;  %p10698_p6 = scmp.ne.s32.totalorder %s12327_s3, %s10697_s16  ;;  %s56_s30 = int_to_ptr.vmem [resolvable:$true] %s55_s30 }
  0x6e   :  { %p10701_p7 = scmp.lt.u32.totalorder %s10697_s16, %s12327_s3 }
  0x70   :  { %p10703_p8 = pnand %p10701_p7, %p10698_p6 }
  0x72   :  { %10706 = shalt.err (!%p10703_p8)
}
  0x73   :  { %s10707_s17 = scalar_lea.vmem %s56_s30, 1536  ;;  %p10712_p10 = scmp.lt.s32.totalorder %s56_s30, %s56_s30 }
  0x74   :  { %p10708_p9 = scmp.ne.s32.totalorder %s56_s30, %s10707_s17  ;;  %p10713_p11 = scmp.lt.s32.totalorder %s10707_s17, %s10707_s17 }
  0x76   :  { %p10714_p12 = por %p10713_p11, %p10712_p10 }
  0x78   :  { %p10715_p13 = pnand %p10714_p12, %p10708_p9 }
  0x7a   :  { %10718 = shalt.err (!%p10715_p13)
}
  0x7b   :  { %s10876_s1 = smov 128   ;;  %s10877_s27 = smov 8  }
  0x7c   :  { %61 = dma.hbm_to_vmem [thread:$0]  %s12327_s3, 1536, %s56_s30, [#allocation6], %s10876_s1, %s10876_s1, %s10877_s27  }
  0x7d   :  { %s10878_s22 = smov [#allocation10]   ;;  %s10879_s18 = smov [#allocation13]  }
  0x7e   :  { %s77_s6 = sshll.u32 %s10878_s22, 4  ;;  %s99_s23 = sshll.u32 %s10879_s18, 4  ;;  %s78_s6 = int_to_ptr.vmem [resolvable:$true] %s77_s6  ;;  %s100_s23 = int_to_ptr.vmem [resolvable:$true] %s99_s23 }
  0x7f   :  { %s10719_s29 = scalar_lea.hbm %s12329_s5, 3072 }
  0x80   :  { %p10720_p0 = scmp.ne.s32.totalorder %s12329_s5, %s10719_s29  ;;  %p10723_p1 = scmp.lt.u32.totalorder %s10719_s29, %s12329_s5 }
  0x82   :  { %p10725_p2 = pnand %p10723_p1, %p10720_p0 }
  0x84   :  { %10728 = shalt.err (!%p10725_p2)
}
  0x85   :  { %s10729_s3 = scalar_lea.vmem %s78_s6, 3072  ;;  %p10734_p4 = scmp.lt.s32.totalorder %s78_s6, %s78_s6 }
  0x86   :  { %p10730_p3 = scmp.ne.s32.totalorder %s78_s6, %s10729_s3  ;;  %p10735_p5 = scmp.lt.s32.totalorder %s10729_s3, %s10729_s3 }
  0x88   :  { %p10736_p6 = por %p10735_p5, %p10734_p4 }
  0x8a   :  { %p10737_p7 = pnand %p10736_p6, %p10730_p3 }
  0x8c   :  { %10740 = shalt.err (!%p10737_p7)
}
  0x8d   :  { %83 = dma.hbm_to_vmem [thread:$0]  %s12329_s5, 3072, %s78_s6, [#allocation9], %s10876_s1, %s10876_s1, %s10877_s27  }
  0x8e   :  { %s10741_s2 = scalar_lea.hbm %s12331_s7, 12288 }
  0x8f   :  { %p10742_p8 = scmp.ne.s32.totalorder %s12331_s7, %s10741_s2  ;;  %p10745_p9 = scmp.lt.u32.totalorder %s10741_s2, %s12331_s7 }
  0x91   :  { %p10747_p10 = pnand %p10745_p9, %p10742_p8 }
  0x93   :  { %10750 = shalt.err (!%p10747_p10)
}
  0x94   :  { %s10751_s22 = scalar_lea.vmem %s100_s23, 12288  ;;  %p10756_p12 = scmp.lt.s32.totalorder %s100_s23, %s100_s23 }
  0x95   :  { %p10752_p11 = scmp.ne.s32.totalorder %s100_s23, %s10751_s22  ;;  %p10757_p13 = scmp.lt.s32.totalorder %s10751_s22, %s10751_s22 }
  0x97   :  { %p10758_p0 = por %p10757_p13, %p10756_p12 }
  0x99   :  { %p10759_p1 = pnand %p10758_p0, %p10752_p11 }
  0x9b   :  { %10762 = shalt.err (!%p10759_p1)
}
  0x9c   :  { %s10880_s5 = smov 256   ;;  %s10881_s6 = smov [#allocation16]  }
  0x9d   :  { %105 = dma.hbm_to_vmem [thread:$0]  %s12331_s7, 12288, %s100_s23, [#allocation12], %s10880_s5, %s10880_s5, %s10873_s24  }
  0x9e   :  { %s121_s18 = sshll.u32 %s10881_s6, 4  ;;  %s10763_s29 = scalar_lea.hbm %s12333_s9, 49152  ;;  %s122_s18 = int_to_ptr.vmem [resolvable:$true] %s121_s18 }
  0x9f   :  { %p10764_p2 = scmp.ne.s32.totalorder %s12333_s9, %s10763_s29  ;;  %p10767_p3 = scmp.lt.u32.totalorder %s10763_s29, %s12333_s9 }
  0xa1   :  { %p10769_p4 = pnand %p10767_p3, %p10764_p2 }
  0xa3   :  { %10772 = shalt.err (!%p10769_p4)
}
  0xa4   :  { %s10773_s3 = scalar_lea.vmem %s122_s18, 49152  ;;  %p10778_p6 = scmp.lt.s32.totalorder %s122_s18, %s122_s18 }
  0xa5   :  { %p10774_p5 = scmp.ne.s32.totalorder %s122_s18, %s10773_s3  ;;  %p10779_p7 = scmp.lt.s32.totalorder %s10773_s3, %s10773_s3 }
  0xa7   :  { %p10780_p8 = por %p10779_p7, %p10778_p6 }
  0xa9   :  { %p10781_p9 = pnand %p10780_p8, %p10774_p5 }
  0xab   :  { %10784 = shalt.err (!%p10781_p9)
}
  0xac   :  { %s10882_s7 = smov 512   ;;  %s10883_s24 = smov 32  }
  0xad   :  { %127 = dma.hbm_to_vmem [thread:$0]  %s12333_s9, 49152, %s122_s18, [#allocation15], %s10882_s7, %s10882_s7, %s10883_s24  }
  0xae   :  { %s10884_s16 = smov [#allocation19]   ;;  %s10785_s26 = scalar_lea.hbm %s12335_s11, 196608 }
  0xaf   :  { %s143_s8 = sshll.u32 %s10884_s16, 4  ;;  %p10786_p10 = scmp.ne.s32.totalorder %s12335_s11, %s10785_s26  ;;  %s144_s8 = int_to_ptr.vmem [resolvable:$true] %s143_s8 }
  0xb0   :  { %p10789_p11 = scmp.lt.u32.totalorder %s10785_s26, %s12335_s11 }
  0xb2   :  { %p10791_p12 = pnand %p10789_p11, %p10786_p10 }
  0xb4   :  { %10794 = shalt.err (!%p10791_p12)
}
  0xb5   :  { %s10795_s5 = scalar_lea.vmem %s144_s8, 196608  ;;  %p10800_p0 = scmp.lt.s32.totalorder %s144_s8, %s144_s8 }
  0xb6   :  { %p10796_p13 = scmp.ne.s32.totalorder %s144_s8, %s10795_s5  ;;  %p10801_p1 = scmp.lt.s32.totalorder %s10795_s5, %s10795_s5 }
  0xb8   :  { %p10802_p2 = por %p10801_p1, %p10800_p0 }
  0xba   :  { %p10803_p3 = pnand %p10802_p2, %p10796_p13 }
  0xbc   :  { %10806 = shalt.err (!%p10803_p3)
}
  0xbd   :  { %s10885_s9 = smov 1024   ;;  %s10886_s1 = smov 64  }
  0xbe   :  { %149 = dma.hbm_to_vmem [thread:$0]  %s12335_s11, 196608, %s144_s8, [#allocation18], %s10885_s9, %s10885_s9, %s10886_s1  }
  0xbf   :  { %s10887_s18 = smov [#allocation20]   ;;  %s10807_s4 = scalar_lea.hbm %s12336_s12, 128 }
  0xc0   :  { %s156_s10 = sshll.u32 %s10887_s18, 4  ;;  %p10808_p4 = scmp.ne.s32.totalorder %s12336_s12, %s10807_s4  ;;  %s157_s10 = int_to_ptr.vmem [resolvable:$true] %s156_s10 }
  0xc1   :  { %p10811_p5 = scmp.lt.u32.totalorder %s10807_s4, %s12336_s12 }
  0xc3   :  { %p10813_p6 = pnand %p10811_p5, %p10808_p4 }
  0xc5   :  { %10816 = shalt.err (!%p10813_p6)
}
  0xc6   :  { %s10817_s7 = scalar_lea.vmem %s157_s10, 128  ;;  %p10822_p8 = scmp.lt.s32.totalorder %s157_s10, %s157_s10 }
  0xc7   :  { %p10818_p7 = scmp.ne.s32.totalorder %s157_s10, %s10817_s7  ;;  %p10823_p9 = scmp.lt.s32.totalorder %s10817_s7, %s10817_s7 }
  0xc9   :  { %p10824_p10 = por %p10823_p9, %p10822_p8 }
  0xcb   :  { %p10825_p11 = pnand %p10824_p10, %p10818_p7 }
  0xcd   :  { %10828 = shalt.err (!%p10825_p11)
}
  0xce   :  { %159 = dma.hbm_to_vmem [thread:$0]  %s12336_s12, 128, %s157_s10, [#allocation21]  }
  0xcf   :  { %10851 = dma.done.wait [#allocation3], 48  }
  0xd0   :  { %10852 = vsyncadd [#allocation3], 4294967248 }
  0xd1   :  { %10853 = dma.done.wait [#allocation6], 1552  }
  0xd2   :  { %10854 = vsyncadd [#allocation6], 4294965744 }
  0xd3   :  { %10855 = dma.done.wait [#allocation9], 3088  }
  0xd4   :  { %10856 = vsyncadd [#allocation9], 4294964208 }
  0xd5   :  { %10857 = dma.done.wait [#allocation12], 12304  }
  0xd6   :  { %10858 = vsyncadd [#allocation12], 4294954992 }
  0xd7   :  { %10859 = dma.done.wait [#allocation15], 49184  }
  0xd8   :  { %10860 = vsyncadd [#allocation15], 4294918112 }
  0xd9   :  { %10861 = dma.done.wait [#allocation18], 196672  }
  0xda   :  { %10862 = vsyncadd [#allocation18], 4294770624 }
  0xdb   :  { %10863 = dma.done.wait [#allocation21], 128  }
  0xdc   :  { %10864 = vsyncadd [#allocation21], 4294967168  ;;  %v10888_v0 = vmov 0   ;;  %v198_v1 = vld [vmem:[%s12324_s0 + $0x10] sm:$0xff]  ;;  %v196_v2 = vld [vmem:[%s12324_s0] sm:$0xff]  ;;  %vm1104_vm0 = vcmask 261120  }
  0xdd   :  { %10560 = vset.pattern.permute.xlu1 %v10888_v0  ;;  %10559 = vset.pattern.permute.xlu0 %v10888_v0  ;;  %v199_v3 = vld [vmem:[%s12324_s0 + $0x18] sm:$0xff]  ;;  %v197_v4 = vld [vmem:[%s12324_s0 + $0x8] sm:$0xff]  ;;  %v200_v6 = vld [vmem:[%s12324_s0 + $0x20] sm:$0xff]  ;;  %vm2019_vm1 = vcmask 523264  }
  0xde   :  { %278 = vperm.xlu1 %10560, %v198_v1   ;;  %268 = vperm.xlu0 %10559, %v196_v2   ;;  %v201_v5 = vld [vmem:[%s12324_s0 + $0x28] sm:$0xff]  ;;  %v203_v7 = vld [vmem:[%s12324_s0 + $0x38] sm:$0xff]  ;;  %v202_v8 = vld [vmem:[%s12324_s0 + $0x30] sm:$0xff] }
  0xdf   :  { %v205_v9 = vld [vmem:[%s12324_s0 + $0x48] sm:$0xff]  ;;  %v204_v10 = vld [vmem:[%s12324_s0 + $0x40] sm:$0xff]  ;;  %v207_v11 = vld [vmem:[%s12324_s0 + $0x58] sm:$0xff] }
  0xe0   :  { %v206_v12 = vld [vmem:[%s12324_s0 + $0x50] sm:$0xff]  ;;  %v209_v13 = vld [vmem:[%s12324_s0 + $0x68] sm:$0xff]  ;;  %v208_v14 = vld [vmem:[%s12324_s0 + $0x60] sm:$0xff] }
  0xe1   :  { %v1100_v15 = vld [vmem:[#allocation7 + $0x20] sm:$0xff]  ;;  %v1101_v16 = vld [vmem:[#allocation7 + $0x28] sm:$0xff]  ;;  %v1102_v17 = vld [vmem:[#allocation7 + $0x30] sm:$0xff] }
  0xe2   :  { %283 = vperm.xlu1 %10560, %v199_v3   ;;  %273 = vperm.xlu0 %10559, %v197_v4   ;;  %v1103_v18 = vld [vmem:[#allocation7 + $0x38] sm:$0xff]  ;;  %v8207_v19 = vpack.c.bf16 %v1101_v16, %v1100_v15  ;;  %v210_v22 = vld [vmem:[%s12324_s0 + $0x70] sm:$0xff]  ;;  %v213_v23 = vld [vmem:[%s12324_s0 + $0x88] sm:$0xff] }
  0xe3   :  { %v8211_v20 = vpack.c.bf16 %v1103_v18, %v1102_v17  ;;  %v211_v21 = vld [vmem:[%s12324_s0 + $0x78] sm:$0xff]  ;;  %v212_v24 = vld [vmem:[%s12324_s0 + $0x80] sm:$0xff]  ;;  %v214_v26 = vld [vmem:[%s12324_s0 + $0x90] sm:$0xff] }
  0xe4   :  { %8208 = vmatprep.subr.bf16.mxu0 %v8207_v19  ;;  %v215_v25 = vld [vmem:[%s12324_s0 + $0x98] sm:$0xff]  ;;  %v217_v27 = vld [vmem:[%s12324_s0 + $0xa8] sm:$0xff]  ;;  %v216_v28 = vld [vmem:[%s12324_s0 + $0xa0] sm:$0xff] }
  0xe5   :  { %8210 = vmatpush3.bf16.msra.mxu0 %v8207_v19  ;;  %v219_v29 = vld [vmem:[%s12324_s0 + $0xb8] sm:$0xff]  ;;  %v218_v30 = vld [vmem:[%s12324_s0 + $0xb0] sm:$0xff]  ;;  %v221_v31 = vld [vmem:[%s12324_s0 + $0xc8] sm:$0xff] }
  0xe6   :  { %293 = vperm.xlu1 %10560, %v201_v5   ;;  %288 = vperm.xlu0 %10559, %v200_v6   ;;  %v220_v32 = vld [vmem:[%s12324_s0 + $0xc0] sm:$0xff]  ;;  %v223_v33 = vld [vmem:[%s12324_s0 + $0xd8] sm:$0xff]  ;;  %v222_v34 = vld [vmem:[%s12324_s0 + $0xd0] sm:$0xff] }
  0xe7   :  { %8212 = vmatprep.subr.bf16.mxu0 %v8211_v20  ;;  %v225_v35 = vld [vmem:[%s12324_s0 + $0xe8] sm:$0xff]  ;;  %v224_v36 = vld [vmem:[%s12324_s0 + $0xe0] sm:$0xff]  ;;  %v227_v37 = vld [vmem:[%s12324_s0 + $0xf8] sm:$0xff] }
  0xe8   :  { %v226_v38 = vld [vmem:[%s12324_s0 + $0xf0] sm:$0xff]  ;;  %v229_v39 = vld [vmem:[%s12324_s0 + $0x108] sm:$0xff]  ;;  %v228_v40 = vld [vmem:[%s12324_s0 + $0x100] sm:$0xff] }
  0xe9   :  { %8214 = vmatpush3.bf16.msra.mxu0 %v8211_v20  ;;  %v231_v41 = vld [vmem:[%s12324_s0 + $0x118] sm:$0xff]  ;;  %v230_v42 = vld [vmem:[%s12324_s0 + $0x110] sm:$0xff]  ;;  %v233_v43 = vld [vmem:[%s12324_s0 + $0x128] sm:$0xff] }
  0xea   :  { %303 = vperm.xlu1 %10560, %v203_v7   ;;  %298 = vperm.xlu0 %10559, %v202_v8   ;;  %v232_v44 = vld [vmem:[%s12324_s0 + $0x120] sm:$0xff]  ;;  %v235_v45 = vld [vmem:[%s12324_s0 + $0x138] sm:$0xff]  ;;  %v234_v46 = vld [vmem:[%s12324_s0 + $0x130] sm:$0xff] }
  0xeb   :  { %v237_v47 = vld [vmem:[%s12324_s0 + $0x148] sm:$0xff]  ;;  %v236_v48 = vld [vmem:[%s12324_s0 + $0x140] sm:$0xff]  ;;  %v239_v52 = vld [vmem:[%s12324_s0 + $0x158] sm:$0xff] }
  0xec   :  { %v1095_v49 = vld [vmem:[#allocation7] sm:$0xff]  ;;  %v1096_v50 = vld [vmem:[#allocation7 + $0x8] sm:$0xff]  ;;  %v243_v56 = vld [vmem:[%s12324_s0 + $0x178] sm:$0xff] }
  0xed   :  { %v11242_v51 = vpack.c.bf16 %v1096_v50, %v1095_v49  ;;  %v238_v53 = vld [vmem:[%s12324_s0 + $0x150] sm:$0xff]  ;;  %v241_v54 = vld [vmem:[%s12324_s0 + $0x168] sm:$0xff]  ;;  %v240_v55 = vld [vmem:[%s12324_s0 + $0x160] sm:$0xff] }
  0xee   :  { %313 = vperm.xlu1 %10560, %v205_v9   ;;  %308 = vperm.xlu0 %10559, %v204_v10   ;;  %v242_v57 = vld [vmem:[%s12324_s0 + $0x170] sm:$0xff]  ;;  %v245_v58 = vld [vmem:[%s12324_s0 + $0x188] sm:$0xff]  ;;  %v244_v59 = vld [vmem:[%s12324_s0 + $0x180] sm:$0xff] }
  0xef   :  { %8216 = vmatprep.subr.bf16.mxu0 %v11242_v51  ;;  %v247_v60 = vld [vmem:[%s12324_s0 + $0x198] sm:$0xff]  ;;  %v246_v61 = vld [vmem:[%s12324_s0 + $0x190] sm:$0xff]  ;;  %v249_v62 = vld [vmem:[%s12324_s0 + $0x1a8] sm:$0xff] }
  0xf0   :  { %v248_v63 = vld [vmem:[%s12324_s0 + $0x1a0] sm:$0xff]  ;;  %v251_v0 = vld [vmem:[%s12324_s0 + $0x1b8] sm:$0xff]  ;;  %v250_v1 = vld [vmem:[%s12324_s0 + $0x1b0] sm:$0xff] }
  0xf1   :  { %v253_v2 = vld [vmem:[%s12324_s0 + $0x1c8] sm:$0xff]  ;;  %v252_v3 = vld [vmem:[%s12324_s0 + $0x1c0] sm:$0xff]  ;;  %v255_v4 = vld [vmem:[%s12324_s0 + $0x1d8] sm:$0xff] }
  0xf2   :  { %323 = vperm.xlu1 %10560, %v207_v11   ;;  %318 = vperm.xlu0 %10559, %v206_v12   ;;  %v254_v5 = vld [vmem:[%s12324_s0 + $0x1d0] sm:$0xff]  ;;  %v257_v6 = vld [vmem:[%s12324_s0 + $0x1e8] sm:$0xff]  ;;  %v256_v7 = vld [vmem:[%s12324_s0 + $0x1e0] sm:$0xff] }
  0xf3   :  { %v259_v8 = vld [vmem:[%s12324_s0 + $0x1f8] sm:$0xff]  ;;  %v258_v9 = vld [vmem:[%s12324_s0 + $0x1f0] sm:$0xff]  ;;  %v11311_v10 = vld [vmem:[#allocation2] ss:$0 sm:$0xff]  ;;  %s10890_s0 = smov [#allocation22]  }
  0xf4   :  { %v11313_v11 = vld [vmem:[#allocation2 + $0x1] ss:$0 sm:$0xff]  ;;  %v11317_v18 = vld [vmem:[#allocation2 + $0x2] ss:$0 sm:$0xff]  ;;  %s7578_s5 = sshll.u32 %s10890_s0, 4  ;;  %s7579_s5 = int_to_ptr.vmem [resolvable:$true] %s7578_s5 }
  0xf5   :  { %s10829_s9 = scalar_lea.vmem %s7579_s5, 1024  ;;  %p10834_p13 = scmp.lt.s32.totalorder %s7579_s5, %s7579_s5 }
  0xf6   :  { %333 = vperm.xlu1 %10560, %v209_v13   ;;  %328 = vperm.xlu0 %10559, %v208_v14   ;;  %v587_v14 = vmul.f32 0.0, %v11311_v10  ;;  %p10830_p12 = scmp.ne.s32.totalorder %s7579_s5, %s10829_s9  ;;  %p10835_p0 = scmp.lt.s32.totalorder %s10829_s9, %s10829_s9 }
  0xf8   :  { %p10836_p1 = por %p10835_p0, %p10834_p13 }
  0xfa   :  { %343 = vperm.xlu1 %10560, %v211_v21   ;;  %338 = vperm.xlu0 %10559, %v210_v22   ;;  %p10837_p2 = pnand %p10836_p1, %p10830_p12 }
  0xfe   :  { %353 = vperm.xlu1 %10560, %v213_v23   ;;  %348 = vperm.xlu0 %10559, %v212_v24  }
 0x102   :  { %363 = vperm.xlu1 %10560, %v215_v25   ;;  %358 = vperm.xlu0 %10559, %v214_v26  }
 0x106   :  { %373 = vperm.xlu1 %10560, %v217_v27   ;;  %368 = vperm.xlu0 %10559, %v216_v28  }
 0x10a   :  { %383 = vperm.xlu1 %10560, %v219_v29   ;;  %378 = vperm.xlu0 %10559, %v218_v30  }
 0x10e   :  { %393 = vperm.xlu1 %10560, %v221_v31   ;;  %388 = vperm.xlu0 %10559, %v220_v32  }
 0x112   :  { %403 = vperm.xlu1 %10560, %v223_v33   ;;  %398 = vperm.xlu0 %10559, %v222_v34   ;;  %v1097_v34 = vld [vmem:[#allocation7 + $0x10] sm:$0xff] }
 0x116   :  { %413 = vperm.xlu1 %10560, %v225_v35   ;;  %408 = vperm.xlu0 %10559, %v224_v36   ;;  %v1098_v35 = vld [vmem:[#allocation7 + $0x18] sm:$0xff] }
 0x11a   :  { %423 = vperm.xlu1 %10560, %v227_v37   ;;  %418 = vperm.xlu0 %10559, %v226_v38   ;;  %v11329_v38 = vld [vmem:[#allocation5] ss:$0 sm:$0xff] }
 0x11e   :  { %433 = vperm.xlu1 %10560, %v229_v39   ;;  %428 = vperm.xlu0 %10559, %v228_v40  }
 0x122   :  { %443 = vperm.xlu1 %10560, %v231_v41   ;;  %438 = vperm.xlu0 %10559, %v230_v42  }
 0x126   :  { %453 = vperm.xlu1 %10560, %v233_v43   ;;  %448 = vperm.xlu0 %10559, %v232_v44  }
 0x12a   :  { %463 = vperm.xlu1 %10560, %v235_v45   ;;  %458 = vperm.xlu0 %10559, %v234_v46  }
 0x12e   :  { %473 = vperm.xlu1 %10560, %v237_v47   ;;  %468 = vperm.xlu0 %10559, %v236_v48   ;;  %v11337_v47 = vpack.c.bf16 %v1098_v35, %v1097_v34 }
 0x132   :  { %483 = vperm.xlu1 %10560, %v239_v52   ;;  %478 = vperm.xlu0 %10559, %v238_v53  }
 0x136   :  { %493 = vperm.xlu1 %10560, %v241_v54   ;;  %488 = vperm.xlu0 %10559, %v240_v55  }
 0x13a   :  { %503 = vperm.xlu1 %10560, %v243_v56   ;;  %498 = vperm.xlu0 %10559, %v242_v57  }
 0x13e   :  { %513 = vperm.xlu1 %10560, %v245_v58   ;;  %508 = vperm.xlu0 %10559, %v244_v59  }
 0x142   :  { %523 = vperm.xlu1 %10560, %v247_v60   ;;  %518 = vperm.xlu0 %10559, %v246_v61  }
 0x146   :  { %533 = vperm.xlu1 %10560, %v249_v62   ;;  %528 = vperm.xlu0 %10559, %v248_v63  }
 0x14a   :  { %543 = vperm.xlu1 %10560, %v251_v0   ;;  %538 = vperm.xlu0 %10559, %v250_v1  }
 0x14e   :  { %553 = vperm.xlu1 %10560, %v253_v2   ;;  %548 = vperm.xlu0 %10559, %v252_v3  }
 0x152   :  { %563 = vperm.xlu1 %10560, %v255_v4   ;;  %558 = vperm.xlu0 %10559, %v254_v5  }
 0x156   :  { %573 = vperm.xlu1 %10560, %v257_v6   ;;  %568 = vperm.xlu0 %10559, %v256_v7  }
 0x15a   :  { %655 = vperm.xlu1 %10560, %v259_v8   ;;  %578 = vperm.xlu0 %10559, %v258_v9  }
 0x15d   :  { %v279_v12 = vpop.permute.xlu1 %278  ;;  %v269_v13 = vpop.permute.xlu0 %268 }
 0x15e   :  { %v664_v15 = vmul.f32 %v11313_v11, %v269_v13  ;;  %v666_v19 = vmul.f32 %v11313_v11, %v279_v12  ;;  %v588_v22 = vmul.f32 %v11311_v10, %v269_v13  ;;  %v590_v26 = vmul.f32 %v11311_v10, %v279_v12 }
 0x15f   :  { %v801_v29 = vmul.f32 %v11317_v18, %v279_v12 }
 0x160   :  { %v728_v23 = vadd.f32 %v664_v15, %v587_v14 }
 0x161   :  { %v284_v16 = vpop.permute.xlu1 %283  ;;  %v274_v17 = vpop.permute.xlu0 %273 }
 0x162   :  { %v667_v20 = vmul.f32 %v11313_v11, %v284_v16  ;;  %v589_v21 = vmul.f32 %v11311_v10, %v274_v17  ;;  %v665_v24 = vmul.f32 %v11313_v11, %v274_v17  ;;  %v800_v25 = vmul.f32 %v11317_v18, %v274_v17 }
 0x163   :  { %v802_v27 = vmul.f32 %v11317_v18, %v284_v16  ;;  %v591_v36 = vmul.f32 %v11311_v10, %v284_v16 }
 0x164   :  { %v730_v28 = vadd.f32 %v666_v19, %v589_v21  ;;  %v729_v30 = vadd.f32 %v665_v24, %v588_v22  ;;  %v864_v31 = vadd.f32 %v800_v25, %v728_v23  ;;  %v731_v37 = vadd.f32 %v667_v20, %v590_v26 }
 0x165   :  { %v294_v32 = vpop.permute.xlu1 %293  ;;  %v289_v33 = vpop.permute.xlu0 %288 }
 0x166   :  { %v866_v39 = vadd.f32 %v802_v27, %v730_v28  ;;  %v669_v40 = vmul.f32 %v11313_v11, %v294_v32  ;;  %v592_v41 = vmul.f32 %v11311_v10, %v289_v33  ;;  %v668_v42 = vmul.f32 %v11313_v11, %v289_v33 }
 0x167   :  { %v803_v43 = vmul.f32 %v11317_v18, %v289_v33  ;;  %v865_v44 = vadd.f32 %v801_v29, %v729_v30  ;;  %v593_v45 = vmul.f32 %v11311_v10, %v294_v32  ;;  %v804_v46 = vmul.f32 %v11317_v18, %v294_v32  ;;  %v1654_v30 = vld [vmem:[#allocation7 + $0x40] sm:$0xff] }
 0x168   :  { %v732_v48 = vadd.f32 %v668_v42, %v591_v36  ;;  %v935_v53 = vadd.f32 %v11329_v38, %v864_v31  ;;  %v937_v55 = vadd.f32 %v11329_v38, %v866_v39  ;;  %v733_v56 = vadd.f32 %v669_v40, %v592_v41  ;;  %v1655_v31 = vld [vmem:[#allocation7 + $0x48] sm:$0xff] }
 0x169   :  { %v867_v49 = vadd.f32 %v803_v43, %v731_v37  ;;  %v304_v50 = vpop.permute.xlu1 %303  ;;  %v299_v52 = vpop.permute.xlu0 %298  ;;  %v936_v54 = vadd.f32 %v11329_v38, %v865_v44  ;;  %v11376_v44 = vpack.c.bf16 %v1655_v31, %v1654_v30 }
 0x16a   :  { %v671_v57 = vmul.f32 %v11313_v11, %v304_v50  ;;  %v594_v58 = vmul.f32 %v11311_v10, %v299_v52  ;;  %v868_v59 = vadd.f32 %v804_v46, %v732_v48  ;;  %v670_v61 = vmul.f32 %v11313_v11, %v299_v52 }
 0x16b   :  { %v938_v60 = vadd.f32 %v11329_v38, %v867_v49  ;;  %v805_v62 = vmul.f32 %v11317_v18, %v299_v52  ;;  %v595_v63 = vmul.f32 %v11311_v10, %v304_v50  ;;  %v806_v0 = vmul.f32 %v11317_v18, %v304_v50 }
 0x16c   :  { %v735_v1 = vadd.f32 %v671_v57, %v594_v58  ;;  %v1000_v2 = vmax.f32 %v936_v54, 0.0  ;;  %v734_v4 = vadd.f32 %v670_v61, %v593_v45  ;;  %v999_v8 = vmax.f32 %v935_v53, 0.0 }
 0x16d   :  { %v1002_v3 = vmax.f32 %v938_v60, 0.0  ;;  %v869_v5 = vadd.f32 %v805_v62, %v733_v56  ;;  %v314_v6 = vpop.permute.xlu1 %313  ;;  %v309_v7 = vpop.permute.xlu0 %308  ;;  %v939_v9 = vadd.f32 %v11329_v38, %v868_v59  ;;  %v1001_v14 = vmax.f32 %v937_v55, 0.0 }
 0x16e   :  { %v673_v12 = vmul.f32 %v11313_v11, %v314_v6  ;;  %v596_v13 = vmul.f32 %v11311_v10, %v309_v7  ;;  %v870_v15 = vadd.f32 %v806_v0, %v734_v4  ;;  %v672_v17 = vmul.f32 %v11313_v11, %v309_v7 }
 0x16f   :  { %v940_v16 = vadd.f32 %v11329_v38, %v869_v5  ;;  %v807_v19 = vmul.f32 %v11317_v18, %v309_v7  ;;  %v597_v20 = vmul.f32 %v11311_v10, %v314_v6  ;;  %v808_v21 = vmul.f32 %v11317_v18, %v314_v6 }
 0x170   :  { %v11357_v22 = vmax.f32 %v999_v8, %v1000_v2  ;;  %v11359_v23 = vmax.f32 %v1001_v14, %v1002_v3  ;;  %v736_v25 = vadd.f32 %v672_v17, %v595_v63  ;;  %v737_v26 = vadd.f32 %v673_v12, %v596_v13 }
 0x171   :  { %v1004_v24 = vmax.f32 %v940_v16, 0.0  ;;  %v871_v27 = vadd.f32 %v807_v19, %v735_v1  ;;  %v324_v28 = vpop.permute.xlu1 %323  ;;  %v319_v29 = vpop.permute.xlu0 %318  ;;  %v941_v32 = vadd.f32 %v11329_v38, %v870_v15  ;;  %v1003_v35 = vmax.f32 %v939_v9, 0.0 }
 0x172   :  { %7927 = vmatprep.mubr.msk.f32.mxu0 %vm1104_vm0, %v11357_v22  ;;  %v675_v33 = vmul.f32 %v11313_v11, %v324_v28  ;;  %v598_v34 = vmul.f32 %v11311_v10, %v319_v29  ;;  %v872_v36 = vadd.f32 %v808_v21, %v736_v25  ;;  %v674_v39 = vmul.f32 %v11313_v11, %v319_v29 }
 0x173   :  { %v942_v37 = vadd.f32 %v11329_v38, %v871_v27  ;;  %7928 = vmatmul.mubr.msk.f32.vlgmr.msra.gmra.mrb[0].mxu0 %vm1104_vm0, %v11359_v23  ;;  %v809_v40 = vmul.f32 %v11317_v18, %v319_v29  ;;  %v599_v41 = vmul.f32 %v11311_v10, %v324_v28  ;;  %v810_v42 = vmul.f32 %v11317_v18, %v324_v28 }
 0x174   :  { %v11373_v43 = vmax.f32 %v1003_v35, %v1004_v24  ;;  %8218 = vmatpush3.bf16.msra.mxu0 %v11242_v51  ;;  %v738_v46 = vadd.f32 %v674_v39, %v597_v20  ;;  %v739_v48 = vadd.f32 %v675_v33, %v598_v34  ;;  %v943_v53 = vadd.f32 %v11329_v38, %v872_v36 }
 0x175   :  { %v1006_v45 = vmax.f32 %v942_v37, 0.0  ;;  %v873_v49 = vadd.f32 %v809_v40, %v737_v26  ;;  %v334_v50 = vpop.permute.xlu1 %333  ;;  %v329_v52 = vpop.permute.xlu0 %328  ;;  %8220 = vmatprep.subr.bf16.mxu0 %v11337_v47  ;;  %v1005_v51 = vmax.f32 %v941_v32, 0.0 }
 0x176   :  { %7930 = vmatprep.mubr.msk.f32.mxu0 %vm1104_vm0, %v11373_v43  ;;  %v677_v54 = vmul.f32 %v11313_v11, %v334_v50  ;;  %v600_v55 = vmul.f32 %v11311_v10, %v329_v52  ;;  %v874_v56 = vadd.f32 %v810_v42, %v738_v46  ;;  %v676_v58 = vmul.f32 %v11313_v11, %v329_v52 }
 0x177   :  { %v944_v57 = vadd.f32 %v11329_v38, %v873_v49  ;;  %v811_v59 = vmul.f32 %v11317_v18, %v329_v52  ;;  %v601_v60 = vmul.f32 %v11311_v10, %v334_v50  ;;  %v812_v61 = vmul.f32 %v11317_v18, %v334_v50 }
 0x178   :  { %v11389_v62 = vmax.f32 %v1005_v51, %v1006_v45  ;;  %8222 = vmatpush3.bf16.msra.mxu0 %v11337_v47  ;;  %v740_v0 = vadd.f32 %v676_v58, %v599_v41  ;;  %v741_v1 = vadd.f32 %v677_v54, %v600_v55  ;;  %v945_v5 = vadd.f32 %v11329_v38, %v874_v56 }
 0x179   :  { %v1008_v63 = vmax.f32 %v944_v57, 0.0  ;;  %v875_v2 = vadd.f32 %v811_v59, %v739_v48  ;;  %v344_v3 = vpop.permute.xlu1 %343  ;;  %v339_v4 = vpop.permute.xlu0 %338  ;;  %8224 = vmatprep.subr.bf16.mxu0 %v11376_v44  ;;  %v1007_v8 = vmax.f32 %v943_v53, 0.0 }
 0x17a   :  { %7931 = vmatmul.mubr.msk.f32.gmra.mrb[2].mxu0 %vm1104_vm0, %v11389_v62  ;;  %v679_v6 = vmul.f32 %v11313_v11, %v344_v3  ;;  %v602_v7 = vmul.f32 %v11311_v10, %v339_v4  ;;  %v876_v9 = vadd.f32 %v812_v61, %v740_v0  ;;  %v678_v12 = vmul.f32 %v11313_v11, %v339_v4 }
 0x17b   :  { %v946_v47 = vadd.f32 %v11329_v38, %v875_v2  ;;  %v813_v13 = vmul.f32 %v11317_v18, %v339_v4  ;;  %v603_v14 = vmul.f32 %v11311_v10, %v344_v3  ;;  %v814_v15 = vmul.f32 %v11317_v18, %v344_v3 }
 0x17c   :  { %v11403_v16 = vmax.f32 %v1007_v8, %v1008_v63  ;;  %v742_v19 = vadd.f32 %v678_v12, %v601_v60  ;;  %v743_v20 = vadd.f32 %v679_v6, %v602_v7  ;;  %v947_v26 = vadd.f32 %v11329_v38, %v876_v9 }
 0x17d   :  { %v1010_v17 = vmax.f32 %v946_v47, 0.0  ;;  %v877_v21 = vadd.f32 %v813_v13, %v741_v1  ;;  %v354_v24 = vpop.permute.xlu1 %353  ;;  %v349_v25 = vpop.permute.xlu0 %348  ;;  %v1009_v29 = vmax.f32 %v945_v5, 0.0 }
 0x17e   :  { %7933 = vmatprep.mubr.msk.f32.mxu0 %vm1104_vm0, %v11403_v16  ;;  %v681_v27 = vmul.f32 %v11313_v11, %v354_v24  ;;  %v604_v28 = vmul.f32 %v11311_v10, %v349_v25  ;;  %v878_v30 = vadd.f32 %v814_v15, %v742_v19  ;;  %v680_v32 = vmul.f32 %v11313_v11, %v349_v25 }
 0x17f   :  { %v948_v31 = vadd.f32 %v11329_v38, %v877_v21  ;;  %v815_v33 = vmul.f32 %v11317_v18, %v349_v25  ;;  %v605_v34 = vmul.f32 %v11311_v10, %v354_v24  ;;  %v816_v35 = vmul.f32 %v11317_v18, %v354_v24 }
 0x180   :  { %v11415_v36 = vmax.f32 %v1009_v29, %v1010_v17  ;;  %v744_v39 = vadd.f32 %v680_v32, %v603_v14  ;;  %v745_v40 = vadd.f32 %v681_v27, %v604_v28  ;;  %v949_v46 = vadd.f32 %v11329_v38, %v878_v30 }
 0x181   :  { %v1012_v37 = vmax.f32 %v948_v31, 0.0  ;;  %v879_v41 = vadd.f32 %v815_v33, %v743_v20  ;;  %v364_v42 = vpop.permute.xlu1 %363  ;;  %v359_v45 = vpop.permute.xlu0 %358  ;;  %v1011_v50 = vmax.f32 %v947_v26, 0.0 }
 0x182   :  { %7934 = vmatmul.mubr.msk.f32.gmra.mrb[4].mxu0 %vm1104_vm0, %v11415_v36  ;;  %v683_v48 = vmul.f32 %v11313_v11, %v364_v42  ;;  %v606_v49 = vmul.f32 %v11311_v10, %v359_v45  ;;  %v880_v52 = vadd.f32 %v816_v35, %v744_v39  ;;  %v682_v54 = vmul.f32 %v11313_v11, %v359_v45 }
 0x183   :  { %v950_v53 = vadd.f32 %v11329_v38, %v879_v41  ;;  %v817_v55 = vmul.f32 %v11317_v18, %v359_v45  ;;  %v607_v51 = vmul.f32 %v11311_v10, %v364_v42  ;;  %v818_v56 = vmul.f32 %v11317_v18, %v364_v42 }
 0x184   :  { %v11427_v57 = vmax.f32 %v1011_v50, %v1012_v37  ;;  %v746_v59 = vadd.f32 %v682_v54, %v605_v34  ;;  %v747_v60 = vadd.f32 %v683_v48, %v606_v49  ;;  %v951_v1 = vadd.f32 %v11329_v38, %v880_v52 }
 0x185   :  { %v1014_v58 = vmax.f32 %v950_v53, 0.0  ;;  %v881_v61 = vadd.f32 %v817_v55, %v745_v40  ;;  %v374_v63 = vpop.permute.xlu1 %373  ;;  %v369_v0 = vpop.permute.xlu0 %368  ;;  %v1013_v4 = vmax.f32 %v949_v46, 0.0 }
 0x186   :  { %7936 = vmatprep.mubr.msk.f32.mxu0 %vm1104_vm0, %v11427_v57  ;;  %v685_v2 = vmul.f32 %v11313_v11, %v374_v63  ;;  %v608_v3 = vmul.f32 %v11311_v10, %v369_v0  ;;  %v882_v5 = vadd.f32 %v818_v56, %v746_v59  ;;  %v684_v7 = vmul.f32 %v11313_v11, %v369_v0 }
 0x187   :  { %v952_v6 = vadd.f32 %v11329_v38, %v881_v61  ;;  %v819_v8 = vmul.f32 %v11317_v18, %v369_v0  ;;  %v609_v9 = vmul.f32 %v11311_v10, %v374_v63  ;;  %v820_v47 = vmul.f32 %v11317_v18, %v374_v63 }
 0x188   :  { %v11439_v12 = vmax.f32 %v1013_v4, %v1014_v58  ;;  %v748_v14 = vadd.f32 %v684_v7, %v607_v51  ;;  %v749_v15 = vadd.f32 %v685_v2, %v608_v3  ;;  %v953_v21 = vadd.f32 %v11329_v38, %v882_v5 }
 0x189   :  { %v1016_v13 = vmax.f32 %v952_v6, 0.0  ;;  %v883_v17 = vadd.f32 %v819_v8, %v747_v60  ;;  %v384_v19 = vpop.permute.xlu1 %383  ;;  %v379_v20 = vpop.permute.xlu0 %378  ;;  %v1015_v26 = vmax.f32 %v951_v1, 0.0 }
 0x18a   :  { %7937 = vmatmul.mubr.msk.f32.gmra.mrb[6].mxu0 %vm1104_vm0, %v11439_v12  ;;  %v687_v24 = vmul.f32 %v11313_v11, %v384_v19  ;;  %v610_v25 = vmul.f32 %v11311_v10, %v379_v20  ;;  %v884_v27 = vadd.f32 %v820_v47, %v748_v14  ;;  %v686_v29 = vmul.f32 %v11313_v11, %v379_v20 }
 0x18b   :  { %v954_v28 = vadd.f32 %v11329_v38, %v883_v17  ;;  %v821_v30 = vmul.f32 %v11317_v18, %v379_v20  ;;  %v611_v31 = vmul.f32 %v11311_v10, %v384_v19  ;;  %v822_v32 = vmul.f32 %v11317_v18, %v384_v19 }
 0x18c   :  { %v11451_v33 = vmax.f32 %v1015_v26, %v1016_v13  ;;  %v750_v35 = vadd.f32 %v686_v29, %v609_v9  ;;  %v751_v37 = vadd.f32 %v687_v24, %v610_v25  ;;  %v955_v42 = vadd.f32 %v11329_v38, %v884_v27 }
 0x18d   :  { %v1018_v34 = vmax.f32 %v954_v28, 0.0  ;;  %v885_v39 = vadd.f32 %v821_v30, %v749_v15  ;;  %v394_v40 = vpop.permute.xlu1 %393  ;;  %v389_v41 = vpop.permute.xlu0 %388  ;;  %v1017_v48 = vmax.f32 %v953_v21, 0.0 }
 0x18e   :  { %7939 = vmatprep.mubr.msk.f32.mxu0 %vm1104_vm0, %v11451_v33  ;;  %v689_v45 = vmul.f32 %v11313_v11, %v394_v40  ;;  %v612_v46 = vmul.f32 %v11311_v10, %v389_v41  ;;  %v886_v49 = vadd.f32 %v822_v32, %v750_v35  ;;  %v688_v52 = vmul.f32 %v11313_v11, %v389_v41 }
 0x18f   :  { %v956_v50 = vadd.f32 %v11329_v38, %v885_v39  ;;  %v823_v53 = vmul.f32 %v11317_v18, %v389_v41  ;;  %v613_v54 = vmul.f32 %v11311_v10, %v394_v40  ;;  %v824_v55 = vmul.f32 %v11317_v18, %v394_v40 }
 0x190   :  { %v11463_v51 = vmax.f32 %v1017_v48, %v1018_v34  ;;  %v752_v58 = vadd.f32 %v688_v52, %v611_v31  ;;  %v753_v59 = vadd.f32 %v689_v45, %v612_v46  ;;  %v957_v0 = vadd.f32 %v11329_v38, %v886_v49 }
 0x191   :  { %v1020_v56 = vmax.f32 %v956_v50, 0.0  ;;  %v887_v60 = vadd.f32 %v823_v53, %v751_v37  ;;  %v404_v61 = vpop.permute.xlu1 %403  ;;  %v399_v63 = vpop.permute.xlu0 %398  ;;  %v1019_v3 = vmax.f32 %v955_v42, 0.0 }
 0x192   :  { %7940 = vmatmul.mubr.msk.f32.gmra.mrb[8].mxu0 %vm1104_vm0, %v11463_v51  ;;  %v691_v1 = vmul.f32 %v11313_v11, %v404_v61  ;;  %v614_v2 = vmul.f32 %v11311_v10, %v399_v63  ;;  %v888_v4 = vadd.f32 %v824_v55, %v752_v58  ;;  %v690_v6 = vmul.f32 %v11313_v11, %v399_v63 }
 0x193   :  { %v958_v5 = vadd.f32 %v11329_v38, %v887_v60  ;;  %v825_v7 = vmul.f32 %v11317_v18, %v399_v63  ;;  %v615_v8 = vmul.f32 %v11311_v10, %v404_v61  ;;  %v826_v9 = vmul.f32 %v11317_v18, %v404_v61 }
 0x194   :  { %v11475_v47 = vmax.f32 %v1019_v3, %v1020_v56  ;;  %v754_v14 = vadd.f32 %v690_v6, %v613_v54  ;;  %v755_v15 = vadd.f32 %v691_v1, %v614_v2  ;;  %v959_v21 = vadd.f32 %v11329_v38, %v888_v4 }
 0x195   :  { %v1022_v13 = vmax.f32 %v958_v5, 0.0  ;;  %v889_v17 = vadd.f32 %v825_v7, %v753_v59  ;;  %v414_v19 = vpop.permute.xlu1 %413  ;;  %v409_v20 = vpop.permute.xlu0 %408  ;;  %v1021_v26 = vmax.f32 %v957_v0, 0.0 }
 0x196   :  { %7942 = vmatprep.mubr.msk.f32.mxu0 %vm1104_vm0, %v11475_v47  ;;  %v693_v24 = vmul.f32 %v11313_v11, %v414_v19  ;;  %v616_v25 = vmul.f32 %v11311_v10, %v409_v20  ;;  %v890_v27 = vadd.f32 %v826_v9, %v754_v14  ;;  %v692_v29 = vmul.f32 %v11313_v11, %v409_v20 }
 0x197   :  { %v960_v28 = vadd.f32 %v11329_v38, %v889_v17  ;;  %v827_v30 = vmul.f32 %v11317_v18, %v409_v20  ;;  %v617_v31 = vmul.f32 %v11311_v10, %v414_v19  ;;  %v828_v32 = vmul.f32 %v11317_v18, %v414_v19 }
 0x198   :  { %v11487_v34 = vmax.f32 %v1021_v26, %v1022_v13  ;;  %v756_v37 = vadd.f32 %v692_v29, %v615_v8  ;;  %v757_v39 = vadd.f32 %v693_v24, %v616_v25  ;;  %v961_v45 = vadd.f32 %v11329_v38, %v890_v27 }
 0x199   :  { %v1024_v35 = vmax.f32 %v960_v28, 0.0  ;;  %v891_v40 = vadd.f32 %v827_v30, %v755_v15  ;;  %v424_v41 = vpop.permute.xlu1 %423  ;;  %v419_v42 = vpop.permute.xlu0 %418  ;;  %v1023_v49 = vmax.f32 %v959_v21, 0.0 }
 0x19a   :  { %7943 = vmatmul.mubr.msk.f32.gmra.mrb[10].mxu0 %vm1104_vm0, %v11487_v34  ;;  %v695_v46 = vmul.f32 %v11313_v11, %v424_v41  ;;  %v618_v48 = vmul.f32 %v11311_v10, %v419_v42  ;;  %v892_v50 = vadd.f32 %v828_v32, %v756_v37  ;;  %v694_v53 = vmul.f32 %v11313_v11, %v419_v42 }
 0x19b   :  { %v962_v52 = vadd.f32 %v11329_v38, %v891_v40  ;;  %v829_v54 = vmul.f32 %v11317_v18, %v419_v42  ;;  %v619_v55 = vmul.f32 %v11311_v10, %v424_v41  ;;  %v830_v56 = vmul.f32 %v11317_v18, %v424_v41 }
 0x19c   :  { %v11499_v58 = vmax.f32 %v1023_v49, %v1024_v35  ;;  %v758_v60 = vadd.f32 %v694_v53, %v617_v31  ;;  %v759_v61 = vadd.f32 %v695_v46, %v618_v48  ;;  %v963_v2 = vadd.f32 %v11329_v38, %v892_v50 }
 0x19d   :  { %v1026_v59 = vmax.f32 %v962_v52, 0.0  ;;  %v893_v63 = vadd.f32 %v829_v54, %v757_v39  ;;  %v434_v0 = vpop.permute.xlu1 %433  ;;  %v429_v1 = vpop.permute.xlu0 %428  ;;  %v1025_v5 = vmax.f32 %v961_v45, 0.0 }
 0x19e   :  { %7945 = vmatprep.mubr.msk.f32.mxu0 %vm1104_vm0, %v11499_v58  ;;  %v697_v3 = vmul.f32 %v11313_v11, %v434_v0  ;;  %v620_v4 = vmul.f32 %v11311_v10, %v429_v1  ;;  %v894_v6 = vadd.f32 %v830_v56, %v758_v60  ;;  %v696_v8 = vmul.f32 %v11313_v11, %v429_v1 }
 0x19f   :  { %v964_v7 = vadd.f32 %v11329_v38, %v893_v63  ;;  %v831_v9 = vmul.f32 %v11317_v18, %v429_v1  ;;  %v621_v13 = vmul.f32 %v11311_v10, %v434_v0  ;;  %v832_v14 = vmul.f32 %v11317_v18, %v434_v0 }
 0x1a0   :  { %v11511_v15 = vmax.f32 %v1025_v5, %v1026_v59  ;;  %v760_v19 = vadd.f32 %v696_v8, %v619_v55  ;;  %v761_v20 = vadd.f32 %v697_v3, %v620_v4  ;;  %v965_v26 = vadd.f32 %v11329_v38, %v894_v6 }
 0x1a1   :  { %v1028_v17 = vmax.f32 %v964_v7, 0.0  ;;  %v895_v21 = vadd.f32 %v831_v9, %v759_v61  ;;  %v444_v24 = vpop.permute.xlu1 %443  ;;  %v439_v25 = vpop.permute.xlu0 %438  ;;  %v1027_v29 = vmax.f32 %v963_v2, 0.0 }
 0x1a2   :  { %7946 = vmatmul.mubr.msk.f32.gmra.mrb[12].mxu0 %vm1104_vm0, %v11511_v15  ;;  %v699_v27 = vmul.f32 %v11313_v11, %v444_v24  ;;  %v622_v28 = vmul.f32 %v11311_v10, %v439_v25  ;;  %v896_v30 = vadd.f32 %v832_v14, %v760_v19  ;;  %v698_v32 = vmul.f32 %v11313_v11, %v439_v25 }
 0x1a3   :  { %v966_v31 = vadd.f32 %v11329_v38, %v895_v21  ;;  %v833_v35 = vmul.f32 %v11317_v18, %v439_v25  ;;  %v623_v37 = vmul.f32 %v11311_v10, %v444_v24  ;;  %v834_v39 = vmul.f32 %v11317_v18, %v444_v24 }
 0x1a4   :  { %v11523_v40 = vmax.f32 %v1027_v29, %v1028_v17  ;;  %v762_v42 = vadd.f32 %v698_v32, %v621_v13  ;;  %v763_v45 = vadd.f32 %v699_v27, %v622_v28  ;;  %v967_v50 = vadd.f32 %v11329_v38, %v896_v30 }
 0x1a5   :  { %v1030_v41 = vmax.f32 %v966_v31, 0.0  ;;  %v897_v46 = vadd.f32 %v833_v35, %v761_v20  ;;  %v454_v48 = vpop.permute.xlu1 %453  ;;  %v449_v49 = vpop.permute.xlu0 %448  ;;  %v1029_v54 = vmax.f32 %v965_v26, 0.0 }
 0x1a6   :  { %7948 = vmatprep.mubr.msk.f32.mxu0 %vm1104_vm0, %v11523_v40  ;;  %v701_v52 = vmul.f32 %v11313_v11, %v454_v48  ;;  %v624_v53 = vmul.f32 %v11311_v10, %v449_v49  ;;  %v898_v55 = vadd.f32 %v834_v39, %v762_v42  ;;  %v700_v59 = vmul.f32 %v11313_v11, %v449_v49 }
 0x1a7   :  { %v968_v56 = vadd.f32 %v11329_v38, %v897_v46  ;;  %v835_v60 = vmul.f32 %v11317_v18, %v449_v49  ;;  %v625_v61 = vmul.f32 %v11311_v10, %v454_v48  ;;  %v836_v63 = vmul.f32 %v11317_v18, %v454_v48 }
 0x1a8   :  { %v11535_v0 = vmax.f32 %v1029_v54, %v1030_v41  ;;  %v764_v2 = vadd.f32 %v700_v59, %v623_v37  ;;  %v765_v3 = vadd.f32 %v701_v52, %v624_v53  ;;  %v969_v7 = vadd.f32 %v11329_v38, %v898_v55 }
 0x1a9   :  { %v1032_v1 = vmax.f32 %v968_v56, 0.0  ;;  %v899_v4 = vadd.f32 %v835_v60, %v763_v45  ;;  %v464_v5 = vpop.permute.xlu1 %463  ;;  %v459_v6 = vpop.permute.xlu0 %458  ;;  %v1031_v13 = vmax.f32 %v967_v50, 0.0 }
 0x1aa   :  { %7949 = vmatmul.mubr.msk.f32.gmra.mrb[14].mxu0 %vm1104_vm0, %v11535_v0  ;;  %v703_v8 = vmul.f32 %v11313_v11, %v464_v5  ;;  %v626_v9 = vmul.f32 %v11311_v10, %v459_v6  ;;  %v900_v14 = vadd.f32 %v836_v63, %v764_v2  ;;  %v702_v19 = vmul.f32 %v11313_v11, %v459_v6 }
 0x1ab   :  { %v970_v17 = vadd.f32 %v11329_v38, %v899_v4  ;;  %v837_v20 = vmul.f32 %v11317_v18, %v459_v6  ;;  %v627_v21 = vmul.f32 %v11311_v10, %v464_v5  ;;  %v838_v24 = vmul.f32 %v11317_v18, %v464_v5 }
 0x1ac   :  { %v11547_v25 = vmax.f32 %v1031_v13, %v1032_v1  ;;  %v766_v27 = vadd.f32 %v702_v19, %v625_v61  ;;  %v767_v28 = vadd.f32 %v703_v8, %v626_v9  ;;  %v971_v32 = vadd.f32 %v11329_v38, %v900_v14 }
 0x1ad   :  { %v1034_v26 = vmax.f32 %v970_v17, 0.0  ;;  %v901_v29 = vadd.f32 %v837_v20, %v765_v3  ;;  %v474_v30 = vpop.permute.xlu1 %473  ;;  %v469_v31 = vpop.permute.xlu0 %468  ;;  %v1033_v39 = vmax.f32 %v969_v7, 0.0 }
 0x1ae   :  { %7951 = vmatprep.mubr.msk.f32.mxu0 %vm1104_vm0, %v11547_v25  ;;  %v705_v35 = vmul.f32 %v11313_v11, %v474_v30  ;;  %v628_v37 = vmul.f32 %v11311_v10, %v469_v31  ;;  %v902_v41 = vadd.f32 %v838_v24, %v766_v27  ;;  %v704_v45 = vmul.f32 %v11313_v11, %v469_v31 }
 0x1af   :  { %v972_v42 = vadd.f32 %v11329_v38, %v901_v29  ;;  %v839_v46 = vmul.f32 %v11317_v18, %v469_v31  ;;  %v629_v48 = vmul.f32 %v11311_v10, %v474_v30  ;;  %v840_v49 = vmul.f32 %v11317_v18, %v474_v30 }
 0x1b0   :  { %v11559_v50 = vmax.f32 %v1033_v39, %v1034_v26  ;;  %v768_v53 = vadd.f32 %v704_v45, %v627_v21  ;;  %v769_v54 = vadd.f32 %v705_v35, %v628_v37  ;;  %v973_v60 = vadd.f32 %v11329_v38, %v902_v41 }
 0x1b1   :  { %v1036_v52 = vmax.f32 %v972_v42, 0.0  ;;  %v903_v55 = vadd.f32 %v839_v46, %v767_v28  ;;  %v484_v56 = vpop.permute.xlu1 %483  ;;  %v479_v59 = vpop.permute.xlu0 %478  ;;  %v1035_v1 = vmax.f32 %v971_v32, 0.0 }
 0x1b2   :  { %7952 = vmatmul.mubr.msk.f32.gmra.mrb[16].mxu0 %vm1104_vm0, %v11559_v50  ;;  %v707_v61 = vmul.f32 %v11313_v11, %v484_v56  ;;  %v630_v63 = vmul.f32 %v11311_v10, %v479_v59  ;;  %v904_v2 = vadd.f32 %v840_v49, %v768_v53  ;;  %v706_v4 = vmul.f32 %v11313_v11, %v479_v59 }
 0x1b3   :  { %v974_v3 = vadd.f32 %v11329_v38, %v903_v55  ;;  %v841_v5 = vmul.f32 %v11317_v18, %v479_v59  ;;  %v631_v6 = vmul.f32 %v11311_v10, %v484_v56  ;;  %v842_v7 = vmul.f32 %v11317_v18, %v484_v56 }
 0x1b4   :  { %v11571_v8 = vmax.f32 %v1035_v1, %v1036_v52  ;;  %v770_v13 = vadd.f32 %v706_v4, %v629_v48  ;;  %v771_v14 = vadd.f32 %v707_v61, %v630_v63  ;;  %v975_v21 = vadd.f32 %v11329_v38, %v904_v2 }
 0x1b5   :  { %v1038_v9 = vmax.f32 %v974_v3, 0.0  ;;  %v905_v17 = vadd.f32 %v841_v5, %v769_v54  ;;  %v494_v19 = vpop.permute.xlu1 %493  ;;  %v489_v20 = vpop.permute.xlu0 %488  ;;  %v1037_v27 = vmax.f32 %v973_v60, 0.0 }
 0x1b6   :  { %7954 = vmatprep.mubr.msk.f32.mxu0 %vm1104_vm0, %v11571_v8  ;;  %v709_v24 = vmul.f32 %v11313_v11, %v494_v19  ;;  %v632_v26 = vmul.f32 %v11311_v10, %v489_v20  ;;  %v906_v28 = vadd.f32 %v842_v7, %v770_v13  ;;  %v708_v30 = vmul.f32 %v11313_v11, %v489_v20 }
 0x1b7   :  { %v976_v29 = vadd.f32 %v11329_v38, %v905_v17  ;;  %v843_v31 = vmul.f32 %v11317_v18, %v489_v20  ;;  %v633_v32 = vmul.f32 %v11311_v10, %v494_v19  ;;  %v844_v35 = vmul.f32 %v11317_v18, %v494_v19 }
 0x1b8   :  { %v11583_v37 = vmax.f32 %v1037_v27, %v1038_v9  ;;  %v772_v41 = vadd.f32 %v708_v30, %v631_v6  ;;  %v773_v42 = vadd.f32 %v709_v24, %v632_v26  ;;  %v977_v49 = vadd.f32 %v11329_v38, %v906_v28 }
 0x1b9   :  { %v1040_v39 = vmax.f32 %v976_v29, 0.0  ;;  %v907_v45 = vadd.f32 %v843_v31, %v771_v14  ;;  %v504_v46 = vpop.permute.xlu1 %503  ;;  %v499_v48 = vpop.permute.xlu0 %498  ;;  %v1039_v54 = vmax.f32 %v975_v21, 0.0 }
 0x1ba   :  { %7955 = vmatmul.mubr.msk.f32.gmra.mrb[18].mxu0 %vm1104_vm0, %v11583_v37  ;;  %v711_v52 = vmul.f32 %v11313_v11, %v504_v46  ;;  %v634_v53 = vmul.f32 %v11311_v10, %v499_v48  ;;  %v908_v55 = vadd.f32 %v844_v35, %v772_v41  ;;  %v710_v59 = vmul.f32 %v11313_v11, %v499_v48 }
 0x1bb   :  { %v978_v56 = vadd.f32 %v11329_v38, %v907_v45  ;;  %v845_v60 = vmul.f32 %v11317_v18, %v499_v48  ;;  %v635_v61 = vmul.f32 %v11311_v10, %v504_v46  ;;  %v846_v63 = vmul.f32 %v11317_v18, %v504_v46 }
 0x1bc   :  { %v11595_v1 = vmax.f32 %v1039_v54, %v1040_v39  ;;  %v774_v3 = vadd.f32 %v710_v59, %v633_v32  ;;  %v775_v4 = vadd.f32 %v711_v52, %v634_v53  ;;  %v979_v9 = vadd.f32 %v11329_v38, %v908_v55 }
 0x1bd   :  { %v1042_v2 = vmax.f32 %v978_v56, 0.0  ;;  %v909_v5 = vadd.f32 %v845_v60, %v773_v42  ;;  %v514_v6 = vpop.permute.xlu1 %513  ;;  %v509_v7 = vpop.permute.xlu0 %508  ;;  %v1041_v17 = vmax.f32 %v977_v49, 0.0 }
 0x1be   :  { %7957 = vmatprep.mubr.msk.f32.mxu0 %vm1104_vm0, %v11595_v1  ;;  %v713_v13 = vmul.f32 %v11313_v11, %v514_v6  ;;  %v636_v14 = vmul.f32 %v11311_v10, %v509_v7  ;;  %v910_v19 = vadd.f32 %v846_v63, %v774_v3  ;;  %v712_v21 = vmul.f32 %v11313_v11, %v509_v7 }
 0x1bf   :  { %v980_v20 = vadd.f32 %v11329_v38, %v909_v5  ;;  %v847_v24 = vmul.f32 %v11317_v18, %v509_v7  ;;  %v637_v26 = vmul.f32 %v11311_v10, %v514_v6  ;;  %v848_v27 = vmul.f32 %v11317_v18, %v514_v6 }
 0x1c0   :  { %v11607_v28 = vmax.f32 %v1041_v17, %v1042_v2  ;;  %v776_v30 = vadd.f32 %v712_v21, %v635_v61  ;;  %v777_v31 = vadd.f32 %v713_v13, %v636_v14  ;;  %v981_v41 = vadd.f32 %v11329_v38, %v910_v19 }
 0x1c1   :  { %v1044_v29 = vmax.f32 %v980_v20, 0.0  ;;  %v911_v32 = vadd.f32 %v847_v24, %v775_v4  ;;  %v524_v35 = vpop.permute.xlu1 %523  ;;  %v519_v39 = vpop.permute.xlu0 %518  ;;  %v1043_v46 = vmax.f32 %v979_v9, 0.0 }
 0x1c2   :  { %7958 = vmatmul.mubr.msk.f32.gmra.mrb[20].mxu0 %vm1104_vm0, %v11607_v28  ;;  %v715_v42 = vmul.f32 %v11313_v11, %v524_v35  ;;  %v638_v45 = vmul.f32 %v11311_v10, %v519_v39  ;;  %v912_v48 = vadd.f32 %v848_v27, %v776_v30  ;;  %v714_v52 = vmul.f32 %v11313_v11, %v519_v39 }
 0x1c3   :  { %v982_v49 = vadd.f32 %v11329_v38, %v911_v32  ;;  %v849_v53 = vmul.f32 %v11317_v18, %v519_v39  ;;  %v639_v54 = vmul.f32 %v11311_v10, %v524_v35  ;;  %v850_v55 = vmul.f32 %v11317_v18, %v524_v35 }
 0x1c4   :  { %v11619_v56 = vmax.f32 %v1043_v46, %v1044_v29  ;;  %v778_v60 = vadd.f32 %v714_v52, %v637_v26  ;;  %v779_v61 = vadd.f32 %v715_v42, %v638_v45  ;;  %v983_v4 = vadd.f32 %v11329_v38, %v912_v48 }
 0x1c5   :  { %v1046_v59 = vmax.f32 %v982_v49, 0.0  ;;  %v913_v63 = vadd.f32 %v849_v53, %v777_v31  ;;  %v534_v2 = vpop.permute.xlu1 %533  ;;  %v529_v3 = vpop.permute.xlu0 %528  ;;  %v1045_v7 = vmax.f32 %v981_v41, 0.0 }
 0x1c6   :  { %7960 = vmatprep.mubr.msk.f32.mxu0 %vm1104_vm0, %v11619_v56  ;;  %v717_v5 = vmul.f32 %v11313_v11, %v534_v2  ;;  %v640_v6 = vmul.f32 %v11311_v10, %v529_v3  ;;  %v914_v9 = vadd.f32 %v850_v55, %v778_v60  ;;  %v716_v14 = vmul.f32 %v11313_v11, %v529_v3 }
 0x1c7   :  { %v984_v13 = vadd.f32 %v11329_v38, %v913_v63  ;;  %v851_v17 = vmul.f32 %v11317_v18, %v529_v3  ;;  %v641_v19 = vmul.f32 %v11311_v10, %v534_v2  ;;  %v852_v20 = vmul.f32 %v11317_v18, %v534_v2 }
 0x1c8   :  { %v11631_v21 = vmax.f32 %v1045_v7, %v1046_v59  ;;  %v780_v26 = vadd.f32 %v716_v14, %v639_v54  ;;  %v781_v27 = vadd.f32 %v717_v5, %v640_v6  ;;  %v985_v32 = vadd.f32 %v11329_v38, %v914_v9  ;;  %v10561_v14 = vld [vmem:[#allocation2] ss:$0 sm:$0xff] }
 0x1c9   :  { %v1048_v24 = vmax.f32 %v984_v13, 0.0  ;;  %v915_v29 = vadd.f32 %v851_v17, %v779_v61  ;;  %v544_v30 = vpop.permute.xlu1 %543  ;;  %v539_v31 = vpop.permute.xlu0 %538  ;;  %v1047_v41 = vmax.f32 %v983_v4, 0.0 }
 0x1ca   :  { %7961 = vmatmul.mubr.msk.f32.gmra.mrb[22].mxu0 %vm1104_vm0, %v11631_v21  ;;  %v719_v35 = vmul.f32 %v11313_v11, %v544_v30  ;;  %v642_v39 = vmul.f32 %v11311_v10, %v539_v31  ;;  %v916_v42 = vadd.f32 %v852_v20, %v780_v26  ;;  %v718_v46 = vmul.f32 %v11313_v11, %v539_v31 }
 0x1cb   :  { %v986_v45 = vadd.f32 %v11329_v38, %v915_v29  ;;  %v853_v48 = vmul.f32 %v11317_v18, %v539_v31  ;;  %v643_v49 = vmul.f32 %v11311_v10, %v544_v30  ;;  %v854_v52 = vmul.f32 %v11317_v18, %v544_v30 }
 0x1cc   :  { %v11643_v53 = vmax.f32 %v1047_v41, %v1048_v24  ;;  %v782_v55 = vadd.f32 %v718_v46, %v641_v19  ;;  %v783_v59 = vadd.f32 %v719_v35, %v642_v39  ;;  %v987_v2 = vadd.f32 %v11329_v38, %v916_v42 }
 0x1cd   :  { %v1050_v54 = vmax.f32 %v986_v45, 0.0  ;;  %v917_v60 = vadd.f32 %v853_v48, %v781_v27  ;;  %v554_v61 = vpop.permute.xlu1 %553  ;;  %v549_v63 = vpop.permute.xlu0 %548  ;;  %v1049_v5 = vmax.f32 %v985_v32, 0.0  ;;  %v10563_v45 = vld [vmem:[#allocation2 + $0x2] ss:$0 sm:$0xff] }
 0x1ce   :  { %7963 = vmatprep.mubr.msk.f32.mxu0 %vm1104_vm0, %v11643_v53  ;;  %v721_v3 = vmul.f32 %v11313_v11, %v554_v61  ;;  %v644_v4 = vmul.f32 %v11311_v10, %v549_v63  ;;  %v918_v6 = vadd.f32 %v854_v52, %v782_v55  ;;  %v720_v9 = vmul.f32 %v11313_v11, %v549_v63  ;;  %v10562_v11 = vld [vmem:[#allocation2 + $0x1] ss:$0 sm:$0xff] }
 0x1cf   :  { %v988_v7 = vadd.f32 %v11329_v38, %v917_v60  ;;  %v855_v13 = vmul.f32 %v11317_v18, %v549_v63  ;;  %v645_v17 = vmul.f32 %v10561_v14, %v554_v61  ;;  %v856_v19 = vmul.f32 %v11317_v18, %v554_v61 }
 0x1d0   :  { %v11654_v20 = vmax.f32 %v1049_v5, %v1050_v54  ;;  %v784_v26 = vadd.f32 %v720_v9, %v643_v49  ;;  %v785_v27 = vadd.f32 %v721_v3, %v644_v4  ;;  %v989_v31 = vadd.f32 %v11329_v38, %v918_v6  ;;  %v10564_v9 = vld [vmem:[#allocation5] ss:$0 sm:$0xff] }
 0x1d1   :  { %v1052_v24 = vmax.f32 %v988_v7, 0.0  ;;  %v919_v29 = vadd.f32 %v855_v13, %v783_v59  ;;  %v564_v30 = vpop.permute.xlu1 %563  ;;  %v559_v10 = vpop.permute.xlu0 %558  ;;  %v1051_v39 = vmax.f32 %v987_v2, 0.0  ;;  %v863_v54 = vmul.f32 0.0, %v10563_v45 }
 0x1d2   :  { %7964 = vmatmul.mubr.msk.f32.gmra.mrb[24].mxu0 %vm1104_vm0, %v11654_v20  ;;  %v723_v32 = vmul.f32 %v10562_v11, %v564_v30  ;;  %v646_v35 = vmul.f32 %v10561_v14, %v559_v10  ;;  %v920_v41 = vadd.f32 %v856_v19, %v784_v26  ;;  %v722_v42 = vmul.f32 %v10562_v11, %v559_v10 }
 0x1d3   :  { %v990_v18 = vadd.f32 %v11329_v38, %v919_v29  ;;  %v857_v46 = vmul.f32 %v10563_v45, %v559_v10  ;;  %v647_v48 = vmul.f32 %v10561_v14, %v564_v30  ;;  %v858_v49 = vmul.f32 %v10563_v45, %v564_v30 }
 0x1d4   :  { %v11660_v52 = vmax.f32 %v1051_v39, %v1052_v24  ;;  %v991_v55 = vadd.f32 %v11329_v38, %v920_v41  ;;  %v786_v60 = vadd.f32 %v722_v42, %v645_v17  ;;  %v787_v4 = vadd.f32 %v723_v32, %v646_v35 }
 0x1d5   :  { %v1054_v59 = vmax.f32 %v990_v18, 0.0  ;;  %v921_v61 = vadd.f32 %v857_v46, %v785_v27  ;;  %v574_v63 = vpop.permute.xlu1 %573  ;;  %v569_v3 = vpop.permute.xlu0 %568  ;;  %v1053_v6 = vmax.f32 %v989_v31, 0.0 }
 0x1d6   :  { %7966 = vmatprep.mubr.msk.f32.mxu0 %vm1104_vm0, %v11660_v52  ;;  %v725_v2 = vmul.f32 %v10562_v11, %v574_v63  ;;  %v648_v5 = vmul.f32 %v10561_v14, %v569_v3  ;;  %v922_v7 = vadd.f32 %v858_v49, %v786_v60  ;;  %v724_v19 = vmul.f32 %v10562_v11, %v569_v3 }
 0x1d7   :  { %v992_v13 = vadd.f32 %v10564_v9, %v921_v61  ;;  %v859_v24 = vmul.f32 %v10563_v45, %v569_v3  ;;  %v649_v26 = vmul.f32 %v10561_v14, %v574_v63  ;;  %v860_v29 = vmul.f32 %v10563_v45, %v574_v63 }
 0x1d8   :  { %v11665_v38 = vmax.f32 %v1053_v6, %v1054_v59  ;;  %v1055_v17 = vmax.f32 %v991_v55, 0.0  ;;  %v993_v27 = vadd.f32 %v10564_v9, %v922_v7  ;;  %v788_v10 = vadd.f32 %v724_v19, %v647_v48 }
 0x1d9   :  { %v1056_v30 = vmax.f32 %v992_v13, 0.0  ;;  %v923_v32 = vadd.f32 %v859_v24, %v787_v4  ;;  %v656_v35 = vpop.permute.xlu1 %655  ;;  %v579_v39 = vpop.permute.xlu0 %578  ;;  %v789_v41 = vadd.f32 %v725_v2, %v648_v5 }
 0x1da   :  { %7967 = vmatmul.mubr.msk.f32.gmra.mrb[26].mxu0 %vm1104_vm0, %v11665_v38  ;;  %v727_v31 = vmul.f32 %v10562_v11, %v656_v35  ;;  %v650_v18 = vmul.f32 %v10561_v14, %v579_v39  ;;  %v726_v42 = vmul.f32 %v10562_v11, %v579_v39  ;;  %v924_v46 = vadd.f32 %v860_v29, %v788_v10 }
 0x1db   :  { %v994_v49 = vadd.f32 %v10564_v9, %v923_v32  ;;  %v861_v60 = vmul.f32 %v10563_v45, %v579_v39  ;;  %v11669_v61 = vmax.f32 %v1055_v17, %v1056_v30  ;;  %v862_v59 = vmul.f32 %v10563_v45, %v656_v35  ;;  %v2012_v30 = vld [vmem:[#allocation10 + $0x48] sm:$0xff] }
 0x1dc   :  { %v790_v55 = vadd.f32 %v726_v42, %v649_v26  ;;  %v791_v63 = vadd.f32 %v727_v31, %v650_v18  ;;  %v995_v3 = vadd.f32 %v10564_v9, %v924_v46  ;;  %v1057_v2 = vmax.f32 %v993_v27, 0.0  ;;  %v1657_v27 = vld [vmem:[#allocation7 + $0x58] sm:$0xff] }
 0x1dd   :  { %v1058_v48 = vmax.f32 %v994_v49, 0.0  ;;  %v925_v4 = vadd.f32 %v861_v60, %v789_v41  ;;  %7969 = vmatprep.mubr.msk.f32.mxu0 %vm1104_vm0, %v11669_v61  ;;  %v10889_v10 = vmov 0.0   ;;  %v2006_v49 = vld [vmem:[#allocation10 + $0x20] sm:$0xff]  ;;  %v2007_v60 = vld [vmem:[#allocation10 + $0x28] sm:$0xff] }
 0x1de   :  { %v926_v5 = vadd.f32 %v862_v59, %v790_v55  ;;  %v927_v6 = vadd.f32 %v863_v54, %v791_v63  ;;  %v1059_v45 = vmax.f32 %v995_v3, 0.0  ;;  %v1656_v54 = vld [vmem:[#allocation7 + $0x50] sm:$0xff] }
 0x1df   :  { %v996_v7 = vadd.f32 %v10564_v9, %v925_v4  ;;  %v11673_v14 = vmax.f32 %v1057_v2, %v1058_v48  ;;  %v8227_v35 = vpack.c.bf16 %v1657_v27, %v1656_v54  ;;  %v8255_v4 = vpack.c.bf16 %v2007_v60, %v2006_v49 }
 0x1e0   :  { %v997_v11 = vadd.f32 %v10564_v9, %v926_v5  ;;  %v998_v13 = vadd.f32 %v10564_v9, %v927_v6  ;;  %v2011_v9 = vld [vmem:[#allocation10 + $0x40] sm:$0xff]  ;;  %v2008_v5 = vld [vmem:[#allocation10 + $0x30] sm:$0xff]  ;;  %v2009_v6 = vld [vmem:[#allocation10 + $0x38] sm:$0xff] }
 0x1e1   :  { %v1060_v19 = vmax.f32 %v996_v7, 0.0  ;;  %7970 = vmatmul.mubr.msk.f32.gmra.mrb[28].mxu0 %vm1104_vm0, %v11673_v14  ;;  %v8231_v32 = vpack.c.bf16 %v2012_v30, %v2011_v9 }
 0x1e2   :  { %v1061_v24 = vmax.f32 %v997_v11, 0.0  ;;  %v1062_v26 = vmax.f32 %v998_v13, 0.0 }
 0x1e3   :  { %v11677_v29 = vmax.f32 %v1059_v45, %v1060_v19  ;;  %8232 = vmatprep.subr.bf16.mxu1 %v8231_v32 }
 0x1e4   :  { %v11679_v17 = vmax.f32 %v1061_v24, %v1062_v26  ;;  %8234 = vmatpush3.bf16.msra.mxu1 %v8231_v32  ;;  %v8259_v24 = vpack.c.bf16 %v2009_v6, %v2008_v5 }
 0x1e5   :  { %7972 = vmatprep.mubr.msk.f32.mxu0 %vm1104_vm0, %v11677_v29 }
 0x1e6   :  { %7973 = vmatmul.mubr.msk.f32.gmra.mrb[30].mxu0 %vm1104_vm0, %v11679_v17 }
 0x1e7   :  { %7983 = vmatprep.mubr.f32.mxu0 %v10889_v10 }
 0x1ea   :  { %7984 = vmatmul.mubr.msk.f32.vlgmr.msra.gmra.mrb[0].mxu0 %vm1104_vm0, %v11357_v22  ;;  %v2013_v22 = vld [vmem:[#allocation10 + $0x50] sm:$0xff] }
 0x1eb   :  { %8226 = vmatpush3.bf16.msra.mxu0 %v11376_v44  ;;  %7986 = vmatprep.mubr.msk.f32.mxu0 %vm1104_vm0, %v11359_v23  ;;  %v2015_v44 = vld [vmem:[#allocation10 + $0x60] sm:$0xff] }
 0x1ec   :  { %8228 = vmatprep.subr.bf16.mxu0 %v8227_v35 }
 0x1ee   :  { %7987 = vmatmul.mubr.msk.f32.gmra.mrb[2].mxu0 %vm1104_vm0, %v11373_v43 }
 0x1ef   :  { %7989 = vmatprep.mubr.msk.f32.mxu0 %vm1104_vm0, %v11389_v62  ;;  %8230 = vmatpush3.bf16.msra.mxu0 %v8227_v35 }
 0x1f2   :  { %7990 = vmatmul.mubr.msk.f32.gmra.mrb[4].mxu0 %vm1104_vm0, %v11403_v16 }
 0x1f3   :  { %7992 = vmatprep.mubr.msk.f32.mxu0 %vm1104_vm0, %v11415_v36 }
 0x1f6   :  { %7993 = vmatmul.mubr.msk.f32.gmra.mrb[6].mxu0 %vm1104_vm0, %v11427_v57 }
 0x1f7   :  { %7995 = vmatprep.mubr.msk.f32.mxu0 %vm1104_vm0, %v11439_v12 }
 0x1fa   :  { %7996 = vmatmul.mubr.msk.f32.gmra.mrb[8].mxu0 %vm1104_vm0, %v11451_v33 }
 0x1fb   :  { %7998 = vmatprep.mubr.msk.f32.mxu0 %vm1104_vm0, %v11463_v51 }
 0x1fe   :  { %7999 = vmatmul.mubr.msk.f32.gmra.mrb[10].mxu0 %vm1104_vm0, %v11475_v47 }
 0x1ff   :  { %8001 = vmatprep.mubr.msk.f32.mxu0 %vm1104_vm0, %v11487_v34 }
 0x202   :  { %8002 = vmatmul.mubr.msk.f32.gmra.mrb[12].mxu0 %vm1104_vm0, %v11499_v58 }
 0x203   :  { %8004 = vmatprep.mubr.msk.f32.mxu0 %vm1104_vm0, %v11511_v15 }
 0x206   :  { %8005 = vmatmul.mubr.msk.f32.gmra.mrb[14].mxu0 %vm1104_vm0, %v11523_v40 }
 0x207   :  { %8007 = vmatprep.mubr.msk.f32.mxu0 %vm1104_vm0, %v11535_v0 }
 0x20a   :  { %8008 = vmatmul.mubr.msk.f32.gmra.mrb[16].mxu0 %vm1104_vm0, %v11547_v25 }
 0x20b   :  { %8010 = vmatprep.mubr.msk.f32.mxu0 %vm1104_vm0, %v11559_v50 }
 0x20e   :  { %8011 = vmatmul.mubr.msk.f32.gmra.mrb[18].mxu0 %vm1104_vm0, %v11571_v8 }
 0x20f   :  { %8013 = vmatprep.mubr.msk.f32.mxu0 %vm1104_vm0, %v11583_v37 }
 0x212   :  { %8014 = vmatmul.mubr.msk.f32.gmra.mrb[20].mxu0 %vm1104_vm0, %v11595_v1 }
 0x213   :  { %8016 = vmatprep.mubr.msk.f32.mxu0 %vm1104_vm0, %v11607_v28 }
 0x216   :  { %8017 = vmatmul.mubr.msk.f32.gmra.mrb[22].mxu0 %vm1104_vm0, %v11619_v56 }
 0x217   :  { %8019 = vmatprep.mubr.msk.f32.mxu0 %vm1104_vm0, %v11631_v21 }
 0x21a   :  { %8020 = vmatmul.mubr.msk.f32.gmra.mrb[24].mxu0 %vm1104_vm0, %v11643_v53 }
 0x21b   :  { %8022 = vmatprep.mubr.msk.f32.mxu0 %vm1104_vm0, %v11654_v20 }
 0x21e   :  { %8023 = vmatmul.mubr.msk.f32.gmra.mrb[26].mxu0 %vm1104_vm0, %v11660_v52 }
 0x21f   :  { %8025 = vmatprep.mubr.msk.f32.mxu0 %vm1104_vm0, %v11665_v38 }
 0x222   :  { %8026 = vmatmul.mubr.msk.f32.gmra.mrb[28].mxu0 %vm1104_vm0, %v11669_v61 }
 0x223   :  { %8028 = vmatprep.mubr.msk.f32.mxu0 %vm1104_vm0, %v11673_v14 }
 0x226   :  { %8029 = vmatmul.mubr.msk.f32.gmra.mrb[30].mxu0 %vm1104_vm0, %v11677_v29 }
 0x227   :  { %8039 = vmatprep.mubr.msk.f32.mxu0 %vm1104_vm0, %v11359_v23  ;;  %v2014_v23 = vld [vmem:[#allocation10 + $0x58] sm:$0xff] }
 0x22a   :  { %8040 = vmatmul.mubr.msk.f32.vlgmr.msra.gmra.mrb[0].mxu0 %vm1104_vm0, %v11373_v43  ;;  %v8235_v43 = vpack.c.bf16 %v2014_v23, %v2013_v22 }
 0x22b   :  { %8042 = vmatprep.mubr.msk.f32.mxu0 %vm1104_vm0, %v11389_v62  ;;  %v2016_v62 = vld [vmem:[#allocation10 + $0x68] sm:$0xff] }
 0x22c   :  { %8236 = vmatprep.subr.bf16.mxu1 %v8235_v43 }
 0x22d   :  { %8238 = vmatpush3.bf16.msra.mxu1 %v8235_v43 }
 0x22e   :  { %8043 = vmatmul.mubr.msk.f32.gmra.mrb[2].mxu0 %vm1104_vm0, %v11403_v16  ;;  %v8239_v16 = vpack.c.bf16 %v2016_v62, %v2015_v44 }
 0x22f   :  { %8045 = vmatprep.mubr.msk.f32.mxu0 %vm1104_vm0, %v11415_v36  ;;  %v2017_v36 = vld [vmem:[#allocation10 + $0x70] sm:$0xff] }
 0x230   :  { %8240 = vmatprep.subr.bf16.mxu1 %v8239_v16 }
 0x231   :  { %8242 = vmatpush3.bf16.msra.mxu1 %v8239_v16 }
 0x232   :  { %8046 = vmatmul.mubr.msk.f32.gmra.mrb[4].mxu0 %vm1104_vm0, %v11427_v57  ;;  %v2018_v57 = vld [vmem:[#allocation10 + $0x78] sm:$0xff] }
 0x233   :  { %8048 = vmatprep.mubr.msk.f32.mxu0 %vm1104_vm0, %v11439_v12  ;;  %v8243_v12 = vpack.c.bf16 %v2018_v57, %v2017_v36 }
 0x235   :  { %8244 = vmatprep.subr.bf16.mxu1 %v8243_v12 }
 0x236   :  { %8049 = vmatmul.mubr.msk.f32.gmra.mrb[6].mxu0 %vm1104_vm0, %v11451_v33  ;;  %8246 = vmatpush3.bf16.msra.mxu1 %v8243_v12  ;;  %v2002_v33 = vld [vmem:[#allocation10] sm:$0xff] }
 0x237   :  { %8051 = vmatprep.mubr.msk.f32.mxu0 %vm1104_vm0, %v11463_v51  ;;  %v2003_v51 = vld [vmem:[#allocation10 + $0x8] sm:$0xff] }
 0x23a   :  { %8052 = vmatmul.mubr.msk.f32.gmra.mrb[8].mxu0 %vm1104_vm0, %v11475_v47  ;;  %v8247_v47 = vpack.c.bf16 %v2003_v51, %v2002_v33 }
 0x23b   :  { %8054 = vmatprep.mubr.msk.f32.mxu0 %vm1104_vm0, %v11487_v34  ;;  %v11812_v34 = vld [vmem:[#allocation8] ss:$0 sm:$0xff] }
 0x23c   :  { %8248 = vmatprep.subr.bf16.mxu1 %v8247_v47 }
 0x23e   :  { %8055 = vmatmul.mubr.msk.f32.gmra.mrb[10].mxu0 %vm1104_vm0, %v11499_v58 }
 0x23f   :  { %8057 = vmatprep.mubr.msk.f32.mxu0 %vm1104_vm0, %v11511_v15 }
 0x242   :  { %8058 = vmatmul.mubr.msk.f32.gmra.mrb[12].mxu0 %vm1104_vm0, %v11523_v40 }
 0x243   :  { %8060 = vmatprep.mubr.msk.f32.mxu0 %vm1104_vm0, %v11535_v0 }
 0x246   :  { %8061 = vmatmul.mubr.msk.f32.gmra.mrb[14].mxu0 %vm1104_vm0, %v11547_v25 }
 0x247   :  { %8063 = vmatprep.mubr.msk.f32.mxu0 %vm1104_vm0, %v11559_v50 }
 0x24a   :  { %8064 = vmatmul.mubr.msk.f32.gmra.mrb[16].mxu0 %vm1104_vm0, %v11571_v8 }
 0x24b   :  { %8066 = vmatprep.mubr.msk.f32.mxu0 %vm1104_vm0, %v11583_v37 }
 0x24e   :  { %8067 = vmatmul.mubr.msk.f32.gmra.mrb[18].mxu0 %vm1104_vm0, %v11595_v1 }
 0x24f   :  { %8069 = vmatprep.mubr.msk.f32.mxu0 %vm1104_vm0, %v11607_v28 }
 0x252   :  { %8070 = vmatmul.mubr.msk.f32.gmra.mrb[20].mxu0 %vm1104_vm0, %v11619_v56 }
 0x253   :  { %8072 = vmatprep.mubr.msk.f32.mxu0 %vm1104_vm0, %v11631_v21 }
 0x256   :  { %8073 = vmatmul.mubr.msk.f32.gmra.mrb[22].mxu0 %vm1104_vm0, %v11643_v53  ;;  %v2004_v53 = vld [vmem:[#allocation10 + $0x10] sm:$0xff] }
 0x257   :  { %8075 = vmatprep.mubr.msk.f32.mxu0 %vm1104_vm0, %v11654_v20  ;;  %v2005_v20 = vld [vmem:[#allocation10 + $0x18] sm:$0xff] }
 0x258   :  { %v8251_v42 = vpack.c.bf16 %v2005_v20, %v2004_v53 }
 0x25a   :  { %8076 = vmatmul.mubr.msk.f32.gmra.mrb[24].mxu0 %vm1104_vm0, %v11660_v52 }
 0x25b   :  { %8078 = vmatprep.mubr.msk.f32.mxu0 %vm1104_vm0, %v11665_v38 }
 0x25e   :  { %8079 = vmatmul.mubr.msk.f32.gmra.mrb[26].mxu0 %vm1104_vm0, %v11669_v61 }
 0x25f   :  { %8081 = vmatprep.mubr.msk.f32.mxu0 %vm1104_vm0, %v11673_v14 }
 0x262   :  { %8082 = vmatmul.mubr.msk.f32.gmra.mrb[28].mxu0 %vm1104_vm0, %v11677_v29  ;;  %v2361_v29 = vld [vmem:[#allocation10 + $0x80] sm:$0xff] }
 0x263   :  { %8084 = vmatprep.mubr.msk.f32.mxu0 %vm1104_vm0, %v11679_v17  ;;  %v2362_v17 = vld [vmem:[#allocation10 + $0x88] sm:$0xff] }
 0x264   :  { %v11844_v22 = vpack.c.bf16 %v2362_v17, %v2361_v29 }
 0x266   :  { %8085 = vmatmul.mubr.f32.gmra.mrb[30].mxu0 %v10889_v10 }
 0x2fd   :  { %v8041_v58 = vpop.f32.mrb[0].mxu0 }
 0x2fe   :  { %v1923_v15 = vadd.f32 %v8041_v58, %v11812_v34  ;;  %v1724_v40 = vpop.f32.mrb[1].mxu0 }
 0x2ff   :  { %v1922_v0 = vadd.f32 %v11812_v34, %v1724_v40 }
 0x300   :  { %v1955_v25 = vmax.f32 %v1923_v15, 0.0 }
 0x301   :  { %v1954_v50 = vmax.f32 %v1922_v0, 0.0  ;;  %v8044_v8 = vpop.f32.mrb[2].mxu0 }
 0x302   :  { %v1925_v37 = vadd.f32 %v8044_v8, %v11812_v34  ;;  %v1734_v1 = vpop.f32.mrb[3].mxu0 }
 0x303   :  { %v1924_v28 = vadd.f32 %v11812_v34, %v1734_v1  ;;  %v11818_v56 = vmax.f32 %v1954_v50, %v1955_v25 }
 0x304   :  { %v1957_v21 = vmax.f32 %v1925_v37, 0.0 }
 0x305   :  { %v1956_v52 = vmax.f32 %v1924_v28, 0.0  ;;  %v8047_v38 = vpop.f32.mrb[4].mxu0  ;;  %8103 = vmatprep.mubr.msk.f32.mxu1 %vm2019_vm1, %v11818_v56 }
 0x306   :  { %v1927_v39 = vadd.f32 %v8047_v38, %v11812_v34  ;;  %v1744_v41 = vpop.f32.mrb[5].mxu0 }
 0x307   :  { %v11823_v31 = vmax.f32 %v1956_v52, %v1957_v21  ;;  %v1926_v18 = vadd.f32 %v11812_v34, %v1744_v41 }
 0x308   :  { %v1959_v46 = vmax.f32 %v1927_v39, 0.0 }
 0x309   :  { %v1958_v61 = vmax.f32 %v1926_v18, 0.0  ;;  %v8050_v59 = vpop.f32.mrb[6].mxu0  ;;  %8104 = vmatmul.mubr.msk.f32.vlgmr.msra.gmra.mrb[0].mxu1 %vm2019_vm1, %v11823_v31 }
 0x30a   :  { %v1929_v55 = vadd.f32 %v8050_v59, %v11812_v34  ;;  %v1754_v63 = vpop.f32.mrb[7].mxu0  ;;  %8250 = vmatpush3.bf16.msra.mxu1 %v8247_v47 }
 0x30b   :  { %v11829_v3 = vmax.f32 %v1958_v61, %v1959_v46  ;;  %v1928_v48 = vadd.f32 %v11812_v34, %v1754_v63  ;;  %8252 = vmatprep.subr.bf16.mxu1 %v8251_v42 }
 0x30c   :  { %v1961_v2 = vmax.f32 %v1929_v55, 0.0 }
 0x30d   :  { %v1960_v7 = vmax.f32 %v1928_v48, 0.0  ;;  %v8053_v14 = vpop.f32.mrb[8].mxu0  ;;  %8106 = vmatprep.mubr.msk.f32.mxu1 %vm2019_vm1, %v11829_v3 }
 0x30e   :  { %v1931_v11 = vadd.f32 %v8053_v14, %v11812_v34  ;;  %v1764_v13 = vpop.f32.mrb[9].mxu0  ;;  %8254 = vmatpush3.bf16.msra.mxu1 %v8251_v42 }
 0x30f   :  { %v11835_v19 = vmax.f32 %v1960_v7, %v1961_v2  ;;  %v1930_v45 = vadd.f32 %v11812_v34, %v1764_v13  ;;  %8256 = vmatprep.subr.bf16.mxu1 %v8255_v4 }
 0x310   :  { %v1963_v26 = vmax.f32 %v1931_v11, 0.0 }
 0x311   :  { %v1962_v54 = vmax.f32 %v1930_v45, 0.0  ;;  %v8056_v27 = vpop.f32.mrb[10].mxu0  ;;  %8107 = vmatmul.mubr.msk.f32.gmra.mrb[2].mxu1 %vm2019_vm1, %v11835_v19 }
 0x312   :  { %v1933_v9 = vadd.f32 %v8056_v27, %v11812_v34  ;;  %v1774_v30 = vpop.f32.mrb[11].mxu0  ;;  %8258 = vmatpush3.bf16.msra.mxu1 %v8255_v4 }
 0x313   :  { %v11841_v32 = vmax.f32 %v1962_v54, %v1963_v26  ;;  %v1932_v35 = vadd.f32 %v11812_v34, %v1774_v30  ;;  %8260 = vmatprep.subr.bf16.mxu1 %v8259_v24 }
 0x314   :  { %v1965_v23 = vmax.f32 %v1933_v9, 0.0 }
 0x315   :  { %v1964_v43 = vmax.f32 %v1932_v35, 0.0  ;;  %v8059_v44 = vpop.f32.mrb[12].mxu0  ;;  %8109 = vmatprep.mubr.msk.f32.mxu1 %vm2019_vm1, %v11841_v32 }
 0x316   :  { %v1935_v62 = vadd.f32 %v8059_v44, %v11812_v34  ;;  %v1784_v16 = vpop.f32.mrb[13].mxu0  ;;  %8262 = vmatpush3.bf16.msra.mxu1 %v8259_v24 }
 0x317   :  { %v11849_v36 = vmax.f32 %v1964_v43, %v1965_v23  ;;  %v1934_v57 = vadd.f32 %v11812_v34, %v1784_v16  ;;  %8264 = vmatprep.subr.bf16.mxu1 %v11844_v22 }
 0x318   :  { %v1967_v12 = vmax.f32 %v1935_v62, 0.0 }
 0x319   :  { %v1966_v33 = vmax.f32 %v1934_v57, 0.0  ;;  %v8062_v51 = vpop.f32.mrb[14].mxu0  ;;  %8110 = vmatmul.mubr.msk.f32.gmra.mrb[4].mxu1 %vm2019_vm1, %v11849_v36 }
 0x31a   :  { %v1937_v47 = vadd.f32 %v8062_v51, %v11812_v34  ;;  %v1794_v58 = vpop.f32.mrb[15].mxu0 }
 0x31b   :  { %v11856_v15 = vmax.f32 %v1966_v33, %v1967_v12  ;;  %v1936_v40 = vadd.f32 %v11812_v34, %v1794_v58 }
 0x31c   :  { %v1969_v0 = vmax.f32 %v1937_v47, 0.0 }
 0x31d   :  { %v1968_v25 = vmax.f32 %v1936_v40, 0.0  ;;  %v8065_v50 = vpop.f32.mrb[16].mxu0  ;;  %8112 = vmatprep.mubr.msk.f32.mxu1 %vm2019_vm1, %v11856_v15 }
 0x31e   :  { %v1939_v8 = vadd.f32 %v8065_v50, %v11812_v34  ;;  %v1804_v37 = vpop.f32.mrb[17].mxu0 }
 0x31f   :  { %v11862_v1 = vmax.f32 %v1968_v25, %v1969_v0  ;;  %v1938_v28 = vadd.f32 %v11812_v34, %v1804_v37 }
 0x320   :  { %v1971_v21 = vmax.f32 %v1939_v8, 0.0 }
 0x321   :  { %v1970_v53 = vmax.f32 %v1938_v28, 0.0  ;;  %v8068_v20 = vpop.f32.mrb[18].mxu0  ;;  %8113 = vmatmul.mubr.msk.f32.gmra.mrb[6].mxu1 %vm2019_vm1, %v11862_v1  ;;  %v2363_v28 = vld [vmem:[#allocation10 + $0x90] sm:$0xff] }
 0x322   :  { %v1941_v52 = vadd.f32 %v8068_v20, %v11812_v34  ;;  %v1814_v38 = vpop.f32.mrb[19].mxu0  ;;  %v2365_v20 = vld [vmem:[#allocation10 + $0xa0] sm:$0xff] }
 0x323   :  { %v11868_v39 = vmax.f32 %v1970_v53, %v1971_v21  ;;  %v1940_v41 = vadd.f32 %v11812_v34, %v1814_v38  ;;  %v2364_v21 = vld [vmem:[#allocation10 + $0x98] sm:$0xff]  ;;  %v2367_v38 = vld [vmem:[#allocation10 + $0xb0] sm:$0xff] }
 0x324   :  { %v1973_v18 = vmax.f32 %v1941_v52, 0.0  ;;  %v8267_v53 = vpack.c.bf16 %v2364_v21, %v2363_v28  ;;  %v2366_v52 = vld [vmem:[#allocation10 + $0xa8] sm:$0xff] }
 0x325   :  { %v1972_v42 = vmax.f32 %v1940_v41, 0.0  ;;  %v8071_v46 = vpop.f32.mrb[20].mxu0  ;;  %8115 = vmatprep.mubr.msk.f32.mxu1 %vm2019_vm1, %v11868_v39  ;;  %v2368_v41 = vld [vmem:[#allocation10 + $0xb8] sm:$0xff]  ;;  %v3211_v28 = vld [vmem:[#allocation16 + $0x400] sm:$0xff] }
 0x326   :  { %v1943_v49 = vadd.f32 %v8071_v46, %v11812_v34  ;;  %v1824_v60 = vpop.f32.mrb[21].mxu0  ;;  %v2610_v46 = vld [vmem:[#allocation13 + $0x100] sm:$0xff] }
 0x327   :  { %v11874_v61 = vmax.f32 %v1972_v42, %v1973_v18  ;;  %v1942_v59 = vadd.f32 %v11812_v34, %v1824_v60  ;;  %v8275_v18 = vpack.c.bf16 %v2368_v41, %v2367_v38  ;;  %v2611_v42 = vld [vmem:[#allocation13 + $0x108] sm:$0xff] }
 0x328   :  { %v1975_v55 = vmax.f32 %v1943_v49, 0.0  ;;  %v2612_v49 = vld [vmem:[#allocation13 + $0x110] sm:$0xff]  ;;  %v2615_v60 = vld [vmem:[#allocation13 + $0x128] sm:$0xff] }
 0x329   :  { %v1974_v63 = vmax.f32 %v1942_v59, 0.0  ;;  %v8074_v48 = vpop.f32.mrb[22].mxu0  ;;  %8116 = vmatmul.mubr.msk.f32.gmra.mrb[8].mxu1 %vm2019_vm1, %v11874_v61  ;;  %v2617_v59 = vld [vmem:[#allocation13 + $0x138] sm:$0xff]  ;;  %v3215_v21 = vld [vmem:[#allocation16 + $0x420] sm:$0xff] }
 0x32a   :  { %v1945_v4 = vadd.f32 %v8074_v48, %v11812_v34  ;;  %v1834_v2 = vpop.f32.mrb[23].mxu0  ;;  %v2614_v48 = vld [vmem:[#allocation13 + $0x120] sm:$0xff] }
 0x32b   :  { %v11880_v5 = vmax.f32 %v1974_v63, %v1975_v55  ;;  %v1944_v6 = vadd.f32 %v11812_v34, %v1834_v2  ;;  %v8281_v55 = vpack.c.bf16 %v2612_v49, %v2610_v46  ;;  %v8283_v63 = vpack.c.bf16 %v2617_v59, %v2615_v60  ;;  %v2619_v2 = vld [vmem:[#allocation13 + $0x148] sm:$0xff] }
 0x32c   :  { %v1977_v7 = vmax.f32 %v1945_v4, 0.0  ;;  %v2616_v4 = vld [vmem:[#allocation13 + $0x130] sm:$0xff]  ;;  %v3219_v38 = vld [vmem:[#allocation16 + $0x440] sm:$0xff] }
 0x32d   :  { %v1976_v14 = vmax.f32 %v1944_v6, 0.0  ;;  %v8077_v11 = vpop.f32.mrb[24].mxu0  ;;  %8118 = vmatprep.mubr.msk.f32.mxu1 %vm2019_vm1, %v11880_v5  ;;  %v2621_v6 = vld [vmem:[#allocation13 + $0x158] sm:$0xff]  ;;  %v3223_v41 = vld [vmem:[#allocation16 + $0x460] sm:$0xff]  ;;  %v3236_v59 = vld [vmem:[#allocation16 + $0x4c8] sm:$0xff] }
 0x32e   :  { %v1947_v13 = vadd.f32 %v8077_v11, %v11812_v34  ;;  %v1844_v45 = vpop.f32.mrb[25].mxu0  ;;  %v2618_v11 = vld [vmem:[#allocation13 + $0x140] sm:$0xff] }
 0x32f   :  { %v11886_v24 = vmax.f32 %v1976_v14, %v1977_v7  ;;  %v1946_v26 = vadd.f32 %v11812_v34, %v1844_v45  ;;  %v8285_v7 = vpack.c.bf16 %v2616_v4, %v2614_v48  ;;  %v8287_v14 = vpack.c.bf16 %v2621_v6, %v2619_v2  ;;  %v2623_v45 = vld [vmem:[#allocation13 + $0x168] sm:$0xff] }
 0x330   :  { %v1979_v29 = vmax.f32 %v1947_v13, 0.0  ;;  %v2620_v13 = vld [vmem:[#allocation13 + $0x150] sm:$0xff]  ;;  %v3227_v46 = vld [vmem:[#allocation16 + $0x480] sm:$0xff] }
 0x331   :  { %v1978_v17 = vmax.f32 %v1946_v26, 0.0  ;;  %v8080_v54 = vpop.f32.mrb[26].mxu0  ;;  %8119 = vmatmul.mubr.msk.f32.gmra.mrb[10].mxu1 %vm2019_vm1, %v11886_v24  ;;  %v8289_v26 = vpack.c.bf16 %v2620_v13, %v2618_v11  ;;  %v3231_v49 = vld [vmem:[#allocation16 + $0x4a0] sm:$0xff]  ;;  %v3244_v2 = vld [vmem:[#allocation16 + $0x508] sm:$0xff] }
 0x332   :  { %v1949_v27 = vadd.f32 %v8080_v54, %v11812_v34  ;;  %v1854_v9 = vpop.f32.mrb[27].mxu0  ;;  %v2629_v54 = vld [vmem:[#allocation13 + $0x198] sm:$0xff]  ;;  %v8385_v60 = vpack.c.bf16 %v3231_v49, %v3227_v46  ;;  %v3235_v48 = vld [vmem:[#allocation16 + $0x4c0] sm:$0xff]  ;;  %v3248_v6 = vld [vmem:[#allocation16 + $0x528] sm:$0xff] }
 0x333   :  { %v11892_v30 = vmax.f32 %v1978_v17, %v1979_v29  ;;  %v1948_v35 = vadd.f32 %v11812_v34, %v1854_v9  ;;  %v2622_v29 = vld [vmem:[#allocation13 + $0x160] sm:$0xff]  ;;  %v2627_v17 = vld [vmem:[#allocation13 + $0x188] sm:$0xff]  ;;  %v2588_v49 = vld [vmem:[#allocation13 + $0x58] sm:$0xff] }
 0x334   :  { %v1981_v23 = vmax.f32 %v1949_v27, 0.0  ;;  %v2626_v9 = vld [vmem:[#allocation13 + $0x180] sm:$0xff]  ;;  %v2586_v46 = vld [vmem:[#allocation13 + $0x48] sm:$0xff] }
 0x335   :  { %v1980_v43 = vmax.f32 %v1948_v35, 0.0  ;;  %v8083_v44 = vpop.f32.mrb[28].mxu0  ;;  %8121 = vmatprep.mubr.msk.f32.mxu1 %vm2019_vm1, %v11892_v30  ;;  %v2631_v35 = vld [vmem:[#allocation13 + $0x1a8] sm:$0xff] }
 0x336   :  { %v1951_v62 = vadd.f32 %v8083_v44, %v11812_v34  ;;  %v1864_v16 = vpop.f32.mrb[29].mxu0  ;;  %v2630_v44 = vld [vmem:[#allocation13 + $0x1a0] sm:$0xff] }
 0x337   :  { %v11898_v57 = vmax.f32 %v1980_v43, %v1981_v23  ;;  %v1950_v12 = vadd.f32 %v11812_v34, %v1864_v16  ;;  %v2633_v23 = vld [vmem:[#allocation13 + $0x1b8] sm:$0xff]  ;;  %v3239_v4 = vld [vmem:[#allocation16 + $0x4e0] sm:$0xff] }
 0x338   :  { %v1983_v33 = vmax.f32 %v1951_v62, 0.0  ;;  %v2635_v62 = vld [vmem:[#allocation13 + $0x1c8] sm:$0xff]  ;;  %v2637_v16 = vld [vmem:[#allocation13 + $0x1d8] sm:$0xff] }
 0x339   :  { %v1982_v51 = vmax.f32 %v1950_v12, 0.0  ;;  %v8086_v47 = vpop.f32.mrb[30].mxu0  ;;  %8122 = vmatmul.mubr.msk.f32.gmra.mrb[12].mxu1 %vm2019_vm1, %v11898_v57  ;;  %v3243_v11 = vld [vmem:[#allocation16 + $0x500] sm:$0xff] }
 0x33a   :  { %v1953_v58 = vadd.f32 %v8086_v47, %v11812_v34  ;;  %v1874_v40 = vpop.f32.mrb[31].mxu0  ;;  %v2640_v47 = vld [vmem:[#allocation13 + $0x1f0] sm:$0xff]  ;;  %v3247_v13 = vld [vmem:[#allocation16 + $0x520] sm:$0xff] }
 0x33b   :  { %v11904_v0 = vmax.f32 %v1982_v51, %v1983_v33  ;;  %v1952_v25 = vadd.f32 %v11812_v34, %v1874_v40  ;;  %v8271_v34 = vpack.c.bf16 %v2366_v52, %v2365_v20  ;;  %v2641_v33 = vld [vmem:[#allocation13 + $0x1f8] sm:$0xff]  ;;  %v2578_v40 = vld [vmem:[#allocation13 + $0x8] sm:$0xff] }
 0x33c   :  { %v1985_v50 = vmax.f32 %v1953_v58, 0.0  ;;  %v3220_v20 = vld [vmem:[#allocation16 + $0x448] sm:$0xff] }
 0x33d   :  { %v1984_v8 = vmax.f32 %v1952_v25, 0.0  ;;  %8124 = vmatprep.mubr.msk.f32.mxu1 %vm2019_vm1, %v11904_v0  ;;  %v3224_v52 = vld [vmem:[#allocation16 + $0x468] sm:$0xff] }
 0x33f   :  { %v11909_v37 = vmax.f32 %v1984_v8, %v1985_v50  ;;  %v3212_v50 = vld [vmem:[#allocation16 + $0x408] sm:$0xff] }
 0x340   :  { %v3216_v8 = vld [vmem:[#allocation16 + $0x428] sm:$0xff] }
 0x341   :  { %8125 = vmatmul.mubr.msk.f32.gmra.mrb[14].mxu1 %vm2019_vm1, %v11909_v37 }
 0x342   :  { %8143 = vmatprep.mubr.f32.mxu1 %v10889_v10 }
 0x345   :  { %8144 = vmatmul.mubr.msk.f32.vlgmr.msra.gmra.mrb[0].mxu1 %vm2019_vm1, %v11818_v56  ;;  %v2613_v56 = vld [vmem:[#allocation13 + $0x118] sm:$0xff] }
 0x346   :  { %8266 = vmatpush3.bf16.msra.mxu1 %v11844_v22  ;;  %8146 = vmatprep.mubr.msk.f32.mxu1 %vm2019_vm1, %v11823_v31  ;;  %v8279_v22 = vpack.c.bf16 %v2613_v56, %v2611_v42  ;;  %v3228_v42 = vld [vmem:[#allocation16 + $0x488] sm:$0xff] }
 0x347   :  { %8268 = vmatprep.subr.bf16.mxu1 %v8267_v53  ;;  %v3232_v56 = vld [vmem:[#allocation16 + $0x4a8] sm:$0xff] }
 0x349   :  { %8147 = vmatmul.mubr.msk.f32.gmra.mrb[2].mxu1 %vm2019_vm1, %v11829_v3 }
 0x34a   :  { %8149 = vmatprep.mubr.msk.f32.mxu1 %vm2019_vm1, %v11835_v19  ;;  %8270 = vmatpush3.bf16.msra.mxu1 %v8267_v53  ;;  %v8377_v53 = vpack.c.bf16 %v3215_v21, %v3211_v28 }
 0x34b   :  { %8272 = vmatprep.subr.bf16.mxu1 %v8271_v34 }
 0x34d   :  { %8150 = vmatmul.mubr.msk.f32.gmra.mrb[4].mxu1 %vm2019_vm1, %v11841_v32 }
 0x34e   :  { %8152 = vmatprep.mubr.msk.f32.mxu1 %vm2019_vm1, %v11849_v36  ;;  %8274 = vmatpush3.bf16.msra.mxu1 %v8271_v34  ;;  %v8379_v34 = vpack.c.bf16 %v3224_v52, %v3220_v20 }
 0x34f   :  { %8276 = vmatprep.subr.bf16.mxu1 %v8275_v18 }
 0x351   :  { %8153 = vmatmul.mubr.msk.f32.gmra.mrb[6].mxu1 %vm2019_vm1, %v11856_v15 }
 0x352   :  { %8155 = vmatprep.mubr.msk.f32.mxu1 %vm2019_vm1, %v11862_v1  ;;  %8278 = vmatpush3.bf16.msra.mxu1 %v8275_v18  ;;  %v8381_v18 = vpack.c.bf16 %v3223_v41, %v3219_v38  ;;  %v3283_v38 = vld [vmem:[#allocation16 + $0x640] sm:$0xff] }
 0x353   :  { %8280 = vmatprep.subr.bf16.mxu1 %v8279_v22  ;;  %v8383_v22 = vpack.c.bf16 %v3232_v56, %v3228_v42  ;;  %v3287_v41 = vld [vmem:[#allocation16 + $0x660] sm:$0xff] }
 0x355   :  { %8156 = vmatmul.mubr.msk.f32.gmra.mrb[8].mxu1 %vm2019_vm1, %v11868_v39 }
 0x356   :  { %8158 = vmatprep.mubr.msk.f32.mxu1 %vm2019_vm1, %v11874_v61 }
 0x359   :  { %8159 = vmatmul.mubr.msk.f32.gmra.mrb[10].mxu1 %vm2019_vm1, %v11880_v5 }
 0x35a   :  { %8161 = vmatprep.mubr.msk.f32.mxu1 %vm2019_vm1, %v11886_v24 }
 0x35d   :  { %8162 = vmatmul.mubr.msk.f32.gmra.mrb[12].mxu1 %vm2019_vm1, %v11892_v30 }
 0x35e   :  { %8164 = vmatprep.mubr.msk.f32.mxu1 %vm2019_vm1, %v11898_v57 }
 0x361   :  { %8165 = vmatmul.mubr.msk.f32.gmra.mrb[14].mxu1 %vm2019_vm1, %v11904_v0 }
 0x362   :  { %8183 = vmatprep.mubr.msk.f32.mxu1 %vm2019_vm1, %v11823_v31  ;;  %v2625_v31 = vld [vmem:[#allocation13 + $0x178] sm:$0xff] }
 0x365   :  { %8184 = vmatmul.mubr.msk.f32.vlgmr.msra.gmra.mrb[0].mxu1 %vm2019_vm1, %v11829_v3  ;;  %v8291_v3 = vpack.c.bf16 %v2625_v31, %v2623_v45  ;;  %v3252_v45 = vld [vmem:[#allocation16 + $0x548] sm:$0xff] }
 0x366   :  { %8186 = vmatprep.mubr.msk.f32.mxu1 %vm2019_vm1, %v11835_v19  ;;  %8282 = vmatpush1.bf16.msra.mxu1 %v8281_v55  ;;  %v2624_v19 = vld [vmem:[#allocation13 + $0x170] sm:$0xff] }
 0x367   :  { %8284 = vmatprep.subr.bf16.mxu1 %v8283_v63  ;;  %v8293_v27 = vpack.c.bf16 %v2624_v19, %v2622_v29  ;;  %v3240_v55 = vld [vmem:[#allocation16 + $0x4e8] sm:$0xff]  ;;  %v3251_v29 = vld [vmem:[#allocation16 + $0x540] sm:$0xff] }
 0x368   :  { %v8387_v63 = vpack.c.bf16 %v3240_v55, %v3236_v59  ;;  %v3256_v31 = vld [vmem:[#allocation16 + $0x568] sm:$0xff]  ;;  %v3255_v19 = vld [vmem:[#allocation16 + $0x560] sm:$0xff] }
 0x369   :  { %8187 = vmatmul.mubr.msk.f32.gmra.mrb[2].mxu1 %vm2019_vm1, %v11841_v32  ;;  %v8295_v32 = vpack.c.bf16 %v2629_v54, %v2627_v17  ;;  %v3260_v17 = vld [vmem:[#allocation16 + $0x588] sm:$0xff] }
 0x36a   :  { %8189 = vmatprep.mubr.msk.f32.mxu1 %vm2019_vm1, %v11849_v36  ;;  %8286 = vmatpush1.bf16.msra.mxu1 %v8285_v7  ;;  %v2628_v36 = vld [vmem:[#allocation13 + $0x190] sm:$0xff]  ;;  %v8389_v7 = vpack.c.bf16 %v3239_v4, %v3235_v48 }
 0x36b   :  { %8288 = vmatprep.subr.bf16.mxu1 %v8287_v14  ;;  %v8297_v43 = vpack.c.bf16 %v2628_v36, %v2626_v9  ;;  %v8391_v14 = vpack.c.bf16 %v3248_v6, %v3244_v2  ;;  %v3264_v54 = vld [vmem:[#allocation16 + $0x5a8] sm:$0xff]  ;;  %v3259_v9 = vld [vmem:[#allocation16 + $0x580] sm:$0xff]  ;;  %v8413_v2 = vpack.c.bf16 %v3287_v41, %v3283_v38 }
 0x36c   :  { %v3263_v36 = vld [vmem:[#allocation16 + $0x5a0] sm:$0xff]  ;;  %v3292_v55 = vld [vmem:[#allocation16 + $0x688] sm:$0xff] }
 0x36d   :  { %8190 = vmatmul.mubr.msk.f32.gmra.mrb[4].mxu1 %vm2019_vm1, %v11856_v15  ;;  %v8299_v15 = vpack.c.bf16 %v2633_v23, %v2631_v35  ;;  %v3268_v35 = vld [vmem:[#allocation16 + $0x5c8] sm:$0xff] }
 0x36e   :  { %8192 = vmatprep.mubr.msk.f32.mxu1 %vm2019_vm1, %v11862_v1  ;;  %8290 = vmatpush1.bf16.msra.mxu1 %v8289_v26  ;;  %v2632_v1 = vld [vmem:[#allocation13 + $0x1b0] sm:$0xff]  ;;  %v8393_v26 = vpack.c.bf16 %v3247_v13, %v3243_v11  ;;  %v8319_v11 = vpack.c.bf16 %v2588_v49, %v2586_v46  ;;  %v2585_v13 = vld [vmem:[#allocation13 + $0x40] sm:$0xff] }
 0x36f   :  { %8292 = vmatprep.subr.bf16.mxu1 %v8291_v3  ;;  %v8301_v12 = vpack.c.bf16 %v2632_v1, %v2630_v44  ;;  %v8395_v3 = vpack.c.bf16 %v3256_v31, %v3252_v45  ;;  %v3272_v23 = vld [vmem:[#allocation16 + $0x5e8] sm:$0xff]  ;;  %v3267_v44 = vld [vmem:[#allocation16 + $0x5c0] sm:$0xff] }
 0x370   :  { %v3271_v1 = vld [vmem:[#allocation16 + $0x5e0] sm:$0xff]  ;;  %v2595_v38 = vld [vmem:[#allocation13 + $0x90] sm:$0xff] }
 0x371   :  { %8193 = vmatmul.mubr.msk.f32.gmra.mrb[6].mxu1 %vm2019_vm1, %v11868_v39  ;;  %v8303_v39 = vpack.c.bf16 %v2637_v16, %v2635_v62  ;;  %v11977_v62 = vld [vmem:[#allocation11] ss:$0 sm:$0xff]  ;;  %v3276_v16 = vld [vmem:[#allocation16 + $0x608] sm:$0xff]  ;;  %v3291_v45 = vld [vmem:[#allocation16 + $0x680] sm:$0xff] }
 0x372   :  { %8195 = vmatprep.mubr.msk.f32.mxu1 %vm2019_vm1, %v11874_v61  ;;  %8294 = vmatpush1.bf16.msra.mxu1 %v8293_v27  ;;  %v2634_v61 = vld [vmem:[#allocation13 + $0x1c0] sm:$0xff]  ;;  %v8397_v27 = vpack.c.bf16 %v3255_v19, %v3251_v29  ;;  %v2587_v29 = vld [vmem:[#allocation13 + $0x50] sm:$0xff]  ;;  %v2590_v19 = vld [vmem:[#allocation13 + $0x68] sm:$0xff] }
 0x373   :  { %8296 = vmatprep.subr.bf16.mxu1 %v8295_v32  ;;  %v8399_v32 = vpack.c.bf16 %v3264_v54, %v3260_v17  ;;  %v3295_v31 = vld [vmem:[#allocation16 + $0x6a0] sm:$0xff]  ;;  %v2592_v17 = vld [vmem:[#allocation13 + $0x78] sm:$0xff] }
 0x375   :  { %8196 = vmatmul.mubr.msk.f32.gmra.mrb[8].mxu1 %vm2019_vm1, %v11880_v5  ;;  %v2636_v5 = vld [vmem:[#allocation13 + $0x1d0] sm:$0xff] }
 0x376   :  { %8198 = vmatprep.mubr.msk.f32.mxu1 %vm2019_vm1, %v11886_v24  ;;  %8298 = vmatpush1.bf16.msra.mxu1 %v8297_v43  ;;  %v8305_v24 = vpack.c.bf16 %v2636_v5, %v2634_v61  ;;  %v8401_v43 = vpack.c.bf16 %v3263_v36, %v3259_v9  ;;  %v8405_v61 = vpack.c.bf16 %v3271_v1, %v3267_v44  ;;  %v3304_v9 = vld [vmem:[#allocation16 + $0x6e8] sm:$0xff] }
 0x377   :  { %8300 = vmatprep.subr.bf16.mxu1 %v8299_v15  ;;  %v8403_v15 = vpack.c.bf16 %v3272_v23, %v3268_v35  ;;  %v8417_v23 = vpack.c.bf16 %v3295_v31, %v3291_v45  ;;  %v8321_v44 = vpack.c.bf16 %v2587_v29, %v2585_v13  ;;  %v8323_v1 = vpack.c.bf16 %v2592_v17, %v2590_v19  ;;  %v2604_v13 = vld [vmem:[#allocation13 + $0xd8] sm:$0xff] }
 0x379   :  { %8199 = vmatmul.mubr.msk.f32.gmra.mrb[10].mxu1 %vm2019_vm1, %v11892_v30  ;;  %v2639_v30 = vld [vmem:[#allocation13 + $0x1e8] sm:$0xff] }
 0x37a   :  { %8201 = vmatprep.mubr.msk.f32.mxu1 %vm2019_vm1, %v11898_v57  ;;  %8302 = vmatpush1.bf16.msra.mxu1 %v8301_v12  ;;  %v8307_v51 = vpack.c.bf16 %v2641_v33, %v2639_v30  ;;  %v2638_v57 = vld [vmem:[#allocation13 + $0x1e0] sm:$0xff]  ;;  %v3280_v12 = vld [vmem:[#allocation16 + $0x628] sm:$0xff] }
 0x37b   :  { %8304 = vmatprep.subr.bf16.mxu1 %v8303_v39  ;;  %v8309_v58 = vpack.c.bf16 %v2640_v47, %v2638_v57  ;;  %v8407_v30 = vpack.c.bf16 %v3280_v12, %v3276_v16  ;;  %v3275_v33 = vld [vmem:[#allocation16 + $0x600] sm:$0xff] }
 0x37c   :  { %v2577_v47 = vld [vmem:[#allocation13] sm:$0xff] }
 0x37d   :  { %8202 = vmatmul.mubr.msk.f32.gmra.mrb[12].mxu1 %vm2019_vm1, %v11904_v0  ;;  %v2580_v0 = vld [vmem:[#allocation13 + $0x18] sm:$0xff]  ;;  %v2589_v16 = vld [vmem:[#allocation13 + $0x60] sm:$0xff] }
 0x37e   :  { %8204 = vmatprep.mubr.msk.f32.mxu1 %vm2019_vm1, %v11909_v37  ;;  %8306 = vmatpush1.bf16.msra.mxu1 %v8305_v24  ;;  %v8311_v25 = vpack.c.bf16 %v2580_v0, %v2578_v40  ;;  %v8375_v37 = vpack.c.bf16 %v3216_v8, %v3212_v50  ;;  %v2582_v40 = vld [vmem:[#allocation13 + $0x28] sm:$0xff] }
 0x37f   :  { %8308 = vmatprep.subr.bf16.mxu1 %v8307_v51  ;;  %v3279_v51 = vld [vmem:[#allocation16 + $0x620] sm:$0xff]  ;;  %v3284_v50 = vld [vmem:[#allocation16 + $0x648] sm:$0xff] }
 0x380   :  { %8376 = vmatprep.subr.bf16.mxu0 %v8375_v37  ;;  %v3288_v8 = vld [vmem:[#allocation16 + $0x668] sm:$0xff]  ;;  %v8409_v21 = vpack.c.bf16 %v3279_v51, %v3275_v33  ;;  %v3299_v12 = vld [vmem:[#allocation16 + $0x6c0] sm:$0xff]  ;;  %v2596_v33 = vld [vmem:[#allocation13 + $0x98] sm:$0xff] }
 0x381   :  { %8205 = vmatmul.mubr.f32.gmra.mrb[14].mxu1 %v10889_v10  ;;  %8378 = vmatpush1.bf16.msra.mxu0 %v8377_v53 }
 0x382   :  { %2706 = vmatprep.mubr.f32.mxu1 %v10889_v10  ;;  %8310 = vmatpush1.bf16.msra.mxu1 %v8309_v58  ;;  %v2579_v58 = vld [vmem:[#allocation13 + $0x10] sm:$0xff] }
 0x383   :  { %8312 = vmatprep.subr.bf16.mxu1 %v8311_v25  ;;  %8380 = vmatprep.subr.bf16.mxu0 %v8379_v34  ;;  %v2584_v25 = vld [vmem:[#allocation13 + $0x38] sm:$0xff]  ;;  %v8313_v52 = vpack.c.bf16 %v2579_v58, %v2577_v47  ;;  %v2581_v34 = vld [vmem:[#allocation13 + $0x20] sm:$0xff]  ;;  %v3308_v47 = vld [vmem:[#allocation16 + $0x708] sm:$0xff] }
 0x384   :  { %v8315_v56 = vpack.c.bf16 %v2584_v25, %v2582_v40  ;;  %v3312_v58 = vld [vmem:[#allocation16 + $0x728] sm:$0xff] }
 0x385   :  { %8382 = vmatpush1.bf16.msra.mxu0 %v8381_v18  ;;  %v8423_v41 = vpack.c.bf16 %v3312_v58, %v3308_v47 }
 0x386   :  { %8384 = vmatprep.subr.bf16.mxu0 %v8383_v22  ;;  %v2583_v22 = vld [vmem:[#allocation13 + $0x30] sm:$0xff] }
 0x389   :  { %8386 = vmatpush1.bf16.msra.mxu0 %v8385_v60  ;;  %v8411_v60 = vpack.c.bf16 %v3288_v8, %v3284_v50 }
 0x38a   :  { %8388 = vmatprep.subr.bf16.mxu0 %v8387_v63  ;;  %v3296_v63 = vld [vmem:[#allocation16 + $0x6a8] sm:$0xff] }
 0x38b   :  { %v8415_v54 = vpack.c.bf16 %v3296_v63, %v3292_v55 }
 0x38d   :  { %8390 = vmatpush1.bf16.msra.mxu0 %v8389_v7 }
 0x38e   :  { %8392 = vmatprep.subr.bf16.mxu0 %v8391_v14  ;;  %v8317_v14 = vpack.c.bf16 %v2583_v22, %v2581_v34  ;;  %v2593_v34 = vld [vmem:[#allocation13 + $0x80] sm:$0xff]  ;;  %v2600_v22 = vld [vmem:[#allocation13 + $0xb8] sm:$0xff] }
 0x38f   :  { %v8329_v63 = vpack.c.bf16 %v2595_v38, %v2593_v34  ;;  %v2880_v34 = vld [vmem:[#allocation13 + $0x258] sm:$0xff] }
 0x391   :  { %8394 = vmatpush1.bf16.msra.mxu0 %v8393_v26 }
 0x392   :  { %8396 = vmatprep.subr.bf16.mxu0 %v8395_v3 }
 0x395   :  { %8398 = vmatpush1.bf16.msra.mxu0 %v8397_v27 }
 0x396   :  { %8400 = vmatprep.subr.bf16.mxu0 %v8399_v32  ;;  %v3300_v32 = vld [vmem:[#allocation16 + $0x6c8] sm:$0xff] }
 0x397   :  { %v8419_v51 = vpack.c.bf16 %v3304_v9, %v3300_v32  ;;  %v2601_v32 = vld [vmem:[#allocation13 + $0xc0] sm:$0xff]  ;;  %v2603_v9 = vld [vmem:[#allocation13 + $0xd0] sm:$0xff] }
 0x399   :  { %8402 = vmatpush1.bf16.msra.mxu0 %v8401_v43 }
 0x39a   :  { %8404 = vmatprep.subr.bf16.mxu0 %v8403_v15 }
 0x39d   :  { %8406 = vmatpush1.bf16.msra.mxu0 %v8405_v61 }
 0x39e   :  { %8408 = vmatprep.subr.bf16.mxu0 %v8407_v30  ;;  %v2594_v30 = vld [vmem:[#allocation13 + $0x88] sm:$0xff] }
 0x3a1   :  { %8410 = vmatpush1.bf16.msra.mxu0 %v8409_v21  ;;  %v3307_v21 = vld [vmem:[#allocation16 + $0x700] sm:$0xff] }
 0x3a2   :  { %8412 = vmatprep.subr.bf16.mxu0 %v8411_v60 }
 0x3a5   :  { %8414 = vmatpush1.bf16.msra.mxu0 %v8413_v2 }
 0x3a6   :  { %8416 = vmatprep.subr.bf16.mxu0 %v8415_v54 }
 0x3a9   :  { %8418 = vmatpush1.bf16.msra.mxu0 %v8417_v23  ;;  %v2608_v23 = vld [vmem:[#allocation13 + $0xf8] sm:$0xff] }
 0x3aa   :  { %8420 = vmatprep.subr.bf16.mxu0 %v8419_v51  ;;  %v2870_v51 = vld [vmem:[#allocation13 + $0x208] sm:$0xff] }
 0x438   :  { %v8185_v39 = vpop.f32.mrb[0].mxu1 }
 0x439   :  { %v2538_v5 = vadd.f32 %v8185_v39, %v11977_v62  ;;  %v2435_v24 = vpop.f32.mrb[1].mxu1  ;;  %v3303_v39 = vld [vmem:[#allocation16 + $0x6e0] sm:$0xff] }
 0x43a   :  { %v2537_v57 = vadd.f32 %v11977_v62, %v2435_v24  ;;  %v2591_v24 = vld [vmem:[#allocation13 + $0x70] sm:$0xff]  ;;  %v8421_v25 = vpack.c.bf16 %v3303_v39, %v3299_v12 }
 0x43b   :  { %v2554_v0 = vmax.f32 %v2538_v5, 0.0 }
 0x43c   :  { %v2553_v37 = vmax.f32 %v2537_v57, 0.0  ;;  %v8188_v28 = vpop.f32.mrb[2].mxu1  ;;  %8422 = vmatpush1.bf16.msra.mxu0 %v8421_v25  ;;  %v2869_v25 = vld [vmem:[#allocation13 + $0x200] sm:$0xff] }
 0x43d   :  { %v2540_v53 = vadd.f32 %v8188_v28, %v11977_v62  ;;  %v2445_v20 = vpop.f32.mrb[3].mxu1  ;;  %v8327_v28 = vpack.c.bf16 %v2596_v33, %v2594_v30  ;;  %8424 = vmatprep.subr.bf16.mxu0 %v8423_v41  ;;  %v2607_v30 = vld [vmem:[#allocation13 + $0xf0] sm:$0xff] }
 0x43e   :  { %v11982_v18 = vmax.f32 %v2553_v37, %v2554_v0  ;;  %v2539_v42 = vadd.f32 %v11977_v62, %v2445_v20  ;;  %v8325_v37 = vpack.c.bf16 %v2591_v24, %v2589_v16  ;;  %v8337_v16 = vpack.c.bf16 %v2603_v9, %v2601_v32  ;;  %v2605_v24 = vld [vmem:[#allocation13 + $0xe0] sm:$0xff]  ;;  %v2895_v9 = vld [vmem:[#allocation13 + $0x2d0] sm:$0xff] }
 0x43f   :  { %v2556_v59 = vmax.f32 %v2540_v53, 0.0  ;;  %v3311_v53 = vld [vmem:[#allocation16 + $0x720] sm:$0xff]  ;;  %v8341_v58 = vpack.c.bf16 %v2607_v30, %v2605_v24  ;;  %v3213_v24 = vld [vmem:[#allocation16 + $0x410] sm:$0xff] }
 0x440   :  { %v2555_v48 = vmax.f32 %v2539_v42, 0.0  ;;  %v8191_v4 = vpop.f32.mrb[4].mxu1  ;;  %2707 = vmatmul.mubr.f32.vlgmr.msra.gmra.mrb[16].mxu1 %v11982_v18  ;;  %v8425_v60 = vpack.c.bf16 %v3311_v53, %v3307_v21  ;;  %v2873_v21 = vld [vmem:[#allocation13 + $0x220] sm:$0xff]  ;;  %v2875_v53 = vld [vmem:[#allocation13 + $0x230] sm:$0xff] }
 0x441   :  { %v2542_v6 = vadd.f32 %v8191_v4, %v11977_v62  ;;  %8314 = vmatpush1.bf16.msra.mxu1 %v8313_v52  ;;  %v2455_v7 = vpop.f32.mrb[5].mxu1  ;;  %2712 = vmatprep.mubr.f32.mxu1 %v10889_v10  ;;  %v8349_v38 = vpack.c.bf16 %v2875_v53, %v2873_v21  ;;  %v2893_v32 = vld [vmem:[#allocation13 + $0x2c0] sm:$0xff]  ;;  %v3217_v30 = vld [vmem:[#allocation16 + $0x430] sm:$0xff] }
 0x442   :  { %v11988_v26 = vmax.f32 %v2555_v48, %v2556_v59  ;;  %v2541_v3 = vadd.f32 %v11977_v62, %v2455_v7  ;;  %8316 = vmatprep.subr.bf16.mxu1 %v8315_v56  ;;  %v2598_v56 = vld [vmem:[#allocation13 + $0xa8] sm:$0xff]  ;;  %v2599_v7 = vld [vmem:[#allocation13 + $0xb0] sm:$0xff]  ;;  %8426 = vmatpush1.bf16.msra.mxu0 %v8425_v60  ;;  %v3238_v21 = vld [vmem:[#allocation16 + $0x4d8] sm:$0xff] }
 0x443   :  { %v2558_v27 = vmax.f32 %v2542_v6, 0.0  ;;  %v8331_v2 = vpack.c.bf16 %v2600_v22, %v2598_v56  ;;  %v2597_v6 = vld [vmem:[#allocation13 + $0xa0] sm:$0xff]  ;;  %v2879_v56 = vld [vmem:[#allocation13 + $0x250] sm:$0xff]  ;;  %v2882_v22 = vld [vmem:[#allocation13 + $0x268] sm:$0xff] }
 0x444   :  { %v2557_v36 = vmax.f32 %v2541_v3, 0.0  ;;  %v8194_v35 = vpop.f32.mrb[6].mxu1  ;;  %2713 = vmatmul.mubr.f32.gmra.mrb[18].mxu1 %v11988_v26  ;;  %v8333_v19 = vpack.c.bf16 %v2599_v7, %v2597_v6  ;;  %v2885_v7 = vld [vmem:[#allocation13 + $0x280] sm:$0xff] }
 0x445   :  { %v2544_v43 = vadd.f32 %v8194_v35, %v11977_v62  ;;  %8318 = vmatpush1.bf16.msra.mxu1 %v8317_v14  ;;  %v2465_v15 = vpop.f32.mrb[7].mxu1  ;;  %2718 = vmatprep.mubr.f32.mxu1 %v10889_v10  ;;  %v2606_v35 = vld [vmem:[#allocation13 + $0xe8] sm:$0xff]  ;;  %v3242_v53 = vld [vmem:[#allocation16 + $0x4f8] sm:$0xff] }
 0x446   :  { %v11994_v61 = vmax.f32 %v2557_v36, %v2558_v27  ;;  %v2543_v5 = vadd.f32 %v11977_v62, %v2465_v15  ;;  %8320 = vmatprep.subr.bf16.mxu1 %v8319_v11  ;;  %v2602_v11 = vld [vmem:[#allocation13 + $0xc8] sm:$0xff] }
 0x447   :  { %v2560_v57 = vmax.f32 %v2544_v43, 0.0  ;;  %v8335_v27 = vpack.c.bf16 %v2604_v13, %v2602_v11  ;;  %v2892_v11 = vld [vmem:[#allocation13 + $0x2b8] sm:$0xff] }
 0x448   :  { %v2559_v40 = vmax.f32 %v2543_v5, 0.0  ;;  %v8197_v0 = vpop.f32.mrb[8].mxu1  ;;  %2719 = vmatmul.mubr.f32.gmra.mrb[20].mxu1 %v11994_v61  ;;  %v8339_v5 = vpack.c.bf16 %v2608_v23, %v2606_v35  ;;  %v2900_v35 = vld [vmem:[#allocation13 + $0x2f8] sm:$0xff]  ;;  %v8369_v23 = vpack.c.bf16 %v2895_v9, %v2893_v32 }
 0x449   :  { %v2546_v50 = vadd.f32 %v8197_v0, %v11977_v62  ;;  %8322 = vmatpush1.bf16.msra.mxu1 %v8321_v44  ;;  %v2475_v8 = vpop.f32.mrb[9].mxu1  ;;  %2724 = vmatprep.mubr.f32.mxu1 %v10889_v10  ;;  %v3286_v32 = vld [vmem:[#allocation16 + $0x658] sm:$0xff] }
 0x44a   :  { %v12000_v20 = vmax.f32 %v2559_v40, %v2560_v57  ;;  %v2545_v52 = vadd.f32 %v11977_v62, %v2475_v8  ;;  %8324 = vmatprep.subr.bf16.mxu1 %v8323_v1  ;;  %v2872_v57 = vld [vmem:[#allocation13 + $0x218] sm:$0xff] }
 0x44b   :  { %v2562_v42 = vmax.f32 %v2546_v50, 0.0  ;;  %v8343_v0 = vpack.c.bf16 %v2872_v57, %v2870_v51  ;;  %v2874_v50 = vld [vmem:[#allocation13 + $0x228] sm:$0xff]  ;;  %v2876_v8 = vld [vmem:[#allocation13 + $0x238] sm:$0xff]  ;;  %v8441_v57 = vpack.c.bf16 %v3217_v30, %v3213_v24 }
 0x44c   :  { %v2561_v46 = vmax.f32 %v2545_v52, 0.0  ;;  %v8200_v49 = vpop.f32.mrb[10].mxu1  ;;  %2725 = vmatmul.mubr.f32.gmra.mrb[22].mxu1 %v12000_v20  ;;  %v2878_v52 = vld [vmem:[#allocation13 + $0x248] sm:$0xff]  ;;  %v3226_v51 = vld [vmem:[#allocation16 + $0x478] sm:$0xff] }
 0x44d   :  { %v2548_v59 = vadd.f32 %v8200_v49, %v11977_v62  ;;  %8326 = vmatpush1.bf16.msra.mxu1 %v8325_v37  ;;  %v2485_v55 = vpop.f32.mrb[11].mxu1  ;;  %2730 = vmatprep.mubr.f32.mxu1 %v10889_v10  ;;  %v8351_v41 = vpack.c.bf16 %v2880_v34, %v2878_v52  ;;  %v8451_v34 = vpack.c.bf16 %v3242_v53, %v3238_v21  ;;  %v3290_v9 = vld [vmem:[#allocation16 + $0x678] sm:$0xff] }
 0x44e   :  { %v12006_v48 = vmax.f32 %v2561_v46, %v2562_v42  ;;  %v2547_v4 = vadd.f32 %v11977_v62, %v2485_v55  ;;  %8328 = vmatprep.subr.bf16.mxu1 %v8327_v28  ;;  %v8347_v28 = vpack.c.bf16 %v2876_v8, %v2874_v50  ;;  %v2877_v42 = vld [vmem:[#allocation13 + $0x240] sm:$0xff]  ;;  %v2884_v46 = vld [vmem:[#allocation13 + $0x278] sm:$0xff]  ;;  %v2883_v55 = vld [vmem:[#allocation13 + $0x270] sm:$0xff] }
 0x44f   :  { %v2564_v14 = vmax.f32 %v2548_v59, 0.0  ;;  %v8353_v49 = vpack.c.bf16 %v2879_v56, %v2877_v42  ;;  %v8355_v60 = vpack.c.bf16 %v2884_v46, %v2882_v22  ;;  %v2881_v59 = vld [vmem:[#allocation13 + $0x260] sm:$0xff]  ;;  %v3245_v46 = vld [vmem:[#allocation16 + $0x510] sm:$0xff] }
 0x450   :  { %v2563_v45 = vmax.f32 %v2547_v4, 0.0  ;;  %v8203_v31 = vpop.f32.mrb[12].mxu1  ;;  %2731 = vmatmul.mubr.f32.gmra.mrb[24].mxu1 %v12006_v48  ;;  %v2888_v4 = vld [vmem:[#allocation13 + $0x298] sm:$0xff] }
 0x451   :  { %v2550_v3 = vadd.f32 %v8203_v31, %v11977_v62  ;;  %8330 = vmatpush1.bf16.msra.mxu1 %v8329_v63  ;;  %v2495_v29 = vpop.f32.mrb[13].mxu1  ;;  %2736 = vmatprep.mubr.f32.mxu1 %v10889_v10  ;;  %v2886_v63 = vld [vmem:[#allocation13 + $0x288] sm:$0xff]  ;;  %v2889_v31 = vld [vmem:[#allocation13 + $0x2a0] sm:$0xff] }
 0x452   :  { %v12012_v17 = vmax.f32 %v2563_v45, %v2564_v14  ;;  %v2549_v54 = vadd.f32 %v11977_v62, %v2495_v29  ;;  %8332 = vmatprep.subr.bf16.mxu1 %v8331_v2  ;;  %v8357_v2 = vpack.c.bf16 %v2883_v55, %v2881_v59  ;;  %v8359_v6 = vpack.c.bf16 %v2888_v4, %v2886_v63  ;;  %v2890_v14 = vld [vmem:[#allocation13 + $0x2a8] sm:$0xff]  ;;  %v3250_v42 = vld [vmem:[#allocation16 + $0x538] sm:$0xff]  ;;  %v3253_v63 = vld [vmem:[#allocation16 + $0x550] sm:$0xff] }
 0x453   :  { %v2566_v36 = vmax.f32 %v2550_v3, 0.0  ;;  %v8363_v45 = vpack.c.bf16 %v2892_v11, %v2890_v14  ;;  %v2891_v3 = vld [vmem:[#allocation13 + $0x2b0] sm:$0xff]  ;;  %v2894_v29 = vld [vmem:[#allocation13 + $0x2c8] sm:$0xff]  ;;  %v3262_v4 = vld [vmem:[#allocation16 + $0x598] sm:$0xff] }
 0x454   :  { %v2565_v43 = vmax.f32 %v2549_v54, 0.0  ;;  %v8206_v15 = vpop.f32.mrb[14].mxu1  ;;  %2737 = vmatmul.mubr.f32.gmra.mrb[26].mxu1 %v12012_v17  ;;  %v8365_v54 = vpack.c.bf16 %v2891_v3, %v2889_v31  ;;  %v3270_v14 = vld [vmem:[#allocation16 + $0x5d8] sm:$0xff]  ;;  %v3269_v31 = vld [vmem:[#allocation16 + $0x5d0] sm:$0xff] }
 0x455   :  { %v2552_v44 = vadd.f32 %v8206_v15, %v11977_v62  ;;  %8334 = vmatpush1.bf16.msra.mxu1 %v8333_v19  ;;  %v2505_v1 = vpop.f32.mrb[15].mxu1  ;;  %2742 = vmatprep.mubr.f32.mxu1 %v10889_v10  ;;  %v2896_v19 = vld [vmem:[#allocation13 + $0x2d8] sm:$0xff]  ;;  %v2897_v15 = vld [vmem:[#allocation13 + $0x2e0] sm:$0xff] }
 0x456   :  { %v12018_v12 = vmax.f32 %v2565_v43, %v2566_v36  ;;  %v2551_v39 = vadd.f32 %v11977_v62, %v2505_v1  ;;  %8336 = vmatprep.subr.bf16.mxu1 %v8335_v27  ;;  %v2871_v62 = vld [vmem:[#allocation13 + $0x210] sm:$0xff]  ;;  %v8367_v27 = vpack.c.bf16 %v2896_v19, %v2894_v29  ;;  %v2898_v36 = vld [vmem:[#allocation13 + $0x2e8] sm:$0xff]  ;;  %v3214_v1 = vld [vmem:[#allocation16 + $0x418] sm:$0xff] }
 0x457   :  { %v2568_v33 = vmax.f32 %v2552_v44, 0.0  ;;  %v8345_v37 = vpack.c.bf16 %v2871_v62, %v2869_v25  ;;  %v8371_v43 = vpack.c.bf16 %v2900_v35, %v2898_v36  ;;  %v2899_v44 = vld [vmem:[#allocation13 + $0x2f0] sm:$0xff]  ;;  %v3230_v25 = vld [vmem:[#allocation16 + $0x498] sm:$0xff]  ;;  %v8475_v35 = vpack.c.bf16 %v3290_v9, %v3286_v32 }
 0x458   :  { %v2567_v47 = vmax.f32 %v2551_v39, 0.0  ;;  %2743 = vmatmul.mubr.f32.gmra.mrb[28].mxu1 %v12018_v12  ;;  %v8373_v39 = vpack.c.bf16 %v2899_v44, %v2897_v15  ;;  %v3234_v62 = vld [vmem:[#allocation16 + $0x4b8] sm:$0xff] }
 0x459   :  { %8338 = vmatpush1.bf16.msra.mxu1 %v8337_v16  ;;  %2748 = vmatprep.mubr.f32.mxu1 %v10889_v10  ;;  %v3218_v16 = vld [vmem:[#allocation16 + $0x438] sm:$0xff]  ;;  %v8447_v8 = vpack.c.bf16 %v3234_v62, %v3230_v25  ;;  %v3309_v62 = vld [vmem:[#allocation16 + $0x710] sm:$0xff] }
 0x45a   :  { %v12023_v40 = vmax.f32 %v2567_v47, %v2568_v33  ;;  %8340 = vmatprep.subr.bf16.mxu1 %v8339_v5  ;;  %v8439_v5 = vpack.c.bf16 %v3218_v16, %v3214_v1  ;;  %v3222_v33 = vld [vmem:[#allocation16 + $0x458] sm:$0xff]  ;;  %v3293_v16 = vld [vmem:[#allocation16 + $0x690] sm:$0xff] }
 0x45b   :  { %v8443_v47 = vpack.c.bf16 %v3226_v51, %v3222_v33  ;;  %v3274_v11 = vld [vmem:[#allocation16 + $0x5f8] sm:$0xff]  ;;  %v3301_v51 = vld [vmem:[#allocation16 + $0x6d0] sm:$0xff] }
 0x45c   :  { %2749 = vmatmul.mubr.f32.gmra.mrb[30].mxu1 %v12023_v40  ;;  %v3278_v3 = vld [vmem:[#allocation16 + $0x618] sm:$0xff] }
 0x45d   :  { %8342 = vmatpush1.bf16.msra.mxu1 %v8341_v58  ;;  %2819 = vmatprep.mubr.f32.mxu1 %v10889_v10  ;;  %v3221_v58 = vld [vmem:[#allocation16 + $0x450] sm:$0xff]  ;;  %v3282_v29 = vld [vmem:[#allocation16 + $0x638] sm:$0xff] }
 0x45e   :  { %8344 = vmatprep.subr.bf16.mxu1 %v8343_v0  ;;  %v3225_v0 = vld [vmem:[#allocation16 + $0x470] sm:$0xff]  ;;  %v3294_v15 = vld [vmem:[#allocation16 + $0x698] sm:$0xff] }
 0x45f   :  { %v8445_v50 = vpack.c.bf16 %v3225_v0, %v3221_v58  ;;  %v3306_v24 = vld [vmem:[#allocation16 + $0x6f8] sm:$0xff] }
 0x460   :  { %2820 = vmatmul.mubr.f32.vlgmr.msra.gmra.mrb[16].mxu1 %v10889_v10  ;;  %v3314_v58 = vld [vmem:[#allocation16 + $0x738] sm:$0xff] }
 0x461   :  { %8346 = vmatpush1.bf16.msra.mxu1 %v8345_v37  ;;  %2825 = vmatprep.mubr.f32.mxu1 %v10889_v10  ;;  %v3229_v37 = vld [vmem:[#allocation16 + $0x490] sm:$0xff]  ;;  %v3318_v21 = vld [vmem:[#allocation16 + $0x758] sm:$0xff] }
 0x462   :  { %8348 = vmatprep.subr.bf16.mxu1 %v8347_v28  ;;  %v3233_v28 = vld [vmem:[#allocation16 + $0x4b0] sm:$0xff]  ;;  %v3085_v32 = vld [vmem:[#allocation16 + $0x18] sm:$0xff] }
 0x463   :  { %v8449_v52 = vpack.c.bf16 %v3233_v28, %v3229_v37  ;;  %v3316_v37 = vld [vmem:[#allocation16 + $0x748] sm:$0xff] }
 0x464   :  { %2826 = vmatmul.mubr.f32.gmra.mrb[18].mxu1 %v11982_v18  ;;  %v2887_v18 = vld [vmem:[#allocation13 + $0x290] sm:$0xff] }
 0x465   :  { %8350 = vmatpush1.bf16.msra.mxu1 %v8349_v38  ;;  %2831 = vmatprep.mubr.f32.mxu1 %v10889_v10  ;;  %v8361_v13 = vpack.c.bf16 %v2887_v18, %v2885_v7  ;;  %v3237_v38 = vld [vmem:[#allocation16 + $0x4d0] sm:$0xff]  ;;  %v3320_v28 = vld [vmem:[#allocation16 + $0x768] sm:$0xff] }
 0x466   :  { %8352 = vmatprep.subr.bf16.mxu1 %v8351_v41  ;;  %v3246_v41 = vld [vmem:[#allocation16 + $0x518] sm:$0xff]  ;;  %v3261_v18 = vld [vmem:[#allocation16 + $0x590] sm:$0xff]  ;;  %v8427_v53 = vpack.c.bf16 %v3320_v28, %v3316_v37  ;;  %v3091_v37 = vld [vmem:[#allocation16 + $0x48] sm:$0xff] }
 0x467   :  { %v8455_v22 = vpack.c.bf16 %v3250_v42, %v3246_v41  ;;  %v3317_v42 = vld [vmem:[#allocation16 + $0x750] sm:$0xff] }
 0x468   :  { %2832 = vmatmul.mubr.f32.gmra.mrb[20].mxu1 %v11988_v26  ;;  %8428 = vmatprep.subr.bf16.mxu0 %v8427_v53 }
 0x469   :  { %8354 = vmatpush1.bf16.msra.mxu1 %v8353_v49  ;;  %2837 = vmatprep.mubr.f32.mxu1 %v10889_v10  ;;  %v3254_v49 = vld [vmem:[#allocation16 + $0x558] sm:$0xff] }
 0x46a   :  { %8356 = vmatprep.subr.bf16.mxu1 %v8355_v60  ;;  %v3258_v60 = vld [vmem:[#allocation16 + $0x578] sm:$0xff] }
 0x46b   :  { %v8459_v55 = vpack.c.bf16 %v3258_v60, %v3254_v49  ;;  %v3326_v49 = vld [vmem:[#allocation16 + $0x798] sm:$0xff] }
 0x46c   :  { %2838 = vmatmul.mubr.f32.gmra.mrb[22].mxu1 %v11994_v61 }
 0x46d   :  { %8358 = vmatpush1.bf16.msra.mxu1 %v8357_v2  ;;  %2843 = vmatprep.mubr.f32.mxu1 %v10889_v10  ;;  %v3266_v2 = vld [vmem:[#allocation16 + $0x5b8] sm:$0xff] }
 0x46e   :  { %8360 = vmatprep.subr.bf16.mxu1 %v8359_v6  ;;  %v8463_v7 = vpack.c.bf16 %v3266_v2, %v3262_v4  ;;  %v3325_v2 = vld [vmem:[#allocation16 + $0x790] sm:$0xff] }
 0x470   :  { %2844 = vmatmul.mubr.f32.gmra.mrb[24].mxu1 %v12000_v20 }
 0x471   :  { %8362 = vmatpush1.bf16.msra.mxu1 %v8361_v13  ;;  %2849 = vmatprep.mubr.f32.mxu1 %v10889_v10 }
 0x472   :  { %8364 = vmatprep.subr.bf16.mxu1 %v8363_v45  ;;  %v8467_v45 = vpack.c.bf16 %v3274_v11, %v3270_v14  ;;  %v3334_v14 = vld [vmem:[#allocation16 + $0x7d8] sm:$0xff] }
 0x474   :  { %2850 = vmatmul.mubr.f32.gmra.mrb[26].mxu1 %v12006_v48 }
 0x475   :  { %8366 = vmatpush1.bf16.msra.mxu1 %v8365_v54  ;;  %2855 = vmatprep.mubr.f32.mxu1 %v10889_v10  ;;  %v8471_v54 = vpack.c.bf16 %v3282_v29, %v3278_v3  ;;  %v3333_v29 = vld [vmem:[#allocation16 + $0x7d0] sm:$0xff] }
 0x476   :  { %8368 = vmatprep.subr.bf16.mxu1 %v8367_v27  ;;  %v3277_v27 = vld [vmem:[#allocation16 + $0x610] sm:$0xff] }
 0x478   :  { %2856 = vmatmul.mubr.f32.gmra.mrb[28].mxu1 %v12012_v17 }
 0x479   :  { %8370 = vmatpush1.bf16.msra.mxu1 %v8369_v23  ;;  %2861 = vmatprep.mubr.f32.mxu1 %v10889_v10  ;;  %v3285_v23 = vld [vmem:[#allocation16 + $0x650] sm:$0xff] }
 0x47a   :  { %8372 = vmatprep.subr.bf16.mxu1 %v8371_v43  ;;  %v3289_v43 = vld [vmem:[#allocation16 + $0x670] sm:$0xff] }
 0x47b   :  { %v8477_v44 = vpack.c.bf16 %v3289_v43, %v3285_v23  ;;  %v3032_v23 = vlaneseq }
 0x47c   :  { %2862 = vmatmul.mubr.f32.gmra.mrb[30].mxu1 %v12018_v12 }
 0x47d   :  { %8374 = vmatpush1.bf16.msra.mxu1 %v8373_v39  ;;  %2965 = vmatprep.mubr.f32.mxu1 %v10889_v10  ;;  %v3297_v39 = vld [vmem:[#allocation16 + $0x6b0] sm:$0xff]  ;;  %v12058_v43 = vshrl.u32 %v3032_v23, 7  ;;  %v3111_v23 = vld [vmem:[#allocation16 + $0xe8] sm:$0xff] }
 0x47e   :  { %8440 = vmatprep.subr.bf16.mxu1 %v8439_v5  ;;  %v3302_v5 = vld [vmem:[#allocation16 + $0x6d8] sm:$0xff]  ;;  %v8481_v30 = vpack.c.bf16 %v3297_v39, %v3293_v16 }
 0x47f   :  { %v8483_v33 = vpack.c.bf16 %v3306_v24, %v3302_v5 }
 0x480   :  { %2966 = vmatmul.mubr.f32.vlgmr.msra.gmra.mrb[16].mxu1 %v11988_v26  ;;  %v3241_v26 = vld [vmem:[#allocation16 + $0x4f0] sm:$0xff] }
 0x481   :  { %2971 = vmatprep.mubr.f32.mxu1 %v10889_v10  ;;  %8442 = vmatpush1.bf16.msra.mxu1 %v8441_v57  ;;  %v8453_v56 = vpack.c.bf16 %v3241_v26, %v3237_v38  ;;  %v3305_v57 = vld [vmem:[#allocation16 + $0x6f0] sm:$0xff]  ;;  %v3319_v38 = vld [vmem:[#allocation16 + $0x760] sm:$0xff] }
 0x482   :  { %8444 = vmatprep.subr.bf16.mxu1 %v8443_v47  ;;  %v3310_v47 = vld [vmem:[#allocation16 + $0x718] sm:$0xff]  ;;  %v8485_v0 = vpack.c.bf16 %v3305_v57, %v3301_v51 }
 0x483   :  { %v8487_v25 = vpack.c.bf16 %v3314_v58, %v3310_v47  ;;  %v3082_v58 = vld [vmem:[#allocation16] sm:$0xff] }
 0x484   :  { %2972 = vmatmul.mubr.f32.gmra.mrb[18].mxu1 %v11994_v61  ;;  %v3249_v61 = vld [vmem:[#allocation16 + $0x530] sm:$0xff] }
 0x485   :  { %2977 = vmatprep.mubr.f32.mxu1 %v10889_v10  ;;  %8446 = vmatpush1.bf16.msra.mxu1 %v8445_v50  ;;  %v8457_v59 = vpack.c.bf16 %v3249_v61, %v3245_v46  ;;  %v3313_v50 = vld [vmem:[#allocation16 + $0x730] sm:$0xff]  ;;  %v3324_v46 = vld [vmem:[#allocation16 + $0x788] sm:$0xff] }
 0x486   :  { %8448 = vmatprep.subr.bf16.mxu1 %v8447_v8  ;;  %v8489_v8 = vpack.c.bf16 %v3313_v50, %v3309_v62  ;;  %v3328_v61 = vld [vmem:[#allocation16 + $0x7a8] sm:$0xff]  ;;  %v3084_v50 = vld [vmem:[#allocation16 + $0x10] sm:$0xff] }
 0x487   :  { %v8431_v60 = vpack.c.bf16 %v3328_v61, %v3324_v46  ;;  %v3090_v46 = vld [vmem:[#allocation16 + $0x40] sm:$0xff] }
 0x488   :  { %2978 = vmatmul.mubr.f32.gmra.mrb[20].mxu1 %v12000_v20  ;;  %v3257_v20 = vld [vmem:[#allocation16 + $0x570] sm:$0xff]  ;;  %v3094_v61 = vld [vmem:[#allocation16 + $0x60] sm:$0xff] }
 0x489   :  { %2983 = vmatprep.mubr.f32.mxu1 %v10889_v10  ;;  %8450 = vmatpush1.bf16.msra.mxu1 %v8449_v52  ;;  %v8461_v6 = vpack.c.bf16 %v3257_v20, %v3253_v63  ;;  %v3322_v52 = vld [vmem:[#allocation16 + $0x778] sm:$0xff]  ;;  %v3327_v63 = vld [vmem:[#allocation16 + $0x7a0] sm:$0xff] }
 0x48a   :  { %8452 = vmatprep.subr.bf16.mxu1 %v8451_v34  ;;  %v3315_v34 = vld [vmem:[#allocation16 + $0x740] sm:$0xff]  ;;  %v8491_v26 = vpack.c.bf16 %v3322_v52, %v3318_v21  ;;  %v3095_v52 = vld [vmem:[#allocation16 + $0x68] sm:$0xff] }
 0x48b   :  { %v8429_v41 = vpack.c.bf16 %v3319_v38, %v3315_v34  ;;  %v3093_v34 = vld [vmem:[#allocation16 + $0x58] sm:$0xff] }
 0x48c   :  { %2984 = vmatmul.mubr.f32.gmra.mrb[22].mxu1 %v12006_v48  ;;  %v3265_v48 = vld [vmem:[#allocation16 + $0x5b0] sm:$0xff]  ;;  %v3097_v38 = vld [vmem:[#allocation16 + $0x78] sm:$0xff] }
 0x48d   :  { %2989 = vmatprep.mubr.f32.mxu1 %v10889_v10  ;;  %8454 = vmatpush1.bf16.msra.mxu1 %v8453_v56  ;;  %v8465_v13 = vpack.c.bf16 %v3265_v48, %v3261_v18  ;;  %v3321_v56 = vld [vmem:[#allocation16 + $0x770] sm:$0xff]  ;;  %v3332_v18 = vld [vmem:[#allocation16 + $0x7c8] sm:$0xff] }
 0x48e   :  { %8456 = vmatprep.subr.bf16.mxu1 %v8455_v22  ;;  %v8493_v22 = vpack.c.bf16 %v3321_v56, %v3317_v42  ;;  %8430 = vmatpush1.bf16.msra.mxu0 %v8429_v41  ;;  %v3336_v48 = vld [vmem:[#allocation16 + $0x7e8] sm:$0xff] }
 0x48f   :  { %8432 = vmatprep.subr.bf16.mxu0 %v8431_v60  ;;  %v8435_v11 = vpack.c.bf16 %v3336_v48, %v3332_v18  ;;  %v8507_v60 = vpack.c.bf16 %v3095_v52, %v3091_v37  ;;  %v3105_v18 = vld [vmem:[#allocation16 + $0xb8] sm:$0xff] }
 0x490   :  { %2990 = vmatmul.mubr.f32.gmra.mrb[24].mxu1 %v12012_v17  ;;  %v3273_v17 = vld [vmem:[#allocation16 + $0x5f0] sm:$0xff]  ;;  %v3121_v52 = vld [vmem:[#allocation16 + $0x138] sm:$0xff] }
 0x491   :  { %2995 = vmatprep.mubr.f32.mxu1 %v10889_v10  ;;  %8458 = vmatpush1.bf16.msra.mxu1 %v8457_v59  ;;  %v8469_v19 = vpack.c.bf16 %v3273_v17, %v3269_v31  ;;  %v3330_v59 = vld [vmem:[#allocation16 + $0x7b8] sm:$0xff]  ;;  %v3335_v31 = vld [vmem:[#allocation16 + $0x7e0] sm:$0xff] }
 0x492   :  { %8460 = vmatprep.subr.bf16.mxu1 %v8459_v55  ;;  %v3323_v55 = vld [vmem:[#allocation16 + $0x780] sm:$0xff]  ;;  %v8495_v20 = vpack.c.bf16 %v3330_v59, %v3326_v49  ;;  %v8571_v59 = vpack.c.bf16 %v3097_v38, %v3093_v34 }
 0x493   :  { %v8433_v4 = vpack.c.bf16 %v3327_v63, %v3323_v55  ;;  %v3092_v55 = vld [vmem:[#allocation16 + $0x50] sm:$0xff] }
 0x494   :  { %2996 = vmatmul.mubr.f32.gmra.mrb[26].mxu1 %v12018_v12  ;;  %v3281_v12 = vld [vmem:[#allocation16 + $0x630] sm:$0xff] }
 0x495   :  { %3001 = vmatprep.mubr.f32.mxu1 %v10889_v10  ;;  %8462 = vmatpush1.bf16.msra.mxu1 %v8461_v6  ;;  %v8473_v36 = vpack.c.bf16 %v3281_v12, %v3277_v27  ;;  %v3329_v6 = vld [vmem:[#allocation16 + $0x7b0] sm:$0xff]  ;;  %v3083_v27 = vld [vmem:[#allocation16 + $0x8] sm:$0xff] }
 0x496   :  { %8464 = vmatprep.subr.bf16.mxu1 %v8463_v7  ;;  %v8497_v7 = vpack.c.bf16 %v3329_v6, %v3325_v2  ;;  %8434 = vmatpush1.bf16.msra.mxu0 %v8433_v4  ;;  %v3087_v12 = vld [vmem:[#allocation16 + $0x28] sm:$0xff]  ;;  %v3096_v63 = vld [vmem:[#allocation16 + $0x70] sm:$0xff] }
 0x497   :  { %8436 = vmatprep.subr.bf16.mxu0 %v8435_v11  ;;  %v8503_v9 = vpack.c.bf16 %v3087_v12, %v3083_v27  ;;  %v3103_v6 = vld [vmem:[#allocation16 + $0xa8] sm:$0xff]  ;;  %v3100_v27 = vld [vmem:[#allocation16 + $0x90] sm:$0xff] }
 0x498   :  { %3002 = vmatmul.mubr.f32.gmra.mrb[28].mxu1 %v12023_v40  ;;  %v3298_v40 = vld [vmem:[#allocation16 + $0x6b8] sm:$0xff]  ;;  %v3104_v12 = vld [vmem:[#allocation16 + $0xb0] sm:$0xff] }
 0x499   :  { %3007 = vmatprep.mubr.f32.mxu1 %v10889_v10  ;;  %8466 = vmatpush1.bf16.msra.mxu1 %v8465_v13  ;;  %v8479_v1 = vpack.c.bf16 %v3298_v40, %v3294_v15  ;;  %v3338_v13 = vld [vmem:[#allocation16 + $0x7f8] sm:$0xff]  ;;  %v12061_v15 = vsub.s32 0, %v12058_v43 }
 0x49a   :  { %8468 = vmatprep.subr.bf16.mxu1 %v8467_v45  ;;  %v3331_v45 = vld [vmem:[#allocation16 + $0x7c0] sm:$0xff]  ;;  %v8499_v17 = vpack.c.bf16 %v3338_v13, %v3334_v14  ;;  %v3030_v40 = vld [vmem:[#allocation14] sm:$0x3]  ;;  %v8509_v13 = vpack.c.bf16 %v3094_v61, %v3090_v46 }
 0x49b   :  { %v8437_v3 = vpack.c.bf16 %v3335_v31, %v3331_v45  ;;  %v8573_v45 = vpack.c.bf16 %v3096_v63, %v3092_v55  ;;  %v3098_v31 = vld [vmem:[#allocation16 + $0x80] sm:$0xff]  ;;  %v3116_v63 = vld [vmem:[#allocation16 + $0x110] sm:$0xff] }
 0x49c   :  { %3008 = vmatmul.mubr.f32.gmra.mrb[30].mxu1 %v10889_v10  ;;  %v3114_v46 = vld [vmem:[#allocation16 + $0x100] sm:$0xff] }
 0x49d   :  { %8470 = vmatpush1.bf16.msra.mxu1 %v8469_v19  ;;  %v3337_v19 = vld [vmem:[#allocation16 + $0x7f0] sm:$0xff]  ;;  %8438 = vmatpush1.bf16.msra.mxu0 %v8437_v3  ;;  %v3118_v61 = vld [vmem:[#allocation16 + $0x120] sm:$0xff] }
 0x49e   :  { %8472 = vmatprep.subr.bf16.mxu1 %v8471_v54  ;;  %v8501_v54 = vpack.c.bf16 %v3337_v19, %v3333_v29  ;;  %8504 = vmatprep.subr.bf16.mxu0 %v8503_v9 }
 0x4a1   :  { %8474 = vmatpush1.bf16.msra.mxu1 %v8473_v36  ;;  %v3089_v36 = vld [vmem:[#allocation16 + $0x38] sm:$0xff] }
 0x4a2   :  { %8476 = vmatprep.subr.bf16.mxu1 %v8475_v35  ;;  %v8567_v35 = vpack.c.bf16 %v3089_v36, %v3085_v32  ;;  %v3107_v32 = vld [vmem:[#allocation16 + $0xc8] sm:$0xff] }
 0x4a5   :  { %8478 = vmatpush1.bf16.msra.mxu1 %v8477_v44  ;;  %v12064_v44 = vsub.s32 1, %v12058_v43 }
 0x4a6   :  { %8480 = vmatprep.subr.bf16.mxu1 %v8479_v1  ;;  %v12067_v1 = vrot.slane %v3030_v40, %v12061_v15 }
 0x4a7   :  { %v12070_v39 = vrot.slane %v3030_v40, %v12064_v44  ;;  %v3109_v40 = vld [vmem:[#allocation16 + $0xd8] sm:$0xff] }
 0x4a9   :  { %8482 = vmatpush1.bf16.msra.mxu1 %v8481_v30 }
 0x4aa   :  { %8484 = vmatprep.subr.bf16.mxu1 %v8483_v33 }
 0x4ad   :  { %8486 = vmatpush1.bf16.msra.mxu1 %v8485_v0  ;;  %v3086_v0 = vld [vmem:[#allocation16 + $0x20] sm:$0xff] }
 0x4ae   :  { %8488 = vmatprep.subr.bf16.mxu1 %v8487_v25  ;;  %v8505_v56 = vpack.c.bf16 %v3086_v0, %v3082_v58  ;;  %v8515_v0 = vpack.c.bf16 %v3111_v23, %v3107_v32  ;;  %v3128_v32 = vld [vmem:[#allocation16 + $0x170] sm:$0xff]  ;;  %v3135_v23 = vld [vmem:[#allocation16 + $0x1a8] sm:$0xff] }
 0x4b1   :  { %8490 = vmatpush1.bf16.msra.mxu1 %v8489_v8  ;;  %v3088_v8 = vld [vmem:[#allocation16 + $0x30] sm:$0xff] }
 0x4b2   :  { %8492 = vmatprep.subr.bf16.mxu1 %v8491_v26 }
 0x4b5   :  { %8494 = vmatpush1.bf16.msra.mxu1 %v8493_v22  ;;  %v8569_v22 = vpack.c.bf16 %v3088_v8, %v3084_v50  ;;  %v3112_v50 = vld [vmem:[#allocation16 + $0xf0] sm:$0xff]  ;;  %v3115_v8 = vld [vmem:[#allocation16 + $0x108] sm:$0xff] }
 0x4b6   :  { %8496 = vmatprep.subr.bf16.mxu1 %v8495_v20  ;;  %v3099_v20 = vld [vmem:[#allocation16 + $0x88] sm:$0xff] }
 0x4b7   :  { %v8511_v19 = vpack.c.bf16 %v3103_v6, %v3099_v20  ;;  %v3120_v20 = vld [vmem:[#allocation16 + $0x130] sm:$0xff] }
 0x4b9   :  { %8498 = vmatpush1.bf16.msra.mxu1 %v8497_v7  ;;  %v3101_v7 = vld [vmem:[#allocation16 + $0x98] sm:$0xff] }
 0x4ba   :  { %8500 = vmatprep.subr.bf16.mxu1 %v8499_v17  ;;  %v3102_v17 = vld [vmem:[#allocation16 + $0xa0] sm:$0xff] }
 0x4bd   :  { %8502 = vmatpush1.bf16.msra.mxu1 %v8501_v54  ;;  %v8575_v54 = vpack.c.bf16 %v3105_v18, %v3101_v7  ;;  %v3127_v18 = vld [vmem:[#allocation16 + $0x168] sm:$0xff] }
 0x4be   :  { %8568 = vmatprep.subr.bf16.mxu1 %v8567_v35 }
 0x553   :  { %v2967_v16 = vpop.f32.mrb[16].mxu1 }
 0x554   :  { %v2969_v5 = vpop.f32.mrb[17].mxu1  ;;  %v3042_v24 = vadd.f32 %v12067_v1, %v2967_v16  ;;  %v3113_v16 = vld [vmem:[#allocation16 + $0xf8] sm:$0xff] }
 0x555   :  { %v3043_v30 = vadd.f32 %v12070_v39, %v2969_v5 }
 0x556   :  { %v3058_v25 = vmax.f32 %v3042_v24, 0.0 }
 0x557   :  { %v2973_v33 = vpop.f32.mrb[18].mxu1  ;;  %v3059_v28 = vmax.f32 %v3043_v30, 0.0 }
 0x558   :  { %v3044_v51 = vadd.f32 %v12067_v1, %v2973_v33  ;;  %v2975_v57 = vpop.f32.mrb[19].mxu1  ;;  %v8513_v33 = vpack.c.bf16 %v3102_v17, %v3098_v31  ;;  %v8521_v31 = vpack.c.bf16 %v3118_v61, %v3114_v46  ;;  %v8585_v17 = vpack.c.bf16 %v3120_v20, %v3116_v63  ;;  %v3138_v46 = vld [vmem:[#allocation16 + $0x1c0] sm:$0xff]  ;;  %v3147_v63 = vld [vmem:[#allocation16 + $0x208] sm:$0xff] }
 0x559   :  { %v3045_v47 = vadd.f32 %v12070_v39, %v2975_v57  ;;  %v3106_v57 = vld [vmem:[#allocation16 + $0xc0] sm:$0xff]  ;;  %v3151_v20 = vld [vmem:[#allocation16 + $0x228] sm:$0xff] }
 0x55a   :  { %v3060_v62 = vmax.f32 %v3044_v51, 0.0  ;;  %v8577_v51 = vpack.c.bf16 %v3104_v12, %v3100_v27  ;;  %v3124_v12 = vld [vmem:[#allocation16 + $0x150] sm:$0xff]  ;;  %v3142_v61 = vld [vmem:[#allocation16 + $0x1e0] sm:$0xff] }
 0x55b   :  { %v3061_v21 = vmax.f32 %v3045_v47, 0.0  ;;  %v2979_v53 = vpop.f32.mrb[20].mxu1  ;;  %v3110_v47 = vld [vmem:[#allocation16 + $0xe0] sm:$0xff] }
 0x55c   :  { %v12076_v26 = vmax.f32 %v3058_v25, %v3060_v62  ;;  %v2981_v41 = vpop.f32.mrb[21].mxu1  ;;  %v3046_v49 = vadd.f32 %v12067_v1, %v2979_v53  ;;  %v8579_v25 = vpack.c.bf16 %v3113_v16, %v3109_v40  ;;  %v3108_v62 = vld [vmem:[#allocation16 + $0xd0] sm:$0xff]  ;;  %v3117_v53 = vld [vmem:[#allocation16 + $0x118] sm:$0xff] }
 0x55d   :  { %v12078_v42 = vmax.f32 %v3059_v28, %v3061_v21  ;;  %v3047_v4 = vadd.f32 %v12070_v39, %v2981_v41  ;;  %v3119_v21 = vld [vmem:[#allocation16 + $0x128] sm:$0xff]  ;;  %v8583_v55 = vpack.c.bf16 %v3121_v52, %v3117_v53  ;;  %v3133_v40 = vld [vmem:[#allocation16 + $0x198] sm:$0xff] }
 0x55e   :  { %v3062_v3 = vmax.f32 %v3046_v49, 0.0  ;;  %v3137_v16 = vld [vmem:[#allocation16 + $0x1b8] sm:$0xff]  ;;  %v3143_v52 = vld [vmem:[#allocation16 + $0x1e8] sm:$0xff] }
 0x55f   :  { %v2985_v2 = vpop.f32.mrb[22].mxu1  ;;  %3403 = vmatprep.mubr.f32.mxu0 %v12078_v42  ;;  %3492 = vmatprep.mubr.f32.mxu1 %v12078_v42  ;;  %v3063_v9 = vmax.f32 %v3047_v4, 0.0  ;;  %v3123_v4 = vld [vmem:[#allocation16 + $0x148] sm:$0xff] }
 0x560   :  { %v3048_v48 = vadd.f32 %v12067_v1, %v2985_v2  ;;  %v2987_v14 = vpop.f32.mrb[23].mxu1  ;;  %3404 = vmatmul.mubr.f32.vlgmr.msra.gmra.mrb[32].mxu0 %v12076_v26  ;;  %3493 = vmatmul.mubr.f32.vlgmr.msra.gmra.mrb[32].mxu1 %v12076_v26 }
 0x561   :  { %v3049_v11 = vadd.f32 %v12070_v39, %v2987_v14  ;;  %8506 = vmatpush1.bf16.msra.mxu0 %v8505_v56  ;;  %8570 = vmatpush1.bf16.msra.mxu1 %v8569_v22  ;;  %v8517_v56 = vpack.c.bf16 %v3110_v47, %v3106_v57  ;;  %v8581_v22 = vpack.c.bf16 %v3112_v50, %v3108_v62  ;;  %v3129_v14 = vld [vmem:[#allocation16 + $0x178] sm:$0xff] }
 0x562   :  { %v3064_v29 = vmax.f32 %v3048_v48, 0.0  ;;  %8508 = vmatprep.subr.bf16.mxu0 %v8507_v60  ;;  %8572 = vmatprep.subr.bf16.mxu1 %v8571_v59  ;;  %v8519_v59 = vpack.c.bf16 %v3119_v21, %v3115_v8  ;;  %v3125_v48 = vld [vmem:[#allocation16 + $0x158] sm:$0xff]  ;;  %v8589_v47 = vpack.c.bf16 %v3128_v32, %v3124_v12  ;;  %v8591_v8 = vpack.c.bf16 %v3137_v16, %v3133_v40  ;;  %v3154_v32 = vld [vmem:[#allocation16 + $0x240] sm:$0xff]  ;;  %v3160_v40 = vld [vmem:[#allocation16 + $0x270] sm:$0xff] }
 0x563   :  { %v3065_v36 = vmax.f32 %v3049_v11, 0.0  ;;  %v2991_v35 = vpop.f32.mrb[24].mxu1  ;;  %v8587_v27 = vpack.c.bf16 %v3129_v14, %v3125_v48  ;;  %v3150_v48 = vld [vmem:[#allocation16 + $0x220] sm:$0xff]  ;;  %v8535_v14 = vpack.c.bf16 %v3151_v20, %v3147_v63  ;;  %v3163_v16 = vld [vmem:[#allocation16 + $0x288] sm:$0xff] }
 0x564   :  { %v12088_v5 = vmax.f32 %v3062_v3, %v3064_v29  ;;  %v2993_v24 = vpop.f32.mrb[25].mxu1  ;;  %v3050_v58 = vadd.f32 %v12067_v1, %v2991_v35  ;;  %v3122_v3 = vld [vmem:[#allocation16 + $0x140] sm:$0xff] }
 0x565   :  { %v12090_v30 = vmax.f32 %v3063_v9, %v3065_v36  ;;  %8510 = vmatpush1.bf16.msra.mxu0 %v8509_v13  ;;  %8574 = vmatpush1.bf16.msra.mxu1 %v8573_v45  ;;  %v3051_v37 = vadd.f32 %v12070_v39, %v2993_v24  ;;  %v3126_v29 = vld [vmem:[#allocation16 + $0x160] sm:$0xff]  ;;  %v3131_v9 = vld [vmem:[#allocation16 + $0x188] sm:$0xff] }
 0x566   :  { %8512 = vmatprep.subr.bf16.mxu0 %v8511_v19  ;;  %8576 = vmatprep.subr.bf16.mxu1 %v8575_v54  ;;  %v3066_v49 = vmax.f32 %v3050_v58, 0.0  ;;  %v8523_v54 = vpack.c.bf16 %v3127_v18, %v3123_v4  ;;  %v8525_v57 = vpack.c.bf16 %v3126_v29, %v3122_v3  ;;  %v3130_v58 = vld [vmem:[#allocation16 + $0x180] sm:$0xff]  ;;  %v8527_v50 = vpack.c.bf16 %v3135_v23, %v3131_v9  ;;  %v3149_v4 = vld [vmem:[#allocation16 + $0x218] sm:$0xff]  ;;  %v3155_v3 = vld [vmem:[#allocation16 + $0x248] sm:$0xff] }
 0x567   :  { %v2997_v28 = vpop.f32.mrb[26].mxu1  ;;  %3409 = vmatprep.mubr.f32.mxu0 %v12090_v30  ;;  %3498 = vmatprep.mubr.f32.mxu1 %v12090_v30  ;;  %v3067_v2 = vmax.f32 %v3051_v37, 0.0  ;;  %v3136_v37 = vld [vmem:[#allocation16 + $0x1b0] sm:$0xff]  ;;  %v3146_v18 = vld [vmem:[#allocation16 + $0x200] sm:$0xff]  ;;  %v3159_v29 = vld [vmem:[#allocation16 + $0x268] sm:$0xff] }
 0x568   :  { %v3052_v34 = vadd.f32 %v12067_v1, %v2997_v28  ;;  %v2999_v38 = vpop.f32.mrb[27].mxu1  ;;  %3410 = vmatmul.mubr.f32.gmra.mrb[34].mxu0 %v12088_v5  ;;  %3499 = vmatmul.mubr.f32.gmra.mrb[34].mxu1 %v12088_v5  ;;  %v3139_v28 = vld [vmem:[#allocation16 + $0x1c8] sm:$0xff]  ;;  %v3158_v9 = vld [vmem:[#allocation16 + $0x260] sm:$0xff]  ;;  %v3156_v23 = vld [vmem:[#allocation16 + $0x250] sm:$0xff] }
 0x569   :  { %v3053_v41 = vadd.f32 %v12070_v39, %v2999_v38  ;;  %8514 = vmatpush1.bf16.msra.mxu0 %v8513_v33  ;;  %8578 = vmatpush1.bf16.msra.mxu1 %v8577_v51 }
 0x56a   :  { %v3068_v60 = vmax.f32 %v3052_v34, 0.0  ;;  %8516 = vmatprep.subr.bf16.mxu0 %v8515_v0  ;;  %8580 = vmatprep.subr.bf16.mxu1 %v8579_v25  ;;  %v3134_v0 = vld [vmem:[#allocation16 + $0x1a0] sm:$0xff]  ;;  %v3141_v34 = vld [vmem:[#allocation16 + $0x1d8] sm:$0xff] }
 0x56b   :  { %v3069_v6 = vmax.f32 %v3053_v41, 0.0  ;;  %v3003_v7 = vpop.f32.mrb[28].mxu1 }
 0x56c   :  { %v12100_v11 = vmax.f32 %v3066_v49, %v3068_v60  ;;  %v3005_v13 = vpop.f32.mrb[29].mxu1  ;;  %v3054_v19 = vadd.f32 %v12067_v1, %v3003_v7  ;;  %v8531_v49 = vpack.c.bf16 %v3143_v52, %v3139_v28  ;;  %v3173_v28 = vld [vmem:[#allocation16 + $0x2d8] sm:$0xff] }
 0x56d   :  { %v12102_v45 = vmax.f32 %v3067_v2, %v3069_v6  ;;  %8518 = vmatpush1.bf16.msra.mxu0 %v8517_v56  ;;  %8582 = vmatpush1.bf16.msra.mxu1 %v8581_v22  ;;  %v3055_v36 = vadd.f32 %v12070_v39, %v3005_v13  ;;  %v8529_v56 = vpack.c.bf16 %v3134_v0, %v3130_v58  ;;  %v3153_v2 = vld [vmem:[#allocation16 + $0x238] sm:$0xff]  ;;  %v3162_v58 = vld [vmem:[#allocation16 + $0x280] sm:$0xff] }
 0x56e   :  { %8520 = vmatprep.subr.bf16.mxu0 %v8519_v59  ;;  %8584 = vmatprep.subr.bf16.mxu1 %v8583_v55  ;;  %v3070_v25 = vmax.f32 %v3054_v19, 0.0  ;;  %v3140_v59 = vld [vmem:[#allocation16 + $0x1d0] sm:$0xff]  ;;  %v8533_v6 = vpack.c.bf16 %v3142_v61, %v3138_v46  ;;  %v8599_v13 = vpack.c.bf16 %v3153_v2, %v3149_v4  ;;  %v3157_v19 = vld [vmem:[#allocation16 + $0x258] sm:$0xff]  ;;  %v3166_v0 = vld [vmem:[#allocation16 + $0x2a0] sm:$0xff] }
 0x56f   :  { %v3009_v35 = vpop.f32.mrb[30].mxu1  ;;  %3415 = vmatprep.mubr.f32.mxu0 %v12102_v45  ;;  %3504 = vmatprep.mubr.f32.mxu1 %v12102_v45  ;;  %v3071_v21 = vmax.f32 %v3055_v36, 0.0  ;;  %v3144_v55 = vld [vmem:[#allocation16 + $0x1f0] sm:$0xff]  ;;  %v8539_v36 = vpack.c.bf16 %v3159_v29, %v3155_v3  ;;  %v3178_v4 = vld [vmem:[#allocation16 + $0x300] sm:$0xff] }
 0x570   :  { %v3056_v24 = vadd.f32 %v12067_v1, %v3009_v35  ;;  %v3011_v33 = vpop.f32.mrb[31].mxu1  ;;  %3416 = vmatmul.mubr.f32.gmra.mrb[36].mxu0 %v12100_v11  ;;  %3505 = vmatmul.mubr.f32.gmra.mrb[36].mxu1 %v12100_v11  ;;  %v3132_v1 = vld [vmem:[#allocation16 + $0x190] sm:$0xff]  ;;  %v8597_v7 = vpack.c.bf16 %v3144_v55, %v3140_v59  ;;  %v3181_v59 = vld [vmem:[#allocation16 + $0x318] sm:$0xff]  ;;  %v3182_v2 = vld [vmem:[#allocation16 + $0x320] sm:$0xff] }
 0x571   :  { %v3057_v51 = vadd.f32 %v12070_v39, %v3011_v33  ;;  %8522 = vmatpush1.bf16.msra.mxu0 %v8521_v31  ;;  %8586 = vmatpush1.bf16.msra.mxu1 %v8585_v17  ;;  %v3145_v39 = vld [vmem:[#allocation16 + $0x1f8] sm:$0xff]  ;;  %v8593_v22 = vpack.c.bf16 %v3136_v37, %v3132_v1  ;;  %v3148_v31 = vld [vmem:[#allocation16 + $0x210] sm:$0xff]  ;;  %v3171_v1 = vld [vmem:[#allocation16 + $0x2c8] sm:$0xff]  ;;  %v8553_v3 = vpack.c.bf16 %v3182_v2, %v3178_v4 }
 0x572   :  { %v3072_v62 = vmax.f32 %v3056_v24, 0.0  ;;  %8524 = vmatprep.subr.bf16.mxu0 %v8523_v54  ;;  %8588 = vmatprep.subr.bf16.mxu1 %v8587_v27  ;;  %v8595_v60 = vpack.c.bf16 %v3145_v39, %v3141_v34  ;;  %v3152_v17 = vld [vmem:[#allocation16 + $0x230] sm:$0xff]  ;;  %v3161_v54 = vld [vmem:[#allocation16 + $0x278] sm:$0xff]  ;;  %v8537_v27 = vpack.c.bf16 %v3150_v48, %v3146_v18  ;;  %v3167_v24 = vld [vmem:[#allocation16 + $0x2a8] sm:$0xff] }
 0x573   :  { %v3073_v53 = vmax.f32 %v3057_v51, 0.0  ;;  %v8601_v12 = vpack.c.bf16 %v3152_v17, %v3148_v31  ;;  %v8603_v35 = vpack.c.bf16 %v3161_v54, %v3157_v19  ;;  %v3165_v33 = vld [vmem:[#allocation16 + $0x298] sm:$0xff]  ;;  %v3175_v37 = vld [vmem:[#allocation16 + $0x2e8] sm:$0xff]  ;;  %v3170_v34 = vld [vmem:[#allocation16 + $0x2c0] sm:$0xff] }
 0x574   :  { %v12112_v38 = vmax.f32 %v3070_v25, %v3072_v62  ;;  %v3169_v51 = vld [vmem:[#allocation16 + $0x2b8] sm:$0xff]  ;;  %v8543_v25 = vpack.c.bf16 %v3167_v24, %v3163_v16  ;;  %v3174_v39 = vld [vmem:[#allocation16 + $0x2e0] sm:$0xff]  ;;  %v3172_v46 = vld [vmem:[#allocation16 + $0x2d0] sm:$0xff] }
 0x575   :  { %v12114_v41 = vmax.f32 %v3071_v21, %v3073_v53  ;;  %8526 = vmatpush1.bf16.msra.mxu0 %v8525_v57  ;;  %8590 = vmatpush1.bf16.msra.mxu1 %v8589_v47  ;;  %v8541_v57 = vpack.c.bf16 %v3158_v9, %v3154_v32  ;;  %v8605_v47 = vpack.c.bf16 %v3160_v40, %v3156_v23  ;;  %v3177_v21 = vld [vmem:[#allocation16 + $0x2f8] sm:$0xff]  ;;  %v3176_v61 = vld [vmem:[#allocation16 + $0x2f0] sm:$0xff]  ;;  %v3186_v19 = vld [vmem:[#allocation16 + $0x340] sm:$0xff] }
 0x576   :  { %8528 = vmatprep.subr.bf16.mxu0 %v8527_v50  ;;  %8592 = vmatprep.subr.bf16.mxu1 %v8591_v8  ;;  %v8607_v62 = vpack.c.bf16 %v3169_v51, %v3165_v33  ;;  %v3164_v50 = vld [vmem:[#allocation16 + $0x290] sm:$0xff]  ;;  %v8545_v53 = vpack.c.bf16 %v3166_v0, %v3162_v58  ;;  %v3185_v55 = vld [vmem:[#allocation16 + $0x338] sm:$0xff]  ;;  %v8549_v63 = vpack.c.bf16 %v3174_v39, %v3170_v34  ;;  %v3190_v54 = vld [vmem:[#allocation16 + $0x360] sm:$0xff] }
 0x577   :  { %3421 = vmatprep.mubr.f32.mxu0 %v12114_v41  ;;  %3510 = vmatprep.mubr.f32.mxu1 %v12114_v41  ;;  %v3168_v8 = vld [vmem:[#allocation16 + $0x2b0] sm:$0xff]  ;;  %v8613_v20 = vpack.c.bf16 %v3176_v61, %v3172_v46  ;;  %v3189_v31 = vld [vmem:[#allocation16 + $0x358] sm:$0xff]  ;;  %v8557_v16 = vpack.c.bf16 %v3190_v54, %v3186_v19  ;;  %v3194_v33 = vld [vmem:[#allocation16 + $0x380] sm:$0xff] }
 0x578   :  { %3422 = vmatmul.mubr.f32.gmra.mrb[38].mxu0 %v12112_v38  ;;  %3511 = vmatmul.mubr.f32.gmra.mrb[38].mxu1 %v12112_v38  ;;  %v8609_v52 = vpack.c.bf16 %v3168_v8, %v3164_v50  ;;  %v3180_v18 = vld [vmem:[#allocation16 + $0x310] sm:$0xff]  ;;  %v3193_v17 = vld [vmem:[#allocation16 + $0x378] sm:$0xff]  ;;  %v3198_v51 = vld [vmem:[#allocation16 + $0x3a0] sm:$0xff] }
 0x579   :  { %8530 = vmatpush1.bf16.msra.mxu0 %v8529_v56  ;;  %8594 = vmatpush1.bf16.msra.mxu1 %v8593_v22  ;;  %v8547_v56 = vpack.c.bf16 %v3175_v37, %v3171_v1  ;;  %v8611_v22 = vpack.c.bf16 %v3177_v21, %v3173_v28  ;;  %v3184_v48 = vld [vmem:[#allocation16 + $0x330] sm:$0xff]  ;;  %v3197_v23 = vld [vmem:[#allocation16 + $0x398] sm:$0xff]  ;;  %v8561_v1 = vpack.c.bf16 %v3198_v51, %v3194_v33  ;;  %v3202_v28 = vld [vmem:[#allocation16 + $0x3c0] sm:$0xff] }
 0x57a   :  { %8532 = vmatprep.subr.bf16.mxu0 %v8531_v49  ;;  %8596 = vmatprep.subr.bf16.mxu1 %v8595_v60  ;;  %v3179_v49 = vld [vmem:[#allocation16 + $0x308] sm:$0xff]  ;;  %v8617_v29 = vpack.c.bf16 %v3184_v48, %v3180_v18  ;;  %v3188_v32 = vld [vmem:[#allocation16 + $0x350] sm:$0xff]  ;;  %v3201_v40 = vld [vmem:[#allocation16 + $0x3b8] sm:$0xff] }
 0x57b   :  { %3581 = vmatprep.mubr.f32.mxu0 %v10889_v10  ;;  %3670 = vmatprep.mubr.f32.mxu1 %v10889_v10  ;;  %v3183_v60 = vld [vmem:[#allocation16 + $0x328] sm:$0xff]  ;;  %v3192_v9 = vld [vmem:[#allocation16 + $0x370] sm:$0xff]  ;;  %v3205_v50 = vld [vmem:[#allocation16 + $0x3d8] sm:$0xff] }
 0x57c   :  { %v8621_v24 = vpack.c.bf16 %v3192_v9, %v3188_v32  ;;  %v3196_v58 = vld [vmem:[#allocation16 + $0x390] sm:$0xff]  ;;  %v3209_v8 = vld [vmem:[#allocation16 + $0x3f8] sm:$0xff]  ;;  %v3206_v21 = vld [vmem:[#allocation16 + $0x3e0] sm:$0xff] }
 0x57d   :  { %8534 = vmatpush1.bf16.msra.mxu0 %v8533_v6  ;;  %8598 = vmatpush1.bf16.msra.mxu1 %v8597_v7  ;;  %v8551_v6 = vpack.c.bf16 %v3183_v60, %v3179_v49  ;;  %v8615_v7 = vpack.c.bf16 %v3185_v55, %v3181_v59  ;;  %v3200_v0 = vld [vmem:[#allocation16 + $0x3b0] sm:$0xff]  ;;  %v3699_v46 = vld [vmem:[#allocation16 + $0x818] sm:$0xff]  ;;  %v8565_v49 = vpack.c.bf16 %v3206_v21, %v3202_v28  ;;  %v3733_v21 = vld [vmem:[#allocation16 + $0x928] sm:$0xff] }
 0x57e   :  { %8536 = vmatprep.subr.bf16.mxu0 %v8535_v14  ;;  %8600 = vmatprep.subr.bf16.mxu1 %v8599_v13  ;;  %v3187_v14 = vld [vmem:[#allocation16 + $0x348] sm:$0xff]  ;;  %v8625_v37 = vpack.c.bf16 %v3200_v0, %v3196_v58  ;;  %v3204_v34 = vld [vmem:[#allocation16 + $0x3d0] sm:$0xff]  ;;  %v3703_v61 = vld [vmem:[#allocation16 + $0x838] sm:$0xff] }
 0x57f   :  { %v3191_v13 = vld [vmem:[#allocation16 + $0x368] sm:$0xff]  ;;  %v3208_v39 = vld [vmem:[#allocation16 + $0x3f0] sm:$0xff]  ;;  %v8695_v55 = vpack.c.bf16 %v3703_v61, %v3699_v46  ;;  %v3707_v18 = vld [vmem:[#allocation16 + $0x858] sm:$0xff] }
 0x580   :  { %v8629_v60 = vpack.c.bf16 %v3208_v39, %v3204_v34  ;;  %v3698_v4 = vld [vmem:[#allocation16 + $0x810] sm:$0xff]  ;;  %v3711_v48 = vld [vmem:[#allocation16 + $0x878] sm:$0xff] }
 0x581   :  { %8538 = vmatpush1.bf16.msra.mxu0 %v8537_v27  ;;  %8602 = vmatpush1.bf16.msra.mxu1 %v8601_v12  ;;  %v8555_v27 = vpack.c.bf16 %v3191_v13, %v3187_v14  ;;  %v8619_v12 = vpack.c.bf16 %v3193_v17, %v3189_v31  ;;  %v3702_v2 = vld [vmem:[#allocation16 + $0x830] sm:$0xff]  ;;  %v3704_v31 = vld [vmem:[#allocation16 + $0x840] sm:$0xff]  ;;  %v3715_v32 = vld [vmem:[#allocation16 + $0x898] sm:$0xff] }
 0x582   :  { %8540 = vmatprep.subr.bf16.mxu0 %v8539_v36  ;;  %8604 = vmatprep.subr.bf16.mxu1 %v8603_v35  ;;  %v3195_v36 = vld [vmem:[#allocation16 + $0x388] sm:$0xff]  ;;  %v8697_v13 = vpack.c.bf16 %v3702_v2, %v3698_v4  ;;  %v3708_v17 = vld [vmem:[#allocation16 + $0x860] sm:$0xff]  ;;  %v3706_v19 = vld [vmem:[#allocation16 + $0x850] sm:$0xff] }
 0x583   :  { %v3199_v35 = vld [vmem:[#allocation16 + $0x3a8] sm:$0xff]  ;;  %v3710_v54 = vld [vmem:[#allocation16 + $0x870] sm:$0xff]  ;;  %v3719_v9 = vld [vmem:[#allocation16 + $0x8b8] sm:$0xff] }
 0x584   :  { %v3714_v33 = vld [vmem:[#allocation16 + $0x890] sm:$0xff]  ;;  %v3723_v58 = vld [vmem:[#allocation16 + $0x8d8] sm:$0xff] }
 0x585   :  { %8542 = vmatpush1.bf16.msra.mxu0 %v8541_v57  ;;  %8606 = vmatpush1.bf16.msra.mxu1 %v8605_v47  ;;  %v8559_v57 = vpack.c.bf16 %v3199_v35, %v3195_v36  ;;  %v8623_v47 = vpack.c.bf16 %v3201_v40, %v3197_v23  ;;  %v8637_v36 = vpack.c.bf16 %v3708_v17, %v3704_v31  ;;  %v3712_v23 = vld [vmem:[#allocation16 + $0x880] sm:$0xff]  ;;  %v3718_v51 = vld [vmem:[#allocation16 + $0x8b0] sm:$0xff]  ;;  %v3745_v31 = vld [vmem:[#allocation16 + $0x988] sm:$0xff] }
 0x586   :  { %8544 = vmatprep.subr.bf16.mxu0 %v8543_v25  ;;  %8608 = vmatprep.subr.bf16.mxu1 %v8607_v62  ;;  %v3203_v25 = vld [vmem:[#allocation16 + $0x3c8] sm:$0xff]  ;;  %v8701_v35 = vpack.c.bf16 %v3710_v54, %v3706_v19  ;;  %v3716_v40 = vld [vmem:[#allocation16 + $0x8a0] sm:$0xff]  ;;  %v3726_v28 = vld [vmem:[#allocation16 + $0x8f0] sm:$0xff] }
 0x587   :  { %v3207_v62 = vld [vmem:[#allocation16 + $0x3e8] sm:$0xff]  ;;  %v8641_v0 = vpack.c.bf16 %v3716_v40, %v3712_v23  ;;  %v3744_v54 = vld [vmem:[#allocation16 + $0x980] sm:$0xff]  ;;  %v3755_v40 = vld [vmem:[#allocation16 + $0x9d8] sm:$0xff] }
 0x588   :  { %v3749_v17 = vld [vmem:[#allocation16 + $0x9a8] sm:$0xff] }
 0x589   :  { %8546 = vmatpush1.bf16.msra.mxu0 %v8545_v53  ;;  %8610 = vmatpush1.bf16.msra.mxu1 %v8609_v52  ;;  %v8563_v53 = vpack.c.bf16 %v3207_v62, %v3203_v25  ;;  %v8627_v52 = vpack.c.bf16 %v3209_v8, %v3205_v50  ;;  %v8705_v25 = vpack.c.bf16 %v3718_v51, %v3714_v33  ;;  %v3720_v62 = vld [vmem:[#allocation16 + $0x8c0] sm:$0xff]  ;;  %v3757_v23 = vld [vmem:[#allocation16 + $0x9e8] sm:$0xff] }
 0x58a   :  { %8548 = vmatprep.subr.bf16.mxu0 %v8547_v56  ;;  %8612 = vmatprep.subr.bf16.mxu1 %v8611_v22  ;;  %v3697_v56 = vld [vmem:[#allocation16 + $0x808] sm:$0xff]  ;;  %v3724_v50 = vld [vmem:[#allocation16 + $0x8e0] sm:$0xff] }
 0x58b   :  { %v3701_v22 = vld [vmem:[#allocation16 + $0x828] sm:$0xff]  ;;  %v8645_v34 = vpack.c.bf16 %v3724_v50, %v3720_v62  ;;  %v3752_v51 = vld [vmem:[#allocation16 + $0x9c0] sm:$0xff]  ;;  %v3763_v50 = vld [vmem:[#allocation16 + $0xa18] sm:$0xff] }
 0x58c   :  { %v8631_v59 = vpack.c.bf16 %v3701_v22, %v3697_v56  ;;  %v3728_v56 = vld [vmem:[#allocation16 + $0x900] sm:$0xff]  ;;  %v3765_v62 = vld [vmem:[#allocation16 + $0xa28] sm:$0xff] }
 0x58d   :  { %8550 = vmatpush1.bf16.msra.mxu0 %v8549_v63  ;;  %8614 = vmatpush1.bf16.msra.mxu1 %v8613_v20  ;;  %v3696_v63 = vld [vmem:[#allocation16 + $0x800] sm:$0xff] }
 0x58e   :  { %8552 = vmatprep.subr.bf16.mxu0 %v8551_v6  ;;  %8616 = vmatprep.subr.bf16.mxu1 %v8615_v7  ;;  %v3700_v20 = vld [vmem:[#allocation16 + $0x820] sm:$0xff]  ;;  %v3705_v6 = vld [vmem:[#allocation16 + $0x848] sm:$0xff] }
 0x58f   :  { %v3709_v7 = vld [vmem:[#allocation16 + $0x868] sm:$0xff]  ;;  %v8633_v14 = vpack.c.bf16 %v3700_v20, %v3696_v63  ;;  %v3732_v22 = vld [vmem:[#allocation16 + $0x920] sm:$0xff]  ;;  %v3739_v63 = vld [vmem:[#allocation16 + $0x958] sm:$0xff] }
 0x590   :  { %v3743_v20 = vld [vmem:[#allocation16 + $0x978] sm:$0xff]  ;;  %v8649_v4 = vpack.c.bf16 %v3732_v22, %v3728_v56  ;;  %v3773_v56 = vld [vmem:[#allocation16 + $0xa68] sm:$0xff] }
 0x591   :  { %8554 = vmatpush1.bf16.msra.mxu0 %v8553_v3  ;;  %8618 = vmatpush1.bf16.msra.mxu1 %v8617_v29  ;;  %v8635_v3 = vpack.c.bf16 %v3709_v7, %v3705_v6  ;;  %v8699_v29 = vpack.c.bf16 %v3711_v48, %v3707_v18  ;;  %v3736_v6 = vld [vmem:[#allocation16 + $0x940] sm:$0xff]  ;;  %v8715_v48 = vpack.c.bf16 %v3743_v20, %v3739_v63  ;;  %v3771_v22 = vld [vmem:[#allocation16 + $0xa58] sm:$0xff]  ;;  %v3770_v20 = vld [vmem:[#allocation16 + $0xa50] sm:$0xff] }
 0x592   :  { %8556 = vmatprep.subr.bf16.mxu0 %v8555_v27  ;;  %8620 = vmatprep.subr.bf16.mxu1 %v8619_v12  ;;  %v3713_v27 = vld [vmem:[#allocation16 + $0x888] sm:$0xff]  ;;  %v3740_v7 = vld [vmem:[#allocation16 + $0x960] sm:$0xff] }
 0x593   :  { %v3717_v12 = vld [vmem:[#allocation16 + $0x8a8] sm:$0xff]  ;;  %v8653_v19 = vpack.c.bf16 %v3740_v7, %v3736_v6  ;;  %v3779_v7 = vld [vmem:[#allocation16 + $0xa98] sm:$0xff] }
 0x594   :  { %v3781_v6 = vld [vmem:[#allocation16 + $0xaa8] sm:$0xff] }
 0x595   :  { %8558 = vmatpush1.bf16.msra.mxu0 %v8557_v16  ;;  %8622 = vmatpush1.bf16.msra.mxu1 %v8621_v24  ;;  %v8639_v16 = vpack.c.bf16 %v3717_v12, %v3713_v27  ;;  %v8703_v24 = vpack.c.bf16 %v3719_v9, %v3715_v32  ;;  %v3748_v27 = vld [vmem:[#allocation16 + $0x9a0] sm:$0xff]  ;;  %v8655_v12 = vpack.c.bf16 %v3749_v17, %v3745_v31  ;;  %v3746_v9 = vld [vmem:[#allocation16 + $0x990] sm:$0xff] }
 0x596   :  { %8560 = vmatprep.subr.bf16.mxu0 %v8559_v57  ;;  %8624 = vmatprep.subr.bf16.mxu1 %v8623_v47  ;;  %v3721_v57 = vld [vmem:[#allocation16 + $0x8c8] sm:$0xff]  ;;  %v3780_v31 = vld [vmem:[#allocation16 + $0xaa0] sm:$0xff] }
 0x597   :  { %v3725_v47 = vld [vmem:[#allocation16 + $0x8e8] sm:$0xff] }
 0x598   :  { %v8643_v8 = vpack.c.bf16 %v3725_v47, %v3721_v57  ;;  %v3756_v57 = vld [vmem:[#allocation16 + $0x9e0] sm:$0xff] }
 0x599   :  { %8562 = vmatpush1.bf16.msra.mxu0 %v8561_v1  ;;  %8626 = vmatpush1.bf16.msra.mxu1 %v8625_v37  ;;  %v3722_v37 = vld [vmem:[#allocation16 + $0x8d0] sm:$0xff] }
 0x59a   :  { %8564 = vmatprep.subr.bf16.mxu0 %v8563_v53  ;;  %8628 = vmatprep.subr.bf16.mxu1 %v8627_v52  ;;  %v3731_v53 = vld [vmem:[#allocation16 + $0x918] sm:$0xff]  ;;  %v8709_v39 = vpack.c.bf16 %v3726_v28, %v3722_v37  ;;  %v3760_v28 = vld [vmem:[#allocation16 + $0xa00] sm:$0xff] }
 0x59b   :  { %v3735_v52 = vld [vmem:[#allocation16 + $0x938] sm:$0xff] }
 0x59c   :  { %v8711_v61 = vpack.c.bf16 %v3735_v52, %v3731_v53  ;;  %v3762_v52 = vld [vmem:[#allocation16 + $0xa10] sm:$0xff] }
 0x59d   :  { %8566 = vmatpush1.bf16.msra.mxu0 %v8565_v49  ;;  %8630 = vmatpush1.bf16.msra.mxu1 %v8629_v60  ;;  %v3730_v49 = vld [vmem:[#allocation16 + $0x910] sm:$0xff] }
 0x59e   :  { %8632 = vmatprep.subr.bf16.mxu0 %v8631_v59  ;;  %8696 = vmatprep.subr.bf16.mxu1 %v8695_v55  ;;  %v3734_v60 = vld [vmem:[#allocation16 + $0x930] sm:$0xff]  ;;  %v3737_v59 = vld [vmem:[#allocation16 + $0x948] sm:$0xff] }
 0x59f   :  { %v3741_v55 = vld [vmem:[#allocation16 + $0x968] sm:$0xff]  ;;  %v8713_v2 = vpack.c.bf16 %v3734_v60, %v3730_v49  ;;  %v3768_v60 = vld [vmem:[#allocation16 + $0xa40] sm:$0xff] }
 0x5a0   :  { %3582 = vmatmul.mubr.f32.vlgmr.msra.gmra.mrb[32].mxu0 %v10889_v10  ;;  %3671 = vmatmul.mubr.f32.vlgmr.msra.gmra.mrb[32].mxu1 %v10889_v10  ;;  %v8651_v18 = vpack.c.bf16 %v3741_v55, %v3737_v59  ;;  %v3772_v59 = vld [vmem:[#allocation16 + $0xa60] sm:$0xff] }
 0x5a1   :  { %3587 = vmatprep.mubr.f32.mxu0 %v12078_v42  ;;  %3676 = vmatprep.mubr.f32.mxu1 %v12078_v42  ;;  %v3727_v42 = vld [vmem:[#allocation16 + $0x8f8] sm:$0xff] }
 0x5a2   :  { %8634 = vmatpush1.bf16.msra.mxu0 %v8633_v14  ;;  %8698 = vmatpush1.bf16.msra.mxu1 %v8697_v13  ;;  %v8707_v1 = vpack.c.bf16 %v3727_v42, %v3723_v58  ;;  %v3738_v14 = vld [vmem:[#allocation16 + $0x950] sm:$0xff] }
 0x5a3   :  { %8636 = vmatprep.subr.bf16.mxu0 %v8635_v3  ;;  %8700 = vmatprep.subr.bf16.mxu1 %v8699_v29  ;;  %v3742_v13 = vld [vmem:[#allocation16 + $0x970] sm:$0xff]  ;;  %v3747_v3 = vld [vmem:[#allocation16 + $0x998] sm:$0xff] }
 0x5a4   :  { %3588 = vmatmul.mubr.f32.gmra.mrb[34].mxu0 %v12076_v26  ;;  %3677 = vmatmul.mubr.f32.gmra.mrb[34].mxu1 %v12076_v26  ;;  %v3729_v26 = vld [vmem:[#allocation16 + $0x908] sm:$0xff]  ;;  %v3751_v29 = vld [vmem:[#allocation16 + $0x9b8] sm:$0xff]  ;;  %v3754_v42 = vld [vmem:[#allocation16 + $0x9d0] sm:$0xff] }
 0x5a5   :  { %3593 = vmatprep.mubr.f32.mxu0 %v12090_v30  ;;  %3682 = vmatprep.mubr.f32.mxu1 %v12090_v30  ;;  %v8647_v46 = vpack.c.bf16 %v3733_v21, %v3729_v26  ;;  %v8719_v32 = vpack.c.bf16 %v3751_v29, %v3747_v3  ;;  %v3764_v26 = vld [vmem:[#allocation16 + $0xa20] sm:$0xff]  ;;  %v3778_v29 = vld [vmem:[#allocation16 + $0xa90] sm:$0xff] }
 0x5a6   :  { %8638 = vmatpush1.bf16.msra.mxu0 %v8637_v36  ;;  %8702 = vmatpush1.bf16.msra.mxu1 %v8701_v35  ;;  %v3750_v36 = vld [vmem:[#allocation16 + $0x9b0] sm:$0xff]  ;;  %v3753_v35 = vld [vmem:[#allocation16 + $0x9c8] sm:$0xff] }
 0x5a7   :  { %8640 = vmatprep.subr.bf16.mxu0 %v8639_v16  ;;  %8704 = vmatprep.subr.bf16.mxu1 %v8703_v24  ;;  %v3759_v16 = vld [vmem:[#allocation16 + $0x9f8] sm:$0xff]  ;;  %v8657_v24 = vpack.c.bf16 %v3748_v27, %v3744_v54  ;;  %v8721_v33 = vpack.c.bf16 %v3750_v36, %v3746_v9  ;;  %v8659_v47 = vpack.c.bf16 %v3757_v23, %v3753_v35  ;;  %v3789_v54 = vld [vmem:[#allocation16 + $0xae8] sm:$0xff]  ;;  %v3784_v36 = vld [vmem:[#allocation16 + $0xac0] sm:$0xff] }
 0x5a8   :  { %3594 = vmatmul.mubr.f32.gmra.mrb[36].mxu0 %v12088_v5  ;;  %3683 = vmatmul.mubr.f32.gmra.mrb[36].mxu1 %v12088_v5  ;;  %v8723_v58 = vpack.c.bf16 %v3759_v16, %v3755_v40  ;;  %v3787_v27 = vld [vmem:[#allocation16 + $0xad8] sm:$0xff]  ;;  %v3788_v35 = vld [vmem:[#allocation16 + $0xae0] sm:$0xff]  ;;  %v3786_v16 = vld [vmem:[#allocation16 + $0xad0] sm:$0xff] }
 0x5a9   :  { %3599 = vmatprep.mubr.f32.mxu0 %v12102_v45  ;;  %3688 = vmatprep.mubr.f32.mxu1 %v12102_v45 }
 0x5aa   :  { %8642 = vmatpush1.bf16.msra.mxu0 %v8641_v0  ;;  %8706 = vmatpush1.bf16.msra.mxu1 %v8705_v25  ;;  %v3758_v0 = vld [vmem:[#allocation16 + $0x9f0] sm:$0xff]  ;;  %v3761_v25 = vld [vmem:[#allocation16 + $0xa08] sm:$0xff] }
 0x5ab   :  { %8644 = vmatprep.subr.bf16.mxu0 %v8643_v8  ;;  %8708 = vmatprep.subr.bf16.mxu1 %v8707_v1  ;;  %v3767_v8 = vld [vmem:[#allocation16 + $0xa38] sm:$0xff]  ;;  %v8661_v1 = vpack.c.bf16 %v3756_v57, %v3752_v51  ;;  %v8725_v37 = vpack.c.bf16 %v3758_v0, %v3754_v42  ;;  %v8663_v21 = vpack.c.bf16 %v3765_v62, %v3761_v25  ;;  %v3797_v51 = vld [vmem:[#allocation16 + $0xb28] sm:$0xff]  ;;  %v3792_v0 = vld [vmem:[#allocation16 + $0xb00] sm:$0xff] }
 0x5ac   :  { %3600 = vmatmul.mubr.f32.gmra.mrb[38].mxu0 %v12100_v11  ;;  %3689 = vmatmul.mubr.f32.gmra.mrb[38].mxu1 %v12100_v11  ;;  %v8727_v53 = vpack.c.bf16 %v3767_v8, %v3763_v50  ;;  %v3795_v57 = vld [vmem:[#allocation16 + $0xb18] sm:$0xff]  ;;  %v3796_v25 = vld [vmem:[#allocation16 + $0xb20] sm:$0xff]  ;;  %v3794_v8 = vld [vmem:[#allocation16 + $0xb10] sm:$0xff] }
 0x5ad   :  { %3888 = vmatprep.mubr.f32.mxu0 %v12090_v30  ;;  %3977 = vmatprep.mubr.f32.mxu1 %v12090_v30  ;;  %v8717_v30 = vpack.c.bf16 %v3742_v13, %v3738_v14  ;;  %v3776_v13 = vld [vmem:[#allocation16 + $0xa80] sm:$0xff] }
 0x5ae   :  { %8646 = vmatpush1.bf16.msra.mxu0 %v8645_v34  ;;  %8710 = vmatpush1.bf16.msra.mxu1 %v8709_v39  ;;  %v3766_v34 = vld [vmem:[#allocation16 + $0xa30] sm:$0xff]  ;;  %v3769_v39 = vld [vmem:[#allocation16 + $0xa48] sm:$0xff] }
 0x5af   :  { %8648 = vmatprep.subr.bf16.mxu0 %v8647_v46  ;;  %8712 = vmatprep.subr.bf16.mxu1 %v8711_v61  ;;  %v3775_v46 = vld [vmem:[#allocation16 + $0xa78] sm:$0xff]  ;;  %v8665_v61 = vpack.c.bf16 %v3764_v26, %v3760_v28  ;;  %v8729_v49 = vpack.c.bf16 %v3766_v34, %v3762_v52  ;;  %v8667_v55 = vpack.c.bf16 %v3773_v56, %v3769_v39  ;;  %v3805_v28 = vld [vmem:[#allocation16 + $0xb68] sm:$0xff]  ;;  %v3800_v34 = vld [vmem:[#allocation16 + $0xb40] sm:$0xff] }
 0x5b0   :  { %v8731_v63 = vpack.c.bf16 %v3775_v46, %v3771_v22  ;;  %v3803_v26 = vld [vmem:[#allocation16 + $0xb58] sm:$0xff]  ;;  %v3804_v39 = vld [vmem:[#allocation16 + $0xb60] sm:$0xff]  ;;  %v3802_v46 = vld [vmem:[#allocation16 + $0xb50] sm:$0xff] }
 0x5b2   :  { %8650 = vmatpush1.bf16.msra.mxu0 %v8649_v4  ;;  %8714 = vmatpush1.bf16.msra.mxu1 %v8713_v2  ;;  %v3774_v4 = vld [vmem:[#allocation16 + $0xa70] sm:$0xff]  ;;  %v3777_v2 = vld [vmem:[#allocation16 + $0xa88] sm:$0xff] }
 0x5b3   :  { %8652 = vmatprep.subr.bf16.mxu0 %v8651_v18  ;;  %8716 = vmatprep.subr.bf16.mxu1 %v8715_v48  ;;  %v3783_v18 = vld [vmem:[#allocation16 + $0xab8] sm:$0xff]  ;;  %v8669_v48 = vpack.c.bf16 %v3772_v59, %v3768_v60  ;;  %v8733_v14 = vpack.c.bf16 %v3774_v4, %v3770_v20  ;;  %v8671_v17 = vpack.c.bf16 %v3781_v6, %v3777_v2  ;;  %v3813_v60 = vld [vmem:[#allocation16 + $0xba8] sm:$0xff]  ;;  %v3808_v4 = vld [vmem:[#allocation16 + $0xb80] sm:$0xff] }
 0x5b4   :  { %v8735_v3 = vpack.c.bf16 %v3783_v18, %v3779_v7  ;;  %v3811_v59 = vld [vmem:[#allocation16 + $0xb98] sm:$0xff]  ;;  %v3812_v2 = vld [vmem:[#allocation16 + $0xba0] sm:$0xff]  ;;  %v3810_v18 = vld [vmem:[#allocation16 + $0xb90] sm:$0xff] }
 0x5b6   :  { %8654 = vmatpush1.bf16.msra.mxu0 %v8653_v19  ;;  %8718 = vmatpush1.bf16.msra.mxu1 %v8717_v30  ;;  %v3782_v19 = vld [vmem:[#allocation16 + $0xab0] sm:$0xff]  ;;  %v3785_v30 = vld [vmem:[#allocation16 + $0xac8] sm:$0xff] }
 0x5b7   :  { %8656 = vmatprep.subr.bf16.mxu0 %v8655_v12  ;;  %8720 = vmatprep.subr.bf16.mxu1 %v8719_v32  ;;  %v3791_v12 = vld [vmem:[#allocation16 + $0xaf8] sm:$0xff]  ;;  %v8673_v32 = vpack.c.bf16 %v3780_v31, %v3776_v13  ;;  %v8737_v9 = vpack.c.bf16 %v3782_v19, %v3778_v29  ;;  %v8675_v23 = vpack.c.bf16 %v3789_v54, %v3785_v30  ;;  %v3821_v13 = vld [vmem:[#allocation16 + $0xbe8] sm:$0xff]  ;;  %v3816_v19 = vld [vmem:[#allocation16 + $0xbc0] sm:$0xff] }
 0x5b8   :  { %v8739_v40 = vpack.c.bf16 %v3791_v12, %v3787_v27  ;;  %v3819_v31 = vld [vmem:[#allocation16 + $0xbd8] sm:$0xff]  ;;  %v3820_v30 = vld [vmem:[#allocation16 + $0xbe0] sm:$0xff]  ;;  %v3818_v12 = vld [vmem:[#allocation16 + $0xbd0] sm:$0xff] }
 0x5ba   :  { %8658 = vmatpush1.bf16.msra.mxu0 %v8657_v24  ;;  %8722 = vmatpush1.bf16.msra.mxu1 %v8721_v33  ;;  %v3790_v24 = vld [vmem:[#allocation16 + $0xaf0] sm:$0xff]  ;;  %v3793_v33 = vld [vmem:[#allocation16 + $0xb08] sm:$0xff] }
 0x5bb   :  { %8660 = vmatprep.subr.bf16.mxu0 %v8659_v47  ;;  %8724 = vmatprep.subr.bf16.mxu1 %v8723_v58  ;;  %v3799_v47 = vld [vmem:[#allocation16 + $0xb38] sm:$0xff]  ;;  %v8677_v58 = vpack.c.bf16 %v3788_v35, %v3784_v36  ;;  %v8741_v42 = vpack.c.bf16 %v3790_v24, %v3786_v16  ;;  %v8679_v62 = vpack.c.bf16 %v3797_v51, %v3793_v33  ;;  %v4602_v36 = vld [vmem:[#allocation19 + $0x1048] sm:$0xff]  ;;  %v4593_v51 = vld [vmem:[#allocation19 + $0x1000] sm:$0xff] }
 0x5bc   :  { %v8743_v50 = vpack.c.bf16 %v3799_v47, %v3795_v57  ;;  %v4596_v35 = vld [vmem:[#allocation19 + $0x1018] sm:$0xff]  ;;  %v4601_v57 = vld [vmem:[#allocation19 + $0x1040] sm:$0xff]  ;;  %v4595_v47 = vld [vmem:[#allocation19 + $0x1010] sm:$0xff] }
 0x5be   :  { %8662 = vmatpush1.bf16.msra.mxu0 %v8661_v1  ;;  %8726 = vmatpush1.bf16.msra.mxu1 %v8725_v37  ;;  %v3798_v1 = vld [vmem:[#allocation16 + $0xb30] sm:$0xff]  ;;  %v3801_v37 = vld [vmem:[#allocation16 + $0xb48] sm:$0xff] }
 0x5bf   :  { %8664 = vmatprep.subr.bf16.mxu0 %v8663_v21  ;;  %8728 = vmatprep.subr.bf16.mxu1 %v8727_v53  ;;  %v3807_v21 = vld [vmem:[#allocation16 + $0xb78] sm:$0xff]  ;;  %v8681_v53 = vpack.c.bf16 %v3796_v25, %v3792_v0  ;;  %v8745_v52 = vpack.c.bf16 %v3798_v1, %v3794_v8  ;;  %v8683_v56 = vpack.c.bf16 %v3805_v28, %v3801_v37  ;;  %v4618_v0 = vld [vmem:[#allocation19 + $0x10c8] sm:$0xff]  ;;  %v4609_v1 = vld [vmem:[#allocation19 + $0x1080] sm:$0xff] }
 0x5c0   :  { %v8747_v22 = vpack.c.bf16 %v3807_v21, %v3803_v26  ;;  %v4612_v25 = vld [vmem:[#allocation19 + $0x1098] sm:$0xff]  ;;  %v4617_v37 = vld [vmem:[#allocation19 + $0x10c0] sm:$0xff]  ;;  %v4611_v21 = vld [vmem:[#allocation19 + $0x1090] sm:$0xff] }
 0x5c2   :  { %8666 = vmatpush1.bf16.msra.mxu0 %v8665_v61  ;;  %8730 = vmatpush1.bf16.msra.mxu1 %v8729_v49  ;;  %v3806_v61 = vld [vmem:[#allocation16 + $0xb70] sm:$0xff]  ;;  %v3809_v49 = vld [vmem:[#allocation16 + $0xb88] sm:$0xff] }
 0x5c3   :  { %8668 = vmatprep.subr.bf16.mxu0 %v8667_v55  ;;  %8732 = vmatprep.subr.bf16.mxu1 %v8731_v63  ;;  %v3815_v55 = vld [vmem:[#allocation16 + $0xbb8] sm:$0xff]  ;;  %v8685_v63 = vpack.c.bf16 %v3804_v39, %v3800_v34  ;;  %v8749_v20 = vpack.c.bf16 %v3806_v61, %v3802_v46  ;;  %v8687_v6 = vpack.c.bf16 %v3813_v60, %v3809_v49  ;;  %v4634_v34 = vld [vmem:[#allocation19 + $0x1148] sm:$0xff]  ;;  %v4625_v61 = vld [vmem:[#allocation19 + $0x1100] sm:$0xff] }
 0x5c4   :  { %v8751_v7 = vpack.c.bf16 %v3815_v55, %v3811_v59  ;;  %v4628_v39 = vld [vmem:[#allocation19 + $0x1118] sm:$0xff]  ;;  %v4633_v49 = vld [vmem:[#allocation19 + $0x1140] sm:$0xff]  ;;  %v4627_v55 = vld [vmem:[#allocation19 + $0x1110] sm:$0xff] }
 0x5c6   :  { %8670 = vmatpush1.bf16.msra.mxu0 %v8669_v48  ;;  %8734 = vmatpush1.bf16.msra.mxu1 %v8733_v14  ;;  %v3814_v48 = vld [vmem:[#allocation16 + $0xbb0] sm:$0xff]  ;;  %v3817_v14 = vld [vmem:[#allocation16 + $0xbc8] sm:$0xff] }
 0x5c7   :  { %8672 = vmatprep.subr.bf16.mxu0 %v8671_v17  ;;  %8736 = vmatprep.subr.bf16.mxu1 %v8735_v3  ;;  %v3823_v17 = vld [vmem:[#allocation16 + $0xbf8] sm:$0xff]  ;;  %v8689_v3 = vpack.c.bf16 %v3812_v2, %v3808_v4  ;;  %v8753_v29 = vpack.c.bf16 %v3814_v48, %v3810_v18  ;;  %v8691_v54 = vpack.c.bf16 %v3821_v13, %v3817_v14  ;;  %v4649_v18 = vld [vmem:[#allocation19 + $0x11c0] sm:$0xff] }
 0x5c8   :  { %v8755_v27 = vpack.c.bf16 %v3823_v17, %v3819_v31  ;;  %v4644_v4 = vld [vmem:[#allocation19 + $0x1198] sm:$0xff]  ;;  %v8769_v2 = vpack.c.bf16 %v4633_v49, %v4625_v61  ;;  %v4643_v13 = vld [vmem:[#allocation19 + $0x1190] sm:$0xff]  ;;  %v4666_v17 = vld [vmem:[#allocation19 + $0x1248] sm:$0xff] }
 0x5c9   :  { %v4651_v31 = vld [vmem:[#allocation19 + $0x11d0] sm:$0xff]  ;;  %v4705_v61 = vld [vmem:[#allocation19 + $0x1380] sm:$0xff] }
 0x5ca   :  { %8674 = vmatpush1.bf16.msra.mxu0 %v8673_v32  ;;  %8738 = vmatpush1.bf16.msra.mxu1 %v8737_v9  ;;  %v3822_v32 = vld [vmem:[#allocation16 + $0xbf0] sm:$0xff]  ;;  %v4713_v49 = vld [vmem:[#allocation19 + $0x13c0] sm:$0xff] }
 0x5cb   :  { %8676 = vmatprep.subr.bf16.mxu0 %v8675_v23  ;;  %8740 = vmatprep.subr.bf16.mxu1 %v8739_v40  ;;  %v4594_v9 = vld [vmem:[#allocation19 + $0x1008] sm:$0xff]  ;;  %v4604_v23 = vld [vmem:[#allocation19 + $0x1058] sm:$0xff]  ;;  %v8693_v40 = vpack.c.bf16 %v3820_v30, %v3816_v19  ;;  %v8757_v16 = vpack.c.bf16 %v3822_v32, %v3818_v12  ;;  %v8901_v19 = vpack.c.bf16 %v4651_v31, %v4643_v13  ;;  %v4657_v30 = vld [vmem:[#allocation19 + $0x1200] sm:$0xff] }
 0x5cc   :  { %v8759_v24 = vpack.c.bf16 %v4602_v36, %v4594_v9  ;;  %v8887_v33 = vpack.c.bf16 %v4604_v23, %v4596_v35  ;;  %v4659_v32 = vld [vmem:[#allocation19 + $0x1210] sm:$0xff]  ;;  %v4682_v36 = vld [vmem:[#allocation19 + $0x12c8] sm:$0xff]  ;;  %v4676_v35 = vld [vmem:[#allocation19 + $0x1298] sm:$0xff] }
 0x5cd   :  { %v4667_v9 = vld [vmem:[#allocation19 + $0x1250] sm:$0xff]  ;;  %v4684_v23 = vld [vmem:[#allocation19 + $0x12d8] sm:$0xff] }
 0x5ce   :  { %8678 = vmatpush1.bf16.msra.mxu0 %v8677_v58  ;;  %8742 = vmatpush1.bf16.msra.mxu1 %v8741_v42  ;;  %v4603_v58 = vld [vmem:[#allocation19 + $0x1050] sm:$0xff]  ;;  %v4610_v42 = vld [vmem:[#allocation19 + $0x1088] sm:$0xff] }
 0x5cf   :  { %8680 = vmatprep.subr.bf16.mxu0 %v8679_v62  ;;  %8744 = vmatprep.subr.bf16.mxu1 %v8743_v50  ;;  %v4620_v62 = vld [vmem:[#allocation19 + $0x10d8] sm:$0xff]  ;;  %v8761_v50 = vpack.c.bf16 %v4601_v57, %v4593_v51  ;;  %v8889_v8 = vpack.c.bf16 %v4603_v58, %v4595_v47  ;;  %v8763_v28 = vpack.c.bf16 %v4618_v0, %v4610_v42  ;;  %v4675_v47 = vld [vmem:[#allocation19 + $0x1290] sm:$0xff]  ;;  %v4690_v42 = vld [vmem:[#allocation19 + $0x1308] sm:$0xff] }
 0x5d0   :  { %v8891_v26 = vpack.c.bf16 %v4620_v62, %v4612_v25  ;;  %v8907_v57 = vpack.c.bf16 %v4684_v23, %v4676_v35  ;;  %v4683_v58 = vld [vmem:[#allocation19 + $0x12d0] sm:$0xff]  ;;  %v4698_v0 = vld [vmem:[#allocation19 + $0x1348] sm:$0xff]  ;;  %v4692_v25 = vld [vmem:[#allocation19 + $0x1318] sm:$0xff] }
 0x5d1   :  { %v4700_v62 = vld [vmem:[#allocation19 + $0x1358] sm:$0xff]  ;;  %v4723_v13 = vld [vmem:[#allocation19 + $0x1410] sm:$0xff] }
 0x5d2   :  { %8682 = vmatpush1.bf16.msra.mxu0 %v8681_v53  ;;  %8746 = vmatpush1.bf16.msra.mxu1 %v8745_v52  ;;  %v4619_v53 = vld [vmem:[#allocation19 + $0x10d0] sm:$0xff]  ;;  %v4626_v52 = vld [vmem:[#allocation19 + $0x1108] sm:$0xff]  ;;  %v4756_v35 = vld [vmem:[#allocation19 + $0x1518] sm:$0xff] }
 0x5d3   :  { %8684 = vmatprep.subr.bf16.mxu0 %v8683_v56  ;;  %8748 = vmatprep.subr.bf16.mxu1 %v8747_v22  ;;  %v4636_v56 = vld [vmem:[#allocation19 + $0x1158] sm:$0xff]  ;;  %v8765_v22 = vpack.c.bf16 %v4617_v37, %v4609_v1  ;;  %v8893_v46 = vpack.c.bf16 %v4619_v53, %v4611_v21  ;;  %v8767_v60 = vpack.c.bf16 %v4634_v34, %v4626_v52  ;;  %v4689_v1 = vld [vmem:[#allocation19 + $0x1300] sm:$0xff]  ;;  %v4691_v21 = vld [vmem:[#allocation19 + $0x1310] sm:$0xff] }
 0x5d4   :  { %v8895_v59 = vpack.c.bf16 %v4636_v56, %v4628_v39  ;;  %v4697_v37 = vld [vmem:[#allocation19 + $0x1340] sm:$0xff]  ;;  %v4699_v53 = vld [vmem:[#allocation19 + $0x1350] sm:$0xff]  ;;  %v4706_v52 = vld [vmem:[#allocation19 + $0x1388] sm:$0xff] }
 0x5d5   :  { %v4714_v34 = vld [vmem:[#allocation19 + $0x13c8] sm:$0xff]  ;;  %v4708_v39 = vld [vmem:[#allocation19 + $0x1398] sm:$0xff]  ;;  %v4731_v31 = vld [vmem:[#allocation19 + $0x1450] sm:$0xff] }
 0x5d6   :  { %8686 = vmatpush1.bf16.msra.mxu0 %v8685_v63  ;;  %8750 = vmatpush1.bf16.msra.mxu1 %v8749_v20  ;;  %v4635_v63 = vld [vmem:[#allocation19 + $0x1150] sm:$0xff]  ;;  %v4650_v20 = vld [vmem:[#allocation19 + $0x11c8] sm:$0xff]  ;;  %v4716_v56 = vld [vmem:[#allocation19 + $0x13d8] sm:$0xff] }
 0x5d7   :  { %8688 = vmatprep.subr.bf16.mxu0 %v8687_v6  ;;  %8752 = vmatprep.subr.bf16.mxu1 %v8751_v7  ;;  %v8897_v6 = vpack.c.bf16 %v4635_v63, %v4627_v55  ;;  %v4641_v7 = vld [vmem:[#allocation19 + $0x1180] sm:$0xff]  ;;  %v4707_v55 = vld [vmem:[#allocation19 + $0x1390] sm:$0xff]  ;;  %v4764_v23 = vld [vmem:[#allocation19 + $0x1558] sm:$0xff] }
 0x5d8   :  { %v4715_v63 = vld [vmem:[#allocation19 + $0x13d0] sm:$0xff] }
 0x5da   :  { %8690 = vmatpush1.bf16.msra.mxu0 %v8689_v3  ;;  %8754 = vmatpush1.bf16.msra.mxu1 %v8753_v29  ;;  %v4660_v3 = vld [vmem:[#allocation19 + $0x1218] sm:$0xff]  ;;  %v8773_v29 = vpack.c.bf16 %v4649_v18, %v4641_v7  ;;  %v4721_v7 = vld [vmem:[#allocation19 + $0x1400] sm:$0xff] }
 0x5db   :  { %8692 = vmatprep.subr.bf16.mxu0 %v8691_v54  ;;  %8756 = vmatprep.subr.bf16.mxu1 %v8755_v27  ;;  %v4665_v54 = vld [vmem:[#allocation19 + $0x1240] sm:$0xff] }
 0x5dc   :  { %v4729_v18 = vld [vmem:[#allocation19 + $0x1440] sm:$0xff] }
 0x5de   :  { %8694 = vmatpush1.bf16.msra.mxu0 %v8693_v40  ;;  %8758 = vmatpush1.bf16.msra.mxu1 %v8757_v16  ;;  %v8777_v40 = vpack.c.bf16 %v4665_v54, %v4657_v30  ;;  %v8905_v16 = vpack.c.bf16 %v4667_v9, %v4659_v32  ;;  %v4737_v30 = vld [vmem:[#allocation19 + $0x1480] sm:$0xff]  ;;  %v4739_v32 = vld [vmem:[#allocation19 + $0x1490] sm:$0xff] }
 0x5df   :  { %8760 = vmatprep.subr.bf16.mxu0 %v8759_v24  ;;  %8888 = vmatprep.subr.bf16.mxu1 %v8887_v33  ;;  %v4673_v24 = vld [vmem:[#allocation19 + $0x1280] sm:$0xff]  ;;  %v4747_v9 = vld [vmem:[#allocation19 + $0x14d0] sm:$0xff] }
 0x5e0   :  { %v4681_v33 = vld [vmem:[#allocation19 + $0x12c0] sm:$0xff] }
 0x5e1   :  { %3889 = vmatmul.mubr.f32.vlgmr.msra.gmra.mrb[32].mxu0 %v12088_v5  ;;  %3978 = vmatmul.mubr.f32.vlgmr.msra.gmra.mrb[32].mxu1 %v12088_v5  ;;  %v4642_v5 = vld [vmem:[#allocation19 + $0x1188] sm:$0xff]  ;;  %v4745_v54 = vld [vmem:[#allocation19 + $0x14c0] sm:$0xff] }
 0x5e2   :  { %3894 = vmatprep.mubr.f32.mxu0 %v12102_v45  ;;  %3983 = vmatprep.mubr.f32.mxu1 %v12102_v45  ;;  %v4652_v45 = vld [vmem:[#allocation19 + $0x11d8] sm:$0xff]  ;;  %v8771_v48 = vpack.c.bf16 %v4650_v20, %v4642_v5  ;;  %v4722_v5 = vld [vmem:[#allocation19 + $0x1408] sm:$0xff] }
 0x5e3   :  { %8762 = vmatpush1.bf16.msra.mxu0 %v8761_v50  ;;  %8890 = vmatpush1.bf16.msra.mxu1 %v8889_v8  ;;  %v8899_v14 = vpack.c.bf16 %v4652_v45, %v4644_v4  ;;  %v8781_v50 = vpack.c.bf16 %v4681_v33, %v4673_v24  ;;  %v8909_v8 = vpack.c.bf16 %v4683_v58, %v4675_v47  ;;  %v4730_v20 = vld [vmem:[#allocation19 + $0x1448] sm:$0xff]  ;;  %v4724_v4 = vld [vmem:[#allocation19 + $0x1418] sm:$0xff]  ;;  %v4753_v24 = vld [vmem:[#allocation19 + $0x1500] sm:$0xff] }
 0x5e4   :  { %8764 = vmatprep.subr.bf16.mxu0 %v8763_v28  ;;  %8892 = vmatprep.subr.bf16.mxu1 %v8891_v26  ;;  %v8783_v28 = vpack.c.bf16 %v4698_v0, %v4690_v42  ;;  %v8911_v26 = vpack.c.bf16 %v4700_v62, %v4692_v25  ;;  %v4732_v45 = vld [vmem:[#allocation19 + $0x1458] sm:$0xff]  ;;  %v4761_v33 = vld [vmem:[#allocation19 + $0x1540] sm:$0xff]  ;;  %v4755_v47 = vld [vmem:[#allocation19 + $0x1510] sm:$0xff] }
 0x5e5   :  { %3895 = vmatmul.mubr.f32.gmra.mrb[34].mxu0 %v12100_v11  ;;  %3984 = vmatmul.mubr.f32.gmra.mrb[34].mxu1 %v12100_v11  ;;  %v4658_v11 = vld [vmem:[#allocation19 + $0x1208] sm:$0xff]  ;;  %v4763_v58 = vld [vmem:[#allocation19 + $0x1550] sm:$0xff]  ;;  %v4772_v25 = vld [vmem:[#allocation19 + $0x1598] sm:$0xff] }
 0x5e6   :  { %3900 = vmatprep.mubr.f32.mxu0 %v12114_v41  ;;  %3989 = vmatprep.mubr.f32.mxu1 %v12114_v41  ;;  %v4668_v41 = vld [vmem:[#allocation19 + $0x1258] sm:$0xff]  ;;  %v8775_v27 = vpack.c.bf16 %v4666_v17, %v4658_v11  ;;  %v4738_v11 = vld [vmem:[#allocation19 + $0x1488] sm:$0xff] }
 0x5e7   :  { %8766 = vmatpush1.bf16.msra.mxu0 %v8765_v22  ;;  %8894 = vmatpush1.bf16.msra.mxu1 %v8893_v46  ;;  %v8903_v12 = vpack.c.bf16 %v4668_v41, %v4660_v3  ;;  %v8785_v22 = vpack.c.bf16 %v4697_v37, %v4689_v1  ;;  %v8913_v46 = vpack.c.bf16 %v4699_v53, %v4691_v21  ;;  %v4746_v17 = vld [vmem:[#allocation19 + $0x14c8] sm:$0xff]  ;;  %v4740_v3 = vld [vmem:[#allocation19 + $0x1498] sm:$0xff]  ;;  %v4769_v1 = vld [vmem:[#allocation19 + $0x1580] sm:$0xff] }
 0x5e8   :  { %8768 = vmatprep.subr.bf16.mxu0 %v8767_v60  ;;  %8896 = vmatprep.subr.bf16.mxu1 %v8895_v59  ;;  %v8787_v60 = vpack.c.bf16 %v4714_v34, %v4706_v52  ;;  %v8915_v59 = vpack.c.bf16 %v4716_v56, %v4708_v39  ;;  %v4748_v41 = vld [vmem:[#allocation19 + $0x14d8] sm:$0xff]  ;;  %v4770_v42 = vld [vmem:[#allocation19 + $0x1588] sm:$0xff]  ;;  %v4777_v37 = vld [vmem:[#allocation19 + $0x15c0] sm:$0xff] }
 0x5e9   :  { %3901 = vmatmul.mubr.f32.gmra.mrb[36].mxu0 %v12112_v38  ;;  %3990 = vmatmul.mubr.f32.gmra.mrb[36].mxu1 %v12112_v38  ;;  %v4674_v38 = vld [vmem:[#allocation19 + $0x1288] sm:$0xff]  ;;  %v4780_v62 = vld [vmem:[#allocation19 + $0x15d8] sm:$0xff]  ;;  %v4771_v21 = vld [vmem:[#allocation19 + $0x1590] sm:$0xff] }
 0x5ea   :  { %3906 = vmatprep.mubr.f32.mxu0 %v10889_v10  ;;  %3995 = vmatprep.mubr.f32.mxu1 %v10889_v10  ;;  %v8779_v51 = vpack.c.bf16 %v4682_v36, %v4674_v38  ;;  %v4754_v38 = vld [vmem:[#allocation19 + $0x1508] sm:$0xff]  ;;  %v4779_v53 = vld [vmem:[#allocation19 + $0x15d0] sm:$0xff]  ;;  %v4788_v39 = vld [vmem:[#allocation19 + $0x1618] sm:$0xff] }
 0x5eb   :  { %8770 = vmatpush1.bf16.msra.mxu0 %v8769_v2  ;;  %8898 = vmatpush1.bf16.msra.mxu1 %v8897_v6  ;;  %v8789_v2 = vpack.c.bf16 %v4713_v49, %v4705_v61  ;;  %v8917_v6 = vpack.c.bf16 %v4715_v63, %v4707_v55  ;;  %v4762_v36 = vld [vmem:[#allocation19 + $0x1548] sm:$0xff]  ;;  %v4796_v56 = vld [vmem:[#allocation19 + $0x1658] sm:$0xff]  ;;  %v4785_v61 = vld [vmem:[#allocation19 + $0x1600] sm:$0xff] }
 0x5ec   :  { %8772 = vmatprep.subr.bf16.mxu0 %v8771_v48  ;;  %8900 = vmatprep.subr.bf16.mxu1 %v8899_v14  ;;  %v8791_v48 = vpack.c.bf16 %v4730_v20, %v4722_v5  ;;  %v8919_v14 = vpack.c.bf16 %v4732_v45, %v4724_v4  ;;  %v4778_v0 = vld [vmem:[#allocation19 + $0x15c8] sm:$0xff]  ;;  %v4787_v55 = vld [vmem:[#allocation19 + $0x1610] sm:$0xff] }
 0x5ed   :  { %3907 = vmatmul.mubr.f32.gmra.mrb[38].mxu0 %v10889_v10  ;;  %3996 = vmatmul.mubr.f32.gmra.mrb[38].mxu1 %v10889_v10  ;;  %v4786_v52 = vld [vmem:[#allocation19 + $0x1608] sm:$0xff]  ;;  %v4795_v63 = vld [vmem:[#allocation19 + $0x1650] sm:$0xff] }
 0x5ee   :  { %v4794_v34 = vld [vmem:[#allocation19 + $0x1648] sm:$0xff]  ;;  %v8937_v20 = vpack.c.bf16 %v4795_v63, %v4787_v55 }
 0x5ef   :  { %8774 = vmatpush1.bf16.msra.mxu0 %v8773_v29  ;;  %8902 = vmatpush1.bf16.msra.mxu1 %v8901_v19  ;;  %v8793_v29 = vpack.c.bf16 %v4729_v18, %v4721_v7  ;;  %v8921_v19 = vpack.c.bf16 %v4731_v31, %v4723_v13  ;;  %v8807_v49 = vpack.c.bf16 %v4794_v34, %v4786_v52  ;;  %v4802_v4 = vld [vmem:[#allocation19 + $0x1688] sm:$0xff]  ;;  %v4812_v7 = vld [vmem:[#allocation19 + $0x16d8] sm:$0xff]  ;;  %v4801_v18 = vld [vmem:[#allocation19 + $0x1680] sm:$0xff] }
 0x5f0   :  { %8776 = vmatprep.subr.bf16.mxu0 %v8775_v27  ;;  %8904 = vmatprep.subr.bf16.mxu1 %v8903_v12  ;;  %v8795_v27 = vpack.c.bf16 %v4746_v17, %v4738_v11  ;;  %v8923_v12 = vpack.c.bf16 %v4748_v41, %v4740_v3  ;;  %v4810_v45 = vld [vmem:[#allocation19 + $0x16c8] sm:$0xff]  ;;  %v4803_v13 = vld [vmem:[#allocation19 + $0x1690] sm:$0xff] }
 0x5f1   :  { %v4811_v31 = vld [vmem:[#allocation19 + $0x16d0] sm:$0xff]  ;;  %v4818_v3 = vld [vmem:[#allocation19 + $0x1708] sm:$0xff] }
 0x5f2   :  { %v8941_v17 = vpack.c.bf16 %v4811_v31, %v4803_v13  ;;  %v4826_v41 = vld [vmem:[#allocation19 + $0x1748] sm:$0xff] }
 0x5f3   :  { %8778 = vmatpush1.bf16.msra.mxu0 %v8777_v40  ;;  %8906 = vmatpush1.bf16.msra.mxu1 %v8905_v16  ;;  %v8797_v40 = vpack.c.bf16 %v4745_v54, %v4737_v30  ;;  %v8925_v16 = vpack.c.bf16 %v4747_v9, %v4739_v32  ;;  %v4828_v30 = vld [vmem:[#allocation19 + $0x1758] sm:$0xff]  ;;  %v4817_v54 = vld [vmem:[#allocation19 + $0x1700] sm:$0xff]  ;;  %v4819_v9 = vld [vmem:[#allocation19 + $0x1710] sm:$0xff] }
 0x5f4   :  { %8780 = vmatprep.subr.bf16.mxu0 %v8779_v51  ;;  %8908 = vmatprep.subr.bf16.mxu1 %v8907_v57  ;;  %v8799_v51 = vpack.c.bf16 %v4762_v36, %v4754_v38  ;;  %v8927_v57 = vpack.c.bf16 %v4764_v23, %v4756_v35  ;;  %v4827_v38 = vld [vmem:[#allocation19 + $0x1750] sm:$0xff]  ;;  %v4834_v35 = vld [vmem:[#allocation19 + $0x1788] sm:$0xff] }
 0x5f5   :  { %v8945_v36 = vpack.c.bf16 %v4827_v38, %v4819_v9  ;;  %v4842_v23 = vld [vmem:[#allocation19 + $0x17c8] sm:$0xff] }
 0x5f6   :  { %v4866_v31 = vld [vmem:[#allocation19 + $0x1888] sm:$0xff] }
 0x5f7   :  { %8782 = vmatpush1.bf16.msra.mxu0 %v8781_v50  ;;  %8910 = vmatpush1.bf16.msra.mxu1 %v8909_v8  ;;  %v8801_v50 = vpack.c.bf16 %v4761_v33, %v4753_v24  ;;  %v8929_v8 = vpack.c.bf16 %v4763_v58, %v4755_v47  ;;  %v4844_v24 = vld [vmem:[#allocation19 + $0x17d8] sm:$0xff]  ;;  %v4833_v33 = vld [vmem:[#allocation19 + $0x1780] sm:$0xff]  ;;  %v4835_v58 = vld [vmem:[#allocation19 + $0x1790] sm:$0xff] }
 0x5f8   :  { %8784 = vmatprep.subr.bf16.mxu0 %v8783_v28  ;;  %8912 = vmatprep.subr.bf16.mxu1 %v8911_v26  ;;  %v8803_v28 = vpack.c.bf16 %v4778_v0, %v4770_v42  ;;  %v8931_v26 = vpack.c.bf16 %v4780_v62, %v4772_v25  ;;  %v4843_v42 = vld [vmem:[#allocation19 + $0x17d0] sm:$0xff]  ;;  %v4850_v25 = vld [vmem:[#allocation19 + $0x1808] sm:$0xff] }
 0x5f9   :  { %v8949_v0 = vpack.c.bf16 %v4843_v42, %v4835_v58  ;;  %v4858_v62 = vld [vmem:[#allocation19 + $0x1848] sm:$0xff] }
 0x5fb   :  { %8786 = vmatpush1.bf16.msra.mxu0 %v8785_v22  ;;  %8914 = vmatpush1.bf16.msra.mxu1 %v8913_v46  ;;  %v8805_v22 = vpack.c.bf16 %v4777_v37, %v4769_v1  ;;  %v8933_v46 = vpack.c.bf16 %v4779_v53, %v4771_v21  ;;  %v4860_v1 = vld [vmem:[#allocation19 + $0x1858] sm:$0xff]  ;;  %v4034_v21 = vsub.s32 3, %v12058_v43 }
 0x5fc   :  { %8788 = vmatprep.subr.bf16.mxu0 %v8787_v60  ;;  %8916 = vmatprep.subr.bf16.mxu1 %v8915_v59  ;;  %v8935_v60 = vpack.c.bf16 %v4796_v56, %v4788_v39  ;;  %v4793_v59 = vld [vmem:[#allocation19 + $0x1640] sm:$0xff] }
 0x5fd   :  { %v8809_v5 = vpack.c.bf16 %v4793_v59, %v4785_v61 }
 0x5ff   :  { %8790 = vmatpush1.bf16.msra.mxu0 %v8789_v2  ;;  %8918 = vmatpush1.bf16.msra.mxu1 %v8917_v6  ;;  %v4804_v2 = vld [vmem:[#allocation19 + $0x1698] sm:$0xff]  ;;  %v8811_v6 = vpack.c.bf16 %v4810_v45, %v4802_v4 }
 0x600   :  { %8792 = vmatprep.subr.bf16.mxu0 %v8791_v48  ;;  %8920 = vmatprep.subr.bf16.mxu1 %v8919_v14  ;;  %v8939_v48 = vpack.c.bf16 %v4812_v7, %v4804_v2  ;;  %v4809_v14 = vld [vmem:[#allocation19 + $0x16c0] sm:$0xff] }
 0x601   :  { %v8813_v11 = vpack.c.bf16 %v4809_v14, %v4801_v18  ;;  %v4857_v7 = vld [vmem:[#allocation19 + $0x1840] sm:$0xff]  ;;  %v4851_v18 = vld [vmem:[#allocation19 + $0x1810] sm:$0xff] }
 0x603   :  { %8794 = vmatpush1.bf16.msra.mxu0 %v8793_v29  ;;  %8922 = vmatpush1.bf16.msra.mxu1 %v8921_v19  ;;  %v4820_v29 = vld [vmem:[#allocation19 + $0x1718] sm:$0xff]  ;;  %v8815_v19 = vpack.c.bf16 %v4826_v41, %v4818_v3 }
 0x604   :  { %8796 = vmatprep.subr.bf16.mxu0 %v8795_v27  ;;  %8924 = vmatprep.subr.bf16.mxu1 %v8923_v12  ;;  %v4825_v27 = vld [vmem:[#allocation19 + $0x1740] sm:$0xff]  ;;  %v8943_v12 = vpack.c.bf16 %v4828_v30, %v4820_v29  ;;  %v4876_v3 = vld [vmem:[#allocation19 + $0x18d8] sm:$0xff] }
 0x605   :  { %v8817_v32 = vpack.c.bf16 %v4825_v27, %v4817_v54  ;;  %v12176_v54 = vld [vmem:[#allocation19 + $0x1880] sm:$0xff] }
 0x606   :  { %v12178_v27 = vld [vmem:[#allocation19 + $0x18c0] sm:$0xff] }
 0x607   :  { %8798 = vmatpush1.bf16.msra.mxu0 %v8797_v40  ;;  %8926 = vmatpush1.bf16.msra.mxu1 %v8925_v16  ;;  %v4836_v40 = vld [vmem:[#allocation19 + $0x1798] sm:$0xff]  ;;  %v8819_v16 = vpack.c.bf16 %v4842_v23, %v4834_v35 }
 0x608   :  { %8800 = vmatprep.subr.bf16.mxu0 %v8799_v51  ;;  %8928 = vmatprep.subr.bf16.mxu1 %v8927_v57  ;;  %v4841_v51 = vld [vmem:[#allocation19 + $0x17c0] sm:$0xff]  ;;  %v8947_v57 = vpack.c.bf16 %v4844_v24, %v4836_v40 }
 0x609   :  { %v8821_v47 = vpack.c.bf16 %v4841_v51, %v4833_v33  ;;  %v4867_v51 = vld [vmem:[#allocation19 + $0x1890] sm:$0xff] }
 0x60b   :  { %8802 = vmatpush1.bf16.msra.mxu0 %v8801_v50  ;;  %8930 = vmatpush1.bf16.msra.mxu1 %v8929_v8  ;;  %v4852_v50 = vld [vmem:[#allocation19 + $0x1818] sm:$0xff]  ;;  %v8823_v8 = vpack.c.bf16 %v4858_v62, %v4850_v25  ;;  %v4882_v25 = vld [vmem:[#allocation19 + $0x1908] sm:$0xff] }
 0x60c   :  { %8804 = vmatprep.subr.bf16.mxu0 %v8803_v28  ;;  %8932 = vmatprep.subr.bf16.mxu1 %v8931_v26  ;;  %v8951_v37 = vpack.c.bf16 %v4860_v1, %v4852_v50  ;;  %v4030_v28 = vsub.s32 2, %v12058_v43  ;;  %v4018_v26 = vld [vmem:[#allocation17] sm:$0xf]  ;;  %v4890_v62 = vld [vmem:[#allocation19 + $0x1948] sm:$0xff] }
 0x60d   :  { %v12159_v52 = vrot.slane %v4018_v26, %v12061_v15  ;;  %v12162_v56 = vrot.slane %v4018_v26, %v12064_v44 }
 0x60e   :  { %v12156_v53 = vrot.slane %v4018_v26, %v4030_v28 }
 0x60f   :  { %8806 = vmatpush1.bf16.msra.mxu0 %v8805_v22  ;;  %8934 = vmatpush1.bf16.msra.mxu1 %v8933_v46  ;;  %v12166_v22 = vrot.slane %v4018_v26, %v4034_v21  ;;  %v4884_v26 = vld [vmem:[#allocation19 + $0x1918] sm:$0xff] }
 0x610   :  { %8808 = vmatprep.subr.bf16.mxu0 %v8807_v49  ;;  %8936 = vmatprep.subr.bf16.mxu1 %v8935_v60 }
 0x613   :  { %8810 = vmatpush1.bf16.msra.mxu0 %v8809_v5  ;;  %8938 = vmatpush1.bf16.msra.mxu1 %v8937_v20 }
 0x614   :  { %8812 = vmatprep.subr.bf16.mxu0 %v8811_v6  ;;  %8940 = vmatprep.subr.bf16.mxu1 %v8939_v48  ;;  %v4849_v6 = vld [vmem:[#allocation19 + $0x1800] sm:$0xff]  ;;  %v4859_v48 = vld [vmem:[#allocation19 + $0x1850] sm:$0xff] }
 0x615   :  { %v8825_v42 = vpack.c.bf16 %v4857_v7, %v4849_v6  ;;  %v4881_v6 = vld [vmem:[#allocation19 + $0x1900] sm:$0xff] }
 0x616   :  { %v4889_v7 = vld [vmem:[#allocation19 + $0x1940] sm:$0xff] }
 0x617   :  { %8814 = vmatpush1.bf16.msra.mxu0 %v8813_v11  ;;  %8942 = vmatpush1.bf16.msra.mxu1 %v8941_v17  ;;  %v4874_v11 = vld [vmem:[#allocation19 + $0x18c8] sm:$0xff]  ;;  %v4868_v17 = vld [vmem:[#allocation19 + $0x1898] sm:$0xff] }
 0x618   :  { %8816 = vmatprep.subr.bf16.mxu0 %v8815_v19  ;;  %8944 = vmatprep.subr.bf16.mxu1 %v8943_v12  ;;  %v8955_v1 = vpack.c.bf16 %v4876_v3, %v4868_v17 }
 0x61b   :  { %8818 = vmatpush1.bf16.msra.mxu0 %v8817_v32  ;;  %8946 = vmatpush1.bf16.msra.mxu1 %v8945_v36 }
 0x61c   :  { %8820 = vmatprep.subr.bf16.mxu0 %v8819_v16  ;;  %8948 = vmatprep.subr.bf16.mxu1 %v8947_v57  ;;  %v4875_v57 = vld [vmem:[#allocation19 + $0x18d0] sm:$0xff] }
 0x61f   :  { %8822 = vmatpush1.bf16.msra.mxu0 %v8821_v47  ;;  %8950 = vmatpush1.bf16.msra.mxu1 %v8949_v0  ;;  %v8953_v0 = vpack.c.bf16 %v4859_v48, %v4851_v18 }
 0x620   :  { %8824 = vmatprep.subr.bf16.mxu0 %v8823_v8  ;;  %8952 = vmatprep.subr.bf16.mxu1 %v8951_v37  ;;  %v8827_v8 = vpack.c.bf16 %v4874_v11, %v4866_v31  ;;  %v8829_v37 = vpack.c.bf16 %v12178_v27, %v12176_v54  ;;  %v4908_v54 = vld [vmem:[#allocation19 + $0x19d8] sm:$0xff] }
 0x6b4   :  { %v3890_v34 = vpop.f32.mrb[32].mxu0  ;;  %v3979_v39 = vpop.f32.mrb[32].mxu1 }
 0x6b5   :  { %v4042_v46 = vadd.f32 %v12156_v53, %v3979_v39  ;;  %v3892_v61 = vpop.f32.mrb[33].mxu0  ;;  %v3981_v49 = vpop.f32.mrb[33].mxu1  ;;  %v4040_v60 = vadd.f32 %v12159_v52, %v3890_v34  ;;  %v4892_v34 = vld [vmem:[#allocation19 + $0x1958] sm:$0xff] }
 0x6b6   :  { %v4041_v59 = vadd.f32 %v12162_v56, %v3892_v61  ;;  %v4043_v55 = vadd.f32 %v12166_v22, %v3981_v49 }
 0x6b7   :  { %v4056_v41 = vmax.f32 %v4040_v60, 0.0  ;;  %v4058_v29 = vmax.f32 %v4042_v46, 0.0  ;;  %v8957_v60 = vpack.c.bf16 %v4875_v57, %v4867_v51  ;;  %v4922_v51 = vld [vmem:[#allocation19 + $0x1a48] sm:$0xff]  ;;  %v4916_v57 = vld [vmem:[#allocation19 + $0x1a18] sm:$0xff] }
 0x6b8   :  { %v3896_v63 = vpop.f32.mrb[34].mxu0  ;;  %v3985_v5 = vpop.f32.mrb[34].mxu1  ;;  %v4057_v12 = vmax.f32 %v4041_v59, 0.0  ;;  %v4059_v32 = vmax.f32 %v4043_v55, 0.0 }
 0x6b9   :  { %v4044_v20 = vadd.f32 %v12159_v52, %v3896_v63  ;;  %v4046_v4 = vadd.f32 %v12156_v53, %v3985_v5  ;;  %v3898_v45 = vpop.f32.mrb[35].mxu0  ;;  %v3987_v2 = vpop.f32.mrb[35].mxu1 }
 0x6ba   :  { %v4045_v14 = vadd.f32 %v12162_v56, %v3898_v45  ;;  %v4047_v13 = vadd.f32 %v12166_v22, %v3987_v2  ;;  %v8959_v2 = vpack.c.bf16 %v4892_v34, %v4884_v26  ;;  %v4923_v26 = vld [vmem:[#allocation19 + $0x1a50] sm:$0xff]  ;;  %v4930_v34 = vld [vmem:[#allocation19 + $0x1a88] sm:$0xff] }
 0x6bb   :  { %v4060_v19 = vmax.f32 %v4044_v20, 0.0  ;;  %v4062_v30 = vmax.f32 %v4046_v4, 0.0  ;;  %v8831_v20 = vpack.c.bf16 %v4890_v62, %v4882_v25  ;;  %v4913_v62 = vld [vmem:[#allocation19 + $0x1a00] sm:$0xff] }
 0x6bc   :  { %v4061_v9 = vmax.f32 %v4045_v14, 0.0  ;;  %v4063_v38 = vmax.f32 %v4047_v13, 0.0  ;;  %v3902_v36 = vpop.f32.mrb[36].mxu0  ;;  %v3991_v35 = vpop.f32.mrb[36].mxu1  ;;  %v4883_v14 = vld [vmem:[#allocation19 + $0x1910] sm:$0xff] }
 0x6bd   :  { %v12180_v23 = vmax.f32 %v4056_v41, %v4060_v19  ;;  %v12182_v40 = vmax.f32 %v4058_v29, %v4062_v30  ;;  %v4050_v16 = vadd.f32 %v12156_v53, %v3991_v35  ;;  %v3904_v24 = vpop.f32.mrb[37].mxu0  ;;  %v3993_v33 = vpop.f32.mrb[37].mxu1  ;;  %v4048_v50 = vadd.f32 %v12159_v52, %v3902_v36  ;;  %v4891_v13 = vld [vmem:[#allocation19 + $0x1950] sm:$0xff]  ;;  %v4906_v19 = vld [vmem:[#allocation19 + $0x19c8] sm:$0xff]  ;;  %v4900_v30 = vld [vmem:[#allocation19 + $0x1998] sm:$0xff] }
 0x6be   :  { %v12185_v47 = vmax.f32 %v4057_v12, %v4061_v9  ;;  %v12187_v58 = vmax.f32 %v4059_v32, %v4063_v38  ;;  %v4049_v39 = vadd.f32 %v12162_v56, %v3904_v24  ;;  %v4051_v46 = vadd.f32 %v12166_v22, %v3993_v33  ;;  %v4897_v9 = vld [vmem:[#allocation19 + $0x1980] sm:$0xff]  ;;  %v4899_v36 = vld [vmem:[#allocation19 + $0x1990] sm:$0xff] }
 0x6bf   :  { %v4064_v18 = vmax.f32 %v4048_v50, 0.0  ;;  %v8833_v29 = vpack.c.bf16 %v4889_v7, %v4881_v6  ;;  %v8961_v32 = vpack.c.bf16 %v4891_v13, %v4883_v14  ;;  %v4905_v38 = vld [vmem:[#allocation19 + $0x19c0] sm:$0xff]  ;;  %v4907_v35 = vld [vmem:[#allocation19 + $0x19d0] sm:$0xff]  ;;  %v8963_v33 = vpack.c.bf16 %v4908_v54, %v4900_v30  ;;  %v4948_v6 = vld [vmem:[#allocation19 + $0x1b18] sm:$0xff] }
 0x6c0   :  { %v3908_v61 = vpop.f32.mrb[38].mxu0  ;;  %v3997_v49 = vpop.f32.mrb[38].mxu1  ;;  %5169 = vmatprep.mubr.f32.mxu0 %v12185_v47  ;;  %5323 = vmatprep.mubr.f32.mxu1 %v12185_v47  ;;  %v4065_v31 = vmax.f32 %v4049_v39, 0.0  ;;  %v4067_v11 = vmax.f32 %v4051_v46, 0.0  ;;  %v8965_v25 = vpack.c.bf16 %v4907_v35, %v4899_v36  ;;  %v4921_v50 = vld [vmem:[#allocation19 + $0x1a40] sm:$0xff]  ;;  %v4938_v39 = vld [vmem:[#allocation19 + $0x1ac8] sm:$0xff] }
 0x6c1   :  { %v4052_v59 = vadd.f32 %v12159_v52, %v3908_v61  ;;  %v4054_v55 = vadd.f32 %v12156_v53, %v3997_v49  ;;  %v3910_v63 = vpop.f32.mrb[39].mxu0  ;;  %v3999_v5 = vpop.f32.mrb[39].mxu1  ;;  %5170 = vmatmul.mubr.f32.vlgmr.msra.gmra.mrb[40].mxu0 %v12180_v23  ;;  %5324 = vmatmul.mubr.f32.vlgmr.msra.gmra.mrb[40].mxu1 %v12180_v23  ;;  %v4066_v52 = vmax.f32 %v4050_v16, 0.0  ;;  %v4914_v16 = vld [vmem:[#allocation19 + $0x1a08] sm:$0xff]  ;;  %v4932_v46 = vld [vmem:[#allocation19 + $0x1a98] sm:$0xff]  ;;  %v8841_v49 = vpack.c.bf16 %v4921_v50, %v4913_v62  ;;  %v4961_v54 = vld [vmem:[#allocation19 + $0x1b80] sm:$0xff] }
 0x6c2   :  { %v4053_v4 = vadd.f32 %v12162_v56, %v3910_v63  ;;  %v4055_v45 = vadd.f32 %v12166_v22, %v3999_v5  ;;  %8826 = vmatpush1.bf16.msra.mxu0 %v8825_v42  ;;  %8954 = vmatpush1.bf16.msra.mxu1 %v8953_v0  ;;  %v4898_v56 = vld [vmem:[#allocation19 + $0x1988] sm:$0xff]  ;;  %v4924_v42 = vld [vmem:[#allocation19 + $0x1a58] sm:$0xff]  ;;  %v8837_v0 = vpack.c.bf16 %v4905_v38, %v4897_v9  ;;  %v4963_v36 = vld [vmem:[#allocation19 + $0x1b90] sm:$0xff] }
 0x6c3   :  { %v4068_v48 = vmax.f32 %v4052_v59, 0.0  ;;  %v4070_v53 = vmax.f32 %v4054_v55, 0.0  ;;  %8828 = vmatprep.subr.bf16.mxu0 %v8827_v8  ;;  %8956 = vmatprep.subr.bf16.mxu1 %v8955_v1  ;;  %v8835_v24 = vpack.c.bf16 %v4906_v19, %v4898_v56  ;;  %v8839_v8 = vpack.c.bf16 %v4922_v51, %v4914_v16  ;;  %v4940_v61 = vld [vmem:[#allocation19 + $0x1ad8] sm:$0xff]  ;;  %v4929_v59 = vld [vmem:[#allocation19 + $0x1a80] sm:$0xff]  ;;  %v4971_v35 = vld [vmem:[#allocation19 + $0x1bd0] sm:$0xff] }
 0x6c4   :  { %v4069_v17 = vmax.f32 %v4053_v4, 0.0  ;;  %v4071_v3 = vmax.f32 %v4055_v45, 0.0  ;;  %v8967_v1 = vpack.c.bf16 %v4924_v42, %v4916_v57  ;;  %v4937_v55 = vld [vmem:[#allocation19 + $0x1ac0] sm:$0xff]  ;;  %v8843_v63 = vpack.c.bf16 %v4938_v39, %v4930_v34  ;;  %v4939_v4 = vld [vmem:[#allocation19 + $0x1ad0] sm:$0xff]  ;;  %v4946_v45 = vld [vmem:[#allocation19 + $0x1b08] sm:$0xff] }
 0x6c5   :  { %v12202_v41 = vmax.f32 %v4064_v18, %v4068_v48  ;;  %v12204_v22 = vmax.f32 %v4066_v52, %v4070_v53  ;;  %v8971_v5 = vpack.c.bf16 %v4940_v61, %v4932_v46  ;;  %v4956_v7 = vld [vmem:[#allocation19 + $0x1b58] sm:$0xff]  ;;  %v8845_v18 = vpack.c.bf16 %v4937_v55, %v4929_v59  ;;  %v4945_v48 = vld [vmem:[#allocation19 + $0x1b00] sm:$0xff]  ;;  %v4978_v16 = vld [vmem:[#allocation19 + $0x1c08] sm:$0xff] }
 0x6c6   :  { %v12206_v27 = vmax.f32 %v4065_v31, %v4069_v17  ;;  %v12208_v12 = vmax.f32 %v4067_v11, %v4071_v3  ;;  %8830 = vmatpush1.bf16.msra.mxu0 %v8829_v37  ;;  %8958 = vmatpush1.bf16.msra.mxu1 %v8957_v60  ;;  %v4915_v37 = vld [vmem:[#allocation19 + $0x1a10] sm:$0xff]  ;;  %v4953_v53 = vld [vmem:[#allocation19 + $0x1b40] sm:$0xff]  ;;  %v8975_v13 = vpack.c.bf16 %v4956_v7, %v4948_v6  ;;  %v4962_v17 = vld [vmem:[#allocation19 + $0x1b88] sm:$0xff] }
 0x6c7   :  { %8832 = vmatprep.subr.bf16.mxu0 %v8831_v20  ;;  %8960 = vmatprep.subr.bf16.mxu1 %v8959_v2  ;;  %v8969_v60 = vpack.c.bf16 %v4923_v26, %v4915_v37  ;;  %v4931_v20 = vld [vmem:[#allocation19 + $0x1a90] sm:$0xff]  ;;  %v4954_v2 = vld [vmem:[#allocation19 + $0x1b48] sm:$0xff]  ;;  %v4964_v56 = vld [vmem:[#allocation19 + $0x1b98] sm:$0xff]  ;;  %v8849_v19 = vpack.c.bf16 %v4953_v53, %v4945_v48  ;;  %v8981_v42 = vpack.c.bf16 %v4971_v35, %v4963_v36 }
 0x6c8   :  { %5175 = vmatprep.mubr.f32.mxu0 %v12206_v27  ;;  %5329 = vmatprep.mubr.f32.mxu1 %v12206_v27  ;;  %v8973_v52 = vpack.c.bf16 %v4939_v4, %v4931_v20  ;;  %v8847_v14 = vpack.c.bf16 %v4954_v2, %v4946_v45  ;;  %v4947_v31 = vld [vmem:[#allocation19 + $0x1b10] sm:$0xff]  ;;  %v4970_v3 = vld [vmem:[#allocation19 + $0x1bc8] sm:$0xff]  ;;  %v4988_v51 = vld [vmem:[#allocation19 + $0x1c58] sm:$0xff] }
 0x6c9   :  { %5176 = vmatmul.mubr.f32.gmra.mrb[42].mxu0 %v12202_v41  ;;  %5330 = vmatmul.mubr.f32.gmra.mrb[42].mxu1 %v12202_v41  ;;  %v4955_v11 = vld [vmem:[#allocation19 + $0x1b50] sm:$0xff]  ;;  %v8851_v9 = vpack.c.bf16 %v4970_v3, %v4962_v17  ;;  %v4994_v37 = vld [vmem:[#allocation19 + $0x1c88] sm:$0xff]  ;;  %v4996_v34 = vld [vmem:[#allocation19 + $0x1c98] sm:$0xff] }
 0x6ca   :  { %8834 = vmatpush1.bf16.msra.mxu0 %v8833_v29  ;;  %8962 = vmatpush1.bf16.msra.mxu1 %v8961_v32  ;;  %v4972_v29 = vld [vmem:[#allocation19 + $0x1bd8] sm:$0xff]  ;;  %v8977_v30 = vpack.c.bf16 %v4955_v11, %v4947_v31  ;;  %v4969_v32 = vld [vmem:[#allocation19 + $0x1bc0] sm:$0xff]  ;;  %v5002_v26 = vld [vmem:[#allocation19 + $0x1cc8] sm:$0xff] }
 0x6cb   :  { %5246 = vmatprep.mubr.f32.mxu0 %v12187_v58  ;;  %5400 = vmatprep.mubr.f32.mxu1 %v12187_v58  ;;  %v8979_v38 = vpack.c.bf16 %v4972_v29, %v4964_v56  ;;  %v8853_v57 = vpack.c.bf16 %v4969_v32, %v4961_v54  ;;  %v5004_v39 = vld [vmem:[#allocation19 + $0x1cd8] sm:$0xff]  ;;  %v8859_v59 = vpack.c.bf16 %v5002_v26, %v4994_v37  ;;  %v5010_v20 = vld [vmem:[#allocation19 + $0x1d08] sm:$0xff] }
 0x6cc   :  { %8836 = vmatprep.subr.bf16.mxu0 %v8835_v24  ;;  %8964 = vmatprep.subr.bf16.mxu1 %v8963_v33  ;;  %v4986_v24 = vld [vmem:[#allocation19 + $0x1c48] sm:$0xff]  ;;  %v4980_v33 = vld [vmem:[#allocation19 + $0x1c18] sm:$0xff]  ;;  %v8987_v55 = vpack.c.bf16 %v5004_v39, %v4996_v34 }
 0x6cd   :  { %v8855_v62 = vpack.c.bf16 %v4986_v24, %v4978_v16  ;;  %v8983_v50 = vpack.c.bf16 %v4988_v51, %v4980_v33  ;;  %v5018_v4 = vld [vmem:[#allocation19 + $0x1d48] sm:$0xff]  ;;  %v5012_v45 = vld [vmem:[#allocation19 + $0x1d18] sm:$0xff] }
 0x6ce   :  { %8838 = vmatpush1.bf16.msra.mxu0 %v8837_v0  ;;  %8966 = vmatpush1.bf16.msra.mxu1 %v8965_v25  ;;  %v4977_v0 = vld [vmem:[#allocation19 + $0x1c00] sm:$0xff]  ;;  %v5020_v2 = vld [vmem:[#allocation19 + $0x1d58] sm:$0xff]  ;;  %v8863_v48 = vpack.c.bf16 %v5018_v4, %v5010_v20  ;;  %v5026_v31 = vld [vmem:[#allocation19 + $0x1d88] sm:$0xff] }
 0x6cf   :  { %8840 = vmatprep.subr.bf16.mxu0 %v8839_v8  ;;  %8968 = vmatprep.subr.bf16.mxu1 %v8967_v1  ;;  %v4985_v25 = vld [vmem:[#allocation19 + $0x1c40] sm:$0xff]  ;;  %v4979_v8 = vld [vmem:[#allocation19 + $0x1c10] sm:$0xff]  ;;  %v8991_v53 = vpack.c.bf16 %v5020_v2, %v5012_v45  ;;  %v5034_v11 = vld [vmem:[#allocation19 + $0x1dc8] sm:$0xff] }
 0x6d0   :  { %v4987_v1 = vld [vmem:[#allocation19 + $0x1c50] sm:$0xff]  ;;  %v8857_v46 = vpack.c.bf16 %v4985_v25, %v4977_v0  ;;  %v5028_v17 = vld [vmem:[#allocation19 + $0x1d98] sm:$0xff]  ;;  %v8867_v54 = vpack.c.bf16 %v5034_v11, %v5026_v31  ;;  %v5042_v36 = vld [vmem:[#allocation19 + $0x1e08] sm:$0xff] }
 0x6d1   :  { %v8985_v61 = vpack.c.bf16 %v4987_v1, %v4979_v8  ;;  %v5036_v3 = vld [vmem:[#allocation19 + $0x1dd8] sm:$0xff]  ;;  %v5050_v35 = vld [vmem:[#allocation19 + $0x1e48] sm:$0xff] }
 0x6d2   :  { %8842 = vmatpush1.bf16.msra.mxu0 %v8841_v49  ;;  %8970 = vmatpush1.bf16.msra.mxu1 %v8969_v60  ;;  %v4993_v49 = vld [vmem:[#allocation19 + $0x1c80] sm:$0xff]  ;;  %v8995_v32 = vpack.c.bf16 %v5036_v3, %v5028_v17  ;;  %v5044_v16 = vld [vmem:[#allocation19 + $0x1e18] sm:$0xff]  ;;  %v8871_v0 = vpack.c.bf16 %v5050_v35, %v5042_v36  ;;  %v5058_v8 = vld [vmem:[#allocation19 + $0x1e88] sm:$0xff] }
 0x6d3   :  { %8844 = vmatprep.subr.bf16.mxu0 %v8843_v63  ;;  %8972 = vmatprep.subr.bf16.mxu1 %v8971_v5  ;;  %v5001_v60 = vld [vmem:[#allocation19 + $0x1cc0] sm:$0xff]  ;;  %v4995_v63 = vld [vmem:[#allocation19 + $0x1c90] sm:$0xff]  ;;  %v5052_v24 = vld [vmem:[#allocation19 + $0x1e58] sm:$0xff] }
 0x6d4   :  { %v5003_v5 = vld [vmem:[#allocation19 + $0x1cd0] sm:$0xff]  ;;  %v8861_v6 = vpack.c.bf16 %v5001_v60, %v4993_v49  ;;  %v8999_v25 = vpack.c.bf16 %v5052_v24, %v5044_v16  ;;  %v5066_v1 = vld [vmem:[#allocation19 + $0x1ec8] sm:$0xff]  ;;  %v5060_v37 = vld [vmem:[#allocation19 + $0x1e98] sm:$0xff] }
 0x6d5   :  { %v8989_v7 = vpack.c.bf16 %v5003_v5, %v4995_v63  ;;  %v5068_v26 = vld [vmem:[#allocation19 + $0x1ed8] sm:$0xff]  ;;  %v8875_v49 = vpack.c.bf16 %v5066_v1, %v5058_v8  ;;  %v5074_v63 = vld [vmem:[#allocation19 + $0x1f08] sm:$0xff] }
 0x6d6   :  { %8846 = vmatpush1.bf16.msra.mxu0 %v8845_v18  ;;  %8974 = vmatpush1.bf16.msra.mxu1 %v8973_v52  ;;  %v5009_v18 = vld [vmem:[#allocation19 + $0x1d00] sm:$0xff]  ;;  %v9003_v60 = vpack.c.bf16 %v5068_v26, %v5060_v37  ;;  %v5082_v5 = vld [vmem:[#allocation19 + $0x1f48] sm:$0xff]  ;;  %v5076_v20 = vld [vmem:[#allocation19 + $0x1f18] sm:$0xff] }
 0x6d7   :  { %8848 = vmatprep.subr.bf16.mxu0 %v8847_v14  ;;  %8976 = vmatprep.subr.bf16.mxu1 %v8975_v13  ;;  %v5017_v52 = vld [vmem:[#allocation19 + $0x1d40] sm:$0xff]  ;;  %v5011_v14 = vld [vmem:[#allocation19 + $0x1d10] sm:$0xff]  ;;  %v5084_v4 = vld [vmem:[#allocation19 + $0x1f58] sm:$0xff] }
 0x6d8   :  { %v5019_v13 = vld [vmem:[#allocation19 + $0x1d50] sm:$0xff]  ;;  %v8865_v56 = vpack.c.bf16 %v5017_v52, %v5009_v18  ;;  %v8879_v18 = vpack.c.bf16 %v5082_v5, %v5074_v63  ;;  %v9007_v52 = vpack.c.bf16 %v5084_v4, %v5076_v20  ;;  %v5092_v31 = vld [vmem:[#allocation19 + $0x1f98] sm:$0xff] }
 0x6d9   :  { %v8993_v29 = vpack.c.bf16 %v5019_v13, %v5011_v14  ;;  %v5090_v14 = vld [vmem:[#allocation19 + $0x1f88] sm:$0xff]  ;;  %v5100_v11 = vld [vmem:[#allocation19 + $0x1fd8] sm:$0xff] }
 0x6da   :  { %8850 = vmatpush1.bf16.msra.mxu0 %v8849_v19  ;;  %8978 = vmatpush1.bf16.msra.mxu1 %v8977_v30  ;;  %v5025_v19 = vld [vmem:[#allocation19 + $0x1d80] sm:$0xff]  ;;  %v5098_v13 = vld [vmem:[#allocation19 + $0x1fc8] sm:$0xff]  ;;  %v4600_v36 = vld [vmem:[#allocation19 + $0x1038] sm:$0xff] }
 0x6db   :  { %8852 = vmatprep.subr.bf16.mxu0 %v8851_v9  ;;  %8980 = vmatprep.subr.bf16.mxu1 %v8979_v38  ;;  %v5033_v30 = vld [vmem:[#allocation19 + $0x1dc0] sm:$0xff]  ;;  %v5027_v9 = vld [vmem:[#allocation19 + $0x1d90] sm:$0xff]  ;;  %v4608_v35 = vld [vmem:[#allocation19 + $0x1078] sm:$0xff] }
 0x6dc   :  { %v5035_v38 = vld [vmem:[#allocation19 + $0x1dd0] sm:$0xff]  ;;  %v8869_v33 = vpack.c.bf16 %v5033_v30, %v5025_v19  ;;  %v8883_v19 = vpack.c.bf16 %v5098_v13, %v5090_v14  ;;  %v9011_v30 = vpack.c.bf16 %v5100_v11, %v5092_v31  ;;  %v4616_v8 = vld [vmem:[#allocation19 + $0x10b8] sm:$0xff] }
 0x6dd   :  { %v8997_v51 = vpack.c.bf16 %v5035_v38, %v5027_v9  ;;  %v4598_v9 = vld [vmem:[#allocation19 + $0x1028] sm:$0xff]  ;;  %v4624_v1 = vld [vmem:[#allocation19 + $0x10f8] sm:$0xff] }
 0x6de   :  { %8854 = vmatpush1.bf16.msra.mxu0 %v8853_v57  ;;  %8982 = vmatpush1.bf16.msra.mxu1 %v8981_v42  ;;  %v5041_v57 = vld [vmem:[#allocation19 + $0x1e00] sm:$0xff]  ;;  %v4606_v38 = vld [vmem:[#allocation19 + $0x1068] sm:$0xff]  ;;  %v4632_v63 = vld [vmem:[#allocation19 + $0x1138] sm:$0xff] }
 0x6df   :  { %8856 = vmatprep.subr.bf16.mxu0 %v8855_v62  ;;  %8984 = vmatprep.subr.bf16.mxu1 %v8983_v50  ;;  %v5049_v42 = vld [vmem:[#allocation19 + $0x1e40] sm:$0xff]  ;;  %v5043_v62 = vld [vmem:[#allocation19 + $0x1e10] sm:$0xff]  ;;  %v4640_v5 = vld [vmem:[#allocation19 + $0x1178] sm:$0xff] }
 0x6e0   :  { %v5051_v50 = vld [vmem:[#allocation19 + $0x1e50] sm:$0xff]  ;;  %v8873_v34 = vpack.c.bf16 %v5049_v42, %v5041_v57  ;;  %v4597_v57 = vld [vmem:[#allocation19 + $0x1020] sm:$0xff]  ;;  %v4648_v14 = vld [vmem:[#allocation19 + $0x11b8] sm:$0xff] }
 0x6e1   :  { %v9001_v39 = vpack.c.bf16 %v5051_v50, %v5043_v62  ;;  %v4605_v42 = vld [vmem:[#allocation19 + $0x1060] sm:$0xff]  ;;  %v4614_v62 = vld [vmem:[#allocation19 + $0x10a8] sm:$0xff]  ;;  %v4656_v13 = vld [vmem:[#allocation19 + $0x11f8] sm:$0xff] }
 0x6e2   :  { %8858 = vmatpush1.bf16.msra.mxu0 %v8857_v46  ;;  %8986 = vmatpush1.bf16.msra.mxu1 %v8985_v61  ;;  %v5057_v46 = vld [vmem:[#allocation19 + $0x1e80] sm:$0xff]  ;;  %v4622_v50 = vld [vmem:[#allocation19 + $0x10e8] sm:$0xff]  ;;  %v9017_v37 = vpack.c.bf16 %v4605_v42, %v4597_v57  ;;  %v4663_v57 = vld [vmem:[#allocation19 + $0x1230] sm:$0xff] }
 0x6e3   :  { %8860 = vmatprep.subr.bf16.mxu0 %v8859_v59  ;;  %8988 = vmatprep.subr.bf16.mxu1 %v8987_v55  ;;  %v5065_v61 = vld [vmem:[#allocation19 + $0x1ec0] sm:$0xff]  ;;  %v5059_v59 = vld [vmem:[#allocation19 + $0x1e90] sm:$0xff] }
 0x6e4   :  { %v5067_v55 = vld [vmem:[#allocation19 + $0x1ed0] sm:$0xff]  ;;  %v8877_v45 = vpack.c.bf16 %v5065_v61, %v5057_v46  ;;  %v9019_v46 = vpack.c.bf16 %v4622_v50, %v4614_v62  ;;  %v9147_v61 = vpack.c.bf16 %v4624_v1, %v4616_v8  ;;  %v4680_v62 = vld [vmem:[#allocation19 + $0x12b8] sm:$0xff] }
 0x6e5   :  { %v9005_v2 = vpack.c.bf16 %v5067_v55, %v5059_v59  ;;  %v4630_v59 = vld [vmem:[#allocation19 + $0x1128] sm:$0xff]  ;;  %v4671_v42 = vld [vmem:[#allocation19 + $0x1270] sm:$0xff]  ;;  %v4688_v50 = vld [vmem:[#allocation19 + $0x12f8] sm:$0xff] }
 0x6e6   :  { %8862 = vmatpush1.bf16.msra.mxu0 %v8861_v6  ;;  %8990 = vmatpush1.bf16.msra.mxu1 %v8989_v7  ;;  %v5073_v6 = vld [vmem:[#allocation19 + $0x1f00] sm:$0xff]  ;;  %v4638_v55 = vld [vmem:[#allocation19 + $0x1168] sm:$0xff]  ;;  %v9161_v1 = vpack.c.bf16 %v4671_v42, %v4663_v57 }
 0x6e7   :  { %8864 = vmatprep.subr.bf16.mxu0 %v8863_v48  ;;  %8992 = vmatprep.subr.bf16.mxu1 %v8991_v53  ;;  %v5081_v7 = vld [vmem:[#allocation19 + $0x1f40] sm:$0xff]  ;;  %v5075_v48 = vld [vmem:[#allocation19 + $0x1f10] sm:$0xff]  ;;  %v4742_v57 = vld [vmem:[#allocation19 + $0x14a8] sm:$0xff] }
 0x6e8   :  { %v5083_v53 = vld [vmem:[#allocation19 + $0x1f50] sm:$0xff]  ;;  %v8881_v17 = vpack.c.bf16 %v5081_v7, %v5073_v6  ;;  %v9023_v6 = vpack.c.bf16 %v4638_v55, %v4630_v59  ;;  %v9151_v7 = vpack.c.bf16 %v4640_v5, %v4632_v63  ;;  %v4696_v59 = vld [vmem:[#allocation19 + $0x1338] sm:$0xff]  ;;  %v4750_v42 = vld [vmem:[#allocation19 + $0x14e8] sm:$0xff] }
 0x6e9   :  { %v9009_v3 = vpack.c.bf16 %v5083_v53, %v5075_v48  ;;  %v4646_v48 = vld [vmem:[#allocation19 + $0x11a8] sm:$0xff]  ;;  %v4704_v55 = vld [vmem:[#allocation19 + $0x1378] sm:$0xff] }
 0x6ea   :  { %8866 = vmatpush1.bf16.msra.mxu0 %v8865_v56  ;;  %8994 = vmatpush1.bf16.msra.mxu1 %v8993_v29  ;;  %v5089_v56 = vld [vmem:[#allocation19 + $0x1f80] sm:$0xff]  ;;  %v4654_v53 = vld [vmem:[#allocation19 + $0x11e8] sm:$0xff] }
 0x6eb   :  { %8868 = vmatprep.subr.bf16.mxu0 %v8867_v54  ;;  %8996 = vmatprep.subr.bf16.mxu1 %v8995_v32  ;;  %v5097_v29 = vld [vmem:[#allocation19 + $0x1fc0] sm:$0xff]  ;;  %v5091_v54 = vld [vmem:[#allocation19 + $0x1f90] sm:$0xff] }
 0x6ec   :  { %v5099_v32 = vld [vmem:[#allocation19 + $0x1fd0] sm:$0xff]  ;;  %v8885_v16 = vpack.c.bf16 %v5097_v29, %v5089_v56  ;;  %v9027_v56 = vpack.c.bf16 %v4654_v53, %v4646_v48  ;;  %v9155_v29 = vpack.c.bf16 %v4656_v13, %v4648_v14  ;;  %v4712_v48 = vld [vmem:[#allocation19 + $0x13b8] sm:$0xff] }
 0x6ed   :  { %v9013_v24 = vpack.c.bf16 %v5099_v32, %v5091_v54  ;;  %v4662_v54 = vld [vmem:[#allocation19 + $0x1228] sm:$0xff]  ;;  %v4720_v53 = vld [vmem:[#allocation19 + $0x13f8] sm:$0xff] }
 0x6ee   :  { %8870 = vmatpush1.bf16.msra.mxu0 %v8869_v33  ;;  %8998 = vmatpush1.bf16.msra.mxu1 %v8997_v51  ;;  %v9015_v33 = vpack.c.bf16 %v4606_v38, %v4598_v9  ;;  %v9143_v51 = vpack.c.bf16 %v4608_v35, %v4600_v36  ;;  %v4670_v32 = vld [vmem:[#allocation19 + $0x1268] sm:$0xff]  ;;  %v4664_v9 = vld [vmem:[#allocation19 + $0x1238] sm:$0xff] }
 0x6ef   :  { %8872 = vmatprep.subr.bf16.mxu0 %v8871_v0  ;;  %9000 = vmatprep.subr.bf16.mxu1 %v8999_v25  ;;  %v4599_v0 = vld [vmem:[#allocation19 + $0x1030] sm:$0xff]  ;;  %v4672_v38 = vld [vmem:[#allocation19 + $0x1278] sm:$0xff] }
 0x6f0   :  { %v4607_v25 = vld [vmem:[#allocation19 + $0x1070] sm:$0xff] }
 0x6f1   :  { %v9145_v26 = vpack.c.bf16 %v4607_v25, %v4599_v0  ;;  %v4678_v0 = vld [vmem:[#allocation19 + $0x12a8] sm:$0xff] }
 0x6f2   :  { %8874 = vmatpush1.bf16.msra.mxu0 %v8873_v34  ;;  %9002 = vmatpush1.bf16.msra.mxu1 %v9001_v39  ;;  %v4613_v34 = vld [vmem:[#allocation19 + $0x10a0] sm:$0xff]  ;;  %v4686_v25 = vld [vmem:[#allocation19 + $0x12e8] sm:$0xff] }
 0x6f3   :  { %8876 = vmatprep.subr.bf16.mxu0 %v8875_v49  ;;  %9004 = vmatprep.subr.bf16.mxu1 %v9003_v60  ;;  %v4621_v39 = vld [vmem:[#allocation19 + $0x10e0] sm:$0xff]  ;;  %v4615_v49 = vld [vmem:[#allocation19 + $0x10b0] sm:$0xff] }
 0x6f4   :  { %v4623_v60 = vld [vmem:[#allocation19 + $0x10f0] sm:$0xff]  ;;  %v9021_v20 = vpack.c.bf16 %v4621_v39, %v4613_v34  ;;  %v9035_v34 = vpack.c.bf16 %v4686_v25, %v4678_v0  ;;  %v9163_v39 = vpack.c.bf16 %v4688_v50, %v4680_v62  ;;  %v4744_v0 = vld [vmem:[#allocation19 + $0x14b8] sm:$0xff] }
 0x6f5   :  { %v9149_v4 = vpack.c.bf16 %v4623_v60, %v4615_v49  ;;  %v4694_v49 = vld [vmem:[#allocation19 + $0x1328] sm:$0xff]  ;;  %v4752_v25 = vld [vmem:[#allocation19 + $0x14f8] sm:$0xff] }
 0x6f6   :  { %8878 = vmatpush1.bf16.msra.mxu0 %v8877_v45  ;;  %9006 = vmatpush1.bf16.msra.mxu1 %v9005_v2  ;;  %v4629_v45 = vld [vmem:[#allocation19 + $0x1120] sm:$0xff]  ;;  %v4702_v60 = vld [vmem:[#allocation19 + $0x1368] sm:$0xff] }
 0x6f7   :  { %8880 = vmatprep.subr.bf16.mxu0 %v8879_v18  ;;  %9008 = vmatprep.subr.bf16.mxu1 %v9007_v52  ;;  %v4637_v2 = vld [vmem:[#allocation19 + $0x1160] sm:$0xff]  ;;  %v4631_v18 = vld [vmem:[#allocation19 + $0x1130] sm:$0xff] }
 0x6f8   :  { %v4639_v52 = vld [vmem:[#allocation19 + $0x1170] sm:$0xff]  ;;  %v9025_v31 = vpack.c.bf16 %v4637_v2, %v4629_v45  ;;  %v9039_v45 = vpack.c.bf16 %v4702_v60, %v4694_v49  ;;  %v9167_v2 = vpack.c.bf16 %v4704_v55, %v4696_v59  ;;  %v4760_v49 = vld [vmem:[#allocation19 + $0x1538] sm:$0xff] }
 0x6f9   :  { %v9153_v11 = vpack.c.bf16 %v4639_v52, %v4631_v18  ;;  %v4710_v18 = vld [vmem:[#allocation19 + $0x13a8] sm:$0xff]  ;;  %v4768_v60 = vld [vmem:[#allocation19 + $0x1578] sm:$0xff] }
 0x6fa   :  { %8882 = vmatpush1.bf16.msra.mxu0 %v8881_v17  ;;  %9010 = vmatpush1.bf16.msra.mxu1 %v9009_v3  ;;  %v4645_v17 = vld [vmem:[#allocation19 + $0x11a0] sm:$0xff]  ;;  %v4718_v52 = vld [vmem:[#allocation19 + $0x13e8] sm:$0xff] }
 0x6fb   :  { %8884 = vmatprep.subr.bf16.mxu0 %v8883_v19  ;;  %9012 = vmatprep.subr.bf16.mxu1 %v9011_v30  ;;  %v4653_v3 = vld [vmem:[#allocation19 + $0x11e0] sm:$0xff]  ;;  %v4647_v19 = vld [vmem:[#allocation19 + $0x11b0] sm:$0xff] }
 0x6fc   :  { %v4655_v30 = vld [vmem:[#allocation19 + $0x11f0] sm:$0xff]  ;;  %v9029_v36 = vpack.c.bf16 %v4653_v3, %v4645_v17  ;;  %v9043_v17 = vpack.c.bf16 %v4718_v52, %v4710_v18  ;;  %v9171_v3 = vpack.c.bf16 %v4720_v53, %v4712_v48  ;;  %v4776_v18 = vld [vmem:[#allocation19 + $0x15b8] sm:$0xff] }
 0x6fd   :  { %v9157_v35 = vpack.c.bf16 %v4655_v30, %v4647_v19  ;;  %v4726_v19 = vld [vmem:[#allocation19 + $0x1428] sm:$0xff]  ;;  %v4784_v52 = vld [vmem:[#allocation19 + $0x15f8] sm:$0xff] }
 0x6fe   :  { %8886 = vmatpush1.bf16.msra.mxu0 %v8885_v16  ;;  %9014 = vmatpush1.bf16.msra.mxu1 %v9013_v24  ;;  %v4661_v16 = vld [vmem:[#allocation19 + $0x1220] sm:$0xff]  ;;  %v4734_v30 = vld [vmem:[#allocation19 + $0x1468] sm:$0xff] }
 0x6ff   :  { %9016 = vmatprep.subr.bf16.mxu0 %v9015_v33  ;;  %9144 = vmatprep.subr.bf16.mxu1 %v9143_v51  ;;  %v4669_v24 = vld [vmem:[#allocation19 + $0x1260] sm:$0xff]  ;;  %v9031_v33 = vpack.c.bf16 %v4670_v32, %v4662_v54  ;;  %v9159_v51 = vpack.c.bf16 %v4672_v38, %v4664_v9  ;;  %v4728_v54 = vld [vmem:[#allocation19 + $0x1438] sm:$0xff] }
 0x700   :  { %v9033_v8 = vpack.c.bf16 %v4669_v24, %v4661_v16  ;;  %v4736_v32 = vld [vmem:[#allocation19 + $0x1478] sm:$0xff]  ;;  %v9047_v16 = vpack.c.bf16 %v4734_v30, %v4726_v19 }
 0x701   :  { %5247 = vmatmul.mubr.f32.vlgmr.msra.gmra.mrb[40].mxu0 %v12182_v40  ;;  %5401 = vmatmul.mubr.f32.vlgmr.msra.gmra.mrb[40].mxu1 %v12182_v40  ;;  %v9175_v24 = vpack.c.bf16 %v4736_v32, %v4728_v54  ;;  %v4792_v19 = vld [vmem:[#allocation19 + $0x1638] sm:$0xff] }
 0x702   :  { %5252 = vmatprep.mubr.f32.mxu0 %v12208_v12  ;;  %5406 = vmatprep.mubr.f32.mxu1 %v12208_v12  ;;  %v4800_v30 = vld [vmem:[#allocation19 + $0x1678] sm:$0xff] }
 0x703   :  { %9018 = vmatpush1.bf16.msra.mxu0 %v9017_v37  ;;  %9146 = vmatpush1.bf16.msra.mxu1 %v9145_v26  ;;  %v4677_v37 = vld [vmem:[#allocation19 + $0x12a0] sm:$0xff] }
 0x704   :  { %9020 = vmatprep.subr.bf16.mxu0 %v9019_v46  ;;  %9148 = vmatprep.subr.bf16.mxu1 %v9147_v61  ;;  %v4685_v26 = vld [vmem:[#allocation19 + $0x12e0] sm:$0xff]  ;;  %v4679_v46 = vld [vmem:[#allocation19 + $0x12b0] sm:$0xff] }
 0x705   :  { %5253 = vmatmul.mubr.f32.gmra.mrb[42].mxu0 %v12204_v22  ;;  %5407 = vmatmul.mubr.f32.gmra.mrb[42].mxu1 %v12204_v22  ;;  %v4687_v61 = vld [vmem:[#allocation19 + $0x12f0] sm:$0xff]  ;;  %v9037_v63 = vpack.c.bf16 %v4685_v26, %v4677_v37  ;;  %v9051_v37 = vpack.c.bf16 %v4750_v42, %v4742_v57  ;;  %v9179_v26 = vpack.c.bf16 %v4752_v25, %v4744_v0  ;;  %v4808_v57 = vld [vmem:[#allocation19 + $0x16b8] sm:$0xff] }
 0x706   :  { %5477 = vmatprep.mubr.f32.mxu0 %v12185_v47  ;;  %5631 = vmatprep.mubr.f32.mxu1 %v12185_v47  ;;  %v9165_v5 = vpack.c.bf16 %v4687_v61, %v4679_v46  ;;  %v4758_v46 = vld [vmem:[#allocation19 + $0x1528] sm:$0xff]  ;;  %v4816_v42 = vld [vmem:[#allocation19 + $0x16f8] sm:$0xff] }
 0x707   :  { %9022 = vmatpush1.bf16.msra.mxu0 %v9021_v20  ;;  %9150 = vmatpush1.bf16.msra.mxu1 %v9149_v4  ;;  %v4693_v20 = vld [vmem:[#allocation19 + $0x1320] sm:$0xff]  ;;  %v4766_v61 = vld [vmem:[#allocation19 + $0x1568] sm:$0xff] }
 0x708   :  { %9024 = vmatprep.subr.bf16.mxu0 %v9023_v6  ;;  %9152 = vmatprep.subr.bf16.mxu1 %v9151_v7  ;;  %v4701_v4 = vld [vmem:[#allocation19 + $0x1360] sm:$0xff]  ;;  %v4695_v6 = vld [vmem:[#allocation19 + $0x1330] sm:$0xff] }
 0x709   :  { %v4703_v7 = vld [vmem:[#allocation19 + $0x1370] sm:$0xff]  ;;  %v9041_v14 = vpack.c.bf16 %v4701_v4, %v4693_v20  ;;  %v9055_v20 = vpack.c.bf16 %v4766_v61, %v4758_v46  ;;  %v9183_v4 = vpack.c.bf16 %v4768_v60, %v4760_v49  ;;  %v4824_v46 = vld [vmem:[#allocation19 + $0x1738] sm:$0xff] }
 0x70a   :  { %v9169_v13 = vpack.c.bf16 %v4703_v7, %v4695_v6  ;;  %v4774_v6 = vld [vmem:[#allocation19 + $0x15a8] sm:$0xff]  ;;  %v4832_v61 = vld [vmem:[#allocation19 + $0x1778] sm:$0xff] }
 0x70b   :  { %9026 = vmatpush1.bf16.msra.mxu0 %v9025_v31  ;;  %9154 = vmatpush1.bf16.msra.mxu1 %v9153_v11  ;;  %v4709_v31 = vld [vmem:[#allocation19 + $0x13a0] sm:$0xff]  ;;  %v4782_v7 = vld [vmem:[#allocation19 + $0x15e8] sm:$0xff] }
 0x70c   :  { %9028 = vmatprep.subr.bf16.mxu0 %v9027_v56  ;;  %9156 = vmatprep.subr.bf16.mxu1 %v9155_v29  ;;  %v4717_v11 = vld [vmem:[#allocation19 + $0x13e0] sm:$0xff]  ;;  %v4711_v56 = vld [vmem:[#allocation19 + $0x13b0] sm:$0xff] }
 0x70d   :  { %v4719_v29 = vld [vmem:[#allocation19 + $0x13f0] sm:$0xff]  ;;  %v9045_v9 = vpack.c.bf16 %v4717_v11, %v4709_v31  ;;  %v9059_v31 = vpack.c.bf16 %v4782_v7, %v4774_v6  ;;  %v9187_v11 = vpack.c.bf16 %v4784_v52, %v4776_v18  ;;  %v4840_v6 = vld [vmem:[#allocation19 + $0x17b8] sm:$0xff] }
 0x70e   :  { %v9173_v38 = vpack.c.bf16 %v4719_v29, %v4711_v56  ;;  %v4790_v56 = vld [vmem:[#allocation19 + $0x1628] sm:$0xff]  ;;  %v4848_v7 = vld [vmem:[#allocation19 + $0x17f8] sm:$0xff] }
 0x70f   :  { %9030 = vmatpush1.bf16.msra.mxu0 %v9029_v36  ;;  %9158 = vmatpush1.bf16.msra.mxu1 %v9157_v35  ;;  %v4725_v36 = vld [vmem:[#allocation19 + $0x1420] sm:$0xff]  ;;  %v4798_v29 = vld [vmem:[#allocation19 + $0x1668] sm:$0xff] }
 0x710   :  { %9032 = vmatprep.subr.bf16.mxu0 %v9031_v33  ;;  %9160 = vmatprep.subr.bf16.mxu1 %v9159_v51  ;;  %v4733_v35 = vld [vmem:[#allocation19 + $0x1460] sm:$0xff]  ;;  %v4727_v33 = vld [vmem:[#allocation19 + $0x1430] sm:$0xff] }
 0x711   :  { %v4735_v51 = vld [vmem:[#allocation19 + $0x1470] sm:$0xff]  ;;  %v9049_v62 = vpack.c.bf16 %v4733_v35, %v4725_v36  ;;  %v9063_v36 = vpack.c.bf16 %v4798_v29, %v4790_v56  ;;  %v9191_v35 = vpack.c.bf16 %v4800_v30, %v4792_v19  ;;  %v4856_v56 = vld [vmem:[#allocation19 + $0x1838] sm:$0xff] }
 0x712   :  { %v9177_v50 = vpack.c.bf16 %v4735_v51, %v4727_v33  ;;  %v4806_v33 = vld [vmem:[#allocation19 + $0x16a8] sm:$0xff]  ;;  %v4864_v29 = vld [vmem:[#allocation19 + $0x1878] sm:$0xff] }
 0x713   :  { %9034 = vmatpush1.bf16.msra.mxu0 %v9033_v8  ;;  %9162 = vmatpush1.bf16.msra.mxu1 %v9161_v1  ;;  %v4741_v8 = vld [vmem:[#allocation19 + $0x14a0] sm:$0xff]  ;;  %v4814_v51 = vld [vmem:[#allocation19 + $0x16e8] sm:$0xff] }
 0x714   :  { %9036 = vmatprep.subr.bf16.mxu0 %v9035_v34  ;;  %9164 = vmatprep.subr.bf16.mxu1 %v9163_v39  ;;  %v4749_v1 = vld [vmem:[#allocation19 + $0x14e0] sm:$0xff]  ;;  %v4743_v34 = vld [vmem:[#allocation19 + $0x14b0] sm:$0xff] }
 0x715   :  { %v4751_v39 = vld [vmem:[#allocation19 + $0x14f0] sm:$0xff]  ;;  %v9053_v59 = vpack.c.bf16 %v4749_v1, %v4741_v8  ;;  %v9067_v8 = vpack.c.bf16 %v4814_v51, %v4806_v33  ;;  %v9195_v1 = vpack.c.bf16 %v4816_v42, %v4808_v57  ;;  %v4872_v33 = vld [vmem:[#allocation19 + $0x18b8] sm:$0xff] }
 0x716   :  { %v9181_v55 = vpack.c.bf16 %v4751_v39, %v4743_v34  ;;  %v4822_v34 = vld [vmem:[#allocation19 + $0x1728] sm:$0xff]  ;;  %v4880_v51 = vld [vmem:[#allocation19 + $0x18f8] sm:$0xff] }
 0x717   :  { %9038 = vmatpush1.bf16.msra.mxu0 %v9037_v63  ;;  %9166 = vmatpush1.bf16.msra.mxu1 %v9165_v5  ;;  %v4757_v63 = vld [vmem:[#allocation19 + $0x1520] sm:$0xff]  ;;  %v4830_v39 = vld [vmem:[#allocation19 + $0x1768] sm:$0xff] }
 0x718   :  { %9040 = vmatprep.subr.bf16.mxu0 %v9039_v45  ;;  %9168 = vmatprep.subr.bf16.mxu1 %v9167_v2  ;;  %v4765_v5 = vld [vmem:[#allocation19 + $0x1560] sm:$0xff]  ;;  %v4759_v45 = vld [vmem:[#allocation19 + $0x1530] sm:$0xff] }
 0x719   :  { %v4767_v2 = vld [vmem:[#allocation19 + $0x1570] sm:$0xff]  ;;  %v9057_v48 = vpack.c.bf16 %v4765_v5, %v4757_v63  ;;  %v9071_v63 = vpack.c.bf16 %v4830_v39, %v4822_v34  ;;  %v9199_v5 = vpack.c.bf16 %v4832_v61, %v4824_v46  ;;  %v4888_v34 = vld [vmem:[#allocation19 + $0x1938] sm:$0xff] }
 0x71a   :  { %v9185_v53 = vpack.c.bf16 %v4767_v2, %v4759_v45  ;;  %v4838_v45 = vld [vmem:[#allocation19 + $0x17a8] sm:$0xff]  ;;  %v4896_v39 = vld [vmem:[#allocation19 + $0x1978] sm:$0xff] }
 0x71b   :  { %9042 = vmatpush1.bf16.msra.mxu0 %v9041_v14  ;;  %9170 = vmatpush1.bf16.msra.mxu1 %v9169_v13  ;;  %v4773_v14 = vld [vmem:[#allocation19 + $0x15a0] sm:$0xff]  ;;  %v4846_v2 = vld [vmem:[#allocation19 + $0x17e8] sm:$0xff] }
 0x71c   :  { %9044 = vmatprep.subr.bf16.mxu0 %v9043_v17  ;;  %9172 = vmatprep.subr.bf16.mxu1 %v9171_v3  ;;  %v4781_v13 = vld [vmem:[#allocation19 + $0x15e0] sm:$0xff]  ;;  %v4775_v17 = vld [vmem:[#allocation19 + $0x15b0] sm:$0xff] }
 0x71d   :  { %v4783_v3 = vld [vmem:[#allocation19 + $0x15f0] sm:$0xff]  ;;  %v9061_v54 = vpack.c.bf16 %v4781_v13, %v4773_v14  ;;  %v9075_v14 = vpack.c.bf16 %v4846_v2, %v4838_v45  ;;  %v9203_v13 = vpack.c.bf16 %v4848_v7, %v4840_v6  ;;  %v4904_v45 = vld [vmem:[#allocation19 + $0x19b8] sm:$0xff] }
 0x71e   :  { %v9189_v32 = vpack.c.bf16 %v4783_v3, %v4775_v17  ;;  %v4854_v17 = vld [vmem:[#allocation19 + $0x1828] sm:$0xff]  ;;  %v4912_v2 = vld [vmem:[#allocation19 + $0x19f8] sm:$0xff] }
 0x71f   :  { %9046 = vmatpush1.bf16.msra.mxu0 %v9045_v9  ;;  %9174 = vmatpush1.bf16.msra.mxu1 %v9173_v38  ;;  %v4789_v9 = vld [vmem:[#allocation19 + $0x1620] sm:$0xff]  ;;  %v4862_v3 = vld [vmem:[#allocation19 + $0x1868] sm:$0xff] }
 0x720   :  { %9048 = vmatprep.subr.bf16.mxu0 %v9047_v16  ;;  %9176 = vmatprep.subr.bf16.mxu1 %v9175_v24  ;;  %v4797_v38 = vld [vmem:[#allocation19 + $0x1660] sm:$0xff]  ;;  %v4791_v16 = vld [vmem:[#allocation19 + $0x1630] sm:$0xff] }
 0x721   :  { %v4799_v24 = vld [vmem:[#allocation19 + $0x1670] sm:$0xff]  ;;  %v9065_v0 = vpack.c.bf16 %v4797_v38, %v4789_v9  ;;  %v4853_v9 = vld [vmem:[#allocation19 + $0x1820] sm:$0xff] }
 0x722   :  { %v9193_v25 = vpack.c.bf16 %v4799_v24, %v4791_v16  ;;  %v4861_v38 = vld [vmem:[#allocation19 + $0x1860] sm:$0xff]  ;;  %v4870_v16 = vld [vmem:[#allocation19 + $0x18a8] sm:$0xff] }
 0x723   :  { %9050 = vmatpush1.bf16.msra.mxu0 %v9049_v62  ;;  %9178 = vmatpush1.bf16.msra.mxu1 %v9177_v50  ;;  %v4805_v62 = vld [vmem:[#allocation19 + $0x16a0] sm:$0xff]  ;;  %v4878_v24 = vld [vmem:[#allocation19 + $0x18e8] sm:$0xff]  ;;  %v9081_v57 = vpack.c.bf16 %v4861_v38, %v4853_v9  ;;  %v4927_v38 = vld [vmem:[#allocation19 + $0x1a70] sm:$0xff] }
 0x724   :  { %9052 = vmatprep.subr.bf16.mxu0 %v9051_v37  ;;  %9180 = vmatprep.subr.bf16.mxu1 %v9179_v26  ;;  %v4813_v50 = vld [vmem:[#allocation19 + $0x16e0] sm:$0xff]  ;;  %v4807_v37 = vld [vmem:[#allocation19 + $0x16b0] sm:$0xff] }
 0x725   :  { %v4815_v26 = vld [vmem:[#allocation19 + $0x16f0] sm:$0xff]  ;;  %v9069_v49 = vpack.c.bf16 %v4813_v50, %v4805_v62  ;;  %v9083_v62 = vpack.c.bf16 %v4878_v24, %v4870_v16  ;;  %v9211_v50 = vpack.c.bf16 %v4880_v51, %v4872_v33  ;;  %v4936_v16 = vld [vmem:[#allocation19 + $0x1ab8] sm:$0xff] }
 0x726   :  { %v9197_v60 = vpack.c.bf16 %v4815_v26, %v4807_v37  ;;  %v4886_v37 = vld [vmem:[#allocation19 + $0x1928] sm:$0xff]  ;;  %v4944_v24 = vld [vmem:[#allocation19 + $0x1af8] sm:$0xff] }
 0x727   :  { %9054 = vmatpush1.bf16.msra.mxu0 %v9053_v59  ;;  %9182 = vmatpush1.bf16.msra.mxu1 %v9181_v55  ;;  %v4821_v59 = vld [vmem:[#allocation19 + $0x1720] sm:$0xff]  ;;  %v4894_v26 = vld [vmem:[#allocation19 + $0x1968] sm:$0xff] }
 0x728   :  { %9056 = vmatprep.subr.bf16.mxu0 %v9055_v20  ;;  %9184 = vmatprep.subr.bf16.mxu1 %v9183_v4  ;;  %v4829_v55 = vld [vmem:[#allocation19 + $0x1760] sm:$0xff]  ;;  %v4823_v20 = vld [vmem:[#allocation19 + $0x1730] sm:$0xff] }
 0x729   :  { %v4831_v4 = vld [vmem:[#allocation19 + $0x1770] sm:$0xff]  ;;  %v9073_v18 = vpack.c.bf16 %v4829_v55, %v4821_v59  ;;  %v9087_v55 = vpack.c.bf16 %v4894_v26, %v4886_v37  ;;  %v4952_v37 = vld [vmem:[#allocation19 + $0x1b38] sm:$0xff] }
 0x72a   :  { %v9201_v52 = vpack.c.bf16 %v4831_v4, %v4823_v20  ;;  %v4887_v59 = vld [vmem:[#allocation19 + $0x1930] sm:$0xff]  ;;  %v4902_v20 = vld [vmem:[#allocation19 + $0x19a8] sm:$0xff]  ;;  %v4960_v26 = vld [vmem:[#allocation19 + $0x1b78] sm:$0xff] }
 0x72b   :  { %9058 = vmatpush1.bf16.msra.mxu0 %v9057_v48  ;;  %9186 = vmatpush1.bf16.msra.mxu1 %v9185_v53  ;;  %v4837_v48 = vld [vmem:[#allocation19 + $0x17a0] sm:$0xff]  ;;  %v4910_v4 = vld [vmem:[#allocation19 + $0x19e8] sm:$0xff] }
 0x72c   :  { %9060 = vmatprep.subr.bf16.mxu0 %v9059_v31  ;;  %9188 = vmatprep.subr.bf16.mxu1 %v9187_v11  ;;  %v4845_v53 = vld [vmem:[#allocation19 + $0x17e0] sm:$0xff]  ;;  %v4839_v31 = vld [vmem:[#allocation19 + $0x17b0] sm:$0xff] }
 0x72d   :  { %v4847_v11 = vld [vmem:[#allocation19 + $0x17f0] sm:$0xff]  ;;  %v9077_v19 = vpack.c.bf16 %v4845_v53, %v4837_v48  ;;  %v4909_v48 = vld [vmem:[#allocation19 + $0x19e0] sm:$0xff] }
 0x72e   :  { %v9205_v30 = vpack.c.bf16 %v4847_v11, %v4839_v31  ;;  %v4903_v53 = vld [vmem:[#allocation19 + $0x19b0] sm:$0xff]  ;;  %v4918_v31 = vld [vmem:[#allocation19 + $0x1a28] sm:$0xff] }
 0x72f   :  { %9062 = vmatpush1.bf16.msra.mxu0 %v9061_v54  ;;  %9190 = vmatpush1.bf16.msra.mxu1 %v9189_v32  ;;  %v9079_v54 = vpack.c.bf16 %v4862_v3, %v4854_v17  ;;  %v9207_v32 = vpack.c.bf16 %v4864_v29, %v4856_v56  ;;  %v4926_v11 = vld [vmem:[#allocation19 + $0x1a68] sm:$0xff]  ;;  %v4920_v17 = vld [vmem:[#allocation19 + $0x1a38] sm:$0xff] }
 0x730   :  { %9064 = vmatprep.subr.bf16.mxu0 %v9063_v36  ;;  %9192 = vmatprep.subr.bf16.mxu1 %v9191_v35  ;;  %v4855_v36 = vld [vmem:[#allocation19 + $0x1830] sm:$0xff]  ;;  %v4928_v3 = vld [vmem:[#allocation19 + $0x1a78] sm:$0xff] }
 0x731   :  { %v4863_v35 = vld [vmem:[#allocation19 + $0x1870] sm:$0xff]  ;;  %v9223_v9 = vpack.c.bf16 %v4928_v3, %v4920_v17 }
 0x732   :  { %v9209_v42 = vpack.c.bf16 %v4863_v35, %v4855_v36  ;;  %v4934_v36 = vld [vmem:[#allocation19 + $0x1aa8] sm:$0xff] }
 0x733   :  { %9066 = vmatpush1.bf16.msra.mxu0 %v9065_v0  ;;  %9194 = vmatpush1.bf16.msra.mxu1 %v9193_v25  ;;  %v4869_v0 = vld [vmem:[#allocation19 + $0x18a0] sm:$0xff]  ;;  %v4942_v35 = vld [vmem:[#allocation19 + $0x1ae8] sm:$0xff] }
 0x734   :  { %9068 = vmatprep.subr.bf16.mxu0 %v9067_v8  ;;  %9196 = vmatprep.subr.bf16.mxu1 %v9195_v1  ;;  %v4877_v25 = vld [vmem:[#allocation19 + $0x18e0] sm:$0xff]  ;;  %v4871_v8 = vld [vmem:[#allocation19 + $0x18b0] sm:$0xff] }
 0x735   :  { %v4879_v1 = vld [vmem:[#allocation19 + $0x18f0] sm:$0xff]  ;;  %v9085_v46 = vpack.c.bf16 %v4877_v25, %v4869_v0  ;;  %v4941_v0 = vld [vmem:[#allocation19 + $0x1ae0] sm:$0xff] }
 0x736   :  { %v9213_v61 = vpack.c.bf16 %v4879_v1, %v4871_v8  ;;  %v4935_v25 = vld [vmem:[#allocation19 + $0x1ab0] sm:$0xff]  ;;  %v4950_v8 = vld [vmem:[#allocation19 + $0x1b28] sm:$0xff] }
 0x737   :  { %9070 = vmatpush1.bf16.msra.mxu0 %v9069_v49  ;;  %9198 = vmatpush1.bf16.msra.mxu1 %v9197_v60  ;;  %v4885_v49 = vld [vmem:[#allocation19 + $0x1920] sm:$0xff]  ;;  %v4958_v1 = vld [vmem:[#allocation19 + $0x1b68] sm:$0xff] }
 0x738   :  { %9072 = vmatprep.subr.bf16.mxu0 %v9071_v63  ;;  %9200 = vmatprep.subr.bf16.mxu1 %v9199_v5  ;;  %v4893_v60 = vld [vmem:[#allocation19 + $0x1960] sm:$0xff]  ;;  %v9215_v63 = vpack.c.bf16 %v4896_v39, %v4888_v34  ;;  %v4895_v5 = vld [vmem:[#allocation19 + $0x1970] sm:$0xff] }
 0x739   :  { %v9089_v6 = vpack.c.bf16 %v4893_v60, %v4885_v49  ;;  %v9217_v7 = vpack.c.bf16 %v4895_v5, %v4887_v59  ;;  %v4957_v49 = vld [vmem:[#allocation19 + $0x1b60] sm:$0xff]  ;;  %v4951_v60 = vld [vmem:[#allocation19 + $0x1b30] sm:$0xff]  ;;  %v9231_v59 = vpack.c.bf16 %v4960_v26, %v4952_v37  ;;  %v4974_v5 = vld [vmem:[#allocation19 + $0x1be8] sm:$0xff] }
 0x73b   :  { %9074 = vmatpush1.bf16.msra.mxu0 %v9073_v18  ;;  %9202 = vmatpush1.bf16.msra.mxu1 %v9201_v52  ;;  %v9091_v18 = vpack.c.bf16 %v4910_v4, %v4902_v20  ;;  %v4901_v52 = vld [vmem:[#allocation19 + $0x19a0] sm:$0xff]  ;;  %v4968_v20 = vld [vmem:[#allocation19 + $0x1bb8] sm:$0xff] }
 0x73c   :  { %9076 = vmatprep.subr.bf16.mxu0 %v9075_v14  ;;  %9204 = vmatprep.subr.bf16.mxu1 %v9203_v13  ;;  %v9219_v14 = vpack.c.bf16 %v4912_v2, %v4904_v45  ;;  %v4911_v13 = vld [vmem:[#allocation19 + $0x19f0] sm:$0xff]  ;;  %v9093_v56 = vpack.c.bf16 %v4909_v48, %v4901_v52  ;;  %v4976_v4 = vld [vmem:[#allocation19 + $0x1bf8] sm:$0xff] }
 0x73d   :  { %v9221_v29 = vpack.c.bf16 %v4911_v13, %v4903_v53  ;;  %v4967_v52 = vld [vmem:[#allocation19 + $0x1bb0] sm:$0xff]  ;;  %v9235_v48 = vpack.c.bf16 %v4976_v4, %v4968_v20  ;;  %v4990_v13 = vld [vmem:[#allocation19 + $0x1c68] sm:$0xff] }
 0x73e   :  { %v4975_v53 = vld [vmem:[#allocation19 + $0x1bf0] sm:$0xff] }
 0x73f   :  { %9078 = vmatpush1.bf16.msra.mxu0 %v9077_v19  ;;  %9206 = vmatpush1.bf16.msra.mxu1 %v9205_v30  ;;  %v9095_v19 = vpack.c.bf16 %v4926_v11, %v4918_v31  ;;  %v4917_v30 = vld [vmem:[#allocation19 + $0x1a20] sm:$0xff]  ;;  %v4984_v31 = vld [vmem:[#allocation19 + $0x1c38] sm:$0xff]  ;;  %v9237_v3 = vpack.c.bf16 %v4975_v53, %v4967_v52  ;;  %v5039_v52 = vld [vmem:[#allocation19 + $0x1df0] sm:$0xff] }
 0x740   :  { %9080 = vmatprep.subr.bf16.mxu0 %v9079_v54  ;;  %9208 = vmatprep.subr.bf16.mxu1 %v9207_v32  ;;  %v4925_v54 = vld [vmem:[#allocation19 + $0x1a60] sm:$0xff]  ;;  %v4919_v32 = vld [vmem:[#allocation19 + $0x1a30] sm:$0xff]  ;;  %v4992_v11 = vld [vmem:[#allocation19 + $0x1c78] sm:$0xff] }
 0x741   :  { %v9097_v33 = vpack.c.bf16 %v4925_v54, %v4917_v30  ;;  %v9225_v51 = vpack.c.bf16 %v4927_v38, %v4919_v32  ;;  %v4983_v30 = vld [vmem:[#allocation19 + $0x1c30] sm:$0xff]  ;;  %v9239_v54 = vpack.c.bf16 %v4992_v11, %v4984_v31  ;;  %v5006_v38 = vld [vmem:[#allocation19 + $0x1ce8] sm:$0xff] }
 0x742   :  { %5478 = vmatmul.mubr.f32.vlgmr.msra.gmra.mrb[44].mxu0 %v12180_v23  ;;  %5632 = vmatmul.mubr.f32.vlgmr.msra.gmra.mrb[44].mxu1 %v12180_v23  ;;  %v4991_v32 = vld [vmem:[#allocation19 + $0x1c70] sm:$0xff]  ;;  %v5054_v53 = vld [vmem:[#allocation19 + $0x1e68] sm:$0xff] }
 0x743   :  { %5483 = vmatprep.mubr.f32.mxu0 %v12206_v27  ;;  %9082 = vmatpush1.bf16.msra.mxu0 %v9081_v57  ;;  %v9099_v57 = vpack.c.bf16 %v4942_v35, %v4934_v36  ;;  %v5000_v36 = vld [vmem:[#allocation19 + $0x1cb8] sm:$0xff] }
 0x744   :  { %5637 = vmatprep.mubr.f32.mxu1 %v12206_v27  ;;  %9210 = vmatpush1.bf16.msra.mxu1 %v9209_v42  ;;  %v4933_v42 = vld [vmem:[#allocation19 + $0x1aa0] sm:$0xff]  ;;  %v5008_v35 = vld [vmem:[#allocation19 + $0x1cf8] sm:$0xff] }
 0x745   :  { %9084 = vmatprep.subr.bf16.mxu0 %v9083_v62  ;;  %9212 = vmatprep.subr.bf16.mxu1 %v9211_v50  ;;  %v9227_v62 = vpack.c.bf16 %v4944_v24, %v4936_v16  ;;  %v4943_v50 = vld [vmem:[#allocation19 + $0x1af0] sm:$0xff]  ;;  %v9101_v34 = vpack.c.bf16 %v4941_v0, %v4933_v42  ;;  %v9241_v24 = vpack.c.bf16 %v4991_v32, %v4983_v30  ;;  %v5070_v32 = vld [vmem:[#allocation19 + $0x1ee8] sm:$0xff] }
 0x746   :  { %5484 = vmatmul.mubr.f32.gmra.mrb[46].mxu0 %v12202_v41  ;;  %5638 = vmatmul.mubr.f32.gmra.mrb[46].mxu1 %v12202_v41  ;;  %v9229_v39 = vpack.c.bf16 %v4943_v50, %v4935_v25  ;;  %v4999_v42 = vld [vmem:[#allocation19 + $0x1cb0] sm:$0xff]  ;;  %v9243_v0 = vpack.c.bf16 %v5008_v35, %v5000_v36  ;;  %v5022_v50 = vld [vmem:[#allocation19 + $0x1d68] sm:$0xff] }
 0x747   :  { %9086 = vmatpush1.bf16.msra.mxu0 %v9085_v46  ;;  %5554 = vmatprep.mubr.f32.mxu0 %v12187_v58  ;;  %v9103_v46 = vpack.c.bf16 %v4958_v1, %v4950_v8  ;;  %v5007_v25 = vld [vmem:[#allocation19 + $0x1cf0] sm:$0xff]  ;;  %v5016_v8 = vld [vmem:[#allocation19 + $0x1d38] sm:$0xff] }
 0x748   :  { %9214 = vmatpush1.bf16.msra.mxu1 %v9213_v61  ;;  %5708 = vmatprep.mubr.f32.mxu1 %v12187_v58  ;;  %v4949_v61 = vld [vmem:[#allocation19 + $0x1b20] sm:$0xff]  ;;  %v5024_v1 = vld [vmem:[#allocation19 + $0x1d78] sm:$0xff]  ;;  %v9245_v26 = vpack.c.bf16 %v5007_v25, %v4999_v42  ;;  %v5055_v30 = vld [vmem:[#allocation19 + $0x1e70] sm:$0xff] }
 0x749   :  { %9088 = vmatprep.subr.bf16.mxu0 %v9087_v55  ;;  %9216 = vmatprep.subr.bf16.mxu1 %v9215_v63  ;;  %v4959_v55 = vld [vmem:[#allocation19 + $0x1b70] sm:$0xff]  ;;  %v4966_v63 = vld [vmem:[#allocation19 + $0x1ba8] sm:$0xff]  ;;  %v9105_v45 = vpack.c.bf16 %v4957_v49, %v4949_v61  ;;  %v9247_v49 = vpack.c.bf16 %v5024_v1, %v5016_v8 }
 0x74a   :  { %v9233_v2 = vpack.c.bf16 %v4959_v55, %v4951_v60  ;;  %v5015_v61 = vld [vmem:[#allocation19 + $0x1d30] sm:$0xff]  ;;  %v5038_v55 = vld [vmem:[#allocation19 + $0x1de8] sm:$0xff] }
 0x74b   :  { %9090 = vmatpush1.bf16.msra.mxu0 %v9089_v6  ;;  %v9107_v6 = vpack.c.bf16 %v4974_v5, %v4966_v63  ;;  %v5023_v60 = vld [vmem:[#allocation19 + $0x1d70] sm:$0xff]  ;;  %v5032_v63 = vld [vmem:[#allocation19 + $0x1db8] sm:$0xff]  ;;  %v5086_v25 = vld [vmem:[#allocation19 + $0x1f68] sm:$0xff] }
 0x74c   :  { %9218 = vmatpush1.bf16.msra.mxu1 %v9217_v7  ;;  %9092 = vmatprep.subr.bf16.mxu0 %v9091_v18  ;;  %v4965_v7 = vld [vmem:[#allocation19 + $0x1ba0] sm:$0xff]  ;;  %v5040_v5 = vld [vmem:[#allocation19 + $0x1df8] sm:$0xff]  ;;  %v9249_v4 = vpack.c.bf16 %v5023_v60, %v5015_v61  ;;  %v5071_v42 = vld [vmem:[#allocation19 + $0x1ef0] sm:$0xff] }
 0x74d   :  { %9220 = vmatprep.subr.bf16.mxu1 %v9219_v14  ;;  %v4973_v18 = vld [vmem:[#allocation19 + $0x1be0] sm:$0xff]  ;;  %v4982_v14 = vld [vmem:[#allocation19 + $0x1c28] sm:$0xff]  ;;  %v5087_v61 = vld [vmem:[#allocation19 + $0x1f70] sm:$0xff] }
 0x74e   :  { %v9109_v17 = vpack.c.bf16 %v4973_v18, %v4965_v7  ;;  %v5031_v7 = vld [vmem:[#allocation19 + $0x1db0] sm:$0xff]  ;;  %v9251_v18 = vpack.c.bf16 %v5040_v5, %v5032_v63  ;;  %v5102_v60 = vld [vmem:[#allocation19 + $0x1fe8] sm:$0xff] }
 0x74f   :  { %9094 = vmatpush1.bf16.msra.mxu0 %v9093_v56  ;;  %v9111_v56 = vpack.c.bf16 %v4990_v13, %v4982_v14  ;;  %v5048_v14 = vld [vmem:[#allocation19 + $0x1e38] sm:$0xff]  ;;  %v9253_v11 = vpack.c.bf16 %v5039_v52, %v5031_v7  ;;  %v5103_v7 = vld [vmem:[#allocation19 + $0x1ff0] sm:$0xff]  ;;  %v4089_v52 = vld [vmem:[#allocation19 + $0x48] sm:$0xff] }
 0x750   :  { %9222 = vmatpush1.bf16.msra.mxu1 %v9221_v29  ;;  %9096 = vmatprep.subr.bf16.mxu0 %v9095_v19  ;;  %v4981_v29 = vld [vmem:[#allocation19 + $0x1c20] sm:$0xff]  ;;  %v5056_v13 = vld [vmem:[#allocation19 + $0x1e78] sm:$0xff] }
 0x751   :  { %9224 = vmatprep.subr.bf16.mxu1 %v9223_v9  ;;  %v4989_v19 = vld [vmem:[#allocation19 + $0x1c60] sm:$0xff]  ;;  %v4998_v9 = vld [vmem:[#allocation19 + $0x1ca8] sm:$0xff] }
 0x752   :  { %v9113_v16 = vpack.c.bf16 %v4989_v19, %v4981_v29  ;;  %v5047_v29 = vld [vmem:[#allocation19 + $0x1e30] sm:$0xff]  ;;  %v9255_v19 = vpack.c.bf16 %v5056_v13, %v5048_v14 }
 0x753   :  { %9098 = vmatpush1.bf16.msra.mxu0 %v9097_v33  ;;  %v9115_v33 = vpack.c.bf16 %v5006_v38, %v4998_v9  ;;  %v5064_v9 = vld [vmem:[#allocation19 + $0x1eb8] sm:$0xff]  ;;  %v9257_v35 = vpack.c.bf16 %v5055_v30, %v5047_v29  ;;  %v4090_v29 = vld [vmem:[#allocation19 + $0x50] sm:$0xff]  ;;  %v4105_v30 = vld [vmem:[#allocation19 + $0xc8] sm:$0xff] }
 0x754   :  { %9226 = vmatpush1.bf16.msra.mxu1 %v9225_v51  ;;  %9100 = vmatprep.subr.bf16.mxu0 %v9099_v57  ;;  %v4997_v51 = vld [vmem:[#allocation19 + $0x1ca0] sm:$0xff]  ;;  %v5072_v38 = vld [vmem:[#allocation19 + $0x1ef8] sm:$0xff] }
 0x755   :  { %9228 = vmatprep.subr.bf16.mxu1 %v9227_v62  ;;  %v5005_v57 = vld [vmem:[#allocation19 + $0x1ce0] sm:$0xff]  ;;  %v5014_v62 = vld [vmem:[#allocation19 + $0x1d28] sm:$0xff] }
 0x756   :  { %v9117_v37 = vpack.c.bf16 %v5005_v57, %v4997_v51  ;;  %v5063_v51 = vld [vmem:[#allocation19 + $0x1eb0] sm:$0xff]  ;;  %v9259_v57 = vpack.c.bf16 %v5072_v38, %v5064_v9 }
 0x757   :  { %9102 = vmatpush1.bf16.msra.mxu0 %v9101_v34  ;;  %v9119_v34 = vpack.c.bf16 %v5022_v50, %v5014_v62  ;;  %v5080_v62 = vld [vmem:[#allocation19 + $0x1f38] sm:$0xff]  ;;  %v9261_v1 = vpack.c.bf16 %v5071_v42, %v5063_v51  ;;  %v4106_v51 = vld [vmem:[#allocation19 + $0xd0] sm:$0xff]  ;;  %v4121_v42 = vld [vmem:[#allocation19 + $0x148] sm:$0xff] }
 0x758   :  { %9230 = vmatpush1.bf16.msra.mxu1 %v9229_v39  ;;  %9104 = vmatprep.subr.bf16.mxu0 %v9103_v46  ;;  %v5013_v39 = vld [vmem:[#allocation19 + $0x1d20] sm:$0xff]  ;;  %v5088_v50 = vld [vmem:[#allocation19 + $0x1f78] sm:$0xff] }
 0x759   :  { %9232 = vmatprep.subr.bf16.mxu1 %v9231_v59  ;;  %v5021_v46 = vld [vmem:[#allocation19 + $0x1d60] sm:$0xff]  ;;  %v5030_v59 = vld [vmem:[#allocation19 + $0x1da8] sm:$0xff] }
 0x75a   :  { %v9121_v20 = vpack.c.bf16 %v5021_v46, %v5013_v39  ;;  %v5079_v39 = vld [vmem:[#allocation19 + $0x1f30] sm:$0xff]  ;;  %v9263_v46 = vpack.c.bf16 %v5088_v50, %v5080_v62 }
 0x75b   :  { %9106 = vmatpush1.bf16.msra.mxu0 %v9105_v45  ;;  %v9123_v45 = vpack.c.bf16 %v5038_v55, %v5030_v59  ;;  %v5096_v59 = vld [vmem:[#allocation19 + $0x1fb8] sm:$0xff]  ;;  %v9265_v5 = vpack.c.bf16 %v5087_v61, %v5079_v39  ;;  %v4122_v39 = vld [vmem:[#allocation19 + $0x150] sm:$0xff]  ;;  %v4137_v61 = vld [vmem:[#allocation19 + $0x1c8] sm:$0xff] }
 0x75c   :  { %9234 = vmatpush1.bf16.msra.mxu1 %v9233_v2  ;;  %9108 = vmatprep.subr.bf16.mxu0 %v9107_v6  ;;  %v5029_v2 = vld [vmem:[#allocation19 + $0x1da0] sm:$0xff]  ;;  %v5104_v55 = vld [vmem:[#allocation19 + $0x1ff8] sm:$0xff] }
 0x75d   :  { %9236 = vmatprep.subr.bf16.mxu1 %v9235_v48  ;;  %v5037_v6 = vld [vmem:[#allocation19 + $0x1de0] sm:$0xff]  ;;  %v5046_v48 = vld [vmem:[#allocation19 + $0x1e28] sm:$0xff] }
 0x75e   :  { %v9125_v31 = vpack.c.bf16 %v5037_v6, %v5029_v2  ;;  %v5095_v2 = vld [vmem:[#allocation19 + $0x1fb0] sm:$0xff]  ;;  %v9267_v6 = vpack.c.bf16 %v5104_v55, %v5096_v59 }
 0x75f   :  { %9110 = vmatpush1.bf16.msra.mxu0 %v9109_v17  ;;  %v9127_v17 = vpack.c.bf16 %v5054_v53, %v5046_v48  ;;  %v4083_v48 = vld [vmem:[#allocation19 + $0x18] sm:$0xff]  ;;  %v9269_v13 = vpack.c.bf16 %v5103_v7, %v5095_v2  ;;  %v4138_v2 = vld [vmem:[#allocation19 + $0x1d0] sm:$0xff]  ;;  %v4153_v7 = vld [vmem:[#allocation19 + $0x248] sm:$0xff] }
 0x760   :  { %9238 = vmatpush1.bf16.msra.mxu1 %v9237_v3  ;;  %9112 = vmatprep.subr.bf16.mxu0 %v9111_v56  ;;  %v5045_v3 = vld [vmem:[#allocation19 + $0x1e20] sm:$0xff]  ;;  %v4091_v53 = vld [vmem:[#allocation19 + $0x58] sm:$0xff] }
 0x761   :  { %9240 = vmatprep.subr.bf16.mxu1 %v9239_v54  ;;  %v5053_v56 = vld [vmem:[#allocation19 + $0x1e60] sm:$0xff]  ;;  %v5062_v54 = vld [vmem:[#allocation19 + $0x1ea8] sm:$0xff] }
 0x762   :  { %v9129_v36 = vpack.c.bf16 %v5053_v56, %v5045_v3  ;;  %v4088_v3 = vld [vmem:[#allocation19 + $0x40] sm:$0xff]  ;;  %v4082_v56 = vld [vmem:[#allocation19 + $0x10] sm:$0xff] }
 0x763   :  { %9114 = vmatpush1.bf16.msra.mxu0 %v9113_v16  ;;  %v9131_v16 = vpack.c.bf16 %v5070_v32, %v5062_v54  ;;  %v4099_v54 = vld [vmem:[#allocation19 + $0x98] sm:$0xff]  ;;  %v9401_v38 = vpack.c.bf16 %v4090_v29, %v4082_v56  ;;  %v4161_v56 = vld [vmem:[#allocation19 + $0x288] sm:$0xff] }
 0x764   :  { %9242 = vmatpush1.bf16.msra.mxu1 %v9241_v24  ;;  %9116 = vmatprep.subr.bf16.mxu0 %v9115_v33  ;;  %v5061_v24 = vld [vmem:[#allocation19 + $0x1ea0] sm:$0xff]  ;;  %v4107_v32 = vld [vmem:[#allocation19 + $0xd8] sm:$0xff]  ;;  %v4169_v29 = vld [vmem:[#allocation19 + $0x2c8] sm:$0xff] }
 0x765   :  { %9244 = vmatprep.subr.bf16.mxu1 %v9243_v0  ;;  %v5069_v33 = vld [vmem:[#allocation19 + $0x1ee0] sm:$0xff]  ;;  %v5078_v0 = vld [vmem:[#allocation19 + $0x1f28] sm:$0xff] }
 0x766   :  { %v9133_v8 = vpack.c.bf16 %v5069_v33, %v5061_v24  ;;  %v4098_v24 = vld [vmem:[#allocation19 + $0x90] sm:$0xff]  ;;  %v9403_v33 = vpack.c.bf16 %v4107_v32, %v4099_v54 }
 0x767   :  { %9118 = vmatpush1.bf16.msra.mxu0 %v9117_v37  ;;  %v9135_v37 = vpack.c.bf16 %v5086_v25, %v5078_v0  ;;  %v4115_v0 = vld [vmem:[#allocation19 + $0x118] sm:$0xff]  ;;  %v9405_v50 = vpack.c.bf16 %v4106_v51, %v4098_v24  ;;  %v4170_v24 = vld [vmem:[#allocation19 + $0x2d0] sm:$0xff]  ;;  %v4185_v51 = vld [vmem:[#allocation19 + $0x348] sm:$0xff] }
 0x768   :  { %9246 = vmatpush1.bf16.msra.mxu1 %v9245_v26  ;;  %9120 = vmatprep.subr.bf16.mxu0 %v9119_v34  ;;  %v5077_v26 = vld [vmem:[#allocation19 + $0x1f20] sm:$0xff]  ;;  %v4123_v25 = vld [vmem:[#allocation19 + $0x158] sm:$0xff] }
 0x769   :  { %9248 = vmatprep.subr.bf16.mxu1 %v9247_v49  ;;  %v5085_v34 = vld [vmem:[#allocation19 + $0x1f60] sm:$0xff]  ;;  %v5094_v49 = vld [vmem:[#allocation19 + $0x1fa8] sm:$0xff] }
 0x76a   :  { %v9137_v63 = vpack.c.bf16 %v5085_v34, %v5077_v26  ;;  %v4114_v26 = vld [vmem:[#allocation19 + $0x110] sm:$0xff]  ;;  %v9407_v34 = vpack.c.bf16 %v4123_v25, %v4115_v0 }
 0x76b   :  { %9122 = vmatpush1.bf16.msra.mxu0 %v9121_v20  ;;  %v9139_v20 = vpack.c.bf16 %v5102_v60, %v5094_v49  ;;  %v4131_v49 = vld [vmem:[#allocation19 + $0x198] sm:$0xff]  ;;  %v9409_v55 = vpack.c.bf16 %v4122_v39, %v4114_v26  ;;  %v4186_v26 = vld [vmem:[#allocation19 + $0x350] sm:$0xff]  ;;  %v4201_v39 = vld [vmem:[#allocation19 + $0x3c8] sm:$0xff] }
 0x76c   :  { %9250 = vmatpush1.bf16.msra.mxu1 %v9249_v4  ;;  %9124 = vmatprep.subr.bf16.mxu0 %v9123_v45  ;;  %v5093_v4 = vld [vmem:[#allocation19 + $0x1fa0] sm:$0xff]  ;;  %v4139_v60 = vld [vmem:[#allocation19 + $0x1d8] sm:$0xff] }
 0x76d   :  { %9252 = vmatprep.subr.bf16.mxu1 %v9251_v18  ;;  %v5101_v45 = vld [vmem:[#allocation19 + $0x1fe0] sm:$0xff]  ;;  %v4081_v18 = vld [vmem:[#allocation19 + $0x8] sm:$0xff] }
 0x76e   :  { %v9141_v14 = vpack.c.bf16 %v5101_v45, %v5093_v4  ;;  %v4130_v4 = vld [vmem:[#allocation19 + $0x190] sm:$0xff]  ;;  %v9411_v45 = vpack.c.bf16 %v4139_v60, %v4131_v49 }
 0x76f   :  { %9126 = vmatpush1.bf16.msra.mxu0 %v9125_v31  ;;  %v9271_v31 = vpack.c.bf16 %v4089_v52, %v4081_v18  ;;  %v4147_v18 = vld [vmem:[#allocation19 + $0x218] sm:$0xff] }
 0x770   :  { %9254 = vmatpush1.bf16.msra.mxu1 %v9253_v11  ;;  %9128 = vmatprep.subr.bf16.mxu0 %v9127_v17  ;;  %v9399_v11 = vpack.c.bf16 %v4091_v53, %v4083_v48  ;;  %v4080_v17 = vld [vmem:[#allocation19] sm:$0xff]  ;;  %v4155_v52 = vld [vmem:[#allocation19 + $0x258] sm:$0xff]  ;;  %v9413_v53 = vpack.c.bf16 %v4138_v2, %v4130_v4  ;;  %v4202_v4 = vld [vmem:[#allocation19 + $0x3d0] sm:$0xff] }
 0x771   :  { %9256 = vmatprep.subr.bf16.mxu1 %v9255_v19  ;;  %v4097_v19 = vld [vmem:[#allocation19 + $0x88] sm:$0xff]  ;;  %v9273_v9 = vpack.c.bf16 %v4088_v3, %v4080_v17  ;;  %v9415_v17 = vpack.c.bf16 %v4155_v52, %v4147_v18  ;;  %v4154_v3 = vld [vmem:[#allocation19 + $0x250] sm:$0xff] }
 0x772   :  { %v4217_v2 = vld [vmem:[#allocation19 + $0x448] sm:$0xff] }
 0x773   :  { %9130 = vmatpush1.bf16.msra.mxu0 %v9129_v36  ;;  %v9275_v36 = vpack.c.bf16 %v4105_v30, %v4097_v19  ;;  %v4163_v19 = vld [vmem:[#allocation19 + $0x298] sm:$0xff] }
 0x774   :  { %9258 = vmatpush1.bf16.msra.mxu1 %v9257_v35  ;;  %9132 = vmatprep.subr.bf16.mxu0 %v9131_v16  ;;  %v4096_v35 = vld [vmem:[#allocation19 + $0x80] sm:$0xff]  ;;  %v4171_v30 = vld [vmem:[#allocation19 + $0x2d8] sm:$0xff] }
 0x775   :  { %9260 = vmatprep.subr.bf16.mxu1 %v9259_v57  ;;  %v4104_v16 = vld [vmem:[#allocation19 + $0xc0] sm:$0xff]  ;;  %v4113_v57 = vld [vmem:[#allocation19 + $0x108] sm:$0xff] }
 0x776   :  { %v9277_v62 = vpack.c.bf16 %v4104_v16, %v4096_v35  ;;  %v4162_v35 = vld [vmem:[#allocation19 + $0x290] sm:$0xff]  ;;  %v9419_v16 = vpack.c.bf16 %v4171_v30, %v4163_v19 }
 0x777   :  { %9134 = vmatpush1.bf16.msra.mxu0 %v9133_v8  ;;  %v9279_v8 = vpack.c.bf16 %v4121_v42, %v4113_v57  ;;  %v4179_v57 = vld [vmem:[#allocation19 + $0x318] sm:$0xff]  ;;  %v9421_v25 = vpack.c.bf16 %v4170_v24, %v4162_v35  ;;  %v4234_v35 = vld [vmem:[#allocation19 + $0x4d0] sm:$0xff]  ;;  %v4249_v24 = vld [vmem:[#allocation19 + $0x548] sm:$0xff] }
 0x778   :  { %9262 = vmatpush1.bf16.msra.mxu1 %v9261_v1  ;;  %9136 = vmatprep.subr.bf16.mxu0 %v9135_v37  ;;  %v4112_v1 = vld [vmem:[#allocation19 + $0x100] sm:$0xff]  ;;  %v4187_v42 = vld [vmem:[#allocation19 + $0x358] sm:$0xff] }
 0x779   :  { %9264 = vmatprep.subr.bf16.mxu1 %v9263_v46  ;;  %v4120_v37 = vld [vmem:[#allocation19 + $0x140] sm:$0xff]  ;;  %v4129_v46 = vld [vmem:[#allocation19 + $0x188] sm:$0xff] }
 0x77a   :  { %v9281_v59 = vpack.c.bf16 %v4120_v37, %v4112_v1  ;;  %v4178_v1 = vld [vmem:[#allocation19 + $0x310] sm:$0xff]  ;;  %v9423_v37 = vpack.c.bf16 %v4187_v42, %v4179_v57 }
 0x77b   :  { %9138 = vmatpush1.bf16.msra.mxu0 %v9137_v63  ;;  %v9283_v63 = vpack.c.bf16 %v4137_v61, %v4129_v46  ;;  %v4195_v46 = vld [vmem:[#allocation19 + $0x398] sm:$0xff]  ;;  %v9425_v60 = vpack.c.bf16 %v4186_v26, %v4178_v1  ;;  %v4250_v1 = vld [vmem:[#allocation19 + $0x550] sm:$0xff]  ;;  %v4265_v26 = vld [vmem:[#allocation19 + $0x5c8] sm:$0xff] }
 0x77c   :  { %9266 = vmatpush1.bf16.msra.mxu1 %v9265_v5  ;;  %9140 = vmatprep.subr.bf16.mxu0 %v9139_v20  ;;  %v4128_v5 = vld [vmem:[#allocation19 + $0x180] sm:$0xff]  ;;  %v4203_v61 = vld [vmem:[#allocation19 + $0x3d8] sm:$0xff] }
 0x77d   :  { %9268 = vmatprep.subr.bf16.mxu1 %v9267_v6  ;;  %v4136_v20 = vld [vmem:[#allocation19 + $0x1c0] sm:$0xff]  ;;  %v4145_v6 = vld [vmem:[#allocation19 + $0x208] sm:$0xff] }
 0x77e   :  { %v9285_v48 = vpack.c.bf16 %v4136_v20, %v4128_v5  ;;  %v4194_v5 = vld [vmem:[#allocation19 + $0x390] sm:$0xff]  ;;  %v9427_v20 = vpack.c.bf16 %v4203_v61, %v4195_v46 }
 0x77f   :  { %9142 = vmatpush1.bf16.msra.mxu0 %v9141_v14  ;;  %v9287_v14 = vpack.c.bf16 %v4153_v7, %v4145_v6  ;;  %v4211_v6 = vld [vmem:[#allocation19 + $0x418] sm:$0xff]  ;;  %v9429_v52 = vpack.c.bf16 %v4202_v4, %v4194_v5  ;;  %v4266_v5 = vld [vmem:[#allocation19 + $0x5d0] sm:$0xff]  ;;  %v4281_v4 = vld [vmem:[#allocation19 + $0x648] sm:$0xff] }
 0x780   :  { %9270 = vmatpush1.bf16.msra.mxu1 %v9269_v13  ;;  %9272 = vmatprep.subr.bf16.mxu0 %v9271_v31  ;;  %v4144_v13 = vld [vmem:[#allocation19 + $0x200] sm:$0xff]  ;;  %v4219_v7 = vld [vmem:[#allocation19 + $0x458] sm:$0xff] }
 0x781   :  { %9400 = vmatprep.subr.bf16.mxu1 %v9399_v11  ;;  %v4152_v31 = vld [vmem:[#allocation19 + $0x240] sm:$0xff]  ;;  %v4146_v11 = vld [vmem:[#allocation19 + $0x210] sm:$0xff] }
 0x782   :  { %5555 = vmatmul.mubr.f32.vlgmr.msra.gmra.mrb[44].mxu0 %v12182_v40  ;;  %v9289_v54 = vpack.c.bf16 %v4152_v31, %v4144_v13  ;;  %v9417_v32 = vpack.c.bf16 %v4154_v3, %v4146_v11  ;;  %v4210_v13 = vld [vmem:[#allocation19 + $0x410] sm:$0xff]  ;;  %v9431_v31 = vpack.c.bf16 %v4219_v7, %v4211_v6  ;;  %v4233_v3 = vld [vmem:[#allocation19 + $0x4c8] sm:$0xff] }
 0x783   :  { %5709 = vmatmul.mubr.f32.vlgmr.msra.gmra.mrb[44].mxu1 %v12182_v40  ;;  %5560 = vmatprep.mubr.f32.mxu0 %v12208_v12  ;;  %v4218_v11 = vld [vmem:[#allocation19 + $0x450] sm:$0xff] }
 0x784   :  { %5714 = vmatprep.mubr.f32.mxu1 %v12208_v12  ;;  %9274 = vmatpush1.bf16.msra.mxu0 %v9273_v9  ;;  %v9291_v9 = vpack.c.bf16 %v4169_v29, %v4161_v56  ;;  %v4227_v56 = vld [vmem:[#allocation19 + $0x498] sm:$0xff]  ;;  %v9433_v30 = vpack.c.bf16 %v4218_v11, %v4210_v13  ;;  %v4282_v13 = vld [vmem:[#allocation19 + $0x650] sm:$0xff]  ;;  %v4297_v11 = vld [vmem:[#allocation19 + $0x6c8] sm:$0xff] }
 0x785   :  { %9402 = vmatpush1.bf16.msra.mxu1 %v9401_v38  ;;  %9276 = vmatprep.subr.bf16.mxu0 %v9275_v36  ;;  %v4160_v38 = vld [vmem:[#allocation19 + $0x280] sm:$0xff]  ;;  %v4235_v29 = vld [vmem:[#allocation19 + $0x4d8] sm:$0xff] }
 0x786   :  { %5561 = vmatmul.mubr.f32.gmra.mrb[46].mxu0 %v12204_v22  ;;  %9404 = vmatprep.subr.bf16.mxu1 %v9403_v33  ;;  %v4168_v36 = vld [vmem:[#allocation19 + $0x2c0] sm:$0xff]  ;;  %v4177_v33 = vld [vmem:[#allocation19 + $0x308] sm:$0xff] }
 0x787   :  { %5715 = vmatmul.mubr.f32.gmra.mrb[46].mxu1 %v12204_v22  ;;  %5785 = vmatprep.mubr.f32.mxu0 %v10889_v10  ;;  %v9293_v0 = vpack.c.bf16 %v4168_v36, %v4160_v38  ;;  %v4226_v38 = vld [vmem:[#allocation19 + $0x490] sm:$0xff]  ;;  %v9435_v36 = vpack.c.bf16 %v4235_v29, %v4227_v56 }
 0x788   :  { %9278 = vmatpush1.bf16.msra.mxu0 %v9277_v62  ;;  %5939 = vmatprep.mubr.f32.mxu1 %v10889_v10  ;;  %v9295_v62 = vpack.c.bf16 %v4185_v51, %v4177_v33  ;;  %v4243_v33 = vld [vmem:[#allocation19 + $0x518] sm:$0xff]  ;;  %v9437_v42 = vpack.c.bf16 %v4234_v35, %v4226_v38  ;;  %v4298_v38 = vld [vmem:[#allocation19 + $0x6d0] sm:$0xff]  ;;  %v4313_v35 = vld [vmem:[#allocation19 + $0x748] sm:$0xff] }
 0x789   :  { %9406 = vmatpush1.bf16.msra.mxu1 %v9405_v50  ;;  %9280 = vmatprep.subr.bf16.mxu0 %v9279_v8  ;;  %v4176_v50 = vld [vmem:[#allocation19 + $0x300] sm:$0xff]  ;;  %v4251_v51 = vld [vmem:[#allocation19 + $0x558] sm:$0xff] }
 0x78a   :  { %9408 = vmatprep.subr.bf16.mxu1 %v9407_v34  ;;  %v4184_v8 = vld [vmem:[#allocation19 + $0x340] sm:$0xff]  ;;  %v4193_v34 = vld [vmem:[#allocation19 + $0x388] sm:$0xff] }
 0x78b   :  { %v9297_v49 = vpack.c.bf16 %v4184_v8, %v4176_v50  ;;  %v4242_v50 = vld [vmem:[#allocation19 + $0x510] sm:$0xff]  ;;  %v9439_v8 = vpack.c.bf16 %v4251_v51, %v4243_v33 }
 0x78c   :  { %9282 = vmatpush1.bf16.msra.mxu0 %v9281_v59  ;;  %v9299_v59 = vpack.c.bf16 %v4201_v39, %v4193_v34  ;;  %v4259_v34 = vld [vmem:[#allocation19 + $0x598] sm:$0xff]  ;;  %v9441_v61 = vpack.c.bf16 %v4250_v1, %v4242_v50  ;;  %v4314_v50 = vld [vmem:[#allocation19 + $0x750] sm:$0xff]  ;;  %v4329_v1 = vld [vmem:[#allocation19 + $0x7c8] sm:$0xff] }
 0x78d   :  { %9410 = vmatpush1.bf16.msra.mxu1 %v9409_v55  ;;  %9284 = vmatprep.subr.bf16.mxu0 %v9283_v63  ;;  %v4192_v55 = vld [vmem:[#allocation19 + $0x380] sm:$0xff]  ;;  %v4267_v39 = vld [vmem:[#allocation19 + $0x5d8] sm:$0xff] }
 0x78e   :  { %9412 = vmatprep.subr.bf16.mxu1 %v9411_v45  ;;  %v4200_v63 = vld [vmem:[#allocation19 + $0x3c0] sm:$0xff]  ;;  %v4209_v45 = vld [vmem:[#allocation19 + $0x408] sm:$0xff] }
 0x78f   :  { %v9301_v18 = vpack.c.bf16 %v4200_v63, %v4192_v55  ;;  %v4258_v55 = vld [vmem:[#allocation19 + $0x590] sm:$0xff]  ;;  %v9443_v63 = vpack.c.bf16 %v4267_v39, %v4259_v34 }
 0x790   :  { %9286 = vmatpush1.bf16.msra.mxu0 %v9285_v48  ;;  %v9303_v48 = vpack.c.bf16 %v4217_v2, %v4209_v45  ;;  %v4275_v45 = vld [vmem:[#allocation19 + $0x618] sm:$0xff]  ;;  %v9445_v7 = vpack.c.bf16 %v4266_v5, %v4258_v55  ;;  %v4330_v55 = vld [vmem:[#allocation19 + $0x7d0] sm:$0xff]  ;;  %v4345_v5 = vld [vmem:[#allocation19 + $0x848] sm:$0xff] }
 0x791   :  { %9414 = vmatpush1.bf16.msra.mxu1 %v9413_v53  ;;  %9288 = vmatprep.subr.bf16.mxu0 %v9287_v14  ;;  %v4208_v53 = vld [vmem:[#allocation19 + $0x400] sm:$0xff]  ;;  %v4283_v2 = vld [vmem:[#allocation19 + $0x658] sm:$0xff] }
 0x792   :  { %9416 = vmatprep.subr.bf16.mxu1 %v9415_v17  ;;  %v4216_v14 = vld [vmem:[#allocation19 + $0x440] sm:$0xff]  ;;  %v4225_v17 = vld [vmem:[#allocation19 + $0x488] sm:$0xff] }
 0x793   :  { %v9305_v19 = vpack.c.bf16 %v4216_v14, %v4208_v53  ;;  %v4274_v53 = vld [vmem:[#allocation19 + $0x610] sm:$0xff]  ;;  %v9447_v14 = vpack.c.bf16 %v4283_v2, %v4275_v45 }
 0x794   :  { %9290 = vmatpush1.bf16.msra.mxu0 %v9289_v54  ;;  %v9307_v54 = vpack.c.bf16 %v4233_v3, %v4225_v17  ;;  %v4291_v17 = vld [vmem:[#allocation19 + $0x698] sm:$0xff]  ;;  %v9449_v29 = vpack.c.bf16 %v4282_v13, %v4274_v53  ;;  %v4346_v53 = vld [vmem:[#allocation19 + $0x850] sm:$0xff]  ;;  %v4361_v13 = vld [vmem:[#allocation19 + $0x8c8] sm:$0xff] }
 0x795   :  { %9418 = vmatpush1.bf16.msra.mxu1 %v9417_v32  ;;  %9292 = vmatprep.subr.bf16.mxu0 %v9291_v9  ;;  %v4224_v32 = vld [vmem:[#allocation19 + $0x480] sm:$0xff]  ;;  %v4299_v3 = vld [vmem:[#allocation19 + $0x6d8] sm:$0xff] }
 0x796   :  { %9420 = vmatprep.subr.bf16.mxu1 %v9419_v16  ;;  %v4232_v9 = vld [vmem:[#allocation19 + $0x4c0] sm:$0xff]  ;;  %v4241_v16 = vld [vmem:[#allocation19 + $0x508] sm:$0xff] }
 0x797   :  { %v9309_v57 = vpack.c.bf16 %v4232_v9, %v4224_v32  ;;  %v4290_v32 = vld [vmem:[#allocation19 + $0x690] sm:$0xff]  ;;  %v9451_v9 = vpack.c.bf16 %v4299_v3, %v4291_v17 }
 0x798   :  { %9294 = vmatpush1.bf16.msra.mxu0 %v9293_v0  ;;  %v9311_v0 = vpack.c.bf16 %v4249_v24, %v4241_v16  ;;  %v4307_v16 = vld [vmem:[#allocation19 + $0x718] sm:$0xff]  ;;  %v9453_v51 = vpack.c.bf16 %v4298_v38, %v4290_v32  ;;  %v4362_v32 = vld [vmem:[#allocation19 + $0x8d0] sm:$0xff]  ;;  %v4377_v38 = vld [vmem:[#allocation19 + $0x948] sm:$0xff] }
 0x799   :  { %9422 = vmatpush1.bf16.msra.mxu1 %v9421_v25  ;;  %9296 = vmatprep.subr.bf16.mxu0 %v9295_v62  ;;  %v4240_v25 = vld [vmem:[#allocation19 + $0x500] sm:$0xff]  ;;  %v4315_v24 = vld [vmem:[#allocation19 + $0x758] sm:$0xff] }
 0x79a   :  { %9424 = vmatprep.subr.bf16.mxu1 %v9423_v37  ;;  %v4248_v62 = vld [vmem:[#allocation19 + $0x540] sm:$0xff]  ;;  %v4257_v37 = vld [vmem:[#allocation19 + $0x588] sm:$0xff] }
 0x79b   :  { %v9313_v46 = vpack.c.bf16 %v4248_v62, %v4240_v25  ;;  %v4306_v25 = vld [vmem:[#allocation19 + $0x710] sm:$0xff]  ;;  %v9455_v62 = vpack.c.bf16 %v4315_v24, %v4307_v16 }
 0x79c   :  { %9298 = vmatpush1.bf16.msra.mxu0 %v9297_v49  ;;  %v9315_v49 = vpack.c.bf16 %v4265_v26, %v4257_v37  ;;  %v4323_v37 = vld [vmem:[#allocation19 + $0x798] sm:$0xff]  ;;  %v9457_v39 = vpack.c.bf16 %v4314_v50, %v4306_v25  ;;  %v4378_v25 = vld [vmem:[#allocation19 + $0x950] sm:$0xff]  ;;  %v4393_v50 = vld [vmem:[#allocation19 + $0x9c8] sm:$0xff] }
 0x79d   :  { %9426 = vmatpush1.bf16.msra.mxu1 %v9425_v60  ;;  %9300 = vmatprep.subr.bf16.mxu0 %v9299_v59  ;;  %v4256_v60 = vld [vmem:[#allocation19 + $0x580] sm:$0xff]  ;;  %v4331_v26 = vld [vmem:[#allocation19 + $0x7d8] sm:$0xff] }
 0x79e   :  { %9428 = vmatprep.subr.bf16.mxu1 %v9427_v20  ;;  %v4264_v59 = vld [vmem:[#allocation19 + $0x5c0] sm:$0xff]  ;;  %v4273_v20 = vld [vmem:[#allocation19 + $0x608] sm:$0xff] }
 0x79f   :  { %v9317_v6 = vpack.c.bf16 %v4264_v59, %v4256_v60  ;;  %v4322_v60 = vld [vmem:[#allocation19 + $0x790] sm:$0xff]  ;;  %v9459_v59 = vpack.c.bf16 %v4331_v26, %v4323_v37 }
 0x7a0   :  { %9302 = vmatpush1.bf16.msra.mxu0 %v9301_v18  ;;  %v9319_v18 = vpack.c.bf16 %v4281_v4, %v4273_v20  ;;  %v4339_v20 = vld [vmem:[#allocation19 + $0x818] sm:$0xff]  ;;  %v9461_v2 = vpack.c.bf16 %v4330_v55, %v4322_v60  ;;  %v4394_v60 = vld [vmem:[#allocation19 + $0x9d0] sm:$0xff]  ;;  %v4409_v55 = vld [vmem:[#allocation19 + $0xa48] sm:$0xff] }
 0x7a1   :  { %9430 = vmatpush1.bf16.msra.mxu1 %v9429_v52  ;;  %9304 = vmatprep.subr.bf16.mxu0 %v9303_v48  ;;  %v4272_v52 = vld [vmem:[#allocation19 + $0x600] sm:$0xff]  ;;  %v4347_v4 = vld [vmem:[#allocation19 + $0x858] sm:$0xff] }
 0x7a2   :  { %9432 = vmatprep.subr.bf16.mxu1 %v9431_v31  ;;  %v4280_v48 = vld [vmem:[#allocation19 + $0x640] sm:$0xff]  ;;  %v4289_v31 = vld [vmem:[#allocation19 + $0x688] sm:$0xff] }
 0x7a3   :  { %v9321_v56 = vpack.c.bf16 %v4280_v48, %v4272_v52  ;;  %v4344_v52 = vld [vmem:[#allocation19 + $0x840] sm:$0xff]  ;;  %v4338_v48 = vld [vmem:[#allocation19 + $0x810] sm:$0xff] }
 0x7a4   :  { %9306 = vmatpush1.bf16.msra.mxu0 %v9305_v19  ;;  %v9323_v19 = vpack.c.bf16 %v4297_v11, %v4289_v31  ;;  %v4355_v31 = vld [vmem:[#allocation19 + $0x898] sm:$0xff]  ;;  %v9465_v3 = vpack.c.bf16 %v4346_v53, %v4338_v48  ;;  %v4417_v48 = vld [vmem:[#allocation19 + $0xa88] sm:$0xff] }
 0x7a5   :  { %9434 = vmatpush1.bf16.msra.mxu1 %v9433_v30  ;;  %9308 = vmatprep.subr.bf16.mxu0 %v9307_v54  ;;  %v4288_v30 = vld [vmem:[#allocation19 + $0x680] sm:$0xff]  ;;  %v4363_v11 = vld [vmem:[#allocation19 + $0x8d8] sm:$0xff]  ;;  %v4425_v53 = vld [vmem:[#allocation19 + $0xac8] sm:$0xff] }
 0x7a6   :  { %9436 = vmatprep.subr.bf16.mxu1 %v9435_v36  ;;  %v4296_v54 = vld [vmem:[#allocation19 + $0x6c0] sm:$0xff]  ;;  %v4305_v36 = vld [vmem:[#allocation19 + $0x708] sm:$0xff] }
 0x7a7   :  { %v9325_v33 = vpack.c.bf16 %v4296_v54, %v4288_v30  ;;  %v4354_v30 = vld [vmem:[#allocation19 + $0x890] sm:$0xff]  ;;  %v9467_v54 = vpack.c.bf16 %v4363_v11, %v4355_v31 }
 0x7a8   :  { %9310 = vmatpush1.bf16.msra.mxu0 %v9309_v57  ;;  %v9327_v57 = vpack.c.bf16 %v4313_v35, %v4305_v36  ;;  %v4371_v36 = vld [vmem:[#allocation19 + $0x918] sm:$0xff]  ;;  %v9469_v24 = vpack.c.bf16 %v4362_v32, %v4354_v30  ;;  %v4426_v30 = vld [vmem:[#allocation19 + $0xad0] sm:$0xff]  ;;  %v4441_v32 = vld [vmem:[#allocation19 + $0xb48] sm:$0xff] }
 0x7a9   :  { %9438 = vmatpush1.bf16.msra.mxu1 %v9437_v42  ;;  %9312 = vmatprep.subr.bf16.mxu0 %v9311_v0  ;;  %v4304_v42 = vld [vmem:[#allocation19 + $0x700] sm:$0xff]  ;;  %v4379_v35 = vld [vmem:[#allocation19 + $0x958] sm:$0xff] }
 0x7aa   :  { %9440 = vmatprep.subr.bf16.mxu1 %v9439_v8  ;;  %v4312_v0 = vld [vmem:[#allocation19 + $0x740] sm:$0xff]  ;;  %v4321_v8 = vld [vmem:[#allocation19 + $0x788] sm:$0xff] }
 0x7ab   :  { %v9329_v34 = vpack.c.bf16 %v4312_v0, %v4304_v42  ;;  %v4370_v42 = vld [vmem:[#allocation19 + $0x910] sm:$0xff]  ;;  %v9471_v0 = vpack.c.bf16 %v4379_v35, %v4371_v36 }
 0x7ac   :  { %9314 = vmatpush1.bf16.msra.mxu0 %v9313_v46  ;;  %v9331_v46 = vpack.c.bf16 %v4329_v1, %v4321_v8  ;;  %v4387_v8 = vld [vmem:[#allocation19 + $0x998] sm:$0xff]  ;;  %v9473_v26 = vpack.c.bf16 %v4378_v25, %v4370_v42  ;;  %v4442_v42 = vld [vmem:[#allocation19 + $0xb50] sm:$0xff]  ;;  %v4457_v25 = vld [vmem:[#allocation19 + $0xbc8] sm:$0xff] }
 0x7ad   :  { %9442 = vmatpush1.bf16.msra.mxu1 %v9441_v61  ;;  %9316 = vmatprep.subr.bf16.mxu0 %v9315_v49  ;;  %v4320_v61 = vld [vmem:[#allocation19 + $0x780] sm:$0xff]  ;;  %v4395_v1 = vld [vmem:[#allocation19 + $0x9d8] sm:$0xff] }
 0x7ae   :  { %9444 = vmatprep.subr.bf16.mxu1 %v9443_v63  ;;  %v4328_v49 = vld [vmem:[#allocation19 + $0x7c0] sm:$0xff]  ;;  %v4337_v63 = vld [vmem:[#allocation19 + $0x808] sm:$0xff] }
 0x7af   :  { %v9333_v45 = vpack.c.bf16 %v4328_v49, %v4320_v61  ;;  %v4386_v61 = vld [vmem:[#allocation19 + $0x990] sm:$0xff]  ;;  %v9475_v49 = vpack.c.bf16 %v4395_v1, %v4387_v8 }
 0x7b0   :  { %9318 = vmatpush1.bf16.msra.mxu0 %v9317_v6  ;;  %v9335_v6 = vpack.c.bf16 %v4345_v5, %v4337_v63  ;;  %v4403_v63 = vld [vmem:[#allocation19 + $0xa18] sm:$0xff] }
 0x7b1   :  { %9446 = vmatpush1.bf16.msra.mxu1 %v9445_v7  ;;  %9320 = vmatprep.subr.bf16.mxu0 %v9319_v18  ;;  %v9463_v7 = vpack.c.bf16 %v4347_v4, %v4339_v20  ;;  %v4336_v18 = vld [vmem:[#allocation19 + $0x800] sm:$0xff]  ;;  %v4411_v5 = vld [vmem:[#allocation19 + $0xa58] sm:$0xff]  ;;  %v9477_v4 = vpack.c.bf16 %v4394_v60, %v4386_v61  ;;  %v4458_v61 = vld [vmem:[#allocation19 + $0xbd0] sm:$0xff] }
 0x7b2   :  { %9448 = vmatprep.subr.bf16.mxu1 %v9447_v14  ;;  %v4353_v14 = vld [vmem:[#allocation19 + $0x888] sm:$0xff]  ;;  %v9337_v17 = vpack.c.bf16 %v4344_v52, %v4336_v18  ;;  %v9479_v18 = vpack.c.bf16 %v4411_v5, %v4403_v63  ;;  %v4410_v52 = vld [vmem:[#allocation19 + $0xa50] sm:$0xff] }
 0x7b3   :  { %v4473_v60 = vld [vmem:[#allocation19 + $0xc48] sm:$0xff] }
 0x7b4   :  { %9322 = vmatpush1.bf16.msra.mxu0 %v9321_v56  ;;  %v9339_v56 = vpack.c.bf16 %v4361_v13, %v4353_v14  ;;  %v4419_v14 = vld [vmem:[#allocation19 + $0xa98] sm:$0xff] }
 0x7b5   :  { %9450 = vmatpush1.bf16.msra.mxu1 %v9449_v29  ;;  %9324 = vmatprep.subr.bf16.mxu0 %v9323_v19  ;;  %v4352_v29 = vld [vmem:[#allocation19 + $0x880] sm:$0xff]  ;;  %v4427_v13 = vld [vmem:[#allocation19 + $0xad8] sm:$0xff] }
 0x7b6   :  { %9452 = vmatprep.subr.bf16.mxu1 %v9451_v9  ;;  %v4360_v19 = vld [vmem:[#allocation19 + $0x8c0] sm:$0xff]  ;;  %v4369_v9 = vld [vmem:[#allocation19 + $0x908] sm:$0xff] }
 0x7b7   :  { %v9341_v16 = vpack.c.bf16 %v4360_v19, %v4352_v29  ;;  %v4418_v29 = vld [vmem:[#allocation19 + $0xa90] sm:$0xff]  ;;  %v9483_v19 = vpack.c.bf16 %v4427_v13, %v4419_v14 }
 0x7b8   :  { %9326 = vmatpush1.bf16.msra.mxu0 %v9325_v33  ;;  %v9343_v33 = vpack.c.bf16 %v4377_v38, %v4369_v9  ;;  %v4435_v9 = vld [vmem:[#allocation19 + $0xb18] sm:$0xff]  ;;  %v9485_v35 = vpack.c.bf16 %v4426_v30, %v4418_v29  ;;  %v4490_v29 = vld [vmem:[#allocation19 + $0xcd0] sm:$0xff]  ;;  %v4505_v30 = vld [vmem:[#allocation19 + $0xd48] sm:$0xff] }
 0x7b9   :  { %9454 = vmatpush1.bf16.msra.mxu1 %v9453_v51  ;;  %9328 = vmatprep.subr.bf16.mxu0 %v9327_v57  ;;  %v4368_v51 = vld [vmem:[#allocation19 + $0x900] sm:$0xff]  ;;  %v4443_v38 = vld [vmem:[#allocation19 + $0xb58] sm:$0xff] }
 0x7ba   :  { %9456 = vmatprep.subr.bf16.mxu1 %v9455_v62  ;;  %v4376_v57 = vld [vmem:[#allocation19 + $0x940] sm:$0xff]  ;;  %v4385_v62 = vld [vmem:[#allocation19 + $0x988] sm:$0xff] }
 0x7bb   :  { %v9345_v37 = vpack.c.bf16 %v4376_v57, %v4368_v51  ;;  %v4434_v51 = vld [vmem:[#allocation19 + $0xb10] sm:$0xff]  ;;  %v9487_v57 = vpack.c.bf16 %v4443_v38, %v4435_v9 }
 0x7bc   :  { %9330 = vmatpush1.bf16.msra.mxu0 %v9329_v34  ;;  %v9347_v34 = vpack.c.bf16 %v4393_v50, %v4385_v62  ;;  %v4451_v62 = vld [vmem:[#allocation19 + $0xb98] sm:$0xff]  ;;  %v9489_v1 = vpack.c.bf16 %v4442_v42, %v4434_v51  ;;  %v4506_v51 = vld [vmem:[#allocation19 + $0xd50] sm:$0xff]  ;;  %v4521_v42 = vld [vmem:[#allocation19 + $0xdc8] sm:$0xff] }
 0x7bd   :  { %9458 = vmatpush1.bf16.msra.mxu1 %v9457_v39  ;;  %9332 = vmatprep.subr.bf16.mxu0 %v9331_v46  ;;  %v4384_v39 = vld [vmem:[#allocation19 + $0x980] sm:$0xff]  ;;  %v4459_v50 = vld [vmem:[#allocation19 + $0xbd8] sm:$0xff] }
 0x7be   :  { %9460 = vmatprep.subr.bf16.mxu1 %v9459_v59  ;;  %v4392_v46 = vld [vmem:[#allocation19 + $0x9c0] sm:$0xff]  ;;  %v4401_v59 = vld [vmem:[#allocation19 + $0xa08] sm:$0xff] }
 0x7bf   :  { %v9349_v20 = vpack.c.bf16 %v4392_v46, %v4384_v39  ;;  %v4450_v39 = vld [vmem:[#allocation19 + $0xb90] sm:$0xff]  ;;  %v9491_v46 = vpack.c.bf16 %v4459_v50, %v4451_v62 }
 0x7c0   :  { %9334 = vmatpush1.bf16.msra.mxu0 %v9333_v45  ;;  %v9351_v45 = vpack.c.bf16 %v4409_v55, %v4401_v59  ;;  %v4467_v59 = vld [vmem:[#allocation19 + $0xc18] sm:$0xff]  ;;  %v9493_v5 = vpack.c.bf16 %v4458_v61, %v4450_v39  ;;  %v4522_v39 = vld [vmem:[#allocation19 + $0xdd0] sm:$0xff]  ;;  %v4537_v61 = vld [vmem:[#allocation19 + $0xe48] sm:$0xff] }
 0x7c1   :  { %9462 = vmatpush1.bf16.msra.mxu1 %v9461_v2  ;;  %9336 = vmatprep.subr.bf16.mxu0 %v9335_v6  ;;  %v4400_v2 = vld [vmem:[#allocation19 + $0xa00] sm:$0xff]  ;;  %v4475_v55 = vld [vmem:[#allocation19 + $0xc58] sm:$0xff] }
 0x7c2   :  { %9464 = vmatprep.subr.bf16.mxu1 %v9463_v7  ;;  %v4408_v6 = vld [vmem:[#allocation19 + $0xa40] sm:$0xff]  ;;  %v4402_v7 = vld [vmem:[#allocation19 + $0xa10] sm:$0xff] }
 0x7c3   :  { %5786 = vmatmul.mubr.f32.vlgmr.msra.gmra.mrb[40].mxu0 %v10889_v10  ;;  %v9353_v31 = vpack.c.bf16 %v4408_v6, %v4400_v2  ;;  %v9481_v11 = vpack.c.bf16 %v4410_v52, %v4402_v7  ;;  %v4466_v2 = vld [vmem:[#allocation19 + $0xc10] sm:$0xff]  ;;  %v9495_v6 = vpack.c.bf16 %v4475_v55, %v4467_v59  ;;  %v4489_v52 = vld [vmem:[#allocation19 + $0xcc8] sm:$0xff] }
 0x7c4   :  { %5940 = vmatmul.mubr.f32.vlgmr.msra.gmra.mrb[40].mxu1 %v10889_v10  ;;  %5791 = vmatprep.mubr.f32.mxu0 %v12185_v47  ;;  %v4474_v7 = vld [vmem:[#allocation19 + $0xc50] sm:$0xff] }
 0x7c5   :  { %9338 = vmatpush1.bf16.msra.mxu0 %v9337_v17  ;;  %5945 = vmatprep.mubr.f32.mxu1 %v12185_v47  ;;  %v9355_v17 = vpack.c.bf16 %v4425_v53, %v4417_v48  ;;  %v4483_v48 = vld [vmem:[#allocation19 + $0xc98] sm:$0xff]  ;;  %v9497_v13 = vpack.c.bf16 %v4474_v7, %v4466_v2  ;;  %v4538_v2 = vld [vmem:[#allocation19 + $0xe50] sm:$0xff]  ;;  %v4553_v7 = vld [vmem:[#allocation19 + $0xec8] sm:$0xff] }
 0x7c6   :  { %9466 = vmatpush1.bf16.msra.mxu1 %v9465_v3  ;;  %9340 = vmatprep.subr.bf16.mxu0 %v9339_v56  ;;  %v4416_v3 = vld [vmem:[#allocation19 + $0xa80] sm:$0xff]  ;;  %v4491_v53 = vld [vmem:[#allocation19 + $0xcd8] sm:$0xff] }
 0x7c7   :  { %5792 = vmatmul.mubr.f32.gmra.mrb[42].mxu0 %v12180_v23  ;;  %9468 = vmatprep.subr.bf16.mxu1 %v9467_v54  ;;  %v4424_v56 = vld [vmem:[#allocation19 + $0xac0] sm:$0xff]  ;;  %v4433_v54 = vld [vmem:[#allocation19 + $0xb08] sm:$0xff] }
 0x7c8   :  { %5946 = vmatmul.mubr.f32.gmra.mrb[42].mxu1 %v12180_v23  ;;  %5862 = vmatprep.mubr.f32.mxu0 %v10889_v10  ;;  %v9357_v36 = vpack.c.bf16 %v4424_v56, %v4416_v3  ;;  %v4482_v3 = vld [vmem:[#allocation19 + $0xc90] sm:$0xff]  ;;  %v9499_v56 = vpack.c.bf16 %v4491_v53, %v4483_v48 }
 0x7c9   :  { %9342 = vmatpush1.bf16.msra.mxu0 %v9341_v16  ;;  %6016 = vmatprep.mubr.f32.mxu1 %v10889_v10  ;;  %v9359_v16 = vpack.c.bf16 %v4441_v32, %v4433_v54  ;;  %v4499_v54 = vld [vmem:[#allocation19 + $0xd18] sm:$0xff]  ;;  %v9501_v38 = vpack.c.bf16 %v4490_v29, %v4482_v3  ;;  %v4554_v3 = vld [vmem:[#allocation19 + $0xed0] sm:$0xff]  ;;  %v4569_v29 = vld [vmem:[#allocation19 + $0xf48] sm:$0xff] }
 0x7ca   :  { %9470 = vmatpush1.bf16.msra.mxu1 %v9469_v24  ;;  %9344 = vmatprep.subr.bf16.mxu0 %v9343_v33  ;;  %v4432_v24 = vld [vmem:[#allocation19 + $0xb00] sm:$0xff]  ;;  %v4507_v32 = vld [vmem:[#allocation19 + $0xd58] sm:$0xff] }
 0x7cb   :  { %9472 = vmatprep.subr.bf16.mxu1 %v9471_v0  ;;  %v4440_v33 = vld [vmem:[#allocation19 + $0xb40] sm:$0xff]  ;;  %v4449_v0 = vld [vmem:[#allocation19 + $0xb88] sm:$0xff] }
 0x7cc   :  { %v9361_v8 = vpack.c.bf16 %v4440_v33, %v4432_v24  ;;  %v4498_v24 = vld [vmem:[#allocation19 + $0xd10] sm:$0xff]  ;;  %v9503_v33 = vpack.c.bf16 %v4507_v32, %v4499_v54 }
 0x7cd   :  { %9346 = vmatpush1.bf16.msra.mxu0 %v9345_v37  ;;  %v9363_v37 = vpack.c.bf16 %v4457_v25, %v4449_v0  ;;  %v4515_v0 = vld [vmem:[#allocation19 + $0xd98] sm:$0xff]  ;;  %v9505_v50 = vpack.c.bf16 %v4506_v51, %v4498_v24  ;;  %v4570_v24 = vld [vmem:[#allocation19 + $0xf50] sm:$0xff]  ;;  %v4585_v51 = vld [vmem:[#allocation19 + $0xfc8] sm:$0xff] }
 0x7ce   :  { %9474 = vmatpush1.bf16.msra.mxu1 %v9473_v26  ;;  %9348 = vmatprep.subr.bf16.mxu0 %v9347_v34  ;;  %v4448_v26 = vld [vmem:[#allocation19 + $0xb80] sm:$0xff]  ;;  %v4523_v25 = vld [vmem:[#allocation19 + $0xdd8] sm:$0xff] }
 0x7cf   :  { %9476 = vmatprep.subr.bf16.mxu1 %v9475_v49  ;;  %v4456_v34 = vld [vmem:[#allocation19 + $0xbc0] sm:$0xff]  ;;  %v4465_v49 = vld [vmem:[#allocation19 + $0xc08] sm:$0xff] }
 0x7d0   :  { %v9365_v63 = vpack.c.bf16 %v4456_v34, %v4448_v26  ;;  %v4514_v26 = vld [vmem:[#allocation19 + $0xd90] sm:$0xff]  ;;  %v9507_v34 = vpack.c.bf16 %v4523_v25, %v4515_v0 }
 0x7d1   :  { %9350 = vmatpush1.bf16.msra.mxu0 %v9349_v20  ;;  %v9367_v20 = vpack.c.bf16 %v4473_v60, %v4465_v49  ;;  %v4531_v49 = vld [vmem:[#allocation19 + $0xe18] sm:$0xff]  ;;  %v9509_v55 = vpack.c.bf16 %v4522_v39, %v4514_v26  ;;  %v4586_v26 = vld [vmem:[#allocation19 + $0xfd0] sm:$0xff]  ;;  %v4093_v39 = vld [vmem:[#allocation19 + $0x68] sm:$0xff] }
 0x7d2   :  { %9478 = vmatpush1.bf16.msra.mxu1 %v9477_v4  ;;  %9352 = vmatprep.subr.bf16.mxu0 %v9351_v45  ;;  %v4464_v4 = vld [vmem:[#allocation19 + $0xc00] sm:$0xff]  ;;  %v4539_v60 = vld [vmem:[#allocation19 + $0xe58] sm:$0xff] }
 0x7d3   :  { %9480 = vmatprep.subr.bf16.mxu1 %v9479_v18  ;;  %v4472_v45 = vld [vmem:[#allocation19 + $0xc40] sm:$0xff]  ;;  %v4481_v18 = vld [vmem:[#allocation19 + $0xc88] sm:$0xff] }
 0x7d4   :  { %v9369_v14 = vpack.c.bf16 %v4472_v45, %v4464_v4  ;;  %v4530_v4 = vld [vmem:[#allocation19 + $0xe10] sm:$0xff]  ;;  %v9511_v45 = vpack.c.bf16 %v4539_v60, %v4531_v49 }
 0x7d5   :  { %9354 = vmatpush1.bf16.msra.mxu0 %v9353_v31  ;;  %v9371_v31 = vpack.c.bf16 %v4489_v52, %v4481_v18  ;;  %v4547_v18 = vld [vmem:[#allocation19 + $0xe98] sm:$0xff]  ;;  %v9513_v53 = vpack.c.bf16 %v4538_v2, %v4530_v4  ;;  %v4094_v4 = vld [vmem:[#allocation19 + $0x70] sm:$0xff]  ;;  %v4109_v2 = vld [vmem:[#allocation19 + $0xe8] sm:$0xff] }
 0x7d6   :  { %9482 = vmatpush1.bf16.msra.mxu1 %v9481_v11  ;;  %9356 = vmatprep.subr.bf16.mxu0 %v9355_v17  ;;  %v4480_v11 = vld [vmem:[#allocation19 + $0xc80] sm:$0xff]  ;;  %v4555_v52 = vld [vmem:[#allocation19 + $0xed8] sm:$0xff] }
 0x7d7   :  { %9484 = vmatprep.subr.bf16.mxu1 %v9483_v19  ;;  %v4488_v17 = vld [vmem:[#allocation19 + $0xcc0] sm:$0xff]  ;;  %v4497_v19 = vld [vmem:[#allocation19 + $0xd08] sm:$0xff] }
 0x7d8   :  { %v9373_v9 = vpack.c.bf16 %v4488_v17, %v4480_v11  ;;  %v4546_v11 = vld [vmem:[#allocation19 + $0xe90] sm:$0xff]  ;;  %v9515_v17 = vpack.c.bf16 %v4555_v52, %v4547_v18 }
 0x7d9   :  { %9358 = vmatpush1.bf16.msra.mxu0 %v9357_v36  ;;  %v9375_v36 = vpack.c.bf16 %v4505_v30, %v4497_v19  ;;  %v4563_v19 = vld [vmem:[#allocation19 + $0xf18] sm:$0xff]  ;;  %v9517_v32 = vpack.c.bf16 %v4554_v3, %v4546_v11  ;;  %v4110_v11 = vld [vmem:[#allocation19 + $0xf0] sm:$0xff]  ;;  %v4125_v3 = vld [vmem:[#allocation19 + $0x168] sm:$0xff] }
 0x7da   :  { %9486 = vmatpush1.bf16.msra.mxu1 %v9485_v35  ;;  %9360 = vmatprep.subr.bf16.mxu0 %v9359_v16  ;;  %v4496_v35 = vld [vmem:[#allocation19 + $0xd00] sm:$0xff]  ;;  %v4571_v30 = vld [vmem:[#allocation19 + $0xf58] sm:$0xff] }
 0x7db   :  { %9488 = vmatprep.subr.bf16.mxu1 %v9487_v57  ;;  %v4504_v16 = vld [vmem:[#allocation19 + $0xd40] sm:$0xff]  ;;  %v4513_v57 = vld [vmem:[#allocation19 + $0xd88] sm:$0xff] }
 0x7dc   :  { %v9377_v62 = vpack.c.bf16 %v4504_v16, %v4496_v35  ;;  %v4562_v35 = vld [vmem:[#allocation19 + $0xf10] sm:$0xff]  ;;  %v9519_v16 = vpack.c.bf16 %v4571_v30, %v4563_v19 }
 0x7dd   :  { %9362 = vmatpush1.bf16.msra.mxu0 %v9361_v8  ;;  %v9379_v8 = vpack.c.bf16 %v4521_v42, %v4513_v57  ;;  %v4579_v57 = vld [vmem:[#allocation19 + $0xf98] sm:$0xff]  ;;  %v9521_v25 = vpack.c.bf16 %v4570_v24, %v4562_v35  ;;  %v4126_v35 = vld [vmem:[#allocation19 + $0x170] sm:$0xff]  ;;  %v4141_v24 = vld [vmem:[#allocation19 + $0x1e8] sm:$0xff] }
 0x7de   :  { %9490 = vmatpush1.bf16.msra.mxu1 %v9489_v1  ;;  %9364 = vmatprep.subr.bf16.mxu0 %v9363_v37  ;;  %v4512_v1 = vld [vmem:[#allocation19 + $0xd80] sm:$0xff]  ;;  %v4587_v42 = vld [vmem:[#allocation19 + $0xfd8] sm:$0xff] }
 0x7df   :  { %9492 = vmatprep.subr.bf16.mxu1 %v9491_v46  ;;  %v4520_v37 = vld [vmem:[#allocation19 + $0xdc0] sm:$0xff]  ;;  %v4529_v46 = vld [vmem:[#allocation19 + $0xe08] sm:$0xff] }
 0x7e0   :  { %v9381_v59 = vpack.c.bf16 %v4520_v37, %v4512_v1  ;;  %v4578_v1 = vld [vmem:[#allocation19 + $0xf90] sm:$0xff]  ;;  %v9523_v37 = vpack.c.bf16 %v4587_v42, %v4579_v57 }
 0x7e1   :  { %9366 = vmatpush1.bf16.msra.mxu0 %v9365_v63  ;;  %v9383_v63 = vpack.c.bf16 %v4537_v61, %v4529_v46  ;;  %v4087_v46 = vld [vmem:[#allocation19 + $0x38] sm:$0xff]  ;;  %v9525_v60 = vpack.c.bf16 %v4586_v26, %v4578_v1  ;;  %v4142_v1 = vld [vmem:[#allocation19 + $0x1f0] sm:$0xff]  ;;  %v4157_v26 = vld [vmem:[#allocation19 + $0x268] sm:$0xff] }
 0x7e2   :  { %9494 = vmatpush1.bf16.msra.mxu1 %v9493_v5  ;;  %9368 = vmatprep.subr.bf16.mxu0 %v9367_v20  ;;  %v4528_v5 = vld [vmem:[#allocation19 + $0xe00] sm:$0xff]  ;;  %v4095_v61 = vld [vmem:[#allocation19 + $0x78] sm:$0xff] }
 0x7e3   :  { %9496 = vmatprep.subr.bf16.mxu1 %v9495_v6  ;;  %v4536_v20 = vld [vmem:[#allocation19 + $0xe40] sm:$0xff]  ;;  %v4545_v6 = vld [vmem:[#allocation19 + $0xe88] sm:$0xff] }
 0x7e4   :  { %v9385_v48 = vpack.c.bf16 %v4536_v20, %v4528_v5  ;;  %v4092_v5 = vld [vmem:[#allocation19 + $0x60] sm:$0xff]  ;;  %v4086_v20 = vld [vmem:[#allocation19 + $0x30] sm:$0xff] }
 0x7e5   :  { %9370 = vmatpush1.bf16.msra.mxu0 %v9369_v14  ;;  %v9387_v14 = vpack.c.bf16 %v4553_v7, %v4545_v6  ;;  %v4103_v6 = vld [vmem:[#allocation19 + $0xb8] sm:$0xff]  ;;  %v9657_v52 = vpack.c.bf16 %v4094_v4, %v4086_v20  ;;  %v4165_v20 = vld [vmem:[#allocation19 + $0x2a8] sm:$0xff] }
 0x7e6   :  { %9498 = vmatpush1.bf16.msra.mxu1 %v9497_v13  ;;  %9372 = vmatprep.subr.bf16.mxu0 %v9371_v31  ;;  %v4544_v13 = vld [vmem:[#allocation19 + $0xe80] sm:$0xff]  ;;  %v4111_v7 = vld [vmem:[#allocation19 + $0xf8] sm:$0xff]  ;;  %v4173_v4 = vld [vmem:[#allocation19 + $0x2e8] sm:$0xff] }
 0x7e7   :  { %9500 = vmatprep.subr.bf16.mxu1 %v9499_v56  ;;  %v4552_v31 = vld [vmem:[#allocation19 + $0xec0] sm:$0xff]  ;;  %v4561_v56 = vld [vmem:[#allocation19 + $0xf08] sm:$0xff] }
 0x7e8   :  { %v9389_v54 = vpack.c.bf16 %v4552_v31, %v4544_v13  ;;  %v4102_v13 = vld [vmem:[#allocation19 + $0xb0] sm:$0xff]  ;;  %v9659_v31 = vpack.c.bf16 %v4111_v7, %v4103_v6 }
 0x7e9   :  { %9374 = vmatpush1.bf16.msra.mxu0 %v9373_v9  ;;  %v9391_v9 = vpack.c.bf16 %v4569_v29, %v4561_v56  ;;  %v4119_v56 = vld [vmem:[#allocation19 + $0x138] sm:$0xff]  ;;  %v9661_v30 = vpack.c.bf16 %v4110_v11, %v4102_v13  ;;  %v4174_v13 = vld [vmem:[#allocation19 + $0x2f0] sm:$0xff]  ;;  %v4189_v11 = vld [vmem:[#allocation19 + $0x368] sm:$0xff] }
 0x7ea   :  { %9502 = vmatpush1.bf16.msra.mxu1 %v9501_v38  ;;  %9376 = vmatprep.subr.bf16.mxu0 %v9375_v36  ;;  %v4560_v38 = vld [vmem:[#allocation19 + $0xf00] sm:$0xff]  ;;  %v4127_v29 = vld [vmem:[#allocation19 + $0x178] sm:$0xff] }
 0x7eb   :  { %9504 = vmatprep.subr.bf16.mxu1 %v9503_v33  ;;  %v4568_v36 = vld [vmem:[#allocation19 + $0xf40] sm:$0xff]  ;;  %v4577_v33 = vld [vmem:[#allocation19 + $0xf88] sm:$0xff] }
 0x7ec   :  { %v9393_v0 = vpack.c.bf16 %v4568_v36, %v4560_v38  ;;  %v4118_v38 = vld [vmem:[#allocation19 + $0x130] sm:$0xff]  ;;  %v9663_v36 = vpack.c.bf16 %v4127_v29, %v4119_v56 }
 0x7ed   :  { %9378 = vmatpush1.bf16.msra.mxu0 %v9377_v62  ;;  %v9395_v62 = vpack.c.bf16 %v4585_v51, %v4577_v33  ;;  %v4135_v33 = vld [vmem:[#allocation19 + $0x1b8] sm:$0xff]  ;;  %v9665_v42 = vpack.c.bf16 %v4126_v35, %v4118_v38  ;;  %v4190_v38 = vld [vmem:[#allocation19 + $0x370] sm:$0xff]  ;;  %v4205_v35 = vld [vmem:[#allocation19 + $0x3e8] sm:$0xff] }
 0x7ee   :  { %9506 = vmatpush1.bf16.msra.mxu1 %v9505_v50  ;;  %9380 = vmatprep.subr.bf16.mxu0 %v9379_v8  ;;  %v4576_v50 = vld [vmem:[#allocation19 + $0xf80] sm:$0xff]  ;;  %v4143_v51 = vld [vmem:[#allocation19 + $0x1f8] sm:$0xff] }
 0x7ef   :  { %9508 = vmatprep.subr.bf16.mxu1 %v9507_v34  ;;  %v4584_v8 = vld [vmem:[#allocation19 + $0xfc0] sm:$0xff]  ;;  %v4085_v34 = vld [vmem:[#allocation19 + $0x28] sm:$0xff] }
 0x7f0   :  { %v9397_v49 = vpack.c.bf16 %v4584_v8, %v4576_v50  ;;  %v4134_v50 = vld [vmem:[#allocation19 + $0x1b0] sm:$0xff]  ;;  %v9667_v8 = vpack.c.bf16 %v4143_v51, %v4135_v33 }
 0x7f1   :  { %9382 = vmatpush1.bf16.msra.mxu0 %v9381_v59  ;;  %v9527_v59 = vpack.c.bf16 %v4093_v39, %v4085_v34  ;;  %v4151_v34 = vld [vmem:[#allocation19 + $0x238] sm:$0xff] }
 0x7f2   :  { %9510 = vmatpush1.bf16.msra.mxu1 %v9509_v55  ;;  %9384 = vmatprep.subr.bf16.mxu0 %v9383_v63  ;;  %v9655_v55 = vpack.c.bf16 %v4095_v61, %v4087_v46  ;;  %v4084_v63 = vld [vmem:[#allocation19 + $0x20] sm:$0xff]  ;;  %v4159_v39 = vld [vmem:[#allocation19 + $0x278] sm:$0xff]  ;;  %v9669_v61 = vpack.c.bf16 %v4142_v1, %v4134_v50  ;;  %v4206_v50 = vld [vmem:[#allocation19 + $0x3f0] sm:$0xff] }
 0x7f3   :  { %9512 = vmatprep.subr.bf16.mxu1 %v9511_v45  ;;  %v4101_v45 = vld [vmem:[#allocation19 + $0xa8] sm:$0xff]  ;;  %v9529_v18 = vpack.c.bf16 %v4092_v5, %v4084_v63  ;;  %v9671_v63 = vpack.c.bf16 %v4159_v39, %v4151_v34  ;;  %v4158_v5 = vld [vmem:[#allocation19 + $0x270] sm:$0xff] }
 0x7f4   :  { %v4221_v1 = vld [vmem:[#allocation19 + $0x468] sm:$0xff] }
 0x7f5   :  { %9386 = vmatpush1.bf16.msra.mxu0 %v9385_v48  ;;  %v9531_v48 = vpack.c.bf16 %v4109_v2, %v4101_v45  ;;  %v4167_v45 = vld [vmem:[#allocation19 + $0x2b8] sm:$0xff] }
 0x7f6   :  { %9514 = vmatpush1.bf16.msra.mxu1 %v9513_v53  ;;  %9388 = vmatprep.subr.bf16.mxu0 %v9387_v14  ;;  %v4100_v53 = vld [vmem:[#allocation19 + $0xa0] sm:$0xff]  ;;  %v4175_v2 = vld [vmem:[#allocation19 + $0x2f8] sm:$0xff] }
 0x7f7   :  { %9516 = vmatprep.subr.bf16.mxu1 %v9515_v17  ;;  %v4108_v14 = vld [vmem:[#allocation19 + $0xe0] sm:$0xff]  ;;  %v4117_v17 = vld [vmem:[#allocation19 + $0x128] sm:$0xff] }
 0x7f8   :  { %v9533_v19 = vpack.c.bf16 %v4108_v14, %v4100_v53  ;;  %v4166_v53 = vld [vmem:[#allocation19 + $0x2b0] sm:$0xff]  ;;  %v9675_v14 = vpack.c.bf16 %v4175_v2, %v4167_v45 }
 0x7f9   :  { %9390 = vmatpush1.bf16.msra.mxu0 %v9389_v54  ;;  %v9535_v54 = vpack.c.bf16 %v4125_v3, %v4117_v17  ;;  %v4183_v17 = vld [vmem:[#allocation19 + $0x338] sm:$0xff]  ;;  %v9677_v29 = vpack.c.bf16 %v4174_v13, %v4166_v53  ;;  %v4238_v53 = vld [vmem:[#allocation19 + $0x4f0] sm:$0xff]  ;;  %v4253_v13 = vld [vmem:[#allocation19 + $0x568] sm:$0xff] }
 0x7fa   :  { %9518 = vmatpush1.bf16.msra.mxu1 %v9517_v32  ;;  %9392 = vmatprep.subr.bf16.mxu0 %v9391_v9  ;;  %v4116_v32 = vld [vmem:[#allocation19 + $0x120] sm:$0xff]  ;;  %v4191_v3 = vld [vmem:[#allocation19 + $0x378] sm:$0xff] }
 0x7fb   :  { %9520 = vmatprep.subr.bf16.mxu1 %v9519_v16  ;;  %v4124_v9 = vld [vmem:[#allocation19 + $0x160] sm:$0xff]  ;;  %v4133_v16 = vld [vmem:[#allocation19 + $0x1a8] sm:$0xff] }
 0x7fc   :  { %v9537_v57 = vpack.c.bf16 %v4124_v9, %v4116_v32  ;;  %v4182_v32 = vld [vmem:[#allocation19 + $0x330] sm:$0xff]  ;;  %v9679_v9 = vpack.c.bf16 %v4191_v3, %v4183_v17 }
 0x7fd   :  { %9394 = vmatpush1.bf16.msra.mxu0 %v9393_v0  ;;  %v9539_v0 = vpack.c.bf16 %v4141_v24, %v4133_v16  ;;  %v4199_v16 = vld [vmem:[#allocation19 + $0x3b8] sm:$0xff]  ;;  %v9681_v51 = vpack.c.bf16 %v4190_v38, %v4182_v32  ;;  %v4254_v32 = vld [vmem:[#allocation19 + $0x570] sm:$0xff]  ;;  %v4269_v38 = vld [vmem:[#allocation19 + $0x5e8] sm:$0xff] }
 0x7fe   :  { %9522 = vmatpush1.bf16.msra.mxu1 %v9521_v25  ;;  %9396 = vmatprep.subr.bf16.mxu0 %v9395_v62  ;;  %v4132_v25 = vld [vmem:[#allocation19 + $0x1a0] sm:$0xff]  ;;  %v4207_v24 = vld [vmem:[#allocation19 + $0x3f8] sm:$0xff] }
 0x7ff   :  { %9524 = vmatprep.subr.bf16.mxu1 %v9523_v37  ;;  %v4140_v62 = vld [vmem:[#allocation19 + $0x1e0] sm:$0xff]  ;;  %v4149_v37 = vld [vmem:[#allocation19 + $0x228] sm:$0xff] }
 0x800   :  { %v9541_v46 = vpack.c.bf16 %v4140_v62, %v4132_v25  ;;  %v4198_v25 = vld [vmem:[#allocation19 + $0x3b0] sm:$0xff]  ;;  %v9683_v62 = vpack.c.bf16 %v4207_v24, %v4199_v16 }
 0x801   :  { %9398 = vmatpush1.bf16.msra.mxu0 %v9397_v49  ;;  %v9543_v49 = vpack.c.bf16 %v4157_v26, %v4149_v37  ;;  %v4215_v37 = vld [vmem:[#allocation19 + $0x438] sm:$0xff]  ;;  %v9685_v39 = vpack.c.bf16 %v4206_v50, %v4198_v25  ;;  %v4270_v25 = vld [vmem:[#allocation19 + $0x5f0] sm:$0xff]  ;;  %v4285_v50 = vld [vmem:[#allocation19 + $0x668] sm:$0xff] }
 0x802   :  { %9526 = vmatpush1.bf16.msra.mxu1 %v9525_v60  ;;  %9528 = vmatprep.subr.bf16.mxu0 %v9527_v59  ;;  %v4148_v60 = vld [vmem:[#allocation19 + $0x220] sm:$0xff]  ;;  %v4223_v26 = vld [vmem:[#allocation19 + $0x478] sm:$0xff] }
 0x803   :  { %9656 = vmatprep.subr.bf16.mxu1 %v9655_v55  ;;  %v4156_v59 = vld [vmem:[#allocation19 + $0x260] sm:$0xff]  ;;  %v4150_v55 = vld [vmem:[#allocation19 + $0x230] sm:$0xff] }
 0x804   :  { %5863 = vmatmul.mubr.f32.vlgmr.msra.gmra.mrb[40].mxu0 %v10889_v10  ;;  %v9545_v6 = vpack.c.bf16 %v4156_v59, %v4148_v60  ;;  %v9673_v7 = vpack.c.bf16 %v4158_v5, %v4150_v55  ;;  %v4214_v60 = vld [vmem:[#allocation19 + $0x430] sm:$0xff]  ;;  %v9687_v59 = vpack.c.bf16 %v4223_v26, %v4215_v37  ;;  %v4237_v5 = vld [vmem:[#allocation19 + $0x4e8] sm:$0xff] }
 0x805   :  { %6017 = vmatmul.mubr.f32.vlgmr.msra.gmra.mrb[40].mxu1 %v10889_v10  ;;  %5868 = vmatprep.mubr.f32.mxu0 %v12187_v58  ;;  %v4222_v55 = vld [vmem:[#allocation19 + $0x470] sm:$0xff] }
 0x806   :  { %6022 = vmatprep.mubr.f32.mxu1 %v12187_v58  ;;  %9530 = vmatpush1.bf16.msra.mxu0 %v9529_v18  ;;  %v9547_v18 = vpack.c.bf16 %v4173_v4, %v4165_v20  ;;  %v4231_v20 = vld [vmem:[#allocation19 + $0x4b8] sm:$0xff]  ;;  %v9689_v2 = vpack.c.bf16 %v4222_v55, %v4214_v60  ;;  %v4286_v60 = vld [vmem:[#allocation19 + $0x670] sm:$0xff]  ;;  %v4301_v55 = vld [vmem:[#allocation19 + $0x6e8] sm:$0xff] }
 0x807   :  { %9658 = vmatpush1.bf16.msra.mxu1 %v9657_v52  ;;  %9532 = vmatprep.subr.bf16.mxu0 %v9531_v48  ;;  %v4164_v52 = vld [vmem:[#allocation19 + $0x2a0] sm:$0xff]  ;;  %v4239_v4 = vld [vmem:[#allocation19 + $0x4f8] sm:$0xff] }
 0x808   :  { %5869 = vmatmul.mubr.f32.gmra.mrb[42].mxu0 %v12182_v40  ;;  %9660 = vmatprep.subr.bf16.mxu1 %v9659_v31  ;;  %v4172_v48 = vld [vmem:[#allocation19 + $0x2e0] sm:$0xff]  ;;  %v4181_v31 = vld [vmem:[#allocation19 + $0x328] sm:$0xff] }
 0x809   :  { %6023 = vmatmul.mubr.f32.gmra.mrb[42].mxu1 %v12182_v40  ;;  %6093 = vmatprep.mubr.f32.mxu0 %v10889_v10  ;;  %v9549_v56 = vpack.c.bf16 %v4172_v48, %v4164_v52  ;;  %v4230_v52 = vld [vmem:[#allocation19 + $0x4b0] sm:$0xff]  ;;  %v9691_v48 = vpack.c.bf16 %v4239_v4, %v4231_v20 }
 0x80a   :  { %9534 = vmatpush1.bf16.msra.mxu0 %v9533_v19  ;;  %6247 = vmatprep.mubr.f32.mxu1 %v10889_v10  ;;  %v9551_v19 = vpack.c.bf16 %v4189_v11, %v4181_v31  ;;  %v4247_v31 = vld [vmem:[#allocation19 + $0x538] sm:$0xff]  ;;  %v9693_v3 = vpack.c.bf16 %v4238_v53, %v4230_v52  ;;  %v4302_v52 = vld [vmem:[#allocation19 + $0x6f0] sm:$0xff]  ;;  %v4317_v53 = vld [vmem:[#allocation19 + $0x768] sm:$0xff] }
 0x80b   :  { %9662 = vmatpush1.bf16.msra.mxu1 %v9661_v30  ;;  %9536 = vmatprep.subr.bf16.mxu0 %v9535_v54  ;;  %v4180_v30 = vld [vmem:[#allocation19 + $0x320] sm:$0xff]  ;;  %v4255_v11 = vld [vmem:[#allocation19 + $0x578] sm:$0xff] }
 0x80c   :  { %9664 = vmatprep.subr.bf16.mxu1 %v9663_v36  ;;  %v4188_v54 = vld [vmem:[#allocation19 + $0x360] sm:$0xff]  ;;  %v4197_v36 = vld [vmem:[#allocation19 + $0x3a8] sm:$0xff] }
 0x80d   :  { %v9553_v33 = vpack.c.bf16 %v4188_v54, %v4180_v30  ;;  %v4246_v30 = vld [vmem:[#allocation19 + $0x530] sm:$0xff]  ;;  %v9695_v54 = vpack.c.bf16 %v4255_v11, %v4247_v31 }
 0x80e   :  { %9538 = vmatpush1.bf16.msra.mxu0 %v9537_v57  ;;  %v9555_v57 = vpack.c.bf16 %v4205_v35, %v4197_v36  ;;  %v4263_v36 = vld [vmem:[#allocation19 + $0x5b8] sm:$0xff]  ;;  %v9697_v24 = vpack.c.bf16 %v4254_v32, %v4246_v30  ;;  %v4318_v30 = vld [vmem:[#allocation19 + $0x770] sm:$0xff]  ;;  %v4333_v32 = vld [vmem:[#allocation19 + $0x7e8] sm:$0xff] }
 0x80f   :  { %9666 = vmatpush1.bf16.msra.mxu1 %v9665_v42  ;;  %9540 = vmatprep.subr.bf16.mxu0 %v9539_v0  ;;  %v4196_v42 = vld [vmem:[#allocation19 + $0x3a0] sm:$0xff]  ;;  %v4271_v35 = vld [vmem:[#allocation19 + $0x5f8] sm:$0xff] }
 0x810   :  { %9668 = vmatprep.subr.bf16.mxu1 %v9667_v8  ;;  %v4204_v0 = vld [vmem:[#allocation19 + $0x3e0] sm:$0xff]  ;;  %v4213_v8 = vld [vmem:[#allocation19 + $0x428] sm:$0xff] }
 0x811   :  { %v9557_v34 = vpack.c.bf16 %v4204_v0, %v4196_v42  ;;  %v4262_v42 = vld [vmem:[#allocation19 + $0x5b0] sm:$0xff]  ;;  %v9699_v0 = vpack.c.bf16 %v4271_v35, %v4263_v36 }
 0x812   :  { %9542 = vmatpush1.bf16.msra.mxu0 %v9541_v46  ;;  %v9559_v46 = vpack.c.bf16 %v4221_v1, %v4213_v8  ;;  %v4279_v8 = vld [vmem:[#allocation19 + $0x638] sm:$0xff]  ;;  %v9701_v26 = vpack.c.bf16 %v4270_v25, %v4262_v42  ;;  %v4334_v42 = vld [vmem:[#allocation19 + $0x7f0] sm:$0xff]  ;;  %v4349_v25 = vld [vmem:[#allocation19 + $0x868] sm:$0xff] }
 0x813   :  { %9670 = vmatpush1.bf16.msra.mxu1 %v9669_v61  ;;  %9544 = vmatprep.subr.bf16.mxu0 %v9543_v49  ;;  %v4212_v61 = vld [vmem:[#allocation19 + $0x420] sm:$0xff]  ;;  %v4287_v1 = vld [vmem:[#allocation19 + $0x678] sm:$0xff] }
 0x814   :  { %9672 = vmatprep.subr.bf16.mxu1 %v9671_v63  ;;  %v4220_v49 = vld [vmem:[#allocation19 + $0x460] sm:$0xff]  ;;  %v4229_v63 = vld [vmem:[#allocation19 + $0x4a8] sm:$0xff] }
 0x815   :  { %v9561_v45 = vpack.c.bf16 %v4220_v49, %v4212_v61  ;;  %v4278_v61 = vld [vmem:[#allocation19 + $0x630] sm:$0xff]  ;;  %v9703_v49 = vpack.c.bf16 %v4287_v1, %v4279_v8 }
 0x816   :  { %9546 = vmatpush1.bf16.msra.mxu0 %v9545_v6  ;;  %v9563_v6 = vpack.c.bf16 %v4237_v5, %v4229_v63  ;;  %v4295_v63 = vld [vmem:[#allocation19 + $0x6b8] sm:$0xff]  ;;  %v9705_v4 = vpack.c.bf16 %v4286_v60, %v4278_v61  ;;  %v4350_v61 = vld [vmem:[#allocation19 + $0x870] sm:$0xff]  ;;  %v4365_v60 = vld [vmem:[#allocation19 + $0x8e8] sm:$0xff] }
 0x817   :  { %9674 = vmatpush1.bf16.msra.mxu1 %v9673_v7  ;;  %9548 = vmatprep.subr.bf16.mxu0 %v9547_v18  ;;  %v4228_v7 = vld [vmem:[#allocation19 + $0x4a0] sm:$0xff]  ;;  %v4303_v5 = vld [vmem:[#allocation19 + $0x6f8] sm:$0xff] }
 0x818   :  { %9676 = vmatprep.subr.bf16.mxu1 %v9675_v14  ;;  %v4236_v18 = vld [vmem:[#allocation19 + $0x4e0] sm:$0xff]  ;;  %v4245_v14 = vld [vmem:[#allocation19 + $0x528] sm:$0xff] }
 0x819   :  { %v9565_v17 = vpack.c.bf16 %v4236_v18, %v4228_v7  ;;  %v4294_v7 = vld [vmem:[#allocation19 + $0x6b0] sm:$0xff]  ;;  %v9707_v18 = vpack.c.bf16 %v4303_v5, %v4295_v63 }
 0x81a   :  { %9550 = vmatpush1.bf16.msra.mxu0 %v9549_v56  ;;  %v9567_v56 = vpack.c.bf16 %v4253_v13, %v4245_v14  ;;  %v4311_v14 = vld [vmem:[#allocation19 + $0x738] sm:$0xff]  ;;  %v9709_v11 = vpack.c.bf16 %v4302_v52, %v4294_v7  ;;  %v4366_v7 = vld [vmem:[#allocation19 + $0x8f0] sm:$0xff]  ;;  %v4381_v52 = vld [vmem:[#allocation19 + $0x968] sm:$0xff] }
 0x81b   :  { %9678 = vmatpush1.bf16.msra.mxu1 %v9677_v29  ;;  %9552 = vmatprep.subr.bf16.mxu0 %v9551_v19  ;;  %v4244_v29 = vld [vmem:[#allocation19 + $0x520] sm:$0xff]  ;;  %v4319_v13 = vld [vmem:[#allocation19 + $0x778] sm:$0xff] }
 0x81c   :  { %9680 = vmatprep.subr.bf16.mxu1 %v9679_v9  ;;  %v4252_v19 = vld [vmem:[#allocation19 + $0x560] sm:$0xff]  ;;  %v4261_v9 = vld [vmem:[#allocation19 + $0x5a8] sm:$0xff] }
 0x81d   :  { %v9569_v16 = vpack.c.bf16 %v4252_v19, %v4244_v29  ;;  %v4310_v29 = vld [vmem:[#allocation19 + $0x730] sm:$0xff]  ;;  %v9711_v19 = vpack.c.bf16 %v4319_v13, %v4311_v14 }
 0x81e   :  { %9554 = vmatpush1.bf16.msra.mxu0 %v9553_v33  ;;  %v9571_v33 = vpack.c.bf16 %v4269_v38, %v4261_v9  ;;  %v4327_v9 = vld [vmem:[#allocation19 + $0x7b8] sm:$0xff]  ;;  %v9713_v35 = vpack.c.bf16 %v4318_v30, %v4310_v29  ;;  %v4382_v29 = vld [vmem:[#allocation19 + $0x970] sm:$0xff]  ;;  %v4397_v30 = vld [vmem:[#allocation19 + $0x9e8] sm:$0xff] }
 0x81f   :  { %9682 = vmatpush1.bf16.msra.mxu1 %v9681_v51  ;;  %9556 = vmatprep.subr.bf16.mxu0 %v9555_v57  ;;  %v4260_v51 = vld [vmem:[#allocation19 + $0x5a0] sm:$0xff]  ;;  %v4335_v38 = vld [vmem:[#allocation19 + $0x7f8] sm:$0xff] }
 0x820   :  { %9684 = vmatprep.subr.bf16.mxu1 %v9683_v62  ;;  %v4268_v57 = vld [vmem:[#allocation19 + $0x5e0] sm:$0xff]  ;;  %v4277_v62 = vld [vmem:[#allocation19 + $0x628] sm:$0xff] }
 0x821   :  { %v9573_v37 = vpack.c.bf16 %v4268_v57, %v4260_v51  ;;  %v4326_v51 = vld [vmem:[#allocation19 + $0x7b0] sm:$0xff]  ;;  %v9715_v57 = vpack.c.bf16 %v4335_v38, %v4327_v9 }
 0x822   :  { %9558 = vmatpush1.bf16.msra.mxu0 %v9557_v34  ;;  %v9575_v34 = vpack.c.bf16 %v4285_v50, %v4277_v62  ;;  %v4343_v62 = vld [vmem:[#allocation19 + $0x838] sm:$0xff]  ;;  %v9717_v1 = vpack.c.bf16 %v4334_v42, %v4326_v51  ;;  %v4405_v51 = vld [vmem:[#allocation19 + $0xa28] sm:$0xff] }
 0x823   :  { %9686 = vmatpush1.bf16.msra.mxu1 %v9685_v39  ;;  %9560 = vmatprep.subr.bf16.mxu0 %v9559_v46  ;;  %v4276_v39 = vld [vmem:[#allocation19 + $0x620] sm:$0xff]  ;;  %v4351_v50 = vld [vmem:[#allocation19 + $0x878] sm:$0xff] }
 0x824   :  { %9688 = vmatprep.subr.bf16.mxu1 %v9687_v59  ;;  %v4284_v46 = vld [vmem:[#allocation19 + $0x660] sm:$0xff]  ;;  %v4293_v59 = vld [vmem:[#allocation19 + $0x6a8] sm:$0xff]  ;;  %v4415_v42 = vld [vmem:[#allocation19 + $0xa78] sm:$0xff] }
 0x825   :  { %v9577_v20 = vpack.c.bf16 %v4284_v46, %v4276_v39  ;;  %v4348_v39 = vld [vmem:[#allocation19 + $0x860] sm:$0xff]  ;;  %v4342_v46 = vld [vmem:[#allocation19 + $0x830] sm:$0xff] }
 0x826   :  { %9562 = vmatpush1.bf16.msra.mxu0 %v9561_v45  ;;  %v9579_v45 = vpack.c.bf16 %v4301_v55, %v4293_v59  ;;  %v4359_v59 = vld [vmem:[#allocation19 + $0x8b8] sm:$0xff]  ;;  %v9721_v5 = vpack.c.bf16 %v4350_v61, %v4342_v46 }
 0x827   :  { %9690 = vmatpush1.bf16.msra.mxu1 %v9689_v2  ;;  %9564 = vmatprep.subr.bf16.mxu0 %v9563_v6  ;;  %v4292_v2 = vld [vmem:[#allocation19 + $0x6a0] sm:$0xff]  ;;  %v4367_v55 = vld [vmem:[#allocation19 + $0x8f8] sm:$0xff] }
 0x828   :  { %9692 = vmatprep.subr.bf16.mxu1 %v9691_v48  ;;  %v4300_v6 = vld [vmem:[#allocation19 + $0x6e0] sm:$0xff]  ;;  %v4309_v48 = vld [vmem:[#allocation19 + $0x728] sm:$0xff]  ;;  %v4423_v46 = vld [vmem:[#allocation19 + $0xab8] sm:$0xff] }
 0x829   :  { %v9581_v31 = vpack.c.bf16 %v4300_v6, %v4292_v2  ;;  %v4358_v2 = vld [vmem:[#allocation19 + $0x8b0] sm:$0xff]  ;;  %v9723_v6 = vpack.c.bf16 %v4367_v55, %v4359_v59  ;;  %v4431_v61 = vld [vmem:[#allocation19 + $0xaf8] sm:$0xff]  ;;  %v4420_v55 = vld [vmem:[#allocation19 + $0xaa0] sm:$0xff] }
 0x82a   :  { %9566 = vmatpush1.bf16.msra.mxu0 %v9565_v17  ;;  %v9583_v17 = vpack.c.bf16 %v4317_v53, %v4309_v48  ;;  %v4375_v48 = vld [vmem:[#allocation19 + $0x938] sm:$0xff]  ;;  %v9725_v13 = vpack.c.bf16 %v4366_v7, %v4358_v2  ;;  %v4445_v2 = vld [vmem:[#allocation19 + $0xb68] sm:$0xff] }
 0x82b   :  { %9694 = vmatpush1.bf16.msra.mxu1 %v9693_v3  ;;  %9568 = vmatprep.subr.bf16.mxu0 %v9567_v56  ;;  %v4308_v3 = vld [vmem:[#allocation19 + $0x720] sm:$0xff]  ;;  %v4383_v53 = vld [vmem:[#allocation19 + $0x978] sm:$0xff] }
 0x82c   :  { %9696 = vmatprep.subr.bf16.mxu1 %v9695_v54  ;;  %v4316_v56 = vld [vmem:[#allocation19 + $0x760] sm:$0xff]  ;;  %v4325_v54 = vld [vmem:[#allocation19 + $0x7a8] sm:$0xff]  ;;  %v4447_v7 = vld [vmem:[#allocation19 + $0xb78] sm:$0xff] }
 0x82d   :  { %v9585_v36 = vpack.c.bf16 %v4316_v56, %v4308_v3  ;;  %v4374_v3 = vld [vmem:[#allocation19 + $0x930] sm:$0xff]  ;;  %v9727_v56 = vpack.c.bf16 %v4383_v53, %v4375_v48  ;;  %v4436_v53 = vld [vmem:[#allocation19 + $0xb20] sm:$0xff] }
 0x82e   :  { %9570 = vmatpush1.bf16.msra.mxu0 %v9569_v16  ;;  %v9587_v16 = vpack.c.bf16 %v4333_v32, %v4325_v54  ;;  %v4391_v54 = vld [vmem:[#allocation19 + $0x9b8] sm:$0xff]  ;;  %v9729_v9 = vpack.c.bf16 %v4382_v29, %v4374_v3  ;;  %v4461_v3 = vld [vmem:[#allocation19 + $0xbe8] sm:$0xff] }
 0x82f   :  { %9698 = vmatpush1.bf16.msra.mxu1 %v9697_v24  ;;  %9572 = vmatprep.subr.bf16.mxu0 %v9571_v33  ;;  %v4324_v24 = vld [vmem:[#allocation19 + $0x7a0] sm:$0xff]  ;;  %v4399_v32 = vld [vmem:[#allocation19 + $0x9f8] sm:$0xff] }
 0x830   :  { %9700 = vmatprep.subr.bf16.mxu1 %v9699_v0  ;;  %v4332_v33 = vld [vmem:[#allocation19 + $0x7e0] sm:$0xff]  ;;  %v4341_v0 = vld [vmem:[#allocation19 + $0x828] sm:$0xff]  ;;  %v4463_v29 = vld [vmem:[#allocation19 + $0xbf8] sm:$0xff] }
 0x831   :  { %v9589_v8 = vpack.c.bf16 %v4332_v33, %v4324_v24  ;;  %v9731_v24 = vpack.c.bf16 %v4399_v32, %v4391_v54  ;;  %v4398_v33 = vld [vmem:[#allocation19 + $0x9f0] sm:$0xff]  ;;  %v4452_v32 = vld [vmem:[#allocation19 + $0xba0] sm:$0xff] }
 0x832   :  { %9574 = vmatpush1.bf16.msra.mxu0 %v9573_v37  ;;  %v9591_v37 = vpack.c.bf16 %v4349_v25, %v4341_v0 }
 0x833   :  { %9702 = vmatpush1.bf16.msra.mxu1 %v9701_v26  ;;  %9576 = vmatprep.subr.bf16.mxu0 %v9575_v34  ;;  %v9719_v26 = vpack.c.bf16 %v4351_v50, %v4343_v62  ;;  %v4340_v34 = vld [vmem:[#allocation19 + $0x820] sm:$0xff] }
 0x834   :  { %9704 = vmatprep.subr.bf16.mxu1 %v9703_v49  ;;  %v4357_v49 = vld [vmem:[#allocation19 + $0x8a8] sm:$0xff]  ;;  %v9593_v63 = vpack.c.bf16 %v4348_v39, %v4340_v34  ;;  %v4404_v50 = vld [vmem:[#allocation19 + $0xa20] sm:$0xff] }
 0x835   :  { %v4421_v34 = vld [vmem:[#allocation19 + $0xaa8] sm:$0xff] }
 0x836   :  { %9578 = vmatpush1.bf16.msra.mxu0 %v9577_v20  ;;  %v9595_v20 = vpack.c.bf16 %v4365_v60, %v4357_v49  ;;  %v4429_v39 = vld [vmem:[#allocation19 + $0xae8] sm:$0xff] }
 0x837   :  { %9706 = vmatpush1.bf16.msra.mxu1 %v9705_v4  ;;  %9580 = vmatprep.subr.bf16.mxu0 %v9579_v45  ;;  %v4356_v4 = vld [vmem:[#allocation19 + $0x8a0] sm:$0xff]  ;;  %v9611_v59 = vpack.c.bf16 %v4429_v39, %v4421_v34 }
 0x838   :  { %9708 = vmatprep.subr.bf16.mxu1 %v9707_v18  ;;  %v4364_v45 = vld [vmem:[#allocation19 + $0x8e0] sm:$0xff]  ;;  %v4373_v18 = vld [vmem:[#allocation19 + $0x928] sm:$0xff] }
 0x839   :  { %v9597_v14 = vpack.c.bf16 %v4364_v45, %v4356_v4  ;;  %v4430_v4 = vld [vmem:[#allocation19 + $0xaf0] sm:$0xff]  ;;  %v4437_v45 = vld [vmem:[#allocation19 + $0xb28] sm:$0xff] }
 0x83a   :  { %9582 = vmatpush1.bf16.msra.mxu0 %v9581_v31  ;;  %v9599_v31 = vpack.c.bf16 %v4381_v52, %v4373_v18  ;;  %v9615_v48 = vpack.c.bf16 %v4445_v2, %v4437_v45 }
 0x83b   :  { %9710 = vmatpush1.bf16.msra.mxu1 %v9709_v11  ;;  %9584 = vmatprep.subr.bf16.mxu0 %v9583_v17  ;;  %v4372_v11 = vld [vmem:[#allocation19 + $0x920] sm:$0xff] }
 0x83c   :  { %9712 = vmatprep.subr.bf16.mxu1 %v9711_v19  ;;  %v4380_v17 = vld [vmem:[#allocation19 + $0x960] sm:$0xff]  ;;  %v4389_v19 = vld [vmem:[#allocation19 + $0x9a8] sm:$0xff] }
 0x83d   :  { %v9603_v38 = vpack.c.bf16 %v4397_v30, %v4389_v19 }
 0x83e   :  { %9586 = vmatpush1.bf16.msra.mxu0 %v9585_v36  ;;  %v4388_v36 = vld [vmem:[#allocation19 + $0x9a0] sm:$0xff] }
 0x83f   :  { %9714 = vmatpush1.bf16.msra.mxu1 %v9713_v35  ;;  %9588 = vmatprep.subr.bf16.mxu0 %v9587_v16  ;;  %v4396_v35 = vld [vmem:[#allocation19 + $0x9e0] sm:$0xff]  ;;  %v4390_v16 = vld [vmem:[#allocation19 + $0x9b0] sm:$0xff] }
 0x840   :  { %9716 = vmatprep.subr.bf16.mxu1 %v9715_v57  ;;  %v4407_v57 = vld [vmem:[#allocation19 + $0xa38] sm:$0xff]  ;;  %v9605_v0 = vpack.c.bf16 %v4396_v35, %v4388_v36  ;;  %v9733_v25 = vpack.c.bf16 %v4398_v33, %v4390_v16  ;;  %v4462_v36 = vld [vmem:[#allocation19 + $0xbf0] sm:$0xff]  ;;  %v4469_v35 = vld [vmem:[#allocation19 + $0xc28] sm:$0xff] }
 0x841   :  { %v4477_v16 = vld [vmem:[#allocation19 + $0xc68] sm:$0xff]  ;;  %v4479_v33 = vld [vmem:[#allocation19 + $0xc78] sm:$0xff] }
 0x842   :  { %9590 = vmatpush1.bf16.msra.mxu0 %v9589_v8  ;;  %v4412_v8 = vld [vmem:[#allocation19 + $0xa60] sm:$0xff] }
 0x843   :  { %9718 = vmatpush1.bf16.msra.mxu1 %v9717_v1  ;;  %9592 = vmatprep.subr.bf16.mxu0 %v9591_v37  ;;  %v4406_v1 = vld [vmem:[#allocation19 + $0xa30] sm:$0xff]  ;;  %v9735_v37 = vpack.c.bf16 %v4415_v42, %v4407_v57  ;;  %v9609_v49 = vpack.c.bf16 %v4412_v8, %v4404_v50  ;;  %v9623_v57 = vpack.c.bf16 %v4477_v16, %v4469_v35  ;;  %v4468_v42 = vld [vmem:[#allocation19 + $0xc20] sm:$0xff]  ;;  %v4485_v8 = vld [vmem:[#allocation19 + $0xca8] sm:$0xff] }
 0x844   :  { %9720 = vmatprep.subr.bf16.mxu1 %v9719_v26  ;;  %v4414_v26 = vld [vmem:[#allocation19 + $0xa70] sm:$0xff] }
 0x845   :  { %6094 = vmatmul.mubr.f32.vlgmr.msra.gmra.mrb[44].mxu0 %v10889_v10  ;;  %v9737_v60 = vpack.c.bf16 %v4414_v26, %v4406_v1  ;;  %v4478_v50 = vld [vmem:[#allocation19 + $0xc70] sm:$0xff]  ;;  %v4493_v1 = vld [vmem:[#allocation19 + $0xce8] sm:$0xff]  ;;  %v4495_v26 = vld [vmem:[#allocation19 + $0xcf8] sm:$0xff] }
 0x846   :  { %6248 = vmatmul.mubr.f32.vlgmr.msra.gmra.mrb[44].mxu1 %v10889_v10  ;;  %6099 = vmatprep.mubr.f32.mxu0 %v12185_v47 }
 0x847   :  { %9594 = vmatpush1.bf16.msra.mxu0 %v9593_v63  ;;  %6253 = vmatprep.mubr.f32.mxu1 %v12185_v47  ;;  %v9601_v47 = vpack.c.bf16 %v4380_v17, %v4372_v11  ;;  %v4428_v63 = vld [vmem:[#allocation19 + $0xae0] sm:$0xff]  ;;  %v4446_v11 = vld [vmem:[#allocation19 + $0xb70] sm:$0xff]  ;;  %v4453_v17 = vld [vmem:[#allocation19 + $0xba8] sm:$0xff] }
 0x848   :  { %9722 = vmatpush1.bf16.msra.mxu1 %v9721_v5  ;;  %9596 = vmatprep.subr.bf16.mxu0 %v9595_v20  ;;  %v4422_v5 = vld [vmem:[#allocation19 + $0xab0] sm:$0xff]  ;;  %v9739_v20 = vpack.c.bf16 %v4431_v61, %v4423_v46  ;;  %v9613_v18 = vpack.c.bf16 %v4428_v63, %v4420_v55  ;;  %v9619_v54 = vpack.c.bf16 %v4461_v3, %v4453_v17  ;;  %v4484_v61 = vld [vmem:[#allocation19 + $0xca0] sm:$0xff]  ;;  %v4501_v63 = vld [vmem:[#allocation19 + $0xd28] sm:$0xff] }
 0x849   :  { %6100 = vmatmul.mubr.f32.gmra.mrb[46].mxu0 %v12180_v23  ;;  %9724 = vmatprep.subr.bf16.mxu1 %v9723_v6  ;;  %v4439_v6 = vld [vmem:[#allocation19 + $0xb38] sm:$0xff]  ;;  %v9741_v52 = vpack.c.bf16 %v4430_v4, %v4422_v5  ;;  %v9627_v46 = vpack.c.bf16 %v4493_v1, %v4485_v8  ;;  %v4494_v55 = vld [vmem:[#allocation19 + $0xcf0] sm:$0xff]  ;;  %v4509_v5 = vld [vmem:[#allocation19 + $0xd68] sm:$0xff] }
 0x84a   :  { %6254 = vmatmul.mubr.f32.gmra.mrb[46].mxu1 %v12180_v23  ;;  %6170 = vmatprep.mubr.f32.mxu0 %v10889_v10  ;;  %v4413_v23 = vld [vmem:[#allocation19 + $0xa68] sm:$0xff]  ;;  %v4511_v4 = vld [vmem:[#allocation19 + $0xd78] sm:$0xff] }
 0x84b   :  { %9598 = vmatpush1.bf16.msra.mxu0 %v9597_v14  ;;  %6324 = vmatprep.mubr.f32.mxu1 %v10889_v10  ;;  %v9607_v62 = vpack.c.bf16 %v4413_v23, %v4405_v51  ;;  %v4444_v14 = vld [vmem:[#allocation19 + $0xb60] sm:$0xff] }
 0x84c   :  { %9726 = vmatpush1.bf16.msra.mxu1 %v9725_v13  ;;  %9600 = vmatprep.subr.bf16.mxu0 %v9599_v31  ;;  %v4438_v13 = vld [vmem:[#allocation19 + $0xb30] sm:$0xff]  ;;  %v9743_v31 = vpack.c.bf16 %v4447_v7, %v4439_v6  ;;  %v9617_v19 = vpack.c.bf16 %v4444_v14, %v4436_v53  ;;  %v9631_v6 = vpack.c.bf16 %v4509_v5, %v4501_v63  ;;  %v4500_v7 = vld [vmem:[#allocation19 + $0xd20] sm:$0xff]  ;;  %v4517_v14 = vld [vmem:[#allocation19 + $0xda8] sm:$0xff] }
 0x84d   :  { %9728 = vmatprep.subr.bf16.mxu1 %v9727_v56  ;;  %v4455_v56 = vld [vmem:[#allocation19 + $0xbb8] sm:$0xff]  ;;  %v9745_v30 = vpack.c.bf16 %v4446_v11, %v4438_v13  ;;  %v4510_v53 = vld [vmem:[#allocation19 + $0xd70] sm:$0xff]  ;;  %v4525_v13 = vld [vmem:[#allocation19 + $0xde8] sm:$0xff] }
 0x84e   :  { %v4527_v11 = vld [vmem:[#allocation19 + $0xdf8] sm:$0xff] }
 0x84f   :  { %9602 = vmatpush1.bf16.msra.mxu0 %v9601_v47  ;;  %v4460_v47 = vld [vmem:[#allocation19 + $0xbe0] sm:$0xff] }
 0x850   :  { %9730 = vmatpush1.bf16.msra.mxu1 %v9729_v9  ;;  %9604 = vmatprep.subr.bf16.mxu0 %v9603_v38  ;;  %v4454_v9 = vld [vmem:[#allocation19 + $0xbb0] sm:$0xff]  ;;  %v9747_v38 = vpack.c.bf16 %v4463_v29, %v4455_v56  ;;  %v9621_v51 = vpack.c.bf16 %v4460_v47, %v4452_v32  ;;  %v9635_v56 = vpack.c.bf16 %v4525_v13, %v4517_v14  ;;  %v4516_v29 = vld [vmem:[#allocation19 + $0xda0] sm:$0xff]  ;;  %v4533_v47 = vld [vmem:[#allocation19 + $0xe28] sm:$0xff] }
 0x851   :  { %9732 = vmatprep.subr.bf16.mxu1 %v9731_v24  ;;  %v4471_v24 = vld [vmem:[#allocation19 + $0xc38] sm:$0xff]  ;;  %v9749_v23 = vpack.c.bf16 %v4462_v36, %v4454_v9  ;;  %v4526_v32 = vld [vmem:[#allocation19 + $0xdf0] sm:$0xff]  ;;  %v4541_v9 = vld [vmem:[#allocation19 + $0xe68] sm:$0xff] }
 0x852   :  { %v4543_v36 = vld [vmem:[#allocation19 + $0xe78] sm:$0xff] }
 0x853   :  { %9606 = vmatpush1.bf16.msra.mxu0 %v9605_v0  ;;  %v4476_v0 = vld [vmem:[#allocation19 + $0xc60] sm:$0xff] }
 0x854   :  { %9734 = vmatpush1.bf16.msra.mxu1 %v9733_v25  ;;  %9608 = vmatprep.subr.bf16.mxu0 %v9607_v62  ;;  %v4470_v25 = vld [vmem:[#allocation19 + $0xc30] sm:$0xff]  ;;  %v9751_v62 = vpack.c.bf16 %v4479_v33, %v4471_v24  ;;  %v9625_v34 = vpack.c.bf16 %v4476_v0, %v4468_v42  ;;  %v9639_v24 = vpack.c.bf16 %v4541_v9, %v4533_v47  ;;  %v4532_v33 = vld [vmem:[#allocation19 + $0xe20] sm:$0xff]  ;;  %v4549_v0 = vld [vmem:[#allocation19 + $0xea8] sm:$0xff] }
 0x855   :  { %9736 = vmatprep.subr.bf16.mxu1 %v9735_v37  ;;  %v4487_v37 = vld [vmem:[#allocation19 + $0xcb8] sm:$0xff]  ;;  %v9753_v39 = vpack.c.bf16 %v4478_v50, %v4470_v25  ;;  %v4542_v42 = vld [vmem:[#allocation19 + $0xe70] sm:$0xff]  ;;  %v4557_v25 = vld [vmem:[#allocation19 + $0xee8] sm:$0xff] }
 0x856   :  { %v4559_v50 = vld [vmem:[#allocation19 + $0xef8] sm:$0xff] }
 0x857   :  { %9610 = vmatpush1.bf16.msra.mxu0 %v9609_v49  ;;  %v4492_v49 = vld [vmem:[#allocation19 + $0xce0] sm:$0xff] }
 0x858   :  { %9738 = vmatpush1.bf16.msra.mxu1 %v9737_v60  ;;  %9612 = vmatprep.subr.bf16.mxu0 %v9611_v59  ;;  %v4486_v60 = vld [vmem:[#allocation19 + $0xcb0] sm:$0xff]  ;;  %v9755_v59 = vpack.c.bf16 %v4495_v26, %v4487_v37  ;;  %v9629_v45 = vpack.c.bf16 %v4492_v49, %v4484_v61  ;;  %v9643_v37 = vpack.c.bf16 %v4557_v25, %v4549_v0  ;;  %v4548_v26 = vld [vmem:[#allocation19 + $0xea0] sm:$0xff]  ;;  %v4565_v49 = vld [vmem:[#allocation19 + $0xf28] sm:$0xff] }
 0x859   :  { %9740 = vmatprep.subr.bf16.mxu1 %v9739_v20  ;;  %v4503_v20 = vld [vmem:[#allocation19 + $0xd38] sm:$0xff]  ;;  %v9757_v2 = vpack.c.bf16 %v4494_v55, %v4486_v60  ;;  %v4558_v61 = vld [vmem:[#allocation19 + $0xef0] sm:$0xff]  ;;  %v4573_v60 = vld [vmem:[#allocation19 + $0xf68] sm:$0xff] }
 0x85a   :  { %v4575_v55 = vld [vmem:[#allocation19 + $0xf78] sm:$0xff] }
 0x85b   :  { %9614 = vmatpush1.bf16.msra.mxu0 %v9613_v18  ;;  %v4508_v18 = vld [vmem:[#allocation19 + $0xd60] sm:$0xff] }
 0x85c   :  { %9742 = vmatpush1.bf16.msra.mxu1 %v9741_v52  ;;  %9616 = vmatprep.subr.bf16.mxu0 %v9615_v48  ;;  %v4502_v52 = vld [vmem:[#allocation19 + $0xd30] sm:$0xff]  ;;  %v9759_v48 = vpack.c.bf16 %v4511_v4, %v4503_v20  ;;  %v9633_v17 = vpack.c.bf16 %v4508_v18, %v4500_v7  ;;  %v9647_v20 = vpack.c.bf16 %v4573_v60, %v4565_v49  ;;  %v4564_v4 = vld [vmem:[#allocation19 + $0xf20] sm:$0xff]  ;;  %v4581_v18 = vld [vmem:[#allocation19 + $0xfa8] sm:$0xff] }
 0x85d   :  { %9744 = vmatprep.subr.bf16.mxu1 %v9743_v31  ;;  %v4519_v31 = vld [vmem:[#allocation19 + $0xdb8] sm:$0xff]  ;;  %v9761_v3 = vpack.c.bf16 %v4510_v53, %v4502_v52  ;;  %v4574_v7 = vld [vmem:[#allocation19 + $0xf70] sm:$0xff]  ;;  %v4589_v52 = vld [vmem:[#allocation19 + $0xfe8] sm:$0xff] }
 0x85e   :  { %v4591_v53 = vld [vmem:[#allocation19 + $0xff8] sm:$0xff] }
 0x85f   :  { %9618 = vmatpush1.bf16.msra.mxu0 %v9617_v19  ;;  %v4524_v19 = vld [vmem:[#allocation19 + $0xde0] sm:$0xff] }
 0x860   :  { %9746 = vmatpush1.bf16.msra.mxu1 %v9745_v30  ;;  %9620 = vmatprep.subr.bf16.mxu0 %v9619_v54  ;;  %v4518_v30 = vld [vmem:[#allocation19 + $0xdb0] sm:$0xff]  ;;  %v9763_v54 = vpack.c.bf16 %v4527_v11, %v4519_v31  ;;  %v9637_v35 = vpack.c.bf16 %v4524_v19, %v4516_v29  ;;  %v9651_v31 = vpack.c.bf16 %v4589_v52, %v4581_v18  ;;  %v4580_v11 = vld [vmem:[#allocation19 + $0xfa0] sm:$0xff]  ;;  %v6339_v19 = vld [vmem:[#allocation19 + $0x2008] sm:$0xff] }
 0x861   :  { %9748 = vmatprep.subr.bf16.mxu1 %v9747_v38  ;;  %v4535_v38 = vld [vmem:[#allocation19 + $0xe38] sm:$0xff]  ;;  %v9765_v16 = vpack.c.bf16 %v4526_v32, %v4518_v30  ;;  %v4590_v29 = vld [vmem:[#allocation19 + $0xff0] sm:$0xff]  ;;  %v6347_v30 = vld [vmem:[#allocation19 + $0x2048] sm:$0xff] }
 0x862   :  { %v6349_v32 = vld [vmem:[#allocation19 + $0x2058] sm:$0xff] }
 0x863   :  { %9622 = vmatpush1.bf16.msra.mxu0 %v9621_v51  ;;  %v4540_v51 = vld [vmem:[#allocation19 + $0xe60] sm:$0xff] }
 0x864   :  { %9750 = vmatpush1.bf16.msra.mxu1 %v9749_v23  ;;  %9624 = vmatprep.subr.bf16.mxu0 %v9623_v57  ;;  %v4534_v23 = vld [vmem:[#allocation19 + $0xe30] sm:$0xff]  ;;  %v9767_v57 = vpack.c.bf16 %v4543_v36, %v4535_v38  ;;  %v9641_v8 = vpack.c.bf16 %v4540_v51, %v4532_v33  ;;  %v9783_v38 = vpack.c.bf16 %v6347_v30, %v6339_v19  ;;  %v6355_v51 = vld [vmem:[#allocation19 + $0x2088] sm:$0xff]  ;;  %v6402_v30 = vld [vmem:[#allocation19 + $0x2200] sm:$0xff] }
 0x865   :  { %9752 = vmatprep.subr.bf16.mxu1 %v9751_v62  ;;  %v4551_v62 = vld [vmem:[#allocation19 + $0xeb8] sm:$0xff]  ;;  %v9769_v1 = vpack.c.bf16 %v4542_v42, %v4534_v23  ;;  %v6348_v33 = vld [vmem:[#allocation19 + $0x2050] sm:$0xff]  ;;  %v6363_v23 = vld [vmem:[#allocation19 + $0x20c8] sm:$0xff] }
 0x866   :  { %v6365_v42 = vld [vmem:[#allocation19 + $0x20d8] sm:$0xff] }
 0x867   :  { %9626 = vmatpush1.bf16.msra.mxu0 %v9625_v34  ;;  %v4556_v34 = vld [vmem:[#allocation19 + $0xee0] sm:$0xff] }
 0x868   :  { %9754 = vmatpush1.bf16.msra.mxu1 %v9753_v39  ;;  %9628 = vmatprep.subr.bf16.mxu0 %v9627_v46  ;;  %v4550_v39 = vld [vmem:[#allocation19 + $0xeb0] sm:$0xff]  ;;  %v9771_v46 = vpack.c.bf16 %v4559_v50, %v4551_v62  ;;  %v9645_v63 = vpack.c.bf16 %v4556_v34, %v4548_v26  ;;  %v9787_v62 = vpack.c.bf16 %v6363_v23, %v6355_v51  ;;  %v6354_v50 = vld [vmem:[#allocation19 + $0x2080] sm:$0xff]  ;;  %v6371_v34 = vld [vmem:[#allocation19 + $0x2108] sm:$0xff] }
 0x869   :  { %9756 = vmatprep.subr.bf16.mxu1 %v9755_v59  ;;  %v4567_v59 = vld [vmem:[#allocation19 + $0xf38] sm:$0xff]  ;;  %v9773_v5 = vpack.c.bf16 %v4558_v61, %v4550_v39  ;;  %v6364_v26 = vld [vmem:[#allocation19 + $0x20d0] sm:$0xff]  ;;  %v6379_v39 = vld [vmem:[#allocation19 + $0x2148] sm:$0xff] }
 0x86a   :  { %v6381_v61 = vld [vmem:[#allocation19 + $0x2158] sm:$0xff]  ;;  %v6418_v23 = vld [vmem:[#allocation19 + $0x2280] sm:$0xff] }
 0x86b   :  { %9630 = vmatpush1.bf16.msra.mxu0 %v9629_v45  ;;  %v4572_v45 = vld [vmem:[#allocation19 + $0xf60] sm:$0xff] }
 0x86c   :  { %9758 = vmatpush1.bf16.msra.mxu1 %v9757_v2  ;;  %9632 = vmatprep.subr.bf16.mxu0 %v9631_v6  ;;  %v4566_v2 = vld [vmem:[#allocation19 + $0xf30] sm:$0xff]  ;;  %v9775_v6 = vpack.c.bf16 %v4575_v55, %v4567_v59  ;;  %v9649_v14 = vpack.c.bf16 %v4572_v45, %v4564_v4  ;;  %v9791_v59 = vpack.c.bf16 %v6379_v39, %v6371_v34  ;;  %v6370_v55 = vld [vmem:[#allocation19 + $0x2100] sm:$0xff]  ;;  %v6387_v45 = vld [vmem:[#allocation19 + $0x2188] sm:$0xff] }
 0x86d   :  { %9760 = vmatprep.subr.bf16.mxu1 %v9759_v48  ;;  %v4583_v48 = vld [vmem:[#allocation19 + $0xfb8] sm:$0xff]  ;;  %v9777_v13 = vpack.c.bf16 %v4574_v7, %v4566_v2  ;;  %v6380_v4 = vld [vmem:[#allocation19 + $0x2150] sm:$0xff]  ;;  %v6395_v2 = vld [vmem:[#allocation19 + $0x21c8] sm:$0xff] }
 0x86e   :  { %v9795_v52 = vpack.c.bf16 %v6395_v2, %v6387_v45  ;;  %v6434_v39 = vld [vmem:[#allocation19 + $0x2300] sm:$0xff] }
 0x86f   :  { %9634 = vmatpush1.bf16.msra.mxu0 %v9633_v17  ;;  %v4588_v17 = vld [vmem:[#allocation19 + $0xfe0] sm:$0xff] }
 0x870   :  { %9762 = vmatpush1.bf16.msra.mxu1 %v9761_v3  ;;  %9636 = vmatprep.subr.bf16.mxu0 %v9635_v56  ;;  %v4582_v3 = vld [vmem:[#allocation19 + $0xfb0] sm:$0xff]  ;;  %v9779_v56 = vpack.c.bf16 %v4591_v53, %v4583_v48  ;;  %v9653_v47 = vpack.c.bf16 %v4588_v17, %v4580_v11  ;;  %v6386_v48 = vld [vmem:[#allocation19 + $0x2180] sm:$0xff]  ;;  %v6403_v11 = vld [vmem:[#allocation19 + $0x2208] sm:$0xff] }
 0x871   :  { %9764 = vmatprep.subr.bf16.mxu1 %v9763_v54  ;;  %v6341_v54 = vld [vmem:[#allocation19 + $0x2018] sm:$0xff]  ;;  %v9781_v9 = vpack.c.bf16 %v4590_v29, %v4582_v3  ;;  %v6394_v53 = vld [vmem:[#allocation19 + $0x21c0] sm:$0xff] }
 0x872   :  { %v9911_v36 = vpack.c.bf16 %v6349_v32, %v6341_v54  ;;  %v6405_v17 = vld [vmem:[#allocation19 + $0x2218] sm:$0xff]  ;;  %v6410_v54 = vld [vmem:[#allocation19 + $0x2240] sm:$0xff]  ;;  %v6404_v32 = vld [vmem:[#allocation19 + $0x2210] sm:$0xff] }
 0x873   :  { %9638 = vmatpush1.bf16.msra.mxu0 %v9637_v35  ;;  %v6338_v35 = vld [vmem:[#allocation19 + $0x2000] sm:$0xff]  ;;  %v6413_v3 = vld [vmem:[#allocation19 + $0x2258] sm:$0xff] }
 0x874   :  { %9766 = vmatpush1.bf16.msra.mxu1 %v9765_v16  ;;  %9640 = vmatprep.subr.bf16.mxu0 %v9639_v24  ;;  %v6346_v16 = vld [vmem:[#allocation19 + $0x2040] sm:$0xff]  ;;  %v6340_v24 = vld [vmem:[#allocation19 + $0x2010] sm:$0xff] }
 0x875   :  { %9768 = vmatprep.subr.bf16.mxu1 %v9767_v57  ;;  %v6357_v57 = vld [vmem:[#allocation19 + $0x2098] sm:$0xff]  ;;  %v9785_v0 = vpack.c.bf16 %v6346_v16, %v6338_v35  ;;  %v9913_v25 = vpack.c.bf16 %v6348_v33, %v6340_v24  ;;  %v9801_v24 = vpack.c.bf16 %v6410_v54, %v6402_v30  ;;  %v6450_v2 = vld [vmem:[#allocation19 + $0x2380] sm:$0xff]  ;;  %v6491_v30 = vld [vmem:[#allocation19 + $0x24c8] sm:$0xff] }
 0x876   :  { %v6421_v35 = vld [vmem:[#allocation19 + $0x2298] sm:$0xff] }
 0x877   :  { %9642 = vmatpush1.bf16.msra.mxu0 %v9641_v8  ;;  %v6362_v8 = vld [vmem:[#allocation19 + $0x20c0] sm:$0xff]  ;;  %v6429_v16 = vld [vmem:[#allocation19 + $0x22d8] sm:$0xff] }
 0x878   :  { %9770 = vmatpush1.bf16.msra.mxu1 %v9769_v1  ;;  %9644 = vmatprep.subr.bf16.mxu0 %v9643_v37  ;;  %v6356_v1 = vld [vmem:[#allocation19 + $0x2090] sm:$0xff]  ;;  %v9915_v37 = vpack.c.bf16 %v6365_v42, %v6357_v57  ;;  %v9789_v49 = vpack.c.bf16 %v6362_v8, %v6354_v50  ;;  %v6426_v57 = vld [vmem:[#allocation19 + $0x22c0] sm:$0xff]  ;;  %v6443_v50 = vld [vmem:[#allocation19 + $0x2348] sm:$0xff] }
 0x879   :  { %9772 = vmatprep.subr.bf16.mxu1 %v9771_v46  ;;  %v6373_v46 = vld [vmem:[#allocation19 + $0x2118] sm:$0xff]  ;;  %v9917_v60 = vpack.c.bf16 %v6364_v26, %v6356_v1  ;;  %v6420_v42 = vld [vmem:[#allocation19 + $0x2290] sm:$0xff] }
 0x87a   :  { %v6437_v8 = vld [vmem:[#allocation19 + $0x2318] sm:$0xff] }
 0x87b   :  { %9646 = vmatpush1.bf16.msra.mxu0 %v9645_v63  ;;  %v6378_v63 = vld [vmem:[#allocation19 + $0x2140] sm:$0xff]  ;;  %v6445_v1 = vld [vmem:[#allocation19 + $0x2358] sm:$0xff] }
 0x87c   :  { %9774 = vmatpush1.bf16.msra.mxu1 %v9773_v5  ;;  %9648 = vmatprep.subr.bf16.mxu0 %v9647_v20  ;;  %v6372_v5 = vld [vmem:[#allocation19 + $0x2110] sm:$0xff]  ;;  %v9919_v20 = vpack.c.bf16 %v6381_v61, %v6373_v46  ;;  %v9793_v7 = vpack.c.bf16 %v6378_v63, %v6370_v55  ;;  %v6442_v46 = vld [vmem:[#allocation19 + $0x2340] sm:$0xff]  ;;  %v6459_v55 = vld [vmem:[#allocation19 + $0x23c8] sm:$0xff] }
 0x87d   :  { %9776 = vmatprep.subr.bf16.mxu1 %v9775_v6  ;;  %v6397_v6 = vld [vmem:[#allocation19 + $0x21d8] sm:$0xff]  ;;  %v9921_v18 = vpack.c.bf16 %v6380_v4, %v6372_v5  ;;  %v6436_v61 = vld [vmem:[#allocation19 + $0x2310] sm:$0xff] }
 0x87e   :  { %v6453_v63 = vld [vmem:[#allocation19 + $0x2398] sm:$0xff] }
 0x87f   :  { %9650 = vmatpush1.bf16.msra.mxu0 %v9649_v14  ;;  %v6388_v14 = vld [vmem:[#allocation19 + $0x2190] sm:$0xff]  ;;  %v6461_v5 = vld [vmem:[#allocation19 + $0x23d8] sm:$0xff] }
 0x880   :  { %9778 = vmatpush1.bf16.msra.mxu1 %v9777_v13  ;;  %9652 = vmatprep.subr.bf16.mxu0 %v9651_v31  ;;  %v6396_v31 = vld [vmem:[#allocation19 + $0x21d0] sm:$0xff]  ;;  %v6485_v54 = vld [vmem:[#allocation19 + $0x2498] sm:$0xff] }
 0x881   :  { %9780 = vmatprep.subr.bf16.mxu1 %v9779_v56  ;;  %v9797_v56 = vpack.c.bf16 %v6394_v53, %v6386_v48  ;;  %v9925_v29 = vpack.c.bf16 %v6396_v31, %v6388_v14  ;;  %v6475_v48 = vld [vmem:[#allocation19 + $0x2448] sm:$0xff]  ;;  %v6469_v53 = vld [vmem:[#allocation19 + $0x2418] sm:$0xff] }
 0x882   :  { %v6477_v14 = vld [vmem:[#allocation19 + $0x2458] sm:$0xff] }
 0x883   :  { %9654 = vmatpush1.bf16.msra.mxu0 %v9653_v47  ;;  %v9927_v47 = vpack.c.bf16 %v6413_v3, %v6405_v17  ;;  %v6474_v17 = vld [vmem:[#allocation19 + $0x2440] sm:$0xff]  ;;  %v6468_v3 = vld [vmem:[#allocation19 + $0x2410] sm:$0xff] }
 0x884   :  { %9782 = vmatpush1.bf16.msra.mxu1 %v9781_v9  ;;  %9784 = vmatprep.subr.bf16.mxu0 %v9783_v38  ;;  %v6412_v9 = vld [vmem:[#allocation19 + $0x2250] sm:$0xff]  ;;  %v6419_v38 = vld [vmem:[#allocation19 + $0x2288] sm:$0xff] }
 0x885   :  { %9912 = vmatprep.subr.bf16.mxu1 %v9911_v36  ;;  %v6427_v36 = vld [vmem:[#allocation19 + $0x22c8] sm:$0xff]  ;;  %v9929_v33 = vpack.c.bf16 %v6412_v9, %v6404_v32  ;;  %v6493_v32 = vld [vmem:[#allocation19 + $0x24d8] sm:$0xff] }
 0x886   :  { %6171 = vmatmul.mubr.f32.vlgmr.msra.gmra.mrb[44].mxu0 %v10889_v10  ;;  %v9803_v51 = vpack.c.bf16 %v6427_v36, %v6419_v38  ;;  %v6482_v36 = vld [vmem:[#allocation19 + $0x2480] sm:$0xff] }
 0x887   :  { %6325 = vmatmul.mubr.f32.vlgmr.msra.gmra.mrb[44].mxu1 %v10889_v10  ;;  %6176 = vmatprep.mubr.f32.mxu0 %v12187_v58 }
 0x888   :  { %6330 = vmatprep.mubr.f32.mxu1 %v12187_v58  ;;  %9786 = vmatpush1.bf16.msra.mxu0 %v9785_v0  ;;  %v6389_v58 = vld [vmem:[#allocation19 + $0x2198] sm:$0xff]  ;;  %v9931_v0 = vpack.c.bf16 %v6429_v16, %v6421_v35  ;;  %v6490_v35 = vld [vmem:[#allocation19 + $0x24c0] sm:$0xff]  ;;  %v6484_v16 = vld [vmem:[#allocation19 + $0x2490] sm:$0xff] }
 0x889   :  { %9914 = vmatpush1.bf16.msra.mxu1 %v9913_v25  ;;  %9788 = vmatprep.subr.bf16.mxu0 %v9787_v62  ;;  %v9923_v13 = vpack.c.bf16 %v6397_v6, %v6389_v58  ;;  %v6428_v25 = vld [vmem:[#allocation19 + $0x22d0] sm:$0xff]  ;;  %v6435_v62 = vld [vmem:[#allocation19 + $0x2308] sm:$0xff]  ;;  %v6458_v58 = vld [vmem:[#allocation19 + $0x23c0] sm:$0xff] }
 0x88a   :  { %6177 = vmatmul.mubr.f32.gmra.mrb[46].mxu0 %v12182_v40  ;;  %9916 = vmatprep.subr.bf16.mxu1 %v9915_v37  ;;  %v9805_v37 = vpack.c.bf16 %v6426_v57, %v6418_v23  ;;  %v9933_v26 = vpack.c.bf16 %v6428_v25, %v6420_v42  ;;  %v9807_v34 = vpack.c.bf16 %v6443_v50, %v6435_v62  ;;  %v6452_v6 = vld [vmem:[#allocation19 + $0x2390] sm:$0xff]  ;;  %v6507_v23 = vld [vmem:[#allocation19 + $0x2548] sm:$0xff]  ;;  %v6501_v57 = vld [vmem:[#allocation19 + $0x2518] sm:$0xff] }
 0x88b   :  { %6331 = vmatmul.mubr.f32.gmra.mrb[46].mxu1 %v12182_v40  ;;  %6914 = vmatprep.mubr.f32.mxu0 %v12206_v27  ;;  %v6411_v40 = vld [vmem:[#allocation19 + $0x2248] sm:$0xff]  ;;  %v6509_v42 = vld [vmem:[#allocation19 + $0x2558] sm:$0xff]  ;;  %v6498_v50 = vld [vmem:[#allocation19 + $0x2500] sm:$0xff] }
 0x88c   :  { %9790 = vmatpush1.bf16.msra.mxu0 %v9789_v49  ;;  %7068 = vmatprep.mubr.f32.mxu1 %v12206_v27  ;;  %v9799_v19 = vpack.c.bf16 %v6411_v40, %v6403_v11  ;;  %v9935_v49 = vpack.c.bf16 %v6445_v1, %v6437_v8  ;;  %v6466_v40 = vld [vmem:[#allocation19 + $0x2400] sm:$0xff]  ;;  %v6500_v1 = vld [vmem:[#allocation19 + $0x2510] sm:$0xff] }
 0x88d   :  { %9918 = vmatpush1.bf16.msra.mxu1 %v9917_v60  ;;  %9792 = vmatprep.subr.bf16.mxu0 %v9791_v59  ;;  %v6444_v60 = vld [vmem:[#allocation19 + $0x2350] sm:$0xff]  ;;  %v6451_v59 = vld [vmem:[#allocation19 + $0x2388] sm:$0xff]  ;;  %v6506_v8 = vld [vmem:[#allocation19 + $0x2540] sm:$0xff] }
 0x88e   :  { %9920 = vmatprep.subr.bf16.mxu1 %v9919_v20  ;;  %v9809_v20 = vpack.c.bf16 %v6442_v46, %v6434_v39  ;;  %v9937_v4 = vpack.c.bf16 %v6444_v60, %v6436_v61  ;;  %v9811_v45 = vpack.c.bf16 %v6459_v55, %v6451_v59  ;;  %v6523_v39 = vld [vmem:[#allocation19 + $0x25c8] sm:$0xff]  ;;  %v6517_v46 = vld [vmem:[#allocation19 + $0x2598] sm:$0xff]  ;;  %v6514_v55 = vld [vmem:[#allocation19 + $0x2580] sm:$0xff] }
 0x88f   :  { %v6525_v61 = vld [vmem:[#allocation19 + $0x25d8] sm:$0xff] }
 0x890   :  { %9794 = vmatpush1.bf16.msra.mxu0 %v9793_v7  ;;  %v9939_v7 = vpack.c.bf16 %v6461_v5, %v6453_v63  ;;  %v6522_v63 = vld [vmem:[#allocation19 + $0x25c0] sm:$0xff]  ;;  %v6516_v5 = vld [vmem:[#allocation19 + $0x2590] sm:$0xff] }
 0x891   :  { %9922 = vmatpush1.bf16.msra.mxu1 %v9921_v18  ;;  %9796 = vmatprep.subr.bf16.mxu0 %v9795_v52  ;;  %v6460_v18 = vld [vmem:[#allocation19 + $0x23d0] sm:$0xff]  ;;  %v6467_v52 = vld [vmem:[#allocation19 + $0x2408] sm:$0xff] }
 0x892   :  { %9924 = vmatprep.subr.bf16.mxu1 %v9923_v13  ;;  %v9813_v13 = vpack.c.bf16 %v6458_v58, %v6450_v2  ;;  %v9941_v31 = vpack.c.bf16 %v6460_v18, %v6452_v6  ;;  %v9815_v11 = vpack.c.bf16 %v6475_v48, %v6467_v52  ;;  %v6539_v2 = vld [vmem:[#allocation19 + $0x2648] sm:$0xff]  ;;  %v6533_v58 = vld [vmem:[#allocation19 + $0x2618] sm:$0xff]  ;;  %v6530_v48 = vld [vmem:[#allocation19 + $0x2600] sm:$0xff] }
 0x893   :  { %v6541_v6 = vld [vmem:[#allocation19 + $0x2658] sm:$0xff] }
 0x894   :  { %9798 = vmatpush1.bf16.msra.mxu0 %v9797_v56  ;;  %v9943_v56 = vpack.c.bf16 %v6477_v14, %v6469_v53  ;;  %v6538_v53 = vld [vmem:[#allocation19 + $0x2640] sm:$0xff]  ;;  %v6532_v14 = vld [vmem:[#allocation19 + $0x2610] sm:$0xff] }
 0x895   :  { %9926 = vmatpush1.bf16.msra.mxu1 %v9925_v29  ;;  %9800 = vmatprep.subr.bf16.mxu0 %v9799_v19  ;;  %v6476_v29 = vld [vmem:[#allocation19 + $0x2450] sm:$0xff]  ;;  %v6483_v19 = vld [vmem:[#allocation19 + $0x2488] sm:$0xff] }
 0x896   :  { %9928 = vmatprep.subr.bf16.mxu1 %v9927_v47  ;;  %v9817_v47 = vpack.c.bf16 %v6474_v17, %v6466_v40  ;;  %v9945_v9 = vpack.c.bf16 %v6476_v29, %v6468_v3  ;;  %v9819_v38 = vpack.c.bf16 %v6491_v30, %v6483_v19  ;;  %v6555_v40 = vld [vmem:[#allocation19 + $0x26c8] sm:$0xff]  ;;  %v6549_v17 = vld [vmem:[#allocation19 + $0x2698] sm:$0xff]  ;;  %v6546_v30 = vld [vmem:[#allocation19 + $0x2680] sm:$0xff] }
 0x897   :  { %v6557_v3 = vld [vmem:[#allocation19 + $0x26d8] sm:$0xff] }
 0x898   :  { %9802 = vmatpush1.bf16.msra.mxu0 %v9801_v24  ;;  %v9947_v24 = vpack.c.bf16 %v6493_v32, %v6485_v54  ;;  %v6554_v54 = vld [vmem:[#allocation19 + $0x26c0] sm:$0xff]  ;;  %v6548_v32 = vld [vmem:[#allocation19 + $0x2690] sm:$0xff] }
 0x899   :  { %9930 = vmatpush1.bf16.msra.mxu1 %v9929_v33  ;;  %9804 = vmatprep.subr.bf16.mxu0 %v9803_v51  ;;  %v6492_v33 = vld [vmem:[#allocation19 + $0x24d0] sm:$0xff]  ;;  %v6499_v51 = vld [vmem:[#allocation19 + $0x2508] sm:$0xff] }
 0x89a   :  { %9932 = vmatprep.subr.bf16.mxu1 %v9931_v0  ;;  %v9821_v0 = vpack.c.bf16 %v6490_v35, %v6482_v36  ;;  %v9949_v25 = vpack.c.bf16 %v6492_v33, %v6484_v16  ;;  %v9823_v62 = vpack.c.bf16 %v6507_v23, %v6499_v51  ;;  %v6571_v36 = vld [vmem:[#allocation19 + $0x2748] sm:$0xff]  ;;  %v6565_v35 = vld [vmem:[#allocation19 + $0x2718] sm:$0xff]  ;;  %v6562_v23 = vld [vmem:[#allocation19 + $0x2700] sm:$0xff] }
 0x89b   :  { %v6573_v16 = vld [vmem:[#allocation19 + $0x2758] sm:$0xff] }
 0x89c   :  { %9806 = vmatpush1.bf16.msra.mxu0 %v9805_v37  ;;  %v9951_v37 = vpack.c.bf16 %v6509_v42, %v6501_v57  ;;  %v6570_v57 = vld [vmem:[#allocation19 + $0x2740] sm:$0xff]  ;;  %v6564_v42 = vld [vmem:[#allocation19 + $0x2710] sm:$0xff] }
 0x89d   :  { %9934 = vmatpush1.bf16.msra.mxu1 %v9933_v26  ;;  %9808 = vmatprep.subr.bf16.mxu0 %v9807_v34  ;;  %v6508_v26 = vld [vmem:[#allocation19 + $0x2550] sm:$0xff]  ;;  %v6515_v34 = vld [vmem:[#allocation19 + $0x2588] sm:$0xff] }
 0x89e   :  { %9936 = vmatprep.subr.bf16.mxu1 %v9935_v49  ;;  %v9825_v49 = vpack.c.bf16 %v6506_v8, %v6498_v50  ;;  %v9953_v60 = vpack.c.bf16 %v6508_v26, %v6500_v1  ;;  %v9827_v59 = vpack.c.bf16 %v6523_v39, %v6515_v34  ;;  %v6587_v50 = vld [vmem:[#allocation19 + $0x27c8] sm:$0xff]  ;;  %v6581_v8 = vld [vmem:[#allocation19 + $0x2798] sm:$0xff]  ;;  %v6578_v39 = vld [vmem:[#allocation19 + $0x2780] sm:$0xff] }
 0x89f   :  { %v6589_v1 = vld [vmem:[#allocation19 + $0x27d8] sm:$0xff] }
 0x8a0   :  { %9810 = vmatpush1.bf16.msra.mxu0 %v9809_v20  ;;  %v9955_v20 = vpack.c.bf16 %v6525_v61, %v6517_v46  ;;  %v6586_v46 = vld [vmem:[#allocation19 + $0x27c0] sm:$0xff]  ;;  %v6580_v61 = vld [vmem:[#allocation19 + $0x2790] sm:$0xff] }
 0x8a1   :  { %9938 = vmatpush1.bf16.msra.mxu1 %v9937_v4  ;;  %9812 = vmatprep.subr.bf16.mxu0 %v9811_v45  ;;  %v6524_v4 = vld [vmem:[#allocation19 + $0x25d0] sm:$0xff]  ;;  %v6531_v45 = vld [vmem:[#allocation19 + $0x2608] sm:$0xff] }
 0x8a2   :  { %9940 = vmatprep.subr.bf16.mxu1 %v9939_v7  ;;  %v9829_v7 = vpack.c.bf16 %v6522_v63, %v6514_v55  ;;  %v9957_v18 = vpack.c.bf16 %v6524_v4, %v6516_v5  ;;  %v9831_v52 = vpack.c.bf16 %v6539_v2, %v6531_v45  ;;  %v6603_v55 = vld [vmem:[#allocation19 + $0x2848] sm:$0xff]  ;;  %v6597_v63 = vld [vmem:[#allocation19 + $0x2818] sm:$0xff]  ;;  %v6594_v2 = vld [vmem:[#allocation19 + $0x2800] sm:$0xff] }
 0x8a3   :  { %v6605_v5 = vld [vmem:[#allocation19 + $0x2858] sm:$0xff] }
 0x8a4   :  { %9814 = vmatpush1.bf16.msra.mxu0 %v9813_v13  ;;  %v9959_v13 = vpack.c.bf16 %v6541_v6, %v6533_v58  ;;  %v6602_v58 = vld [vmem:[#allocation19 + $0x2840] sm:$0xff]  ;;  %v9975_v6 = vpack.c.bf16 %v6605_v5, %v6597_v63  ;;  %v6660_v5 = vld [vmem:[#allocation19 + $0x2a10] sm:$0xff] }
 0x8a5   :  { %9942 = vmatpush1.bf16.msra.mxu1 %v9941_v31  ;;  %9816 = vmatprep.subr.bf16.mxu0 %v9815_v11  ;;  %v6540_v31 = vld [vmem:[#allocation19 + $0x2650] sm:$0xff]  ;;  %v6547_v11 = vld [vmem:[#allocation19 + $0x2688] sm:$0xff]  ;;  %v6666_v63 = vld [vmem:[#allocation19 + $0x2a40] sm:$0xff] }
 0x8a6   :  { %9944 = vmatprep.subr.bf16.mxu1 %v9943_v56  ;;  %v9833_v56 = vpack.c.bf16 %v6538_v53, %v6530_v48  ;;  %v9961_v29 = vpack.c.bf16 %v6540_v31, %v6532_v14  ;;  %v9835_v19 = vpack.c.bf16 %v6555_v40, %v6547_v11  ;;  %v6619_v48 = vld [vmem:[#allocation19 + $0x28c8] sm:$0xff]  ;;  %v9849_v53 = vpack.c.bf16 %v6602_v58, %v6594_v2  ;;  %v6613_v14 = vld [vmem:[#allocation19 + $0x2898] sm:$0xff]  ;;  %v6610_v11 = vld [vmem:[#allocation19 + $0x2880] sm:$0xff] }
 0x8a7   :  { %v6618_v40 = vld [vmem:[#allocation19 + $0x28c0] sm:$0xff]  ;;  %v6683_v2 = vld [vmem:[#allocation19 + $0x2ac8] sm:$0xff]  ;;  %v6677_v58 = vld [vmem:[#allocation19 + $0x2a98] sm:$0xff] }
 0x8a8   :  { %9818 = vmatpush1.bf16.msra.mxu0 %v9817_v47  ;;  %v9963_v47 = vpack.c.bf16 %v6557_v3, %v6549_v17  ;;  %v6612_v3 = vld [vmem:[#allocation19 + $0x2890] sm:$0xff] }
 0x8a9   :  { %9946 = vmatpush1.bf16.msra.mxu1 %v9945_v9  ;;  %9820 = vmatprep.subr.bf16.mxu0 %v9819_v38  ;;  %v6556_v9 = vld [vmem:[#allocation19 + $0x26d0] sm:$0xff]  ;;  %v6563_v38 = vld [vmem:[#allocation19 + $0x2708] sm:$0xff] }
 0x8aa   :  { %9948 = vmatprep.subr.bf16.mxu1 %v9947_v24  ;;  %v9837_v24 = vpack.c.bf16 %v6554_v54, %v6546_v30  ;;  %v9965_v33 = vpack.c.bf16 %v6556_v9, %v6548_v32  ;;  %v9839_v51 = vpack.c.bf16 %v6571_v36, %v6563_v38  ;;  %v6635_v30 = vld [vmem:[#allocation19 + $0x2948] sm:$0xff]  ;;  %v9853_v54 = vpack.c.bf16 %v6618_v40, %v6610_v11  ;;  %v6629_v32 = vld [vmem:[#allocation19 + $0x2918] sm:$0xff]  ;;  %v6626_v38 = vld [vmem:[#allocation19 + $0x2900] sm:$0xff] }
 0x8ab   :  { %v6634_v36 = vld [vmem:[#allocation19 + $0x2940] sm:$0xff]  ;;  %v6691_v11 = vld [vmem:[#allocation19 + $0x2b08] sm:$0xff] }
 0x8ac   :  { %9822 = vmatpush1.bf16.msra.mxu0 %v9821_v0  ;;  %v9967_v0 = vpack.c.bf16 %v6573_v16, %v6565_v35  ;;  %v6628_v35 = vld [vmem:[#allocation19 + $0x2910] sm:$0xff]  ;;  %v6699_v40 = vld [vmem:[#allocation19 + $0x2b48] sm:$0xff] }
 0x8ad   :  { %9950 = vmatpush1.bf16.msra.mxu1 %v9949_v25  ;;  %9824 = vmatprep.subr.bf16.mxu0 %v9823_v62  ;;  %v6572_v25 = vld [vmem:[#allocation19 + $0x2750] sm:$0xff]  ;;  %v6579_v62 = vld [vmem:[#allocation19 + $0x2788] sm:$0xff] }
 0x8ae   :  { %9952 = vmatprep.subr.bf16.mxu1 %v9951_v37  ;;  %v9841_v37 = vpack.c.bf16 %v6570_v57, %v6562_v23  ;;  %v9969_v26 = vpack.c.bf16 %v6572_v25, %v6564_v42  ;;  %v9843_v34 = vpack.c.bf16 %v6587_v50, %v6579_v62  ;;  %v6645_v57 = vld [vmem:[#allocation19 + $0x2998] sm:$0xff]  ;;  %v6642_v50 = vld [vmem:[#allocation19 + $0x2980] sm:$0xff] }
 0x8af   :  { %v6653_v42 = vld [vmem:[#allocation19 + $0x29d8] sm:$0xff] }
 0x8b0   :  { %9826 = vmatpush1.bf16.msra.mxu0 %v9825_v49  ;;  %v9971_v49 = vpack.c.bf16 %v6589_v1, %v6581_v8  ;;  %v6650_v8 = vld [vmem:[#allocation19 + $0x29c0] sm:$0xff]  ;;  %v6644_v1 = vld [vmem:[#allocation19 + $0x2990] sm:$0xff] }
 0x8b1   :  { %9954 = vmatpush1.bf16.msra.mxu1 %v9953_v60  ;;  %9828 = vmatprep.subr.bf16.mxu0 %v9827_v59  ;;  %v6588_v60 = vld [vmem:[#allocation19 + $0x27d0] sm:$0xff]  ;;  %v6595_v59 = vld [vmem:[#allocation19 + $0x2808] sm:$0xff] }
 0x8b2   :  { %9956 = vmatprep.subr.bf16.mxu1 %v9955_v20  ;;  %v9845_v20 = vpack.c.bf16 %v6586_v46, %v6578_v39  ;;  %v9973_v4 = vpack.c.bf16 %v6588_v60, %v6580_v61  ;;  %v9847_v45 = vpack.c.bf16 %v6603_v55, %v6595_v59  ;;  %v6667_v39 = vld [vmem:[#allocation19 + $0x2a48] sm:$0xff]  ;;  %v6661_v46 = vld [vmem:[#allocation19 + $0x2a18] sm:$0xff]  ;;  %v6658_v55 = vld [vmem:[#allocation19 + $0x2a00] sm:$0xff] }
 0x8b3   :  { %v6669_v61 = vld [vmem:[#allocation19 + $0x2a58] sm:$0xff] }
 0x8b4   :  { %9830 = vmatpush1.bf16.msra.mxu0 %v9829_v7  ;;  %v6596_v7 = vld [vmem:[#allocation19 + $0x2810] sm:$0xff] }
 0x8b5   :  { %9958 = vmatpush1.bf16.msra.mxu1 %v9957_v18  ;;  %9832 = vmatprep.subr.bf16.mxu0 %v9831_v52  ;;  %v6604_v18 = vld [vmem:[#allocation19 + $0x2850] sm:$0xff]  ;;  %v6611_v52 = vld [vmem:[#allocation19 + $0x2888] sm:$0xff] }
 0x8b6   :  { %9960 = vmatprep.subr.bf16.mxu1 %v9959_v13  ;;  %v6621_v13 = vld [vmem:[#allocation19 + $0x28d8] sm:$0xff]  ;;  %v9977_v31 = vpack.c.bf16 %v6604_v18, %v6596_v7  ;;  %v9851_v17 = vpack.c.bf16 %v6619_v48, %v6611_v52  ;;  %v9865_v7 = vpack.c.bf16 %v6666_v63, %v6658_v55  ;;  %v6674_v48 = vld [vmem:[#allocation19 + $0x2a80] sm:$0xff]  ;;  %v6747_v55 = vld [vmem:[#allocation19 + $0x2cc8] sm:$0xff] }
 0x8b7   :  { %v6741_v63 = vld [vmem:[#allocation19 + $0x2c98] sm:$0xff] }
 0x8b8   :  { %9834 = vmatpush1.bf16.msra.mxu0 %v9833_v56  ;;  %v6620_v56 = vld [vmem:[#allocation19 + $0x28d0] sm:$0xff] }
 0x8b9   :  { %9962 = vmatpush1.bf16.msra.mxu1 %v9961_v29  ;;  %9836 = vmatprep.subr.bf16.mxu0 %v9835_v19  ;;  %v9979_v29 = vpack.c.bf16 %v6621_v13, %v6613_v14  ;;  %v6627_v19 = vld [vmem:[#allocation19 + $0x2908] sm:$0xff]  ;;  %v9981_v9 = vpack.c.bf16 %v6620_v56, %v6612_v3  ;;  %v6676_v14 = vld [vmem:[#allocation19 + $0x2a90] sm:$0xff]  ;;  %v6701_v3 = vld [vmem:[#allocation19 + $0x2b58] sm:$0xff] }
 0x8ba   :  { %9964 = vmatprep.subr.bf16.mxu1 %v9963_v47  ;;  %v6637_v47 = vld [vmem:[#allocation19 + $0x2958] sm:$0xff]  ;;  %v9855_v16 = vpack.c.bf16 %v6635_v30, %v6627_v19  ;;  %v9871_v19 = vpack.c.bf16 %v6699_v40, %v6691_v11  ;;  %v6690_v30 = vld [vmem:[#allocation19 + $0x2b00] sm:$0xff] }
 0x8bb   :  { %v9983_v23 = vpack.c.bf16 %v6637_v47, %v6629_v32  ;;  %v6692_v32 = vld [vmem:[#allocation19 + $0x2b10] sm:$0xff]  ;;  %v6754_v40 = vld [vmem:[#allocation19 + $0x2d00] sm:$0xff] }
 0x8bc   :  { %9838 = vmatpush1.bf16.msra.mxu0 %v9837_v24  ;;  %v6636_v24 = vld [vmem:[#allocation19 + $0x2950] sm:$0xff] }
 0x8bd   :  { %9966 = vmatpush1.bf16.msra.mxu1 %v9965_v33  ;;  %9840 = vmatprep.subr.bf16.mxu0 %v9839_v51  ;;  %v6643_v33 = vld [vmem:[#allocation19 + $0x2988] sm:$0xff]  ;;  %v9985_v25 = vpack.c.bf16 %v6636_v24, %v6628_v35  ;;  %v6709_v35 = vld [vmem:[#allocation19 + $0x2b98] sm:$0xff] }
 0x8be   :  { %9968 = vmatprep.subr.bf16.mxu1 %v9967_v0  ;;  %v6651_v51 = vld [vmem:[#allocation19 + $0x29c8] sm:$0xff]  ;;  %v9857_v0 = vpack.c.bf16 %v6634_v36, %v6626_v38 }
 0x8bf   :  { %v9859_v62 = vpack.c.bf16 %v6651_v51, %v6643_v33  ;;  %v6707_v38 = vld [vmem:[#allocation19 + $0x2b88] sm:$0xff] }
 0x8c0   :  { %9842 = vmatpush1.bf16.msra.mxu0 %v9841_v37  ;;  %v9987_v37 = vpack.c.bf16 %v6653_v42, %v6645_v57  ;;  %v6715_v36 = vld [vmem:[#allocation19 + $0x2bc8] sm:$0xff]  ;;  %v6714_v57 = vld [vmem:[#allocation19 + $0x2bc0] sm:$0xff]  ;;  %v6708_v42 = vld [vmem:[#allocation19 + $0x2b90] sm:$0xff] }
 0x8c1   :  { %9970 = vmatpush1.bf16.msra.mxu1 %v9969_v26  ;;  %9844 = vmatprep.subr.bf16.mxu0 %v9843_v34  ;;  %v6652_v26 = vld [vmem:[#allocation19 + $0x29d0] sm:$0xff]  ;;  %v6659_v34 = vld [vmem:[#allocation19 + $0x2a08] sm:$0xff]  ;;  %v9875_v51 = vpack.c.bf16 %v6715_v36, %v6707_v38  ;;  %v6770_v36 = vld [vmem:[#allocation19 + $0x2d80] sm:$0xff] }
 0x8c2   :  { %9972 = vmatprep.subr.bf16.mxu1 %v9971_v49  ;;  %v9861_v49 = vpack.c.bf16 %v6650_v8, %v6642_v50  ;;  %v9989_v60 = vpack.c.bf16 %v6652_v26, %v6644_v1  ;;  %v9863_v59 = vpack.c.bf16 %v6667_v39, %v6659_v34  ;;  %v6731_v50 = vld [vmem:[#allocation19 + $0x2c48] sm:$0xff]  ;;  %v6725_v8 = vld [vmem:[#allocation19 + $0x2c18] sm:$0xff]  ;;  %v6722_v39 = vld [vmem:[#allocation19 + $0x2c00] sm:$0xff] }
 0x8c3   :  { %v6733_v1 = vld [vmem:[#allocation19 + $0x2c58] sm:$0xff] }
 0x8c4   :  { %9846 = vmatpush1.bf16.msra.mxu0 %v9845_v20  ;;  %v9991_v20 = vpack.c.bf16 %v6669_v61, %v6661_v46  ;;  %v6730_v46 = vld [vmem:[#allocation19 + $0x2c40] sm:$0xff]  ;;  %v6724_v61 = vld [vmem:[#allocation19 + $0x2c10] sm:$0xff] }
 0x8c5   :  { %9974 = vmatpush1.bf16.msra.mxu1 %v9973_v4  ;;  %9848 = vmatprep.subr.bf16.mxu0 %v9847_v45  ;;  %v6668_v4 = vld [vmem:[#allocation19 + $0x2a50] sm:$0xff]  ;;  %v6675_v45 = vld [vmem:[#allocation19 + $0x2a88] sm:$0xff] }
 0x8c6   :  { %9976 = vmatprep.subr.bf16.mxu1 %v9975_v6  ;;  %v6685_v6 = vld [vmem:[#allocation19 + $0x2ad8] sm:$0xff]  ;;  %v9993_v18 = vpack.c.bf16 %v6668_v4, %v6660_v5  ;;  %v9867_v52 = vpack.c.bf16 %v6683_v2, %v6675_v45  ;;  %v6738_v2 = vld [vmem:[#allocation19 + $0x2c80] sm:$0xff] }
 0x8c7   :  { %6915 = vmatmul.mubr.f32.vlgmr.msra.gmra.mrb[40].mxu0 %v12202_v41  ;;  %v9995_v13 = vpack.c.bf16 %v6685_v6, %v6677_v58  ;;  %v6749_v5 = vld [vmem:[#allocation19 + $0x2cd8] sm:$0xff]  ;;  %v6746_v58 = vld [vmem:[#allocation19 + $0x2cc0] sm:$0xff]  ;;  %v6740_v6 = vld [vmem:[#allocation19 + $0x2c90] sm:$0xff] }
 0x8c8   :  { %7069 = vmatmul.mubr.f32.vlgmr.msra.gmra.mrb[40].mxu1 %v12202_v41  ;;  %9850 = vmatpush1.bf16.msra.mxu0 %v9849_v53  ;;  %v6682_v53 = vld [vmem:[#allocation19 + $0x2ac0] sm:$0xff] }
 0x8c9   :  { %9978 = vmatpush1.bf16.msra.mxu1 %v9977_v31  ;;  %6920 = vmatprep.mubr.f32.mxu0 %v10889_v10  ;;  %v6684_v31 = vld [vmem:[#allocation19 + $0x2ad0] sm:$0xff]  ;;  %v9869_v56 = vpack.c.bf16 %v6682_v53, %v6674_v48  ;;  %v6763_v48 = vld [vmem:[#allocation19 + $0x2d48] sm:$0xff]  ;;  %v6757_v53 = vld [vmem:[#allocation19 + $0x2d18] sm:$0xff] }
 0x8ca   :  { %7074 = vmatprep.mubr.f32.mxu1 %v10889_v10  ;;  %9852 = vmatprep.subr.bf16.mxu0 %v9851_v17  ;;  %v6693_v17 = vld [vmem:[#allocation19 + $0x2b18] sm:$0xff] }
 0x8cb   :  { %6921 = vmatmul.mubr.f32.gmra.mrb[42].mxu0 %v10889_v10  ;;  %9980 = vmatprep.subr.bf16.mxu1 %v9979_v29  ;;  %v9997_v29 = vpack.c.bf16 %v6684_v31, %v6676_v14  ;;  %v9999_v47 = vpack.c.bf16 %v6701_v3, %v6693_v17  ;;  %v6765_v14 = vld [vmem:[#allocation19 + $0x2d58] sm:$0xff]  ;;  %v6762_v17 = vld [vmem:[#allocation19 + $0x2d40] sm:$0xff]  ;;  %v6756_v3 = vld [vmem:[#allocation19 + $0x2d10] sm:$0xff] }
 0x8cc   :  { %7075 = vmatmul.mubr.f32.gmra.mrb[42].mxu1 %v10889_v10  ;;  %9854 = vmatpush1.bf16.msra.mxu0 %v9853_v54  ;;  %v6698_v54 = vld [vmem:[#allocation19 + $0x2b40] sm:$0xff] }
 0x8cd   :  { %6991 = vmatprep.mubr.f32.mxu0 %v12208_v12  ;;  %9982 = vmatpush1.bf16.msra.mxu1 %v9981_v9  ;;  %v6700_v9 = vld [vmem:[#allocation19 + $0x2b50] sm:$0xff]  ;;  %v9873_v24 = vpack.c.bf16 %v6698_v54, %v6690_v30  ;;  %v6779_v30 = vld [vmem:[#allocation19 + $0x2dc8] sm:$0xff]  ;;  %v6773_v54 = vld [vmem:[#allocation19 + $0x2d98] sm:$0xff] }
 0x8ce   :  { %7145 = vmatprep.mubr.f32.mxu1 %v12208_v12  ;;  %9856 = vmatprep.subr.bf16.mxu0 %v9855_v16  ;;  %v6717_v16 = vld [vmem:[#allocation19 + $0x2bd8] sm:$0xff]  ;;  %v10001_v33 = vpack.c.bf16 %v6700_v9, %v6692_v32 }
 0x8cf   :  { %9984 = vmatprep.subr.bf16.mxu1 %v9983_v23  ;;  %v6706_v23 = vld [vmem:[#allocation19 + $0x2b80] sm:$0xff]  ;;  %v6781_v32 = vld [vmem:[#allocation19 + $0x2dd8] sm:$0xff] }
 0x8d0   :  { %9858 = vmatpush1.bf16.msra.mxu0 %v9857_v0  ;;  %v10003_v0 = vpack.c.bf16 %v6717_v16, %v6709_v35  ;;  %v6778_v35 = vld [vmem:[#allocation19 + $0x2dc0] sm:$0xff]  ;;  %v6772_v16 = vld [vmem:[#allocation19 + $0x2d90] sm:$0xff] }
 0x8d1   :  { %9986 = vmatpush1.bf16.msra.mxu1 %v9985_v25  ;;  %9860 = vmatprep.subr.bf16.mxu0 %v9859_v62  ;;  %v6716_v25 = vld [vmem:[#allocation19 + $0x2bd0] sm:$0xff]  ;;  %v6723_v62 = vld [vmem:[#allocation19 + $0x2c08] sm:$0xff] }
 0x8d2   :  { %9988 = vmatprep.subr.bf16.mxu1 %v9987_v37  ;;  %v9877_v37 = vpack.c.bf16 %v6714_v57, %v6706_v23  ;;  %v10005_v26 = vpack.c.bf16 %v6716_v25, %v6708_v42  ;;  %v9879_v34 = vpack.c.bf16 %v6731_v50, %v6723_v62  ;;  %v6795_v23 = vld [vmem:[#allocation19 + $0x2e48] sm:$0xff]  ;;  %v6789_v57 = vld [vmem:[#allocation19 + $0x2e18] sm:$0xff]  ;;  %v6786_v50 = vld [vmem:[#allocation19 + $0x2e00] sm:$0xff] }
 0x8d3   :  { %v6797_v42 = vld [vmem:[#allocation19 + $0x2e58] sm:$0xff] }
 0x8d4   :  { %9862 = vmatpush1.bf16.msra.mxu0 %v9861_v49  ;;  %v10007_v49 = vpack.c.bf16 %v6733_v1, %v6725_v8  ;;  %v6794_v8 = vld [vmem:[#allocation19 + $0x2e40] sm:$0xff]  ;;  %v6788_v1 = vld [vmem:[#allocation19 + $0x2e10] sm:$0xff] }
 0x8d5   :  { %9990 = vmatpush1.bf16.msra.mxu1 %v9989_v60  ;;  %9864 = vmatprep.subr.bf16.mxu0 %v9863_v59  ;;  %v6732_v60 = vld [vmem:[#allocation19 + $0x2c50] sm:$0xff]  ;;  %v6739_v59 = vld [vmem:[#allocation19 + $0x2c88] sm:$0xff] }
 0x8d6   :  { %9992 = vmatprep.subr.bf16.mxu1 %v9991_v20  ;;  %v9881_v20 = vpack.c.bf16 %v6730_v46, %v6722_v39  ;;  %v10009_v4 = vpack.c.bf16 %v6732_v60, %v6724_v61  ;;  %v9883_v45 = vpack.c.bf16 %v6747_v55, %v6739_v59  ;;  %v6811_v39 = vld [vmem:[#allocation19 + $0x2ec8] sm:$0xff]  ;;  %v6805_v46 = vld [vmem:[#allocation19 + $0x2e98] sm:$0xff]  ;;  %v6802_v55 = vld [vmem:[#allocation19 + $0x2e80] sm:$0xff] }
 0x8d7   :  { %v6813_v61 = vld [vmem:[#allocation19 + $0x2ed8] sm:$0xff] }
 0x8d8   :  { %9866 = vmatpush1.bf16.msra.mxu0 %v9865_v7  ;;  %v10011_v7 = vpack.c.bf16 %v6749_v5, %v6741_v63  ;;  %v6810_v63 = vld [vmem:[#allocation19 + $0x2ec0] sm:$0xff]  ;;  %v6804_v5 = vld [vmem:[#allocation19 + $0x2e90] sm:$0xff] }
 0x8d9   :  { %9994 = vmatpush1.bf16.msra.mxu1 %v9993_v18  ;;  %9868 = vmatprep.subr.bf16.mxu0 %v9867_v52  ;;  %v6748_v18 = vld [vmem:[#allocation19 + $0x2cd0] sm:$0xff]  ;;  %v6755_v52 = vld [vmem:[#allocation19 + $0x2d08] sm:$0xff] }
 0x8da   :  { %9996 = vmatprep.subr.bf16.mxu1 %v9995_v13  ;;  %v9885_v13 = vpack.c.bf16 %v6746_v58, %v6738_v2  ;;  %v10013_v31 = vpack.c.bf16 %v6748_v18, %v6740_v6  ;;  %v9887_v11 = vpack.c.bf16 %v6763_v48, %v6755_v52  ;;  %v6827_v2 = vld [vmem:[#allocation19 + $0x2f48] sm:$0xff]  ;;  %v6821_v58 = vld [vmem:[#allocation19 + $0x2f18] sm:$0xff]  ;;  %v6818_v48 = vld [vmem:[#allocation19 + $0x2f00] sm:$0xff] }
 0x8db   :  { %v6829_v6 = vld [vmem:[#allocation19 + $0x2f58] sm:$0xff] }
 0x8dc   :  { %9870 = vmatpush1.bf16.msra.mxu0 %v9869_v56  ;;  %v10015_v56 = vpack.c.bf16 %v6765_v14, %v6757_v53  ;;  %v6826_v53 = vld [vmem:[#allocation19 + $0x2f40] sm:$0xff]  ;;  %v6820_v14 = vld [vmem:[#allocation19 + $0x2f10] sm:$0xff] }
 0x8dd   :  { %9998 = vmatpush1.bf16.msra.mxu1 %v9997_v29  ;;  %9872 = vmatprep.subr.bf16.mxu0 %v9871_v19  ;;  %v6764_v29 = vld [vmem:[#allocation19 + $0x2d50] sm:$0xff]  ;;  %v6771_v19 = vld [vmem:[#allocation19 + $0x2d88] sm:$0xff] }
 0x8de   :  { %10000 = vmatprep.subr.bf16.mxu1 %v9999_v47  ;;  %v9889_v47 = vpack.c.bf16 %v6762_v17, %v6754_v40  ;;  %v10017_v9 = vpack.c.bf16 %v6764_v29, %v6756_v3  ;;  %v9891_v38 = vpack.c.bf16 %v6779_v30, %v6771_v19  ;;  %v6843_v40 = vld [vmem:[#allocation19 + $0x2fc8] sm:$0xff]  ;;  %v6837_v17 = vld [vmem:[#allocation19 + $0x2f98] sm:$0xff]  ;;  %v6834_v30 = vld [vmem:[#allocation19 + $0x2f80] sm:$0xff] }
 0x8df   :  { %v6845_v3 = vld [vmem:[#allocation19 + $0x2fd8] sm:$0xff] }
 0x8e0   :  { %9874 = vmatpush1.bf16.msra.mxu0 %v9873_v24  ;;  %v10019_v24 = vpack.c.bf16 %v6781_v32, %v6773_v54  ;;  %v6842_v54 = vld [vmem:[#allocation19 + $0x2fc0] sm:$0xff]  ;;  %v6836_v32 = vld [vmem:[#allocation19 + $0x2f90] sm:$0xff] }
 0x8e1   :  { %10002 = vmatpush1.bf16.msra.mxu1 %v10001_v33  ;;  %9876 = vmatprep.subr.bf16.mxu0 %v9875_v51  ;;  %v6780_v33 = vld [vmem:[#allocation19 + $0x2dd0] sm:$0xff]  ;;  %v6787_v51 = vld [vmem:[#allocation19 + $0x2e08] sm:$0xff] }
 0x8e2   :  { %10004 = vmatprep.subr.bf16.mxu1 %v10003_v0  ;;  %v9893_v0 = vpack.c.bf16 %v6778_v35, %v6770_v36  ;;  %v10021_v25 = vpack.c.bf16 %v6780_v33, %v6772_v16  ;;  %v9895_v62 = vpack.c.bf16 %v6795_v23, %v6787_v51  ;;  %v6351_v36 = vld [vmem:[#allocation19 + $0x2068] sm:$0xff]  ;;  %v6345_v35 = vld [vmem:[#allocation19 + $0x2038] sm:$0xff]  ;;  %v6342_v23 = vld [vmem:[#allocation19 + $0x2020] sm:$0xff] }
 0x8e3   :  { %v6353_v16 = vld [vmem:[#allocation19 + $0x2078] sm:$0xff] }
 0x8e4   :  { %9878 = vmatpush1.bf16.msra.mxu0 %v9877_v37  ;;  %v10023_v37 = vpack.c.bf16 %v6797_v42, %v6789_v57  ;;  %v6350_v57 = vld [vmem:[#allocation19 + $0x2060] sm:$0xff]  ;;  %v10167_v42 = vpack.c.bf16 %v6353_v16, %v6345_v35  ;;  %v6408_v16 = vld [vmem:[#allocation19 + $0x2230] sm:$0xff] }
 0x8e5   :  { %10006 = vmatpush1.bf16.msra.mxu1 %v10005_v26  ;;  %9880 = vmatprep.subr.bf16.mxu0 %v9879_v34  ;;  %v6796_v26 = vld [vmem:[#allocation19 + $0x2e50] sm:$0xff]  ;;  %v6803_v34 = vld [vmem:[#allocation19 + $0x2e88] sm:$0xff]  ;;  %v6414_v35 = vld [vmem:[#allocation19 + $0x2260] sm:$0xff] }
 0x8e6   :  { %10008 = vmatprep.subr.bf16.mxu1 %v10007_v49  ;;  %v9897_v49 = vpack.c.bf16 %v6794_v8, %v6786_v50  ;;  %v10025_v60 = vpack.c.bf16 %v6796_v26, %v6788_v1  ;;  %v9899_v59 = vpack.c.bf16 %v6811_v39, %v6803_v34  ;;  %v6367_v50 = vld [vmem:[#allocation19 + $0x20e8] sm:$0xff]  ;;  %v10041_v8 = vpack.c.bf16 %v6350_v57, %v6342_v23  ;;  %v6361_v1 = vld [vmem:[#allocation19 + $0x20b8] sm:$0xff]  ;;  %v6358_v34 = vld [vmem:[#allocation19 + $0x20a0] sm:$0xff] }
 0x8e7   :  { %v6366_v39 = vld [vmem:[#allocation19 + $0x20e0] sm:$0xff]  ;;  %v6425_v23 = vld [vmem:[#allocation19 + $0x22b8] sm:$0xff] }
 0x8e8   :  { %9882 = vmatpush1.bf16.msra.mxu0 %v9881_v20  ;;  %v10027_v20 = vpack.c.bf16 %v6813_v61, %v6805_v46  ;;  %v6360_v61 = vld [vmem:[#allocation19 + $0x20b0] sm:$0xff]  ;;  %v6433_v57 = vld [vmem:[#allocation19 + $0x22f8] sm:$0xff] }
 0x8e9   :  { %10010 = vmatpush1.bf16.msra.mxu1 %v10009_v4  ;;  %9884 = vmatprep.subr.bf16.mxu0 %v9883_v45  ;;  %v6812_v4 = vld [vmem:[#allocation19 + $0x2ed0] sm:$0xff]  ;;  %v6819_v45 = vld [vmem:[#allocation19 + $0x2f08] sm:$0xff] }
 0x8ea   :  { %10012 = vmatprep.subr.bf16.mxu1 %v10011_v7  ;;  %v9901_v7 = vpack.c.bf16 %v6810_v63, %v6802_v55  ;;  %v10029_v18 = vpack.c.bf16 %v6812_v4, %v6804_v5  ;;  %v9903_v52 = vpack.c.bf16 %v6827_v2, %v6819_v45  ;;  %v6383_v55 = vld [vmem:[#allocation19 + $0x2168] sm:$0xff]  ;;  %v10045_v63 = vpack.c.bf16 %v6366_v39, %v6358_v34  ;;  %v6377_v5 = vld [vmem:[#allocation19 + $0x2138] sm:$0xff]  ;;  %v6374_v45 = vld [vmem:[#allocation19 + $0x2120] sm:$0xff] }
 0x8eb   :  { %v6382_v2 = vld [vmem:[#allocation19 + $0x2160] sm:$0xff]  ;;  %v6447_v34 = vld [vmem:[#allocation19 + $0x2368] sm:$0xff]  ;;  %v6441_v39 = vld [vmem:[#allocation19 + $0x2338] sm:$0xff] }
 0x8ec   :  { %9886 = vmatpush1.bf16.msra.mxu0 %v9885_v13  ;;  %v10031_v13 = vpack.c.bf16 %v6829_v6, %v6821_v58  ;;  %v6376_v58 = vld [vmem:[#allocation19 + $0x2130] sm:$0xff] }
 0x8ed   :  { %10014 = vmatpush1.bf16.msra.mxu1 %v10013_v31  ;;  %9888 = vmatprep.subr.bf16.mxu0 %v9887_v11  ;;  %v6828_v31 = vld [vmem:[#allocation19 + $0x2f50] sm:$0xff]  ;;  %v6835_v11 = vld [vmem:[#allocation19 + $0x2f88] sm:$0xff] }
 0x8ee   :  { %10016 = vmatprep.subr.bf16.mxu1 %v10015_v56  ;;  %v9905_v56 = vpack.c.bf16 %v6826_v53, %v6818_v48  ;;  %v10033_v29 = vpack.c.bf16 %v6828_v31, %v6820_v14  ;;  %v9907_v19 = vpack.c.bf16 %v6843_v40, %v6835_v11  ;;  %v6393_v53 = vld [vmem:[#allocation19 + $0x21b8] sm:$0xff]  ;;  %v6390_v40 = vld [vmem:[#allocation19 + $0x21a0] sm:$0xff] }
 0x8ef   :  { %v6401_v14 = vld [vmem:[#allocation19 + $0x21f8] sm:$0xff] }
 0x8f0   :  { %9890 = vmatpush1.bf16.msra.mxu0 %v9889_v47  ;;  %v10035_v47 = vpack.c.bf16 %v6845_v3, %v6837_v17  ;;  %v6398_v17 = vld [vmem:[#allocation19 + $0x21e0] sm:$0xff]  ;;  %v6392_v3 = vld [vmem:[#allocation19 + $0x21b0] sm:$0xff] }
 0x8f1   :  { %10018 = vmatpush1.bf16.msra.mxu1 %v10017_v9  ;;  %9892 = vmatprep.subr.bf16.mxu0 %v9891_v38  ;;  %v6844_v9 = vld [vmem:[#allocation19 + $0x2fd0] sm:$0xff]  ;;  %v6343_v38 = vld [vmem:[#allocation19 + $0x2028] sm:$0xff] }
 0x8f2   :  { %10020 = vmatprep.subr.bf16.mxu1 %v10019_v24  ;;  %v9909_v24 = vpack.c.bf16 %v6842_v54, %v6834_v30  ;;  %v10037_v33 = vpack.c.bf16 %v6844_v9, %v6836_v32  ;;  %v10039_v51 = vpack.c.bf16 %v6351_v36, %v6343_v38  ;;  %v6415_v30 = vld [vmem:[#allocation19 + $0x2268] sm:$0xff]  ;;  %v6409_v54 = vld [vmem:[#allocation19 + $0x2238] sm:$0xff]  ;;  %v6406_v36 = vld [vmem:[#allocation19 + $0x2220] sm:$0xff] }
 0x8f3   :  { %v6417_v32 = vld [vmem:[#allocation19 + $0x2278] sm:$0xff] }
 0x8f4   :  { %9894 = vmatpush1.bf16.msra.mxu0 %v9893_v0  ;;  %v6344_v0 = vld [vmem:[#allocation19 + $0x2030] sm:$0xff] }
 0x8f5   :  { %10022 = vmatpush1.bf16.msra.mxu1 %v10021_v25  ;;  %9896 = vmatprep.subr.bf16.mxu0 %v9895_v62  ;;  %v6352_v25 = vld [vmem:[#allocation19 + $0x2070] sm:$0xff]  ;;  %v6359_v62 = vld [vmem:[#allocation19 + $0x20a8] sm:$0xff] }
 0x8f6   :  { %10024 = vmatprep.subr.bf16.mxu1 %v10023_v37  ;;  %v6369_v37 = vld [vmem:[#allocation19 + $0x20f8] sm:$0xff]  ;;  %v10169_v26 = vpack.c.bf16 %v6352_v25, %v6344_v0  ;;  %v10043_v46 = vpack.c.bf16 %v6367_v50, %v6359_v62  ;;  %v6422_v62 = vld [vmem:[#allocation19 + $0x22a0] sm:$0xff] }
 0x8f7   :  { %v6430_v50 = vld [vmem:[#allocation19 + $0x22e0] sm:$0xff] }
 0x8f8   :  { %9898 = vmatpush1.bf16.msra.mxu0 %v9897_v49  ;;  %v6368_v49 = vld [vmem:[#allocation19 + $0x20f0] sm:$0xff] }
 0x8f9   :  { %10026 = vmatpush1.bf16.msra.mxu1 %v10025_v60  ;;  %9900 = vmatprep.subr.bf16.mxu0 %v9899_v59  ;;  %v10171_v60 = vpack.c.bf16 %v6369_v37, %v6361_v1  ;;  %v6375_v59 = vld [vmem:[#allocation19 + $0x2128] sm:$0xff]  ;;  %v10173_v4 = vpack.c.bf16 %v6368_v49, %v6360_v61  ;;  %v10187_v1 = vpack.c.bf16 %v6433_v57, %v6425_v23  ;;  %v6432_v37 = vld [vmem:[#allocation19 + $0x22f0] sm:$0xff] }
 0x8fa   :  { %10028 = vmatprep.subr.bf16.mxu1 %v10027_v20  ;;  %v6385_v20 = vld [vmem:[#allocation19 + $0x2178] sm:$0xff]  ;;  %v10047_v6 = vpack.c.bf16 %v6383_v55, %v6375_v59  ;;  %v10061_v61 = vpack.c.bf16 %v6430_v50, %v6422_v62  ;;  %v6438_v59 = vld [vmem:[#allocation19 + $0x2320] sm:$0xff]  ;;  %v6488_v23 = vld [vmem:[#allocation19 + $0x24b0] sm:$0xff] }
 0x8fb   :  { %v10175_v48 = vpack.c.bf16 %v6385_v20, %v6377_v5  ;;  %v6446_v55 = vld [vmem:[#allocation19 + $0x2360] sm:$0xff]  ;;  %v6448_v20 = vld [vmem:[#allocation19 + $0x2370] sm:$0xff]  ;;  %v6505_v62 = vld [vmem:[#allocation19 + $0x2538] sm:$0xff] }
 0x8fc   :  { %9902 = vmatpush1.bf16.msra.mxu0 %v9901_v7  ;;  %v6384_v7 = vld [vmem:[#allocation19 + $0x2170] sm:$0xff]  ;;  %v6513_v50 = vld [vmem:[#allocation19 + $0x2578] sm:$0xff] }
 0x8fd   :  { %10030 = vmatpush1.bf16.msra.mxu1 %v10029_v18  ;;  %9904 = vmatprep.subr.bf16.mxu0 %v9903_v52  ;;  %v6391_v18 = vld [vmem:[#allocation19 + $0x21a8] sm:$0xff]  ;;  %v10177_v31 = vpack.c.bf16 %v6384_v7, %v6376_v58  ;;  %v6465_v58 = vld [vmem:[#allocation19 + $0x23f8] sm:$0xff] }
 0x8fe   :  { %10032 = vmatprep.subr.bf16.mxu1 %v10031_v13  ;;  %v6399_v52 = vld [vmem:[#allocation19 + $0x21e8] sm:$0xff]  ;;  %v10049_v13 = vpack.c.bf16 %v6382_v2, %v6374_v45  ;;  %v6457_v2 = vld [vmem:[#allocation19 + $0x23b8] sm:$0xff] }
 0x8ff   :  { %v10051_v11 = vpack.c.bf16 %v6399_v52, %v6391_v18  ;;  %v6463_v45 = vld [vmem:[#allocation19 + $0x23e8] sm:$0xff]  ;;  %v6454_v52 = vld [vmem:[#allocation19 + $0x23a0] sm:$0xff] }
 0x900   :  { %9906 = vmatpush1.bf16.msra.mxu0 %v9905_v56  ;;  %v10179_v56 = vpack.c.bf16 %v6401_v14, %v6393_v53  ;;  %v6456_v53 = vld [vmem:[#allocation19 + $0x23b0] sm:$0xff]  ;;  %v10195_v14 = vpack.c.bf16 %v6465_v58, %v6457_v2 }
 0x901   :  { %10034 = vmatpush1.bf16.msra.mxu1 %v10033_v29  ;;  %9908 = vmatprep.subr.bf16.mxu0 %v9907_v19  ;;  %v6400_v29 = vld [vmem:[#allocation19 + $0x21f0] sm:$0xff]  ;;  %v6407_v19 = vld [vmem:[#allocation19 + $0x2228] sm:$0xff] }
 0x902   :  { %10036 = vmatprep.subr.bf16.mxu1 %v10035_v47  ;;  %v10053_v47 = vpack.c.bf16 %v6398_v17, %v6390_v40  ;;  %v10181_v9 = vpack.c.bf16 %v6400_v29, %v6392_v3  ;;  %v10055_v38 = vpack.c.bf16 %v6415_v30, %v6407_v19  ;;  %v6473_v40 = vld [vmem:[#allocation19 + $0x2438] sm:$0xff]  ;;  %v6470_v19 = vld [vmem:[#allocation19 + $0x2420] sm:$0xff]  ;;  %v6520_v2 = vld [vmem:[#allocation19 + $0x25b0] sm:$0xff] }
 0x903   :  { %v6481_v17 = vld [vmem:[#allocation19 + $0x2478] sm:$0xff]  ;;  %v6478_v30 = vld [vmem:[#allocation19 + $0x2460] sm:$0xff] }
 0x904   :  { %9910 = vmatpush1.bf16.msra.mxu0 %v9909_v24  ;;  %v10183_v24 = vpack.c.bf16 %v6417_v32, %v6409_v54  ;;  %v6472_v54 = vld [vmem:[#allocation19 + $0x2430] sm:$0xff]  ;;  %v10199_v32 = vpack.c.bf16 %v6481_v17, %v6473_v40 }
 0x905   :  { %10038 = vmatpush1.bf16.msra.mxu1 %v10037_v33  ;;  %10040 = vmatprep.subr.bf16.mxu0 %v10039_v51  ;;  %v6423_v33 = vld [vmem:[#allocation19 + $0x22a8] sm:$0xff]  ;;  %v6536_v40 = vld [vmem:[#allocation19 + $0x2630] sm:$0xff] }
 0x906   :  { %10168 = vmatprep.subr.bf16.mxu1 %v10167_v42  ;;  %v6431_v51 = vld [vmem:[#allocation19 + $0x22e8] sm:$0xff]  ;;  %v10057_v42 = vpack.c.bf16 %v6414_v35, %v6406_v36  ;;  %v6489_v36 = vld [vmem:[#allocation19 + $0x24b8] sm:$0xff] }
 0x907   :  { %6992 = vmatmul.mubr.f32.vlgmr.msra.gmra.mrb[40].mxu0 %v12204_v22  ;;  %v10059_v25 = vpack.c.bf16 %v6431_v51, %v6423_v33  ;;  %v6497_v35 = vld [vmem:[#allocation19 + $0x24f8] sm:$0xff]  ;;  %v6486_v33 = vld [vmem:[#allocation19 + $0x24a0] sm:$0xff] }
 0x908   :  { %7146 = vmatmul.mubr.f32.vlgmr.msra.gmra.mrb[40].mxu1 %v12204_v22  ;;  %10042 = vmatpush1.bf16.msra.mxu0 %v10041_v8  ;;  %v6424_v8 = vld [vmem:[#allocation19 + $0x22b0] sm:$0xff]  ;;  %v6494_v51 = vld [vmem:[#allocation19 + $0x24e0] sm:$0xff]  ;;  %v10203_v57 = vpack.c.bf16 %v6497_v35, %v6489_v36 }
 0x909   :  { %10170 = vmatpush1.bf16.msra.mxu1 %v10169_v26  ;;  %6997 = vmatprep.mubr.f32.mxu0 %v10889_v10  ;;  %v6439_v26 = vld [vmem:[#allocation19 + $0x2328] sm:$0xff]  ;;  %v10189_v49 = vpack.c.bf16 %v6432_v37, %v6424_v8  ;;  %v10077_v8 = vpack.c.bf16 %v6494_v51, %v6486_v33  ;;  %v6552_v36 = vld [vmem:[#allocation19 + $0x26b0] sm:$0xff]  ;;  %v6569_v33 = vld [vmem:[#allocation19 + $0x2738] sm:$0xff] }
 0x90a   :  { %7151 = vmatprep.mubr.f32.mxu1 %v10889_v10  ;;  %10044 = vmatprep.subr.bf16.mxu0 %v10043_v46  ;;  %v6449_v46 = vld [vmem:[#allocation19 + $0x2378] sm:$0xff] }
 0x90b   :  { %6998 = vmatmul.mubr.f32.gmra.mrb[42].mxu0 %v10889_v10  ;;  %10172 = vmatprep.subr.bf16.mxu1 %v10171_v60  ;;  %v10063_v60 = vpack.c.bf16 %v6447_v34, %v6439_v26  ;;  %v10191_v5 = vpack.c.bf16 %v6449_v46, %v6441_v39  ;;  %v6502_v26 = vld [vmem:[#allocation19 + $0x2520] sm:$0xff]  ;;  %v6504_v39 = vld [vmem:[#allocation19 + $0x2530] sm:$0xff]  ;;  %v10207_v46 = vpack.c.bf16 %v6513_v50, %v6505_v62  ;;  %v6577_v51 = vld [vmem:[#allocation19 + $0x2778] sm:$0xff] }
 0x90c   :  { %7152 = vmatmul.mubr.f32.gmra.mrb[42].mxu1 %v10889_v10  ;;  %10046 = vmatpush1.bf16.msra.mxu0 %v10045_v63  ;;  %v6440_v63 = vld [vmem:[#allocation19 + $0x2330] sm:$0xff]  ;;  %v6510_v34 = vld [vmem:[#allocation19 + $0x2560] sm:$0xff]  ;;  %v10223_v50 = vpack.c.bf16 %v6577_v51, %v6569_v33 }
 0x90d   :  { %7222 = vmatprep.mubr.f32.mxu0 %v12206_v27  ;;  %10174 = vmatpush1.bf16.msra.mxu1 %v10173_v4  ;;  %v6455_v4 = vld [vmem:[#allocation19 + $0x23a8] sm:$0xff]  ;;  %v10193_v7 = vpack.c.bf16 %v6448_v20, %v6440_v63  ;;  %v10081_v63 = vpack.c.bf16 %v6510_v34, %v6502_v26  ;;  %v6568_v62 = vld [vmem:[#allocation19 + $0x2730] sm:$0xff]  ;;  %v6585_v26 = vld [vmem:[#allocation19 + $0x27b8] sm:$0xff] }
 0x90e   :  { %7376 = vmatprep.mubr.f32.mxu1 %v12206_v27  ;;  %10048 = vmatprep.subr.bf16.mxu0 %v10047_v6  ;;  %v6416_v27 = vld [vmem:[#allocation19 + $0x2270] sm:$0xff]  ;;  %v10065_v6 = vpack.c.bf16 %v6446_v55, %v6438_v59  ;;  %v10067_v18 = vpack.c.bf16 %v6463_v45, %v6455_v4  ;;  %v6521_v59 = vld [vmem:[#allocation19 + $0x25b8] sm:$0xff]  ;;  %v6518_v4 = vld [vmem:[#allocation19 + $0x25a0] sm:$0xff] }
 0x90f   :  { %10176 = vmatprep.subr.bf16.mxu1 %v10175_v48  ;;  %v10185_v0 = vpack.c.bf16 %v6416_v27, %v6408_v16  ;;  %v6462_v48 = vld [vmem:[#allocation19 + $0x23e0] sm:$0xff]  ;;  %v10073_v16 = vpack.c.bf16 %v6478_v30, %v6470_v19  ;;  %v6529_v55 = vld [vmem:[#allocation19 + $0x25f8] sm:$0xff]  ;;  %v6640_v51 = vld [vmem:[#allocation19 + $0x2970] sm:$0xff] }
 0x910   :  { %10050 = vmatpush1.bf16.msra.mxu0 %v10049_v13  ;;  %v6464_v13 = vld [vmem:[#allocation19 + $0x23f0] sm:$0xff]  ;;  %v10069_v3 = vpack.c.bf16 %v6462_v48, %v6454_v52  ;;  %v6526_v45 = vld [vmem:[#allocation19 + $0x25e0] sm:$0xff]  ;;  %v10211_v58 = vpack.c.bf16 %v6529_v55, %v6521_v59  ;;  %v6537_v52 = vld [vmem:[#allocation19 + $0x2638] sm:$0xff] }
 0x911   :  { %10178 = vmatpush1.bf16.msra.mxu1 %v10177_v31  ;;  %10052 = vmatprep.subr.bf16.mxu0 %v10051_v11  ;;  %v6471_v31 = vld [vmem:[#allocation19 + $0x2428] sm:$0xff]  ;;  %v6545_v48 = vld [vmem:[#allocation19 + $0x2678] sm:$0xff]  ;;  %v6584_v59 = vld [vmem:[#allocation19 + $0x27b0] sm:$0xff] }
 0x912   :  { %10180 = vmatprep.subr.bf16.mxu1 %v10179_v56  ;;  %v6479_v11 = vld [vmem:[#allocation19 + $0x2468] sm:$0xff]  ;;  %v10197_v56 = vpack.c.bf16 %v6464_v13, %v6456_v53  ;;  %v10085_v53 = vpack.c.bf16 %v6526_v45, %v6518_v4  ;;  %v10215_v17 = vpack.c.bf16 %v6545_v48, %v6537_v52  ;;  %v6553_v19 = vld [vmem:[#allocation19 + $0x26b8] sm:$0xff]  ;;  %v6600_v48 = vld [vmem:[#allocation19 + $0x2830] sm:$0xff] }
 0x913   :  { %v10071_v29 = vpack.c.bf16 %v6479_v11, %v6471_v31  ;;  %v6534_v31 = vld [vmem:[#allocation19 + $0x2620] sm:$0xff]  ;;  %v6561_v30 = vld [vmem:[#allocation19 + $0x26f8] sm:$0xff] }
 0x914   :  { %10054 = vmatpush1.bf16.msra.mxu0 %v10053_v47  ;;  %v6480_v47 = vld [vmem:[#allocation19 + $0x2470] sm:$0xff]  ;;  %v6542_v11 = vld [vmem:[#allocation19 + $0x2660] sm:$0xff]  ;;  %v10219_v35 = vpack.c.bf16 %v6561_v30, %v6553_v19  ;;  %v6593_v34 = vld [vmem:[#allocation19 + $0x27f8] sm:$0xff] }
 0x915   :  { %10182 = vmatpush1.bf16.msra.mxu1 %v10181_v9  ;;  %10056 = vmatprep.subr.bf16.mxu0 %v10055_v38  ;;  %v6487_v9 = vld [vmem:[#allocation19 + $0x24a8] sm:$0xff]  ;;  %v10227_v55 = vpack.c.bf16 %v6593_v34, %v6585_v26  ;;  %v6601_v4 = vld [vmem:[#allocation19 + $0x2838] sm:$0xff]  ;;  %v6616_v19 = vld [vmem:[#allocation19 + $0x28b0] sm:$0xff] }
 0x916   :  { %10184 = vmatprep.subr.bf16.mxu1 %v10183_v24  ;;  %v6495_v38 = vld [vmem:[#allocation19 + $0x24e8] sm:$0xff]  ;;  %v10201_v24 = vpack.c.bf16 %v6480_v47, %v6472_v54  ;;  %v10089_v54 = vpack.c.bf16 %v6542_v11, %v6534_v31  ;;  %v6609_v45 = vld [vmem:[#allocation19 + $0x2878] sm:$0xff]  ;;  %v6624_v30 = vld [vmem:[#allocation19 + $0x28f0] sm:$0xff] }
 0x917   :  { %v10075_v27 = vpack.c.bf16 %v6495_v38, %v6487_v9  ;;  %v6550_v9 = vld [vmem:[#allocation19 + $0x26a0] sm:$0xff]  ;;  %v10231_v52 = vpack.c.bf16 %v6609_v45, %v6601_v4  ;;  %v6617_v11 = vld [vmem:[#allocation19 + $0x28b8] sm:$0xff]  ;;  %v6656_v34 = vld [vmem:[#allocation19 + $0x29f0] sm:$0xff] }
 0x918   :  { %10058 = vmatpush1.bf16.msra.mxu0 %v10057_v42  ;;  %v6496_v42 = vld [vmem:[#allocation19 + $0x24f0] sm:$0xff]  ;;  %v6558_v38 = vld [vmem:[#allocation19 + $0x26e0] sm:$0xff]  ;;  %v6679_v45 = vld [vmem:[#allocation19 + $0x2aa8] sm:$0xff] }
 0x919   :  { %10186 = vmatpush1.bf16.msra.mxu1 %v10185_v0  ;;  %10060 = vmatprep.subr.bf16.mxu0 %v10059_v25  ;;  %v6503_v0 = vld [vmem:[#allocation19 + $0x2528] sm:$0xff] }
 0x91a   :  { %10188 = vmatprep.subr.bf16.mxu1 %v10187_v1  ;;  %v6511_v25 = vld [vmem:[#allocation19 + $0x2568] sm:$0xff]  ;;  %v10205_v1 = vpack.c.bf16 %v6496_v42, %v6488_v23  ;;  %v10093_v23 = vpack.c.bf16 %v6558_v38, %v6550_v9  ;;  %v6633_v38 = vld [vmem:[#allocation19 + $0x2938] sm:$0xff] }
 0x91b   :  { %v10079_v37 = vpack.c.bf16 %v6511_v25, %v6503_v0  ;;  %v6566_v0 = vld [vmem:[#allocation19 + $0x2720] sm:$0xff] }
 0x91c   :  { %10062 = vmatpush1.bf16.msra.mxu0 %v10061_v61  ;;  %v6512_v61 = vld [vmem:[#allocation19 + $0x2570] sm:$0xff]  ;;  %v6574_v25 = vld [vmem:[#allocation19 + $0x2760] sm:$0xff] }
 0x91d   :  { %10190 = vmatpush1.bf16.msra.mxu1 %v10189_v49  ;;  %10064 = vmatprep.subr.bf16.mxu0 %v10063_v60  ;;  %v6519_v49 = vld [vmem:[#allocation19 + $0x25a8] sm:$0xff] }
 0x91e   :  { %10192 = vmatprep.subr.bf16.mxu1 %v10191_v5  ;;  %v6527_v60 = vld [vmem:[#allocation19 + $0x25e8] sm:$0xff]  ;;  %v10209_v5 = vpack.c.bf16 %v6512_v61, %v6504_v39  ;;  %v10097_v39 = vpack.c.bf16 %v6574_v25, %v6566_v0  ;;  %v6657_v0 = vld [vmem:[#allocation19 + $0x29f8] sm:$0xff] }
 0x91f   :  { %v10083_v20 = vpack.c.bf16 %v6527_v60, %v6519_v49  ;;  %v6582_v49 = vld [vmem:[#allocation19 + $0x27a0] sm:$0xff] }
 0x920   :  { %10066 = vmatpush1.bf16.msra.mxu0 %v10065_v6  ;;  %v6528_v6 = vld [vmem:[#allocation19 + $0x25f0] sm:$0xff]  ;;  %v6590_v60 = vld [vmem:[#allocation19 + $0x27e0] sm:$0xff] }
 0x921   :  { %10194 = vmatpush1.bf16.msra.mxu1 %v10193_v7  ;;  %10068 = vmatprep.subr.bf16.mxu0 %v10067_v18  ;;  %v6535_v7 = vld [vmem:[#allocation19 + $0x2628] sm:$0xff] }
 0x922   :  { %10196 = vmatprep.subr.bf16.mxu1 %v10195_v14  ;;  %v6543_v18 = vld [vmem:[#allocation19 + $0x2668] sm:$0xff]  ;;  %v10213_v14 = vpack.c.bf16 %v6528_v6, %v6520_v2  ;;  %v10101_v2 = vpack.c.bf16 %v6590_v60, %v6582_v49  ;;  %v6673_v49 = vld [vmem:[#allocation19 + $0x2a78] sm:$0xff] }
 0x923   :  { %v10087_v13 = vpack.c.bf16 %v6543_v18, %v6535_v7  ;;  %v6598_v7 = vld [vmem:[#allocation19 + $0x2820] sm:$0xff] }
 0x924   :  { %10070 = vmatpush1.bf16.msra.mxu0 %v10069_v3  ;;  %v6544_v3 = vld [vmem:[#allocation19 + $0x2670] sm:$0xff]  ;;  %v6606_v18 = vld [vmem:[#allocation19 + $0x2860] sm:$0xff] }
 0x925   :  { %10198 = vmatpush1.bf16.msra.mxu1 %v10197_v56  ;;  %10072 = vmatprep.subr.bf16.mxu0 %v10071_v29  ;;  %v6551_v56 = vld [vmem:[#allocation19 + $0x26a8] sm:$0xff]  ;;  %v10105_v31 = vpack.c.bf16 %v6606_v18, %v6598_v7 }
 0x926   :  { %10200 = vmatprep.subr.bf16.mxu1 %v10199_v32  ;;  %v6559_v29 = vld [vmem:[#allocation19 + $0x26e8] sm:$0xff]  ;;  %v10217_v32 = vpack.c.bf16 %v6544_v3, %v6536_v40  ;;  %v6625_v40 = vld [vmem:[#allocation19 + $0x28f8] sm:$0xff]  ;;  %v6614_v3 = vld [vmem:[#allocation19 + $0x28a0] sm:$0xff] }
 0x927   :  { %v10091_v47 = vpack.c.bf16 %v6559_v29, %v6551_v56  ;;  %v6622_v56 = vld [vmem:[#allocation19 + $0x28e0] sm:$0xff] }
 0x928   :  { %10074 = vmatpush1.bf16.msra.mxu0 %v10073_v16  ;;  %v6560_v16 = vld [vmem:[#allocation19 + $0x26f0] sm:$0xff]  ;;  %v10109_v9 = vpack.c.bf16 %v6622_v56, %v6614_v3  ;;  %v6705_v3 = vld [vmem:[#allocation19 + $0x2b78] sm:$0xff] }
 0x929   :  { %10202 = vmatpush1.bf16.msra.mxu1 %v10201_v24  ;;  %10076 = vmatprep.subr.bf16.mxu0 %v10075_v27  ;;  %v6567_v24 = vld [vmem:[#allocation19 + $0x2728] sm:$0xff] }
 0x92a   :  { %10204 = vmatprep.subr.bf16.mxu1 %v10203_v57  ;;  %v6575_v27 = vld [vmem:[#allocation19 + $0x2768] sm:$0xff]  ;;  %v10221_v57 = vpack.c.bf16 %v6560_v16, %v6552_v36  ;;  %v6641_v36 = vld [vmem:[#allocation19 + $0x2978] sm:$0xff]  ;;  %v6630_v16 = vld [vmem:[#allocation19 + $0x2920] sm:$0xff] }
 0x92b   :  { %v10095_v42 = vpack.c.bf16 %v6575_v27, %v6567_v24  ;;  %v6638_v24 = vld [vmem:[#allocation19 + $0x2960] sm:$0xff]  ;;  %v6632_v27 = vld [vmem:[#allocation19 + $0x2930] sm:$0xff] }
 0x92c   :  { %10078 = vmatpush1.bf16.msra.mxu0 %v10077_v8  ;;  %v6576_v8 = vld [vmem:[#allocation19 + $0x2770] sm:$0xff]  ;;  %v10113_v25 = vpack.c.bf16 %v6638_v24, %v6630_v16  ;;  %v6721_v16 = vld [vmem:[#allocation19 + $0x2bf8] sm:$0xff] }
 0x92d   :  { %10206 = vmatpush1.bf16.msra.mxu1 %v10205_v1  ;;  %10080 = vmatprep.subr.bf16.mxu0 %v10079_v37  ;;  %v6583_v1 = vld [vmem:[#allocation19 + $0x27a8] sm:$0xff] }
 0x92e   :  { %10208 = vmatprep.subr.bf16.mxu1 %v10207_v46  ;;  %v6591_v37 = vld [vmem:[#allocation19 + $0x27e8] sm:$0xff]  ;;  %v10225_v46 = vpack.c.bf16 %v6576_v8, %v6568_v62  ;;  %v10241_v62 = vpack.c.bf16 %v6640_v51, %v6632_v27  ;;  %v6646_v8 = vld [vmem:[#allocation19 + $0x29a0] sm:$0xff] }
 0x92f   :  { %v10099_v61 = vpack.c.bf16 %v6591_v37, %v6583_v1  ;;  %v6654_v1 = vld [vmem:[#allocation19 + $0x29e0] sm:$0xff]  ;;  %v6648_v37 = vld [vmem:[#allocation19 + $0x29b0] sm:$0xff] }
 0x930   :  { %10082 = vmatpush1.bf16.msra.mxu0 %v10081_v63  ;;  %v6592_v63 = vld [vmem:[#allocation19 + $0x27f0] sm:$0xff]  ;;  %v10117_v60 = vpack.c.bf16 %v6654_v1, %v6646_v8  ;;  %v6710_v51 = vld [vmem:[#allocation19 + $0x2ba0] sm:$0xff] }
 0x931   :  { %10210 = vmatpush1.bf16.msra.mxu1 %v10209_v5  ;;  %10084 = vmatprep.subr.bf16.mxu0 %v10083_v20  ;;  %v6599_v5 = vld [vmem:[#allocation19 + $0x2828] sm:$0xff] }
 0x932   :  { %10212 = vmatprep.subr.bf16.mxu1 %v10211_v58  ;;  %v6607_v20 = vld [vmem:[#allocation19 + $0x2868] sm:$0xff]  ;;  %v10229_v58 = vpack.c.bf16 %v6592_v63, %v6584_v59  ;;  %v10245_v59 = vpack.c.bf16 %v6656_v34, %v6648_v37  ;;  %v6662_v63 = vld [vmem:[#allocation19 + $0x2a20] sm:$0xff] }
 0x933   :  { %v10103_v6 = vpack.c.bf16 %v6607_v20, %v6599_v5  ;;  %v6670_v5 = vld [vmem:[#allocation19 + $0x2a60] sm:$0xff]  ;;  %v6664_v20 = vld [vmem:[#allocation19 + $0x2a30] sm:$0xff] }
 0x934   :  { %10086 = vmatpush1.bf16.msra.mxu0 %v10085_v53  ;;  %v6608_v53 = vld [vmem:[#allocation19 + $0x2870] sm:$0xff]  ;;  %v10121_v7 = vpack.c.bf16 %v6670_v5, %v6662_v63  ;;  %v6734_v34 = vld [vmem:[#allocation19 + $0x2c60] sm:$0xff] }
 0x935   :  { %10214 = vmatpush1.bf16.msra.mxu1 %v10213_v14  ;;  %10088 = vmatprep.subr.bf16.mxu0 %v10087_v13  ;;  %v6615_v14 = vld [vmem:[#allocation19 + $0x28a8] sm:$0xff] }
 0x936   :  { %10216 = vmatprep.subr.bf16.mxu1 %v10215_v17  ;;  %v6623_v13 = vld [vmem:[#allocation19 + $0x28e8] sm:$0xff]  ;;  %v10233_v17 = vpack.c.bf16 %v6608_v53, %v6600_v48  ;;  %v6678_v48 = vld [vmem:[#allocation19 + $0x2aa0] sm:$0xff] }
 0x937   :  { %v10107_v29 = vpack.c.bf16 %v6623_v13, %v6615_v14  ;;  %v6686_v53 = vld [vmem:[#allocation19 + $0x2ae0] sm:$0xff]  ;;  %v6680_v14 = vld [vmem:[#allocation19 + $0x2ab0] sm:$0xff] }
 0x938   :  { %10090 = vmatpush1.bf16.msra.mxu0 %v10089_v54  ;;  %v10235_v54 = vpack.c.bf16 %v6625_v40, %v6617_v11  ;;  %v6695_v11 = vld [vmem:[#allocation19 + $0x2b28] sm:$0xff]  ;;  %v10125_v56 = vpack.c.bf16 %v6686_v53, %v6678_v48 }
 0x939   :  { %10218 = vmatpush1.bf16.msra.mxu1 %v10217_v32  ;;  %10092 = vmatprep.subr.bf16.mxu0 %v10091_v47  ;;  %v6631_v32 = vld [vmem:[#allocation19 + $0x2928] sm:$0xff] }
 0x93a   :  { %10220 = vmatprep.subr.bf16.mxu1 %v10219_v35  ;;  %v6639_v47 = vld [vmem:[#allocation19 + $0x2968] sm:$0xff]  ;;  %v10237_v35 = vpack.c.bf16 %v6624_v30, %v6616_v19  ;;  %v6694_v30 = vld [vmem:[#allocation19 + $0x2b20] sm:$0xff] }
 0x93b   :  { %v10111_v33 = vpack.c.bf16 %v6639_v47, %v6631_v32  ;;  %v6703_v40 = vld [vmem:[#allocation19 + $0x2b68] sm:$0xff]  ;;  %v6696_v32 = vld [vmem:[#allocation19 + $0x2b30] sm:$0xff] }
 0x93c   :  { %10094 = vmatpush1.bf16.msra.mxu0 %v10093_v23  ;;  %v6647_v23 = vld [vmem:[#allocation19 + $0x29a8] sm:$0xff]  ;;  %v10127_v19 = vpack.c.bf16 %v6703_v40, %v6695_v11  ;;  %v6760_v11 = vld [vmem:[#allocation19 + $0x2d30] sm:$0xff] }
 0x93d   :  { %10222 = vmatpush1.bf16.msra.mxu1 %v10221_v57  ;;  %10096 = vmatprep.subr.bf16.mxu0 %v10095_v42  ;;  %v6655_v57 = vld [vmem:[#allocation19 + $0x29e8] sm:$0xff]  ;;  %v6649_v42 = vld [vmem:[#allocation19 + $0x29b8] sm:$0xff] }
 0x93e   :  { %10224 = vmatprep.subr.bf16.mxu1 %v10223_v50  ;;  %v10115_v50 = vpack.c.bf16 %v6655_v57, %v6647_v23  ;;  %v10243_v26 = vpack.c.bf16 %v6657_v0, %v6649_v42  ;;  %v6718_v23 = vld [vmem:[#allocation19 + $0x2be0] sm:$0xff]  ;;  %v6712_v57 = vld [vmem:[#allocation19 + $0x2bb0] sm:$0xff]  ;;  %v6727_v0 = vld [vmem:[#allocation19 + $0x2c28] sm:$0xff] }
 0x93f   :  { %v6720_v42 = vld [vmem:[#allocation19 + $0x2bf0] sm:$0xff]  ;;  %v10133_v8 = vpack.c.bf16 %v6718_v23, %v6710_v51 }
 0x940   :  { %10098 = vmatpush1.bf16.msra.mxu0 %v10097_v39  ;;  %v6663_v39 = vld [vmem:[#allocation19 + $0x2a28] sm:$0xff]  ;;  %v10261_v1 = vpack.c.bf16 %v6720_v42, %v6712_v57  ;;  %v6798_v42 = vld [vmem:[#allocation19 + $0x2e60] sm:$0xff] }
 0x941   :  { %10226 = vmatpush1.bf16.msra.mxu1 %v10225_v46  ;;  %10100 = vmatprep.subr.bf16.mxu0 %v10099_v61  ;;  %v6671_v46 = vld [vmem:[#allocation19 + $0x2a68] sm:$0xff]  ;;  %v6665_v61 = vld [vmem:[#allocation19 + $0x2a38] sm:$0xff] }
 0x942   :  { %10228 = vmatprep.subr.bf16.mxu1 %v10227_v55  ;;  %v10119_v55 = vpack.c.bf16 %v6671_v46, %v6663_v39  ;;  %v10247_v4 = vpack.c.bf16 %v6673_v49, %v6665_v61  ;;  %v6728_v39 = vld [vmem:[#allocation19 + $0x2c30] sm:$0xff]  ;;  %v6743_v49 = vld [vmem:[#allocation19 + $0x2ca8] sm:$0xff] }
 0x943   :  { %v6736_v61 = vld [vmem:[#allocation19 + $0x2c70] sm:$0xff] }
 0x944   :  { %10102 = vmatpush1.bf16.msra.mxu0 %v10101_v2  ;;  %v6687_v2 = vld [vmem:[#allocation19 + $0x2ae8] sm:$0xff]  ;;  %v10265_v5 = vpack.c.bf16 %v6736_v61, %v6728_v39  ;;  %v6814_v61 = vld [vmem:[#allocation19 + $0x2ee0] sm:$0xff] }
 0x945   :  { %10230 = vmatpush1.bf16.msra.mxu1 %v10229_v58  ;;  %10104 = vmatprep.subr.bf16.mxu0 %v10103_v6  ;;  %v6681_v58 = vld [vmem:[#allocation19 + $0x2ab8] sm:$0xff] }
 0x946   :  { %10232 = vmatprep.subr.bf16.mxu1 %v10231_v52  ;;  %v6689_v6 = vld [vmem:[#allocation19 + $0x2af8] sm:$0xff]  ;;  %v10123_v52 = vpack.c.bf16 %v6687_v2, %v6679_v45  ;;  %v6744_v45 = vld [vmem:[#allocation19 + $0x2cb0] sm:$0xff] }
 0x947   :  { %7223 = vmatmul.mubr.f32.vlgmr.msra.gmra.mrb[44].mxu0 %v12202_v41  ;;  %v10251_v13 = vpack.c.bf16 %v6689_v6, %v6681_v58  ;;  %v6752_v58 = vld [vmem:[#allocation19 + $0x2cf0] sm:$0xff]  ;;  %v6759_v6 = vld [vmem:[#allocation19 + $0x2d28] sm:$0xff] }
 0x948   :  { %7377 = vmatmul.mubr.f32.vlgmr.msra.gmra.mrb[44].mxu1 %v12202_v41  ;;  %10106 = vmatpush1.bf16.msra.mxu0 %v10105_v31  ;;  %v10239_v41 = vpack.c.bf16 %v6641_v36, %v6633_v38  ;;  %v6688_v31 = vld [vmem:[#allocation19 + $0x2af0] sm:$0xff]  ;;  %v6711_v38 = vld [vmem:[#allocation19 + $0x2ba8] sm:$0xff]  ;;  %v10269_v53 = vpack.c.bf16 %v6752_v58, %v6744_v45  ;;  %v6830_v58 = vld [vmem:[#allocation19 + $0x2f60] sm:$0xff] }
 0x949   :  { %10234 = vmatpush1.bf16.msra.mxu1 %v10233_v17  ;;  %7228 = vmatprep.mubr.f32.mxu0 %v10889_v10  ;;  %v6697_v17 = vld [vmem:[#allocation19 + $0x2b38] sm:$0xff]  ;;  %v6719_v36 = vld [vmem:[#allocation19 + $0x2be8] sm:$0xff] }
 0x94a   :  { %7382 = vmatprep.mubr.f32.mxu1 %v10889_v10  ;;  %10108 = vmatprep.subr.bf16.mxu0 %v10107_v29  ;;  %v10253_v29 = vpack.c.bf16 %v6688_v31, %v6680_v14  ;;  %v10255_v47 = vpack.c.bf16 %v6705_v3, %v6697_v17  ;;  %v6766_v31 = vld [vmem:[#allocation19 + $0x2d60] sm:$0xff]  ;;  %v6768_v17 = vld [vmem:[#allocation19 + $0x2d70] sm:$0xff]  ;;  %v6775_v3 = vld [vmem:[#allocation19 + $0x2da8] sm:$0xff] }
 0x94b   :  { %7229 = vmatmul.mubr.f32.gmra.mrb[46].mxu0 %v10889_v10  ;;  %10236 = vmatprep.subr.bf16.mxu1 %v10235_v54  ;;  %v6702_v54 = vld [vmem:[#allocation19 + $0x2b60] sm:$0xff] }
 0x94c   :  { %7383 = vmatmul.mubr.f32.gmra.mrb[46].mxu1 %v10889_v10  ;;  %10110 = vmatpush1.bf16.msra.mxu0 %v10109_v9  ;;  %v6704_v9 = vld [vmem:[#allocation19 + $0x2b70] sm:$0xff]  ;;  %v10129_v24 = vpack.c.bf16 %v6702_v54, %v6694_v30  ;;  %v10273_v54 = vpack.c.bf16 %v6768_v17, %v6760_v11  ;;  %v6846_v17 = vld [vmem:[#allocation19 + $0x2fe0] sm:$0xff] }
 0x94d   :  { %7299 = vmatprep.mubr.f32.mxu0 %v12208_v12  ;;  %10238 = vmatpush1.bf16.msra.mxu1 %v10237_v35  ;;  %v6713_v35 = vld [vmem:[#allocation19 + $0x2bb8] sm:$0xff]  ;;  %v10257_v27 = vpack.c.bf16 %v6704_v9, %v6696_v32  ;;  %v6782_v9 = vld [vmem:[#allocation19 + $0x2de0] sm:$0xff] }
 0x94e   :  { %7453 = vmatprep.mubr.f32.mxu1 %v12208_v12  ;;  %10112 = vmatprep.subr.bf16.mxu0 %v10111_v33  ;;  %v6672_v12 = vld [vmem:[#allocation19 + $0x2a70] sm:$0xff]  ;;  %v10131_v33 = vpack.c.bf16 %v6719_v36, %v6711_v38 }
 0x94f   :  { %10240 = vmatprep.subr.bf16.mxu1 %v10239_v41  ;;  %v10249_v18 = vpack.c.bf16 %v6672_v12, %v6664_v20  ;;  %v10259_v41 = vpack.c.bf16 %v6721_v16, %v6713_v35  ;;  %v6750_v12 = vld [vmem:[#allocation19 + $0x2ce0] sm:$0xff]  ;;  %v6776_v38 = vld [vmem:[#allocation19 + $0x2db0] sm:$0xff]  ;;  %v6791_v16 = vld [vmem:[#allocation19 + $0x2e28] sm:$0xff] }
 0x950   :  { %10114 = vmatpush1.bf16.msra.mxu0 %v10113_v25  ;;  %v6735_v25 = vld [vmem:[#allocation19 + $0x2c68] sm:$0xff]  ;;  %v6784_v35 = vld [vmem:[#allocation19 + $0x2df0] sm:$0xff] }
 0x951   :  { %10242 = vmatpush1.bf16.msra.mxu1 %v10241_v62  ;;  %10116 = vmatprep.subr.bf16.mxu0 %v10115_v50  ;;  %v6729_v62 = vld [vmem:[#allocation19 + $0x2c38] sm:$0xff]  ;;  %v10135_v37 = vpack.c.bf16 %v6735_v25, %v6727_v0  ;;  %v10277_v23 = vpack.c.bf16 %v6784_v35, %v6776_v38  ;;  %v6792_v0 = vld [vmem:[#allocation19 + $0x2e30] sm:$0xff] }
 0x952   :  { %10244 = vmatprep.subr.bf16.mxu1 %v10243_v26  ;;  %v6737_v50 = vld [vmem:[#allocation19 + $0x2c78] sm:$0xff]  ;;  %v6726_v26 = vld [vmem:[#allocation19 + $0x2c20] sm:$0xff] }
 0x953   :  { %v10263_v46 = vpack.c.bf16 %v6737_v50, %v6729_v62  ;;  %v10137_v63 = vpack.c.bf16 %v6734_v34, %v6726_v26  ;;  %v6800_v62 = vld [vmem:[#allocation19 + $0x2e70] sm:$0xff]  ;;  %v6807_v50 = vld [vmem:[#allocation19 + $0x2ea8] sm:$0xff] }
 0x954   :  { %10118 = vmatpush1.bf16.msra.mxu0 %v10117_v60  ;;  %v6751_v60 = vld [vmem:[#allocation19 + $0x2ce8] sm:$0xff]  ;;  %v10281_v34 = vpack.c.bf16 %v6800_v62, %v6792_v0 }
 0x955   :  { %10246 = vmatpush1.bf16.msra.mxu1 %v10245_v59  ;;  %10120 = vmatprep.subr.bf16.mxu0 %v10119_v55  ;;  %v6745_v59 = vld [vmem:[#allocation19 + $0x2cb8] sm:$0xff]  ;;  %v10139_v20 = vpack.c.bf16 %v6751_v60, %v6743_v49  ;;  %v6808_v49 = vld [vmem:[#allocation19 + $0x2eb0] sm:$0xff] }
 0x956   :  { %10248 = vmatprep.subr.bf16.mxu1 %v10247_v4  ;;  %v6753_v55 = vld [vmem:[#allocation19 + $0x2cf8] sm:$0xff]  ;;  %v6742_v4 = vld [vmem:[#allocation19 + $0x2ca0] sm:$0xff] }
 0x957   :  { %v10267_v2 = vpack.c.bf16 %v6753_v55, %v6745_v59  ;;  %v10141_v48 = vpack.c.bf16 %v6750_v12, %v6742_v4  ;;  %v6816_v59 = vld [vmem:[#allocation19 + $0x2ef0] sm:$0xff]  ;;  %v6823_v55 = vld [vmem:[#allocation19 + $0x2f28] sm:$0xff] }
 0x958   :  { %10122 = vmatpush1.bf16.msra.mxu0 %v10121_v7  ;;  %v6767_v7 = vld [vmem:[#allocation19 + $0x2d68] sm:$0xff]  ;;  %v10285_v12 = vpack.c.bf16 %v6816_v59, %v6808_v49  ;;  %v7510_v49 = vsub.s32 6, %v12058_v43  ;;  %v7514_v59 = vsub.s32 7, %v12058_v43 }
 0x959   :  { %10250 = vmatpush1.bf16.msra.mxu1 %v10249_v18  ;;  %10124 = vmatprep.subr.bf16.mxu0 %v10123_v52  ;;  %v6761_v18 = vld [vmem:[#allocation19 + $0x2d38] sm:$0xff]  ;;  %v10143_v14 = vpack.c.bf16 %v6767_v7, %v6759_v6  ;;  %v6824_v6 = vld [vmem:[#allocation19 + $0x2f30] sm:$0xff] }
 0x95a   :  { %10252 = vmatprep.subr.bf16.mxu1 %v10251_v13  ;;  %v6769_v52 = vld [vmem:[#allocation19 + $0x2d78] sm:$0xff]  ;;  %v6758_v13 = vld [vmem:[#allocation19 + $0x2d20] sm:$0xff] }
 0x95b   :  { %v10271_v40 = vpack.c.bf16 %v6769_v52, %v6761_v18  ;;  %v10145_v30 = vpack.c.bf16 %v6766_v31, %v6758_v13  ;;  %v6832_v18 = vld [vmem:[#allocation19 + $0x2f70] sm:$0xff]  ;;  %v6839_v52 = vld [vmem:[#allocation19 + $0x2fa8] sm:$0xff] }
 0x95c   :  { %10126 = vmatpush1.bf16.msra.mxu0 %v10125_v56  ;;  %v6783_v56 = vld [vmem:[#allocation19 + $0x2de8] sm:$0xff]  ;;  %v10289_v31 = vpack.c.bf16 %v6832_v18, %v6824_v6 }
 0x95d   :  { %10254 = vmatpush1.bf16.msra.mxu1 %v10253_v29  ;;  %10128 = vmatprep.subr.bf16.mxu0 %v10127_v19  ;;  %v6777_v29 = vld [vmem:[#allocation19 + $0x2db8] sm:$0xff]  ;;  %v10147_v32 = vpack.c.bf16 %v6783_v56, %v6775_v3  ;;  %v6840_v56 = vld [vmem:[#allocation19 + $0x2fb0] sm:$0xff] }
 0x95e   :  { %10256 = vmatprep.subr.bf16.mxu1 %v10255_v47  ;;  %v6785_v19 = vld [vmem:[#allocation19 + $0x2df8] sm:$0xff]  ;;  %v6774_v47 = vld [vmem:[#allocation19 + $0x2da0] sm:$0xff] }
 0x95f   :  { %v10275_v36 = vpack.c.bf16 %v6785_v19, %v6777_v29  ;;  %v10149_v51 = vpack.c.bf16 %v6782_v9, %v6774_v47  ;;  %v6848_v29 = vld [vmem:[#allocation19 + $0x2ff0] sm:$0xff] }
 0x960   :  { %10130 = vmatpush1.bf16.msra.mxu0 %v10129_v24  ;;  %v6799_v24 = vld [vmem:[#allocation19 + $0x2e68] sm:$0xff] }
 0x961   :  { %10258 = vmatpush1.bf16.msra.mxu1 %v10257_v27  ;;  %10132 = vmatprep.subr.bf16.mxu0 %v10131_v33  ;;  %v6793_v27 = vld [vmem:[#allocation19 + $0x2e38] sm:$0xff]  ;;  %v10151_v57 = vpack.c.bf16 %v6799_v24, %v6791_v16 }
 0x962   :  { %10260 = vmatprep.subr.bf16.mxu1 %v10259_v41  ;;  %v6801_v33 = vld [vmem:[#allocation19 + $0x2e78] sm:$0xff]  ;;  %v6790_v41 = vld [vmem:[#allocation19 + $0x2e20] sm:$0xff] }
 0x963   :  { %v10279_v25 = vpack.c.bf16 %v6801_v33, %v6793_v27  ;;  %v10153_v26 = vpack.c.bf16 %v6798_v42, %v6790_v41 }
 0x964   :  { %10134 = vmatpush1.bf16.msra.mxu0 %v10133_v8  ;;  %v6815_v8 = vld [vmem:[#allocation19 + $0x2ee8] sm:$0xff] }
 0x965   :  { %10262 = vmatpush1.bf16.msra.mxu1 %v10261_v1  ;;  %10136 = vmatprep.subr.bf16.mxu0 %v10135_v37  ;;  %v6809_v1 = vld [vmem:[#allocation19 + $0x2eb8] sm:$0xff]  ;;  %v10155_v39 = vpack.c.bf16 %v6815_v8, %v6807_v50 }
 0x966   :  { %10264 = vmatprep.subr.bf16.mxu1 %v10263_v46  ;;  %v6817_v37 = vld [vmem:[#allocation19 + $0x2ef8] sm:$0xff]  ;;  %v6806_v46 = vld [vmem:[#allocation19 + $0x2ea0] sm:$0xff] }
 0x967   :  { %v10283_v60 = vpack.c.bf16 %v6817_v37, %v6809_v1  ;;  %v10157_v4 = vpack.c.bf16 %v6814_v61, %v6806_v46  ;;  %v7502_v61 = vsub.s32 4, %v12058_v43 }
 0x968   :  { %10138 = vmatpush1.bf16.msra.mxu0 %v10137_v63  ;;  %v6831_v63 = vld [vmem:[#allocation19 + $0x2f68] sm:$0xff] }
 0x969   :  { %10266 = vmatpush1.bf16.msra.mxu1 %v10265_v5  ;;  %10140 = vmatprep.subr.bf16.mxu0 %v10139_v20  ;;  %v6825_v5 = vld [vmem:[#allocation19 + $0x2f38] sm:$0xff]  ;;  %v10159_v45 = vpack.c.bf16 %v6831_v63, %v6823_v55 }
 0x96a   :  { %10268 = vmatprep.subr.bf16.mxu1 %v10267_v2  ;;  %v6833_v20 = vld [vmem:[#allocation19 + $0x2f78] sm:$0xff]  ;;  %v6822_v2 = vld [vmem:[#allocation19 + $0x2f20] sm:$0xff] }
 0x96b   :  { %v10287_v7 = vpack.c.bf16 %v6833_v20, %v6825_v5  ;;  %v10161_v13 = vpack.c.bf16 %v6830_v58, %v6822_v2 }
 0x96c   :  { %10142 = vmatpush1.bf16.msra.mxu0 %v10141_v48  ;;  %v6847_v48 = vld [vmem:[#allocation19 + $0x2fe8] sm:$0xff] }
 0x96d   :  { %10270 = vmatpush1.bf16.msra.mxu1 %v10269_v53  ;;  %10144 = vmatprep.subr.bf16.mxu0 %v10143_v14  ;;  %v6841_v53 = vld [vmem:[#allocation19 + $0x2fb8] sm:$0xff]  ;;  %v10163_v11 = vpack.c.bf16 %v6847_v48, %v6839_v52 }
 0x96e   :  { %10272 = vmatprep.subr.bf16.mxu1 %v10271_v40  ;;  %v6849_v14 = vld [vmem:[#allocation19 + $0x2ff8] sm:$0xff]  ;;  %v6838_v40 = vld [vmem:[#allocation19 + $0x2fa0] sm:$0xff] }
 0x96f   :  { %v10291_v3 = vpack.c.bf16 %v6849_v14, %v6841_v53  ;;  %v10165_v19 = vpack.c.bf16 %v6846_v17, %v6838_v40 }
 0x970   :  { %10146 = vmatpush1.bf16.msra.mxu0 %v10145_v30  ;;  %v10293_v30 = vpack.c.bf16 %v6848_v29, %v6840_v56 }
 0x971   :  { %10274 = vmatpush1.bf16.msra.mxu1 %v10273_v54  ;;  %10148 = vmatprep.subr.bf16.mxu0 %v10147_v32  ;;  %v7482_v54 = vld [vmem:[#allocation20] sm:$0xff] }
 0x972   :  { %10276 = vmatprep.subr.bf16.mxu1 %v10275_v36  ;;  %v7487_v32 = vrot.slane %v7482_v54, %v12061_v15  ;;  %v7495_v9 = vrot.slane %v7482_v54, %v4030_v28  ;;  %v7491_v38 = vrot.slane %v7482_v54, %v12064_v44  ;;  %v7503_v55 = vrot.slane %v7482_v54, %v7502_v61 }
 0x973   :  { %v7511_v5 = vrot.slane %v7482_v54, %v7510_v49 }
 0x974   :  { %10150 = vmatpush1.bf16.msra.mxu0 %v10149_v51 }
 0x975   :  { %10278 = vmatpush1.bf16.msra.mxu1 %v10277_v23  ;;  %10152 = vmatprep.subr.bf16.mxu0 %v10151_v57 }
 0x976   :  { %10280 = vmatprep.subr.bf16.mxu1 %v10279_v25 }
 0x978   :  { %10154 = vmatpush1.bf16.msra.mxu0 %v10153_v26 }
 0x979   :  { %10282 = vmatpush1.bf16.msra.mxu1 %v10281_v34  ;;  %10156 = vmatprep.subr.bf16.mxu0 %v10155_v39 }
 0x97a   :  { %10284 = vmatprep.subr.bf16.mxu1 %v10283_v60  ;;  %v7506_v60 = vsub.s32 5, %v12058_v43 }
 0x97c   :  { %10158 = vmatpush1.bf16.msra.mxu0 %v10157_v4  ;;  %v7507_v20 = vrot.slane %v7482_v54, %v7506_v60 }
 0x97d   :  { %10286 = vmatpush1.bf16.msra.mxu1 %v10285_v12  ;;  %10160 = vmatprep.subr.bf16.mxu0 %v10159_v45  ;;  %v7515_v45 = vrot.slane %v7482_v54, %v7514_v59 }
 0x97e   :  { %10288 = vmatprep.subr.bf16.mxu1 %v10287_v7 }
 0x980   :  { %10162 = vmatpush1.bf16.msra.mxu0 %v10161_v13 }
 0x981   :  { %10290 = vmatpush1.bf16.msra.mxu1 %v10289_v31  ;;  %10164 = vmatprep.subr.bf16.mxu0 %v10163_v11 }
 0x982   :  { %10292 = vmatprep.subr.bf16.mxu1 %v10291_v3 }
 0x984   :  { %10166 = vmatpush1.bf16.msra.mxu0 %v10165_v19 }
 0x985   :  { %10294 = vmatpush1.bf16.msra.mxu1 %v10293_v30 }
 0x987   :  { %7300 = vmatmul.mubr.f32.vlgmr.msra.gmra.mrb[44].mxu0 %v12204_v22 }
 0x988   :  { %7454 = vmatmul.mubr.f32.vlgmr.msra.gmra.mrb[44].mxu1 %v12204_v22  ;;  %7305 = vmatprep.mubr.f32.mxu0 %v10889_v10  ;;  %v7499_v22 = vrot.slane %v7482_v54, %v4034_v21 }
 0x989   :  { %7459 = vmatprep.mubr.f32.mxu1 %v10889_v10 }
 0x98b   :  { %7306 = vmatmul.mubr.f32.gmra.mrb[46].mxu0 %v10889_v10 }
 0x98c   :  { %7460 = vmatmul.mubr.f32.gmra.mrb[46].mxu1 %v10889_v10 }
 0x9da   :  { %v6993_v47 = vpop.f32.mrb[40].mxu0 }
 0x9db   :  { %v7147_v36 = vpop.f32.mrb[40].mxu1  ;;  %v6995_v35 = vpop.f32.mrb[41].mxu0  ;;  %v7524_v24 = vadd.f32 %v7487_v32, %v6993_v47 }
 0x9dc   :  { %v7149_v16 = vpop.f32.mrb[41].mxu1  ;;  %v7526_v27 = vadd.f32 %v7495_v9, %v7147_v36  ;;  %v7525_v33 = vadd.f32 %v7491_v38, %v6995_v35 }
 0x9dd   :  { %v7527_v10 = vadd.f32 %v7499_v22, %v7149_v16  ;;  %v7540_v28 = vmax.f32 %v7524_v24, 0.0 }
 0x9de   :  { %v6999_v51 = vpop.f32.mrb[42].mxu0  ;;  %v7542_v62 = vmax.f32 %v7526_v27, 0.0  ;;  %v7541_v50 = vmax.f32 %v7525_v33, 0.0 }
 0x9df   :  { %v7532_v23 = vadd.f32 %v7487_v32, %v6999_v51  ;;  %v7153_v57 = vpop.f32.mrb[42].mxu1  ;;  %v7001_v15 = vpop.f32.mrb[43].mxu0  ;;  %v7543_v21 = vmax.f32 %v7527_v10, 0.0 }
 0x9e0   :  { %v7534_v41 = vadd.f32 %v7495_v9, %v7153_v57  ;;  %v7533_v42 = vadd.f32 %v7491_v38, %v7001_v15  ;;  %v7155_v0 = vpop.f32.mrb[43].mxu1 }
 0x9e1   :  { %v7548_v25 = vmax.f32 %v7532_v23, 0.0  ;;  %v7535_v44 = vadd.f32 %v7499_v22, %v7155_v0 }
 0x9e2   :  { %v7550_v8 = vmax.f32 %v7534_v41, 0.0  ;;  %v7549_v1 = vmax.f32 %v7533_v42, 0.0 }
 0x9e3   :  { %v7556_v37 = vmax.f32 %v7540_v28, %v7548_v25  ;;  %v7551_v26 = vmax.f32 %v7535_v44, 0.0 }
 0x9e4   :  { %v7558_v34 = vmax.f32 %v7542_v62, %v7550_v8  ;;  %v7557_v39 = vmax.f32 %v7541_v50, %v7549_v1 }
 0x9e5   :  { %7564 = vst [vmem:[#allocation22] sm:$0xff] %v7556_v37  ;;  %v7559_v46 = vmax.f32 %v7543_v21, %v7551_v26 }
 0x9e6   :  { %7566 = vst [vmem:[#allocation22 + $0x10] sm:$0xff] %v7558_v34  ;;  %7565 = vst [vmem:[#allocation22 + $0x8] sm:$0xff] %v7557_v39 }
 0x9e7   :  { %7567 = vst [vmem:[#allocation22 + $0x18] sm:$0xff] %v7559_v46 }
 0xa5a   :  { %v7301_v63 = vpop.f32.mrb[44].mxu0 }
 0xa5b   :  { %v7455_v4 = vpop.f32.mrb[44].mxu1  ;;  %v7303_v12 = vpop.f32.mrb[45].mxu0  ;;  %v7528_v58 = vadd.f32 %v7503_v55, %v7301_v63 }
 0xa5c   :  { %v7457_v2 = vpop.f32.mrb[45].mxu1  ;;  %v7530_v6 = vadd.f32 %v7511_v5, %v7455_v4  ;;  %v7529_v7 = vadd.f32 %v7507_v20, %v7303_v12 }
 0xa5d   :  { %v7531_v52 = vadd.f32 %v7515_v45, %v7457_v2  ;;  %v7544_v43 = vmax.f32 %v7528_v58, 0.0 }
 0xa5e   :  { %v7307_v18 = vpop.f32.mrb[46].mxu0  ;;  %v7546_v3 = vmax.f32 %v7530_v6, 0.0  ;;  %v7545_v56 = vmax.f32 %v7529_v7, 0.0 }
 0xa5f   :  { %v7536_v48 = vadd.f32 %v7503_v55, %v7307_v18  ;;  %v7461_v53 = vpop.f32.mrb[46].mxu1  ;;  %v7309_v14 = vpop.f32.mrb[47].mxu0  ;;  %v7547_v30 = vmax.f32 %v7531_v52, 0.0 }
 0xa60   :  { %v7538_v13 = vadd.f32 %v7511_v5, %v7461_v53  ;;  %v7537_v31 = vadd.f32 %v7507_v20, %v7309_v14  ;;  %v7463_v11 = vpop.f32.mrb[47].mxu1 }
 0xa61   :  { %v7552_v40 = vmax.f32 %v7536_v48, 0.0  ;;  %v7539_v17 = vadd.f32 %v7515_v45, %v7463_v11 }
 0xa62   :  { %v7554_v29 = vmax.f32 %v7538_v13, 0.0  ;;  %v7553_v19 = vmax.f32 %v7537_v31, 0.0 }
 0xa63   :  { %v7560_v54 = vmax.f32 %v7544_v43, %v7552_v40  ;;  %v7555_v32 = vmax.f32 %v7539_v17, 0.0 }
 0xa64   :  { %v7562_v47 = vmax.f32 %v7546_v3, %v7554_v29  ;;  %v7561_v9 = vmax.f32 %v7545_v56, %v7553_v19 }
 0xa65   :  { %7568 = vst [vmem:[#allocation22 + $0x20] sm:$0xff] %v7560_v54  ;;  %v7563_v38 = vmax.f32 %v7547_v30, %v7555_v32 }
 0xa66   :  { %7570 = vst [vmem:[#allocation22 + $0x30] sm:$0xff] %v7562_v47  ;;  %7569 = vst [vmem:[#allocation22 + $0x28] sm:$0xff] %v7561_v9 }
 0xa67   :  { %7571 = vst [vmem:[#allocation22 + $0x38] sm:$0xff] %v7563_v38 }
 0xa68   :  { %10840 = shalt.err (!%p10837_p2)
}
 0xa69   :  { %s10841_s6 = scalar_lea.hbm %s12337_s13, 1024 }
 0xa6a   :  { %p10842_p3 = scmp.ne.s32.totalorder %s12337_s13, %s10841_s6  ;;  %p10845_p4 = scmp.lt.u32.totalorder %s10841_s6, %s12337_s13 }
 0xa6c   :  { %p10847_p5 = pnand %p10845_p4, %p10842_p3 }
 0xa6e   :  { %10850 = shalt.err (!%p10847_p5)
}
 0xa6f   :  { %7581 = dma.vmem_to_hbm [thread:$0]  %s7579_s5, 1024, %s12337_s13, [#allocation4]  }
 0xa70   :  { %10865 = dma.done.wait [#allocation4], 1024  }
 0xa71   :  { %10866 = vsyncadd [#allocation4], 4294966272 }
 0xa72   :  { %7585 = vsyncpa [#allocation3], 1 }
 0xa73   :  { %7586 = vsyncpa [#allocation6], 1 }
 0xa74   :  { %7587 = vsyncpa [#allocation9], 1 }
 0xa75   :  { %7588 = vsyncpa [#allocation12], 1 }
 0xa76   :  { %7589 = vsyncpa [#allocation15], 1 }
 0xa77   :  { %7590 = vsyncpa [#allocation18], 1 }
 0xa78   :  { %7591 = vsyncpa [#allocation21], 1 }
 0xa79   :  { %7592 = vsyncpa [#allocation4], 1 }

</bundles_post_ra>
